<compile_context>
chip_gen: v7x
topology: tpu7x:2x2x1
jax: 0.10.0
libtpu: 0.0.40
codegen_flags: <defaults>
</compile_context>

<pallas_src>
import functools
import math

import jax
import jax.numpy as jnp
from jax.experimental import pallas as pl
from jax.experimental.pallas import tpu as pltpu


NEG_BIG = 1e10  # matches reference masked_fill(..., -1e10)


def _round_up(n, m):
    return ((n + m - 1) // m) * m


# ------------------------------ in-kernel helpers ----------------------------

def _layer_norm(x, g, b, eps):
    mean = jnp.mean(x, axis=-1, keepdims=True)
    var = jnp.mean(jnp.square(x - mean), axis=-1, keepdims=True)
    return (x - mean) * jax.lax.rsqrt(var + eps) * g + b


def _linear(x, w_ref, b_ref):
    # bf16 MXU operands, f32 accumulation + f32 bias.
    return jnp.dot(x.astype(jnp.bfloat16), w_ref[...],
                   preferred_element_type=jnp.float32) + b_ref[...]


def _heads_attention(q, k, v, bias, H, d, scale):
    """Batched multi-head attention for one batch element.

    q: (Tq, H*d) f32, k/v: (Tk, H*d) f32,
    bias: additive mask broadcastable to (Tq, Tk)  (either (1,Tk) or (Tq,Tk)).
    Returns ctx (Tq, H*d) f32 and attention probs p (H, Tq, Tk) f32.
    """
    Tq = q.shape[0]
    Tk = k.shape[0]
    qh = pltpu.einshape("qhd->hqd", q.reshape(Tq, H, d))
    kh = pltpu.einshape("khd->hkd", k.reshape(Tk, H, d))
    vh = pltpu.einshape("khd->hkd", v.reshape(Tk, H, d))

    s = jnp.einsum("hqd,hkd->hqk", qh.astype(jnp.bfloat16),
                   kh.astype(jnp.bfloat16),
                   preferred_element_type=jnp.float32) * scale
    s = s + bias[None, :, :]
    s = s - jnp.max(s, axis=-1, keepdims=True)
    e = jnp.exp(s)
    p = e / jnp.sum(e, axis=-1, keepdims=True)  # exact softmax (parity w/ torch)

    ctx = jnp.einsum("hqk,hkd->hqd", p.astype(jnp.bfloat16),
                     vh.astype(jnp.bfloat16),
                     preferred_element_type=jnp.float32)
    ctx = pltpu.einshape("hqd->qhd", ctx).reshape(Tq, H * d)
    return ctx, p


# ------------------------------ fused encoder kernel -------------------------

def _encoder_kernel(x_ref, keep_ref, wqkv_ref, bqkv_ref, wo_ref, bo_ref,
                    g1_ref, be1_ref, w1_ref, bb1_ref, w2_ref, bb2_ref,
                    g2_ref, be2_ref, y_ref, *, H, d, scale, eps):
    S, hid = x_ref.shape
    x = x_ref[...]

    # fused QKV projection + key-pad bias built in-kernel from compact mask
    qkv = _linear(x, wqkv_ref, bqkv_ref)
    bias = (keep_ref[...] - 1.0) * NEG_BIG            # (1, S): 0 keep / -1e10 pad
    ctx, _ = _heads_attention(qkv[:, :hid], qkv[:, hid:2 * hid],
                              qkv[:, 2 * hid:], bias, H, d, scale)
    x = _layer_norm(x + _linear(ctx, wo_ref, bo_ref),
                    g1_ref[...], be1_ref[...], eps)

    # fused position-wise FFN + residual + LN
    h = jnp.maximum(_linear(x, w1_ref, bb1_ref), 0.0)
    y_ref[...] = _layer_norm(x + _linear(h, w2_ref, bb2_ref),
                             g2_ref[...], be2_ref[...], eps)


# ------------------------------ fused decoder kernel -------------------------

def _decoder_kernel(x_ref, enc_ref, tkeep_ref, skeep_ref,
                    wqkv_ref, bqkv_ref, wo1_ref, bo1_ref, g1_ref, be1_ref,
                    wq_ref, bq_ref, wkv_ref, bkv_ref, wo2_ref, bo2_ref,
                    g2_ref, be2_ref,
                    w1_ref, bb1_ref, w2_ref, bb2_ref, g3_ref, be3_ref,
                    wout_ref, bout_ref,
                    logits_ref, attn_ref, *, H, d, scale, eps):
    T, hid = x_ref.shape
    S = enc_ref.shape[0]
    x = x_ref[...]

    # -- masked (causal + trg key-pad) self-attention, fused QKV projection --
    qkv = _linear(x, wqkv_ref, bqkv_ref)
    row = jax.lax.broadcasted_iota(jnp.int32, (T, T), 0)
    col = jax.lax.broadcasted_iota(jnp.int32, (T, T), 1)
    causal = (col <= row).astype(jnp.float32)
    keep = causal * tkeep_ref[...]                    # (T,T) * (1,T) -> (T,T)
    bias_self = (keep - 1.0) * NEG_BIG
    ctx, _ = _heads_attention(qkv[:, :hid], qkv[:, hid:2 * hid],
                              qkv[:, 2 * hid:], bias_self, H, d, scale)
    x = _layer_norm(x + _linear(ctx, wo1_ref, bo1_ref),
                    g1_ref[...], be1_ref[...], eps)

    # -- cross attention over the encoder output (also emits attn weights) --
    q = _linear(x, wq_ref, bq_ref)
    kv = _linear(enc_ref[...], wkv_ref, bkv_ref)
    bias_cross = (skeep_ref[...] - 1.0) * NEG_BIG     # (1, S)
    ctx2, p = _heads_attention(q, kv[:, :hid], kv[:, hid:], bias_cross,
                               H, d, scale)
    x = _layer_norm(x + _linear(ctx2, wo2_ref, bo2_ref),
                    g2_ref[...], be2_ref[...], eps)

    # lane-dense attention-weight store: pad key dim S -> Sp (multiple of 128)
    Sp = attn_ref.shape[-1]
    if Sp > S:
        p = jnp.concatenate(
            [p, jnp.zeros((H, T, Sp - S), jnp.float32)], axis=-1)
    attn_ref[...] = p

    # -- position-wise FFN + residual + LN --
    h = jnp.maximum(_linear(x, w1_ref, bb1_ref), 0.0)
    x = _layer_norm(x + _linear(h, w2_ref, bb2_ref),
                    g3_ref[...], be3_ref[...], eps)

    # -- vocab projection (padded to lane-dense Vp = multiple of 128) --
    logits_ref[...] = _linear(x, wout_ref, bout_ref)


# ------------------------------ BlockSpec helpers ----------------------------

def _full(shape):
    n = len(shape)
    return pl.BlockSpec(tuple(shape), lambda b: (0,) * n)


def _per_batch(shape):
    n = len(shape)
    return pl.BlockSpec((None,) + tuple(shape), lambda b: (b,) + (0,) * n)


# ------------------------------ pallas_call wrappers -------------------------

def encoder_pallas(x_emb, src_keep, ep, cfg):
    B, S, hid = x_emb.shape
    H = cfg["heads"]
    d = hid // H
    pf = cfg["pf"]
    kernel = functools.partial(_encoder_kernel, H=H, d=d,
                               scale=1.0 / math.sqrt(d), eps=1e-5)
    return pl.pallas_call(
        kernel,
        out_shape=jax.ShapeDtypeStruct((B, S, hid), jnp.float32),
        grid=(B,),
        in_specs=[
            _per_batch((S, hid)), _per_batch((1, S)),
            _full((hid, 3 * hid)), _full((1, 3 * hid)),
            _full((hid, hid)), _full((1, hid)),
            _full((1, hid)), _full((1, hid)),
            _full((hid, pf)), _full((1, pf)),
            _full((pf, hid)), _full((1, hid)),
            _full((1, hid)), _full((1, hid)),
        ],
        out_specs=_per_batch((S, hid)),
        compiler_params=pltpu.CompilerParams(
            dimension_semantics=("parallel",)),   # batch -> 2nd TC on v7x
    )(x_emb, src_keep,
      ep["wqkv"], ep["bqkv"], ep["wo"], ep["bo"],
      ep["ln1_g"], ep["ln1_b"],
      ep["ff1_w"], ep["ff1_b"], ep["ff2_w"], ep["ff2_b"],
      ep["ln2_g"], ep["ln2_b"])


def decoder_pallas(y_emb, enc_src, trg_keep, src_keep, dp, cfg):
    B, T, hid = y_emb.shape
    S = enc_src.shape[1]
    H = cfg["heads"]
    d = hid // H
    pf = cfg["pf"]
    Vp = dp["out_w"].shape[1]
    Sp = _round_up(S, 128)
    kernel = functools.partial(_decoder_kernel, H=H, d=d,
                               scale=1.0 / math.sqrt(d), eps=1e-5)
    logits, attn = pl.pallas_call(
        kernel,
        out_shape=(jax.ShapeDtypeStruct((B, T, Vp), jnp.float32),
                   jax.ShapeDtypeStruct((B, H, T, Sp), jnp.float32)),
        grid=(B,),
        in_specs=[
            _per_batch((T, hid)), _per_batch((S, hid)),
            _per_batch((1, T)), _per_batch((1, S)),
            _full((hid, 3 * hid)), _full((1, 3 * hid)),      # self-attn QKV
            _full((hid, hid)), _full((1, hid)),              # self-attn out
            _full((1, hid)), _full((1, hid)),                # LN1
            _full((hid, hid)), _full((1, hid)),              # cross Q
            _full((hid, 2 * hid)), _full((1, 2 * hid)),      # cross KV
            _full((hid, hid)), _full((1, hid)),              # cross out
            _full((1, hid)), _full((1, hid)),                # LN2
            _full((hid, pf)), _full((1, pf)),                # FF1
            _full((pf, hid)), _full((1, hid)),               # FF2
            _full((1, hid)), _full((1, hid)),                # LN3
            _full((hid, Vp)), _full((1, Vp)),                # vocab proj (padded)
        ],
        out_specs=(_per_batch((T, Vp)), _per_batch((H, T, Sp))),
        compiler_params=pltpu.CompilerParams(
            dimension_semantics=("parallel",)),
    )(y_emb, enc_src, trg_keep, src_keep,
      dp["wqkv"], dp["bqkv"], dp["wo1"], dp["bo1"], dp["ln1_g"], dp["ln1_b"],
      dp["wq"], dp["bq"], dp["wkv"], dp["bkv"], dp["wo2"], dp["bo2"],
      dp["ln2_g"], dp["ln2_b"],
      dp["ff1_w"], dp["ff1_b"], dp["ff2_w"], dp["ff2_b"],
      dp["ln3_g"], dp["ln3_b"], dp["out_w"], dp["out_b"])
    return logits, attn


# ------------------------------ model (JAX glue) -----------------------------

def net_forward(params, src, trg, img_features, src_pad_idx, trg_pad_idx, cfg):
    B, S = src.shape
    T = trg.shape[1]
    hid = cfg["hid"]
    emb_scale = math.sqrt(hid)

    # compact key-pad masks; expanded to additive biases inside the kernels
    src_keep = (src != src_pad_idx).astype(jnp.float32).reshape(B, 1, S)
    trg_keep = (trg != trg_pad_idx).astype(jnp.float32).reshape(B, 1, T)

    enc_p, dec_p = params["encoder"], params["decoder"]

    # TODO(synk): token / positional embedding gathers remain plain JAX
    # (dynamic vocab gather offers no benefit as a Pallas kernel at this size).
    enc_in = enc_p["tok_emb"][src] * emb_scale + enc_p["pos_emb"][:S][None, :, :]
    enc_src = encoder_pallas(enc_in, src_keep, enc_p, cfg)

    # Reference computes fc(img_features) and concatenates with enc_src but
    # never uses the result; keep it as plain jnp so XLA DCEs it under jit.
    img = img_features @ params["fc_w"] + params["fc_b"]
    _unused_enc_features = jnp.concatenate([enc_src, img], axis=1)  # noqa: F841

    dec_in = dec_p["tok_emb"][trg] * emb_scale + dec_p["pos_emb"][:T][None, :, :]
    logits_p, attn_p = decoder_pallas(dec_in, enc_src, trg_keep, src_keep,
                                      dec_p, cfg)

    output = logits_p[..., :cfg["trg_vocab"]]
    attention = attn_p[..., :S]
    return output, attention


# ------------------------------ parameter handling ---------------------------

def init_params(key, cfg):
    hid, pf = cfg["hid"], cfg["pf"]
    it = iter(jax.random.split(key, 40))

    def w(shape, s=0.02):
        return jax.random.normal(next(it), shape, jnp.float32) * s

    def zeros(n):
        return jnp.zeros((n,), jnp.float32)

    def ones(n):
        return jnp.ones((n,), jnp.float32)

    def mha_p():
        return {"wq": w((hid, hid)), "bq": zeros(hid),
                "wk": w((hid, hid)), "bk": zeros(hid),
                "wv": w((hid, hid)), "bv": zeros(hid),
                "wo": w((hid, hid)), "bo": zeros(hid)}

    enc = {"tok_emb": w((cfg["src_vocab"], hid)),
           "pos_emb": w((cfg["max_len"], hid)),
           "self_attn": mha_p(),
           "ln1_g": ones(hid), "ln1_b": zeros(hid),
           "ff1_w": w((hid, pf)), "ff1_b": zeros(pf),
           "ff2_w": w((pf, hid)), "ff2_b": zeros(hid),
           "ln2_g": ones(hid), "ln2_b": zeros(hid)}

    dec = {"tok_emb": w((cfg["trg_vocab"], hid)),
           "pos_emb": w((cfg["max_len"], hid)),
           "self_attn": mha_p(), "cross_attn": mha_p(),
           "ln1_g": ones(hid), "ln1_b": zeros(hid),
           "ln2_g": ones(hid), "ln2_b": zeros(hid),
           "ln3_g": ones(hid), "ln3_b": zeros(hid),
           "ff1_w": w((hid, pf)), "ff1_b": zeros(pf),
           "ff2_w": w((pf, hid)), "ff2_b": zeros(hid),
           "out_w": w((hid, cfg["trg_vocab"])), "out_b": zeros(cfg["trg_vocab"])}

    return {"encoder": enc, "decoder": dec,
            "fc_w": w((cfg["img_feat"], hid)), "fc_b": zeros(hid)}


def prepare_params(params, cfg):
    """One-time (outside jit) weight fusion, bf16 casting and vocab padding."""
    V = cfg["trg_vocab"]
    Vp = _round_up(V, 128)

    def row(b):
        return b.reshape(1, -1).astype(jnp.float32)

    def bf(w):
        return w.astype(jnp.bfloat16)

    e = params["encoder"]
    sa = e["self_attn"]
    enc = dict(
        tok_emb=e["tok_emb"], pos_emb=e["pos_emb"],
        wqkv=bf(jnp.concatenate([sa["wq"], sa["wk"], sa["wv"]], axis=1)),
        bqkv=row(jnp.concatenate([sa["bq"], sa["bk"], sa["bv"]])),
        wo=bf(sa["wo"]), bo=row(sa["bo"]),
        ln1_g=row(e["ln1_g"]), ln1_b=row(e["ln1_b"]),
        ff1_w=bf(e["ff1_w"]), ff1_b=row(e["ff1_b"]),
        ff2_w=bf(e["ff2_w"]), ff2_b=row(e["ff2_b"]),
        ln2_g=row(e["ln2_g"]), ln2_b=row(e["ln2_b"]),
    )

    dd = params["decoder"]
    dsa, dca = dd["self_attn"], dd["cross_attn"]
    dec = dict(
        tok_emb=dd["tok_emb"], pos_emb=dd["pos_emb"],
        wqkv=bf(jnp.concatenate([dsa["wq"], dsa["wk"], dsa["wv"]], axis=1)),
        bqkv=row(jnp.concatenate([dsa["bq"], dsa["bk"], dsa["bv"]])),
        wo1=bf(dsa["wo"]), bo1=row(dsa["bo"]),
        ln1_g=row(dd["ln1_g"]), ln1_b=row(dd["ln1_b"]),
        wq=bf(dca["wq"]), bq=row(dca["bq"]),
        wkv=bf(jnp.concatenate([dca["wk"], dca["wv"]], axis=1)),
        bkv=row(jnp.concatenate([dca["bk"], dca["bv"]])),
        wo2=bf(dca["wo"]), bo2=row(dca["bo"]),
        ln2_g=row(dd["ln2_g"]), ln2_b=row(dd["ln2_b"]),
        ff1_w=bf(dd["ff1_w"]), ff1_b=row(dd["ff1_b"]),
        ff2_w=bf(dd["ff2_w"]), ff2_b=row(dd["ff2_b"]),
        ln3_g=row(dd["ln3_g"]), ln3_b=row(dd["ln3_b"]),
        out_w=bf(jnp.pad(dd["out_w"], ((0, 0), (0, Vp - V)))),
        out_b=row(jnp.pad(dd["out_b"], (0, Vp - V))),
    )
    return dict(encoder=enc, decoder=dec,
                fc_w=params["fc_w"], fc_b=params["fc_b"])


# ------------------------------------ main ------------------------------------

if __name__ == "__main__":
    cfg = dict(hid=256, heads=8, pf=512, src_vocab=32, trg_vocab=32,
               max_len=16, img_feat=196)
    SRC_PAD, TRG_PAD = 0, 0
    B, S, T, N_IMG = 2, 8, 8, 4

    key = jax.random.PRNGKey(0)
    kp, ks, kt, ki = jax.random.split(key, 4)
    raw_params = init_params(kp, cfg)
    params = prepare_params(raw_params, cfg)   # fuse/cast/pad once, outside jit

    src = jax.random.randint(ks, (B, S), 1, cfg["src_vocab"]).astype(jnp.int32)
    src = src.at[:, -2:].set(SRC_PAD)          # padding to exercise src_mask
    trg = jax.random.randint(kt, (B, T), 1, cfg["trg_vocab"]).astype(jnp.int32)
    trg = trg.at[:, -1:].set(TRG_PAD)          # padding to exercise trg_mask
    img_features = jax.random.normal(ki, (B, N_IMG, cfg["img_feat"]), jnp.float32)

    fwd = jax.jit(functools.partial(net_forward, src_pad_idx=SRC_PAD,
                                    trg_pad_idx=TRG_PAD, cfg=cfg))
    output, attention = fwd(params, src, trg, img_features)
    jax.block_until_ready((output, attention))

    assert output.shape == (B, T, cfg["trg_vocab"])
    assert attention.shape == (B, cfg["heads"], T, S)
    print("KERNEL_OK")
</pallas_src>

<mosaic_0001>
module attributes {stable_mosaic.version = 11 : i64} {
  func.func @_encoder_kernel(%arg0: i32, %arg1: memref<1x8x256xf32, #tpu.memory_space<vmem>>, %arg2: memref<1x1x8xf32, #tpu.memory_space<vmem>>, %arg3: memref<256x768xbf16, #tpu.memory_space<vmem>>, %arg4: memref<1x768xf32, #tpu.memory_space<vmem>>, %arg5: memref<256x256xbf16, #tpu.memory_space<vmem>>, %arg6: memref<1x256xf32, #tpu.memory_space<vmem>>, %arg7: memref<1x256xf32, #tpu.memory_space<vmem>>, %arg8: memref<1x256xf32, #tpu.memory_space<vmem>>, %arg9: memref<256x512xbf16, #tpu.memory_space<vmem>>, %arg10: memref<1x512xf32, #tpu.memory_space<vmem>>, %arg11: memref<512x256xbf16, #tpu.memory_space<vmem>>, %arg12: memref<1x256xf32, #tpu.memory_space<vmem>>, %arg13: memref<1x256xf32, #tpu.memory_space<vmem>>, %arg14: memref<1x256xf32, #tpu.memory_space<vmem>>, %arg15: memref<1x8x256xf32, #tpu.memory_space<vmem>>) attributes {dimension_semantics = [#tpu.dimension_semantics<parallel>], iteration_bounds = array<i64: 2>, scalar_prefetch = 0 : i64, scratch_operands = 0 : i64, tpu.core_type = #tpu.core_type<tc>, window_params = [{transform_indices = @transform_0, window_bounds = array<i64: 1, 8, 256>}, {transform_indices = @transform_1, window_bounds = array<i64: 1, 1, 8>}, {pipeline_mode = #tpu.pipeline_mode<synchronous>, transform_indices = @transform_2, window_bounds = array<i64: 256, 768>}, {pipeline_mode = #tpu.pipeline_mode<synchronous>, transform_indices = @transform_3, window_bounds = array<i64: 1, 768>}, {pipeline_mode = #tpu.pipeline_mode<synchronous>, transform_indices = @transform_4, window_bounds = array<i64: 256, 256>}, {pipeline_mode = #tpu.pipeline_mode<synchronous>, transform_indices = @transform_5, window_bounds = array<i64: 1, 256>}, {pipeline_mode = #tpu.pipeline_mode<synchronous>, transform_indices = @transform_6, window_bounds = array<i64: 1, 256>}, {pipeline_mode = #tpu.pipeline_mode<synchronous>, transform_indices = @transform_7, window_bounds = array<i64: 1, 256>}, {pipeline_mode = #tpu.pipeline_mode<synchronous>, transform_indices = @transform_8, window_bounds = array<i64: 256, 512>}, {pipeline_mode = #tpu.pipeline_mode<synchronous>, transform_indices = @transform_9, window_bounds = array<i64: 1, 512>}, {pipeline_mode = #tpu.pipeline_mode<synchronous>, transform_indices = @transform_10, window_bounds = array<i64: 512, 256>}, {pipeline_mode = #tpu.pipeline_mode<synchronous>, transform_indices = @transform_11, window_bounds = array<i64: 1, 256>}, {pipeline_mode = #tpu.pipeline_mode<synchronous>, transform_indices = @transform_12, window_bounds = array<i64: 1, 256>}, {pipeline_mode = #tpu.pipeline_mode<synchronous>, transform_indices = @transform_13, window_bounds = array<i64: 1, 256>}, {transform_indices = @transform_14, window_bounds = array<i64: 1, 8, 256>}]} {
    %c0 = arith.constant 0 : index
    %c0_0 = arith.constant 0 : index
    %c0_1 = arith.constant 0 : index
    %0 = vector.load %arg1[%c0, %c0_0, %c0_1] : memref<1x8x256xf32, #tpu.memory_space<vmem>>, vector<1x8x256xf32>
    %1 = vector.shape_cast %0 : vector<1x8x256xf32> to vector<8x256xf32>
    %2 = arith.truncf %1 : vector<8x256xf32> to vector<8x256xbf16>
    %c0_2 = arith.constant 0 : index
    %c0_3 = arith.constant 0 : index
    %3 = vector.load %arg3[%c0_2, %c0_3] : memref<256x768xbf16, #tpu.memory_space<vmem>>, vector<256x768xbf16>
    %cst = arith.constant dense<0.000000e+00> : vector<8x768xf32>
    %4 = tpu.matmul %2, %3, %cst {dimension_numbers = #tpu.dot_dimension_numbers<[1], [0], [0], [1], [0, 0, 1, 1], [], []>} : vector<8x256xbf16>, vector<256x768xbf16>, vector<8x768xf32> -> vector<8x768xf32>
    %c0_4 = arith.constant 0 : index
    %c0_5 = arith.constant 0 : index
    %5 = vector.load %arg4[%c0_4, %c0_5] : memref<1x768xf32, #tpu.memory_space<vmem>>, vector<1x768xf32>
    %6 = vector.broadcast %5 : vector<1x768xf32> to vector<8x768xf32>
    %7 = arith.addf %4, %6 : vector<8x768xf32>
    %c0_6 = arith.constant 0 : index
    %c0_7 = arith.constant 0 : index
    %c0_8 = arith.constant 0 : index
    %8 = vector.load %arg2[%c0_6, %c0_7, %c0_8] : memref<1x1x8xf32, #tpu.memory_space<vmem>>, vector<1x1x8xf32>
    %9 = vector.shape_cast %8 : vector<1x1x8xf32> to vector<1x8xf32>
    %cst_9 = arith.constant 1.000000e+00 : f32
    %10 = vector.broadcast %cst_9 : f32 to vector<1x8xf32>
    %11 = arith.subf %9, %10 : vector<1x8xf32>
    %cst_10 = arith.constant 1.000000e+10 : f32
    %12 = vector.broadcast %cst_10 : f32 to vector<1x8xf32>
    %13 = arith.mulf %11, %12 : vector<1x8xf32>
    %14 = vector.extract_strided_slice %7 {offsets = [0, 0], sizes = [8, 256], strides = [1, 1]} : vector<8x768xf32> to vector<8x256xf32>
    %15 = vector.extract_strided_slice %7 {offsets = [0, 256], sizes = [8, 256], strides = [1, 1]} : vector<8x768xf32> to vector<8x256xf32>
    %16 = vector.extract_strided_slice %7 {offsets = [0, 512], sizes = [8, 256], strides = [1, 1]} : vector<8x768xf32> to vector<8x256xf32>
    %17 = vector.shape_cast %14 : vector<8x256xf32> to vector<8x8x32xf32>
    %18 = tpu.transpose %17, [1, 0, 2] : vector<8x8x32xf32> -> vector<8x8x32xf32>
    %19 = vector.shape_cast %15 : vector<8x256xf32> to vector<8x8x32xf32>
    %20 = tpu.transpose %19, [1, 0, 2] : vector<8x8x32xf32> -> vector<8x8x32xf32>
    %21 = vector.shape_cast %16 : vector<8x256xf32> to vector<8x8x32xf32>
    %22 = tpu.transpose %21, [1, 0, 2] : vector<8x8x32xf32> -> vector<8x8x32xf32>
    %23 = arith.truncf %18 : vector<8x8x32xf32> to vector<8x8x32xbf16>
    %24 = arith.truncf %20 : vector<8x8x32xf32> to vector<8x8x32xbf16>
    "tpu.trace_start"() <{level = 10 : i32, message = "hqd,hkd->hqk"}> : () -> ()
    %cst_11 = arith.constant dense<0.000000e+00> : vector<8x8x8xf32>
    %25 = tpu.matmul %23, %24, %cst_11 {dimension_numbers = #tpu.dot_dimension_numbers<[2], [2], [1], [1], [0, 0, 0, 1, 1, 1], [0], [0]>} : vector<8x8x32xbf16>, vector<8x8x32xbf16>, vector<8x8x8xf32> -> vector<8x8x8xf32>
    "tpu.trace_stop"() : () -> ()
    %cst_12 = arith.constant 0.176776692 : f32
    %26 = vector.broadcast %cst_12 : f32 to vector<8x8x8xf32>
    %27 = arith.mulf %25, %26 : vector<8x8x8xf32>
    %28 = vector.shape_cast %13 : vector<1x8xf32> to vector<1x1x8xf32>
    %29 = vector.broadcast %28 : vector<1x1x8xf32> to vector<8x8x8xf32>
    %30 = arith.addf %27, %29 : vector<8x8x8xf32>
    %cst_13 = arith.constant dense<0xFF800000> : vector<8x8xf32>
    %31 = vector.multi_reduction <maximumf>, %30, %cst_13 [2] : vector<8x8x8xf32> to vector<8x8xf32>
    %32 = vector.shape_cast %31 : vector<8x8xf32> to vector<8x8x1xf32>
    %33 = vector.broadcast %32 : vector<8x8x1xf32> to vector<8x8x8xf32>
    %34 = arith.subf %30, %33 : vector<8x8x8xf32>
    %35 = math.exp %34 : vector<8x8x8xf32>
    %cst_14 = arith.constant dense<0.000000e+00> : vector<8x8xf32>
    %36 = vector.multi_reduction <add>, %35, %cst_14 [2] : vector<8x8x8xf32> to vector<8x8xf32>
    %37 = vector.shape_cast %36 : vector<8x8xf32> to vector<8x8x1xf32>
    %38 = vector.broadcast %37 : vector<8x8x1xf32> to vector<8x8x8xf32>
    %39 = arith.divf %35, %38 : vector<8x8x8xf32>
    %40 = arith.truncf %39 : vector<8x8x8xf32> to vector<8x8x8xbf16>
    %41 = arith.truncf %22 : vector<8x8x32xf32> to vector<8x8x32xbf16>
    "tpu.trace_start"() <{level = 10 : i32, message = "hqk,hkd->hqd"}> : () -> ()
    %cst_15 = arith.constant dense<0.000000e+00> : vector<8x8x32xf32>
    %42 = tpu.matmul %40, %41, %cst_15 {dimension_numbers = #tpu.dot_dimension_numbers<[2], [1], [1], [2], [0, 0, 0, 1, 1, 2], [0], [0]>} : vector<8x8x8xbf16>, vector<8x8x32xbf16>, vector<8x8x32xf32> -> vector<8x8x32xf32>
    "tpu.trace_stop"() : () -> ()
    %43 = tpu.transpose %42, [1, 0, 2] : vector<8x8x32xf32> -> vector<8x8x32xf32>
    %44 = vector.shape_cast %43 : vector<8x8x32xf32> to vector<8x256xf32>
    %45 = arith.truncf %44 : vector<8x256xf32> to vector<8x256xbf16>
    %c0_16 = arith.constant 0 : index
    %c0_17 = arith.constant 0 : index
    %46 = vector.load %arg5[%c0_16, %c0_17] : memref<256x256xbf16, #tpu.memory_space<vmem>>, vector<256x256xbf16>
    %cst_18 = arith.constant dense<0.000000e+00> : vector<8x256xf32>
    %47 = tpu.matmul %45, %46, %cst_18 {dimension_numbers = #tpu.dot_dimension_numbers<[1], [0], [0], [1], [0, 0, 1, 1], [], []>} : vector<8x256xbf16>, vector<256x256xbf16>, vector<8x256xf32> -> vector<8x256xf32>
    %c0_19 = arith.constant 0 : index
    %c0_20 = arith.constant 0 : index
    %48 = vector.load %arg6[%c0_19, %c0_20] : memref<1x256xf32, #tpu.memory_space<vmem>>, vector<1x256xf32>
    %49 = vector.broadcast %48 : vector<1x256xf32> to vector<8x256xf32>
    %50 = arith.addf %47, %49 : vector<8x256xf32>
    %51 = arith.addf %1, %50 : vector<8x256xf32>
    %c0_21 = arith.constant 0 : index
    %c0_22 = arith.constant 0 : index
    %52 = vector.load %arg7[%c0_21, %c0_22] : memref<1x256xf32, #tpu.memory_space<vmem>>, vector<1x256xf32>
    %c0_23 = arith.constant 0 : index
    %c0_24 = arith.constant 0 : index
    %53 = vector.load %arg8[%c0_23, %c0_24] : memref<1x256xf32, #tpu.memory_space<vmem>>, vector<1x256xf32>
    %cst_25 = arith.constant dense<0.000000e+00> : vector<8xf32>
    %54 = vector.multi_reduction <add>, %51, %cst_25 [1] : vector<8x256xf32> to vector<8xf32>
    %55 = vector.shape_cast %54 : vector<8xf32> to vector<8x1xf32>
    %cst_26 = arith.constant 2.560000e+02 : f32
    %56 = vector.broadcast %cst_26 : f32 to vector<8x1xf32>
    %57 = arith.divf %55, %56 : vector<8x1xf32>
    %58 = vector.broadcast %57 : vector<8x1xf32> to vector<8x256xf32>
    %59 = arith.subf %51, %58 : vector<8x256xf32>
    %60 = arith.mulf %59, %59 : vector<8x256xf32>
    %cst_27 = arith.constant dense<0.000000e+00> : vector<8xf32>
    %61 = vector.multi_reduction <add>, %60, %cst_27 [1] : vector<8x256xf32> to vector<8xf32>
    %62 = vector.shape_cast %61 : vector<8xf32> to vector<8x1xf32>
    %cst_28 = arith.constant 2.560000e+02 : f32
    %63 = vector.broadcast %cst_28 : f32 to vector<8x1xf32>
    %64 = arith.divf %62, %63 : vector<8x1xf32>
    %65 = vector.broadcast %57 : vector<8x1xf32> to vector<8x256xf32>
    %66 = arith.subf %51, %65 : vector<8x256xf32>
    %cst_29 = arith.constant 9.99999974E-6 : f32
    %67 = vector.broadcast %cst_29 : f32 to vector<8x1xf32>
    %68 = arith.addf %64, %67 : vector<8x1xf32>
    %69 = math.rsqrt %68 : vector<8x1xf32>
    %70 = vector.broadcast %69 : vector<8x1xf32> to vector<8x256xf32>
    %71 = arith.mulf %66, %70 : vector<8x256xf32>
    %72 = vector.broadcast %52 : vector<1x256xf32> to vector<8x256xf32>
    %73 = arith.mulf %71, %72 : vector<8x256xf32>
    %74 = vector.broadcast %53 : vector<1x256xf32> to vector<8x256xf32>
    %75 = arith.addf %73, %74 : vector<8x256xf32>
    %76 = arith.truncf %75 : vector<8x256xf32> to vector<8x256xbf16>
    %c0_30 = arith.constant 0 : index
    %c0_31 = arith.constant 0 : index
    %77 = vector.load %arg9[%c0_30, %c0_31] : memref<256x512xbf16, #tpu.memory_space<vmem>>, vector<256x512xbf16>
    %cst_32 = arith.constant dense<0.000000e+00> : vector<8x512xf32>
    %78 = tpu.matmul %76, %77, %cst_32 {dimension_numbers = #tpu.dot_dimension_numbers<[1], [0], [0], [1], [0, 0, 1, 1], [], []>} : vector<8x256xbf16>, vector<256x512xbf16>, vector<8x512xf32> -> vector<8x512xf32>
    %c0_33 = arith.constant 0 : index
    %c0_34 = arith.constant 0 : index
    %79 = vector.load %arg10[%c0_33, %c0_34] : memref<1x512xf32, #tpu.memory_space<vmem>>, vector<1x512xf32>
    %80 = vector.broadcast %79 : vector<1x512xf32> to vector<8x512xf32>
    %81 = arith.addf %78, %80 : vector<8x512xf32>
    %cst_35 = arith.constant 0.000000e+00 : f32
    %82 = vector.broadcast %cst_35 : f32 to vector<8x512xf32>
    %83 = arith.maximumf %81, %82 : vector<8x512xf32>
    %84 = arith.truncf %83 : vector<8x512xf32> to vector<8x512xbf16>
    %c0_36 = arith.constant 0 : index
    %c0_37 = arith.constant 0 : index
    %85 = vector.load %arg11[%c0_36, %c0_37] : memref<512x256xbf16, #tpu.memory_space<vmem>>, vector<512x256xbf16>
    %cst_38 = arith.constant dense<0.000000e+00> : vector<8x256xf32>
    %86 = tpu.matmul %84, %85, %cst_38 {dimension_numbers = #tpu.dot_dimension_numbers<[1], [0], [0], [1], [0, 0, 1, 1], [], []>} : vector<8x512xbf16>, vector<512x256xbf16>, vector<8x256xf32> -> vector<8x256xf32>
    %c0_39 = arith.constant 0 : index
    %c0_40 = arith.constant 0 : index
    %87 = vector.load %arg12[%c0_39, %c0_40] : memref<1x256xf32, #tpu.memory_space<vmem>>, vector<1x256xf32>
    %88 = vector.broadcast %87 : vector<1x256xf32> to vector<8x256xf32>
    %89 = arith.addf %86, %88 : vector<8x256xf32>
    %90 = arith.addf %75, %89 : vector<8x256xf32>
    %c0_41 = arith.constant 0 : index
    %c0_42 = arith.constant 0 : index
    %91 = vector.load %arg13[%c0_41, %c0_42] : memref<1x256xf32, #tpu.memory_space<vmem>>, vector<1x256xf32>
    %c0_43 = arith.constant 0 : index
    %c0_44 = arith.constant 0 : index
    %92 = vector.load %arg14[%c0_43, %c0_44] : memref<1x256xf32, #tpu.memory_space<vmem>>, vector<1x256xf32>
    %cst_45 = arith.constant dense<0.000000e+00> : vector<8xf32>
    %93 = vector.multi_reduction <add>, %90, %cst_45 [1] : vector<8x256xf32> to vector<8xf32>
    %94 = vector.shape_cast %93 : vector<8xf32> to vector<8x1xf32>
    %cst_46 = arith.constant 2.560000e+02 : f32
    %95 = vector.broadcast %cst_46 : f32 to vector<8x1xf32>
    %96 = arith.divf %94, %95 : vector<8x1xf32>
    %97 = vector.broadcast %96 : vector<8x1xf32> to vector<8x256xf32>
    %98 = arith.subf %90, %97 : vector<8x256xf32>
    %99 = arith.mulf %98, %98 : vector<8x256xf32>
    %cst_47 = arith.constant dense<0.000000e+00> : vector<8xf32>
    %100 = vector.multi_reduction <add>, %99, %cst_47 [1] : vector<8x256xf32> to vector<8xf32>
    %101 = vector.shape_cast %100 : vector<8xf32> to vector<8x1xf32>
    %cst_48 = arith.constant 2.560000e+02 : f32
    %102 = vector.broadcast %cst_48 : f32 to vector<8x1xf32>
    %103 = arith.divf %101, %102 : vector<8x1xf32>
    %104 = vector.broadcast %96 : vector<8x1xf32> to vector<8x256xf32>
    %105 = arith.subf %90, %104 : vector<8x256xf32>
    %cst_49 = arith.constant 9.99999974E-6 : f32
    %106 = vector.broadcast %cst_49 : f32 to vector<8x1xf32>
    %107 = arith.addf %103, %106 : vector<8x1xf32>
    %108 = math.rsqrt %107 : vector<8x1xf32>
    %109 = vector.broadcast %108 : vector<8x1xf32> to vector<8x256xf32>
    %110 = arith.mulf %105, %109 : vector<8x256xf32>
    %111 = vector.broadcast %91 : vector<1x256xf32> to vector<8x256xf32>
    %112 = arith.mulf %110, %111 : vector<8x256xf32>
    %113 = vector.broadcast %92 : vector<1x256xf32> to vector<8x256xf32>
    %114 = arith.addf %112, %113 : vector<8x256xf32>
    %c0_50 = arith.constant 0 : index
    %c0_51 = arith.constant 0 : index
    %c0_52 = arith.constant 0 : index
    %115 = vector.load %arg15[%c0_50, %c0_51, %c0_52] : memref<1x8x256xf32, #tpu.memory_space<vmem>>, vector<1x8x256xf32>
    %116 = vector.shape_cast %115 : vector<1x8x256xf32> to vector<8x256xf32>
    %117 = vector.shape_cast %114 : vector<8x256xf32> to vector<1x8x256xf32>
    tpu.vector_store %arg15[%c0_50, %c0_51, %c0_52], %117 {strides = array<i32>} : memref<1x8x256xf32, #tpu.memory_space<vmem>>, vector<1x8x256xf32>,
    return
  }
  func.func @transform_0(%arg0: i32) -> (i32, i32, i32) {
    %c0_i32 = arith.constant 0 : i32
    %c0_i32_0 = arith.constant 0 : i32
    %c0_i32_1 = arith.constant 0 : i32
    return %arg0, %c0_i32, %c0_i32_0 : i32, i32, i32
  }
  func.func @transform_1(%arg0: i32) -> (i32, i32, i32) {
    %c0_i32 = arith.constant 0 : i32
    %c0_i32_0 = arith.constant 0 : i32
    %c0_i32_1 = arith.constant 0 : i32
    return %arg0, %c0_i32, %c0_i32_0 : i32, i32, i32
  }
  func.func @transform_2(%arg0: i32) -> (i32, i32) {
    %c0_i32 = arith.constant 0 : i32
    %c0_i32_0 = arith.constant 0 : i32
    %c0_i32_1 = arith.constant 0 : i32
    return %c0_i32, %c0_i32_0 : i32, i32
  }
  func.func @transform_3(%arg0: i32) -> (i32, i32) {
    %c0_i32 = arith.constant 0 : i32
    %c0_i32_0 = arith.constant 0 : i32
    %c0_i32_1 = arith.constant 0 : i32
    return %c0_i32, %c0_i32_0 : i32, i32
  }
  func.func @transform_4(%arg0: i32) -> (i32, i32) {
    %c0_i32 = arith.constant 0 : i32
    %c0_i32_0 = arith.constant 0 : i32
    %c0_i32_1 = arith.constant 0 : i32
    return %c0_i32, %c0_i32_0 : i32, i32
  }
  func.func @transform_5(%arg0: i32) -> (i32, i32) {
    %c0_i32 = arith.constant 0 : i32
    %c0_i32_0 = arith.constant 0 : i32
    %c0_i32_1 = arith.constant 0 : i32
    return %c0_i32, %c0_i32_0 : i32, i32
  }
  func.func @transform_6(%arg0: i32) -> (i32, i32) {
    %c0_i32 = arith.constant 0 : i32
    %c0_i32_0 = arith.constant 0 : i32
    %c0_i32_1 = arith.constant 0 : i32
    return %c0_i32, %c0_i32_0 : i32, i32
  }
  func.func @transform_7(%arg0: i32) -> (i32, i32) {
    %c0_i32 = arith.constant 0 : i32
    %c0_i32_0 = arith.constant 0 : i32
    %c0_i32_1 = arith.constant 0 : i32
    return %c0_i32, %c0_i32_0 : i32, i32
  }
  func.func @transform_8(%arg0: i32) -> (i32, i32) {
    %c0_i32 = arith.constant 0 : i32
    %c0_i32_0 = arith.constant 0 : i32
    %c0_i32_1 = arith.constant 0 : i32
    return %c0_i32, %c0_i32_0 : i32, i32
  }
  func.func @transform_9(%arg0: i32) -> (i32, i32) {
    %c0_i32 = arith.constant 0 : i32
    %c0_i32_0 = arith.constant 0 : i32
    %c0_i32_1 = arith.constant 0 : i32
    return %c0_i32, %c0_i32_0 : i32, i32
  }
  func.func @transform_10(%arg0: i32) -> (i32, i32) {
    %c0_i32 = arith.constant 0 : i32
    %c0_i32_0 = arith.constant 0 : i32
    %c0_i32_1 = arith.constant 0 : i32
    return %c0_i32, %c0_i32_0 : i32, i32
  }
  func.func @transform_11(%arg0: i32) -> (i32, i32) {
    %c0_i32 = arith.constant 0 : i32
    %c0_i32_0 = arith.constant 0 : i32
    %c0_i32_1 = arith.constant 0 : i32
    return %c0_i32, %c0_i32_0 : i32, i32
  }
  func.func @transform_12(%arg0: i32) -> (i32, i32) {
    %c0_i32 = arith.constant 0 : i32
    %c0_i32_0 = arith.constant 0 : i32
    %c0_i32_1 = arith.constant 0 : i32
    return %c0_i32, %c0_i32_0 : i32, i32
  }
  func.func @transform_13(%arg0: i32) -> (i32, i32) {
    %c0_i32 = arith.constant 0 : i32
    %c0_i32_0 = arith.constant 0 : i32
    %c0_i32_1 = arith.constant 0 : i32
    return %c0_i32, %c0_i32_0 : i32, i32
  }
  func.func @transform_14(%arg0: i32) -> (i32, i32, i32) {
    %c0_i32 = arith.constant 0 : i32
    %c0_i32_0 = arith.constant 0 : i32
    %c0_i32_1 = arith.constant 0 : i32
    return %arg0, %c0_i32, %c0_i32_0 : i32, i32, i32
  }
}

module attributes {stable_mosaic.version = 11 : i64} {
  func.func @_decoder_kernel(%arg0: i32, %arg1: memref<1x8x256xf32, #tpu.memory_space<vmem>>, %arg2: memref<1x8x256xf32, #tpu.memory_space<vmem>>, %arg3: memref<1x1x8xf32, #tpu.memory_space<vmem>>, %arg4: memref<1x1x8xf32, #tpu.memory_space<vmem>>, %arg5: memref<256x768xbf16, #tpu.memory_space<vmem>>, %arg6: memref<1x768xf32, #tpu.memory_space<vmem>>, %arg7: memref<256x256xbf16, #tpu.memory_space<vmem>>, %arg8: memref<1x256xf32, #tpu.memory_space<vmem>>, %arg9: memref<1x256xf32, #tpu.memory_space<vmem>>, %arg10: memref<1x256xf32, #tpu.memory_space<vmem>>, %arg11: memref<256x256xbf16, #tpu.memory_space<vmem>>, %arg12: memref<1x256xf32, #tpu.memory_space<vmem>>, %arg13: memref<256x512xbf16, #tpu.memory_space<vmem>>, %arg14: memref<1x512xf32, #tpu.memory_space<vmem>>, %arg15: memref<256x256xbf16, #tpu.memory_space<vmem>>, %arg16: memref<1x256xf32, #tpu.memory_space<vmem>>, %arg17: memref<1x256xf32, #tpu.memory_space<vmem>>, %arg18: memref<1x256xf32, #tpu.memory_space<vmem>>, %arg19: memref<256x512xbf16, #tpu.memory_space<vmem>>, %arg20: memref<1x512xf32, #tpu.memory_space<vmem>>, %arg21: memref<512x256xbf16, #tpu.memory_space<vmem>>, %arg22: memref<1x256xf32, #tpu.memory_space<vmem>>, %arg23: memref<1x256xf32, #tpu.memory_space<vmem>>, %arg24: memref<1x256xf32, #tpu.memory_space<vmem>>, %arg25: memref<256x128xbf16, #tpu.memory_space<vmem>>, %arg26: memref<1x128xf32, #tpu.memory_space<vmem>>, %arg27: memref<1x8x128xf32, #tpu.memory_space<vmem>>, %arg28: memref<1x8x8x128xf32, #tpu.memory_space<vmem>>) attributes {dimension_semantics = [#tpu.dimension_semantics<parallel>], iteration_bounds = array<i64: 2>, scalar_prefetch = 0 : i64, scratch_operands = 0 : i64, tpu.core_type = #tpu.core_type<tc>, window_params = [{transform_indices = @transform_0, window_bounds = array<i64: 1, 8, 256>}, {transform_indices = @transform_1, window_bounds = array<i64: 1, 8, 256>}, {transform_indices = @transform_2, window_bounds = array<i64: 1, 1, 8>}, {transform_indices = @transform_3, window_bounds = array<i64: 1, 1, 8>}, {pipeline_mode = #tpu.pipeline_mode<synchronous>, transform_indices = @transform_4, window_bounds = array<i64: 256, 768>}, {pipeline_mode = #tpu.pipeline_mode<synchronous>, transform_indices = @transform_5, window_bounds = array<i64: 1, 768>}, {pipeline_mode = #tpu.pipeline_mode<synchronous>, transform_indices = @transform_6, window_bounds = array<i64: 256, 256>}, {pipeline_mode = #tpu.pipeline_mode<synchronous>, transform_indices = @transform_7, window_bounds = array<i64: 1, 256>}, {pipeline_mode = #tpu.pipeline_mode<synchronous>, transform_indices = @transform_8, window_bounds = array<i64: 1, 256>}, {pipeline_mode = #tpu.pipeline_mode<synchronous>, transform_indices = @transform_9, window_bounds = array<i64: 1, 256>}, {pipeline_mode = #tpu.pipeline_mode<synchronous>, transform_indices = @transform_10, window_bounds = array<i64: 256, 256>}, {pipeline_mode = #tpu.pipeline_mode<synchronous>, transform_indices = @transform_11, window_bounds = array<i64: 1, 256>}, {pipeline_mode = #tpu.pipeline_mode<synchronous>, transform_indices = @transform_12, window_bounds = array<i64: 256, 512>}, {pipeline_mode = #tpu.pipeline_mode<synchronous>, transform_indices = @transform_13, window_bounds = array<i64: 1, 512>}, {pipeline_mode = #tpu.pipeline_mode<synchronous>, transform_indices = @transform_14, window_bounds = array<i64: 256, 256>}, {pipeline_mode = #tpu.pipeline_mode<synchronous>, transform_indices = @transform_15, window_bounds = array<i64: 1, 256>}, {pipeline_mode = #tpu.pipeline_mode<synchronous>, transform_indices = @transform_16, window_bounds = array<i64: 1, 256>}, {pipeline_mode = #tpu.pipeline_mode<synchronous>, transform_indices = @transform_17, window_bounds = array<i64: 1, 256>}, {pipeline_mode = #tpu.pipeline_mode<synchronous>, transform_indices = @transform_18, window_bounds = array<i64: 256, 512>}, {pipeline_mode = #tpu.pipeline_mode<synchronous>, transform_indices = @transform_19, window_bounds = array<i64: 1, 512>}, {pipeline_mode = #tpu.pipeline_mode<synchronous>, transform_indices = @transform_20, window_bounds = array<i64: 512, 256>}, {pipeline_mode = #tpu.pipeline_mode<synchronous>, transform_indices = @transform_21, window_bounds = array<i64: 1, 256>}, {pipeline_mode = #tpu.pipeline_mode<synchronous>, transform_indices = @transform_22, window_bounds = array<i64: 1, 256>}, {pipeline_mode = #tpu.pipeline_mode<synchronous>, transform_indices = @transform_23, window_bounds = array<i64: 1, 256>}, {pipeline_mode = #tpu.pipeline_mode<synchronous>, transform_indices = @transform_24, window_bounds = array<i64: 256, 128>}, {pipeline_mode = #tpu.pipeline_mode<synchronous>, transform_indices = @transform_25, window_bounds = array<i64: 1, 128>}, {transform_indices = @transform_26, window_bounds = array<i64: 1, 8, 128>}, {transform_indices = @transform_27, window_bounds = array<i64: 1, 8, 8, 128>}]} {
    %c0 = arith.constant 0 : index
    %c0_0 = arith.constant 0 : index
    %c0_1 = arith.constant 0 : index
    %0 = vector.load %arg1[%c0, %c0_0, %c0_1] : memref<1x8x256xf32, #tpu.memory_space<vmem>>, vector<1x8x256xf32>
    %1 = vector.shape_cast %0 : vector<1x8x256xf32> to vector<8x256xf32>
    %2 = arith.truncf %1 : vector<8x256xf32> to vector<8x256xbf16>
    %c0_2 = arith.constant 0 : index
    %c0_3 = arith.constant 0 : index
    %3 = vector.load %arg5[%c0_2, %c0_3] : memref<256x768xbf16, #tpu.memory_space<vmem>>, vector<256x768xbf16>
    %cst = arith.constant dense<0.000000e+00> : vector<8x768xf32>
    %4 = tpu.matmul %2, %3, %cst {dimension_numbers = #tpu.dot_dimension_numbers<[1], [0], [0], [1], [0, 0, 1, 1], [], []>} : vector<8x256xbf16>, vector<256x768xbf16>, vector<8x768xf32> -> vector<8x768xf32>
    %c0_4 = arith.constant 0 : index
    %c0_5 = arith.constant 0 : index
    %5 = vector.load %arg6[%c0_4, %c0_5] : memref<1x768xf32, #tpu.memory_space<vmem>>, vector<1x768xf32>
    %6 = vector.broadcast %5 : vector<1x768xf32> to vector<8x768xf32>
    %7 = arith.addf %4, %6 : vector<8x768xf32>
    %8 = tpu.iota {dimensions = array<i32: 0>} : vector<8x8xi32>
    %9 = tpu.iota {dimensions = array<i32: 1>} : vector<8x8xi32>
    %10 = arith.cmpi sle, %9, %8 : vector<8x8xi32>
    %11 = arith.extui %10 : vector<8x8xi1> to vector<8x8xi32>
    %12 = arith.sitofp %11 : vector<8x8xi32> to vector<8x8xf32>
    %c0_6 = arith.constant 0 : index
    %c0_7 = arith.constant 0 : index
    %c0_8 = arith.constant 0 : index
    %13 = vector.load %arg3[%c0_6, %c0_7, %c0_8] : memref<1x1x8xf32, #tpu.memory_space<vmem>>, vector<1x1x8xf32>
    %14 = vector.shape_cast %13 : vector<1x1x8xf32> to vector<1x8xf32>
    %15 = vector.broadcast %14 : vector<1x8xf32> to vector<8x8xf32>
    %16 = arith.mulf %12, %15 : vector<8x8xf32>
    %cst_9 = arith.constant 1.000000e+00 : f32
    %17 = vector.broadcast %cst_9 : f32 to vector<8x8xf32>
    %18 = arith.subf %16, %17 : vector<8x8xf32>
    %cst_10 = arith.constant 1.000000e+10 : f32
    %19 = vector.broadcast %cst_10 : f32 to vector<8x8xf32>
    %20 = arith.mulf %18, %19 : vector<8x8xf32>
    %21 = vector.extract_strided_slice %7 {offsets = [0, 0], sizes = [8, 256], strides = [1, 1]} : vector<8x768xf32> to vector<8x256xf32>
    %22 = vector.extract_strided_slice %7 {offsets = [0, 256], sizes = [8, 256], strides = [1, 1]} : vector<8x768xf32> to vector<8x256xf32>
    %23 = vector.extract_strided_slice %7 {offsets = [0, 512], sizes = [8, 256], strides = [1, 1]} : vector<8x768xf32> to vector<8x256xf32>
    %24 = vector.shape_cast %21 : vector<8x256xf32> to vector<8x8x32xf32>
    %25 = tpu.transpose %24, [1, 0, 2] : vector<8x8x32xf32> -> vector<8x8x32xf32>
    %26 = vector.shape_cast %22 : vector<8x256xf32> to vector<8x8x32xf32>
    %27 = tpu.transpose %26, [1, 0, 2] : vector<8x8x32xf32> -> vector<8x8x32xf32>
    %28 = vector.shape_cast %23 : vector<8x256xf32> to vector<8x8x32xf32>
    %29 = tpu.transpose %28, [1, 0, 2] : vector<8x8x32xf32> -> vector<8x8x32xf32>
    %30 = arith.truncf %25 : vector<8x8x32xf32> to vector<8x8x32xbf16>
    %31 = arith.truncf %27 : vector<8x8x32xf32> to vector<8x8x32xbf16>
    "tpu.trace_start"() <{level = 10 : i32, message = "hqd,hkd->hqk"}> : () -> ()
    %cst_11 = arith.constant dense<0.000000e+00> : vector<8x8x8xf32>
    %32 = tpu.matmul %30, %31, %cst_11 {dimension_numbers = #tpu.dot_dimension_numbers<[2], [2], [1], [1], [0, 0, 0, 1, 1, 1], [0], [0]>} : vector<8x8x32xbf16>, vector<8x8x32xbf16>, vector<8x8x8xf32> -> vector<8x8x8xf32>
    "tpu.trace_stop"() : () -> ()
    %cst_12 = arith.constant 0.176776692 : f32
    %33 = vector.broadcast %cst_12 : f32 to vector<8x8x8xf32>
    %34 = arith.mulf %32, %33 : vector<8x8x8xf32>
    %35 = vector.shape_cast %20 : vector<8x8xf32> to vector<1x8x8xf32>
    %36 = vector.broadcast %35 : vector<1x8x8xf32> to vector<8x8x8xf32>
    %37 = arith.addf %34, %36 : vector<8x8x8xf32>
    %cst_13 = arith.constant dense<0xFF800000> : vector<8x8xf32>
    %38 = vector.multi_reduction <maximumf>, %37, %cst_13 [2] : vector<8x8x8xf32> to vector<8x8xf32>
    %39 = vector.shape_cast %38 : vector<8x8xf32> to vector<8x8x1xf32>
    %40 = vector.broadcast %39 : vector<8x8x1xf32> to vector<8x8x8xf32>
    %41 = arith.subf %37, %40 : vector<8x8x8xf32>
    %42 = math.exp %41 : vector<8x8x8xf32>
    %cst_14 = arith.constant dense<0.000000e+00> : vector<8x8xf32>
    %43 = vector.multi_reduction <add>, %42, %cst_14 [2] : vector<8x8x8xf32> to vector<8x8xf32>
    %44 = vector.shape_cast %43 : vector<8x8xf32> to vector<8x8x1xf32>
    %45 = vector.broadcast %44 : vector<8x8x1xf32> to vector<8x8x8xf32>
    %46 = arith.divf %42, %45 : vector<8x8x8xf32>
    %47 = arith.truncf %46 : vector<8x8x8xf32> to vector<8x8x8xbf16>
    %48 = arith.truncf %29 : vector<8x8x32xf32> to vector<8x8x32xbf16>
    "tpu.trace_start"() <{level = 10 : i32, message = "hqk,hkd->hqd"}> : () -> ()
    %cst_15 = arith.constant dense<0.000000e+00> : vector<8x8x32xf32>
    %49 = tpu.matmul %47, %48, %cst_15 {dimension_numbers = #tpu.dot_dimension_numbers<[2], [1], [1], [2], [0, 0, 0, 1, 1, 2], [0], [0]>} : vector<8x8x8xbf16>, vector<8x8x32xbf16>, vector<8x8x32xf32> -> vector<8x8x32xf32>
    "tpu.trace_stop"() : () -> ()
    %50 = tpu.transpose %49, [1, 0, 2] : vector<8x8x32xf32> -> vector<8x8x32xf32>
    %51 = vector.shape_cast %50 : vector<8x8x32xf32> to vector<8x256xf32>
    %52 = arith.truncf %51 : vector<8x256xf32> to vector<8x256xbf16>
    %c0_16 = arith.constant 0 : index
    %c0_17 = arith.constant 0 : index
    %53 = vector.load %arg7[%c0_16, %c0_17] : memref<256x256xbf16, #tpu.memory_space<vmem>>, vector<256x256xbf16>
    %cst_18 = arith.constant dense<0.000000e+00> : vector<8x256xf32>
    %54 = tpu.matmul %52, %53, %cst_18 {dimension_numbers = #tpu.dot_dimension_numbers<[1], [0], [0], [1], [0, 0, 1, 1], [], []>} : vector<8x256xbf16>, vector<256x256xbf16>, vector<8x256xf32> -> vector<8x256xf32>
    %c0_19 = arith.constant 0 : index
    %c0_20 = arith.constant 0 : index
    %55 = vector.load %arg8[%c0_19, %c0_20] : memref<1x256xf32, #tpu.memory_space<vmem>>, vector<1x256xf32>
    %56 = vector.broadcast %55 : vector<1x256xf32> to vector<8x256xf32>
    %57 = arith.addf %54, %56 : vector<8x256xf32>
    %58 = arith.addf %1, %57 : vector<8x256xf32>
    %c0_21 = arith.constant 0 : index
    %c0_22 = arith.constant 0 : index
    %59 = vector.load %arg9[%c0_21, %c0_22] : memref<1x256xf32, #tpu.memory_space<vmem>>, vector<1x256xf32>
    %c0_23 = arith.constant 0 : index
    %c0_24 = arith.constant 0 : index
    %60 = vector.load %arg10[%c0_23, %c0_24] : memref<1x256xf32, #tpu.memory_space<vmem>>, vector<1x256xf32>
    %cst_25 = arith.constant dense<0.000000e+00> : vector<8xf32>
    %61 = vector.multi_reduction <add>, %58, %cst_25 [1] : vector<8x256xf32> to vector<8xf32>
    %62 = vector.shape_cast %61 : vector<8xf32> to vector<8x1xf32>
    %cst_26 = arith.constant 2.560000e+02 : f32
    %63 = vector.broadcast %cst_26 : f32 to vector<8x1xf32>
    %64 = arith.divf %62, %63 : vector<8x1xf32>
    %65 = vector.broadcast %64 : vector<8x1xf32> to vector<8x256xf32>
    %66 = arith.subf %58, %65 : vector<8x256xf32>
    %67 = arith.mulf %66, %66 : vector<8x256xf32>
    %cst_27 = arith.constant dense<0.000000e+00> : vector<8xf32>
    %68 = vector.multi_reduction <add>, %67, %cst_27 [1] : vector<8x256xf32> to vector<8xf32>
    %69 = vector.shape_cast %68 : vector<8xf32> to vector<8x1xf32>
    %cst_28 = arith.constant 2.560000e+02 : f32
    %70 = vector.broadcast %cst_28 : f32 to vector<8x1xf32>
    %71 = arith.divf %69, %70 : vector<8x1xf32>
    %72 = vector.broadcast %64 : vector<8x1xf32> to vector<8x256xf32>
    %73 = arith.subf %58, %72 : vector<8x256xf32>
    %cst_29 = arith.constant 9.99999974E-6 : f32
    %74 = vector.broadcast %cst_29 : f32 to vector<8x1xf32>
    %75 = arith.addf %71, %74 : vector<8x1xf32>
    %76 = math.rsqrt %75 : vector<8x1xf32>
    %77 = vector.broadcast %76 : vector<8x1xf32> to vector<8x256xf32>
    %78 = arith.mulf %73, %77 : vector<8x256xf32>
    %79 = vector.broadcast %59 : vector<1x256xf32> to vector<8x256xf32>
    %80 = arith.mulf %78, %79 : vector<8x256xf32>
    %81 = vector.broadcast %60 : vector<1x256xf32> to vector<8x256xf32>
    %82 = arith.addf %80, %81 : vector<8x256xf32>
    %83 = arith.truncf %82 : vector<8x256xf32> to vector<8x256xbf16>
    %c0_30 = arith.constant 0 : index
    %c0_31 = arith.constant 0 : index
    %84 = vector.load %arg11[%c0_30, %c0_31] : memref<256x256xbf16, #tpu.memory_space<vmem>>, vector<256x256xbf16>
    %cst_32 = arith.constant dense<0.000000e+00> : vector<8x256xf32>
    %85 = tpu.matmul %83, %84, %cst_32 {dimension_numbers = #tpu.dot_dimension_numbers<[1], [0], [0], [1], [0, 0, 1, 1], [], []>} : vector<8x256xbf16>, vector<256x256xbf16>, vector<8x256xf32> -> vector<8x256xf32>
    %c0_33 = arith.constant 0 : index
    %c0_34 = arith.constant 0 : index
    %86 = vector.load %arg12[%c0_33, %c0_34] : memref<1x256xf32, #tpu.memory_space<vmem>>, vector<1x256xf32>
    %87 = vector.broadcast %86 : vector<1x256xf32> to vector<8x256xf32>
    %88 = arith.addf %85, %87 : vector<8x256xf32>
    %c0_35 = arith.constant 0 : index
    %c0_36 = arith.constant 0 : index
    %c0_37 = arith.constant 0 : index
    %89 = vector.load %arg2[%c0_35, %c0_36, %c0_37] : memref<1x8x256xf32, #tpu.memory_space<vmem>>, vector<1x8x256xf32>
    %90 = vector.shape_cast %89 : vector<1x8x256xf32> to vector<8x256xf32>
    %91 = arith.truncf %90 : vector<8x256xf32> to vector<8x256xbf16>
    %c0_38 = arith.constant 0 : index
    %c0_39 = arith.constant 0 : index
    %92 = vector.load %arg13[%c0_38, %c0_39] : memref<256x512xbf16, #tpu.memory_space<vmem>>, vector<256x512xbf16>
    %cst_40 = arith.constant dense<0.000000e+00> : vector<8x512xf32>
    %93 = tpu.matmul %91, %92, %cst_40 {dimension_numbers = #tpu.dot_dimension_numbers<[1], [0], [0], [1], [0, 0, 1, 1], [], []>} : vector<8x256xbf16>, vector<256x512xbf16>, vector<8x512xf32> -> vector<8x512xf32>
    %c0_41 = arith.constant 0 : index
    %c0_42 = arith.constant 0 : index
    %94 = vector.load %arg14[%c0_41, %c0_42] : memref<1x512xf32, #tpu.memory_space<vmem>>, vector<1x512xf32>
    %95 = vector.broadcast %94 : vector<1x512xf32> to vector<8x512xf32>
    %96 = arith.addf %93, %95 : vector<8x512xf32>
    %c0_43 = arith.constant 0 : index
    %c0_44 = arith.constant 0 : index
    %c0_45 = arith.constant 0 : index
    %97 = vector.load %arg4[%c0_43, %c0_44, %c0_45] : memref<1x1x8xf32, #tpu.memory_space<vmem>>, vector<1x1x8xf32>
    %98 = vector.shape_cast %97 : vector<1x1x8xf32> to vector<1x8xf32>
    %cst_46 = arith.constant 1.000000e+00 : f32
    %99 = vector.broadcast %cst_46 : f32 to vector<1x8xf32>
    %100 = arith.subf %98, %99 : vector<1x8xf32>
    %cst_47 = arith.constant 1.000000e+10 : f32
    %101 = vector.broadcast %cst_47 : f32 to vector<1x8xf32>
    %102 = arith.mulf %100, %101 : vector<1x8xf32>
    %103 = vector.extract_strided_slice %96 {offsets = [0, 0], sizes = [8, 256], strides = [1, 1]} : vector<8x512xf32> to vector<8x256xf32>
    %104 = vector.extract_strided_slice %96 {offsets = [0, 256], sizes = [8, 256], strides = [1, 1]} : vector<8x512xf32> to vector<8x256xf32>
    %105 = vector.shape_cast %88 : vector<8x256xf32> to vector<8x8x32xf32>
    %106 = tpu.transpose %105, [1, 0, 2] : vector<8x8x32xf32> -> vector<8x8x32xf32>
    %107 = vector.shape_cast %103 : vector<8x256xf32> to vector<8x8x32xf32>
    %108 = tpu.transpose %107, [1, 0, 2] : vector<8x8x32xf32> -> vector<8x8x32xf32>
    %109 = vector.shape_cast %104 : vector<8x256xf32> to vector<8x8x32xf32>
    %110 = tpu.transpose %109, [1, 0, 2] : vector<8x8x32xf32> -> vector<8x8x32xf32>
    %111 = arith.truncf %106 : vector<8x8x32xf32> to vector<8x8x32xbf16>
    %112 = arith.truncf %108 : vector<8x8x32xf32> to vector<8x8x32xbf16>
    "tpu.trace_start"() <{level = 10 : i32, message = "hqd,hkd->hqk"}> : () -> ()
    %cst_48 = arith.constant dense<0.000000e+00> : vector<8x8x8xf32>
    %113 = tpu.matmul %111, %112, %cst_48 {dimension_numbers = #tpu.dot_dimension_numbers<[2], [2], [1], [1], [0, 0, 0, 1, 1, 1], [0], [0]>} : vector<8x8x32xbf16>, vector<8x8x32xbf16>, vector<8x8x8xf32> -> vector<8x8x8xf32>
    "tpu.trace_stop"() : () -> ()
    %cst_49 = arith.constant 0.176776692 : f32
    %114 = vector.broadcast %cst_49 : f32 to vector<8x8x8xf32>
    %115 = arith.mulf %113, %114 : vector<8x8x8xf32>
    %116 = vector.shape_cast %102 : vector<1x8xf32> to vector<1x1x8xf32>
    %117 = vector.broadcast %116 : vector<1x1x8xf32> to vector<8x8x8xf32>
    %118 = arith.addf %115, %117 : vector<8x8x8xf32>
    %cst_50 = arith.constant dense<0xFF800000> : vector<8x8xf32>
    %119 = vector.multi_reduction <maximumf>, %118, %cst_50 [2] : vector<8x8x8xf32> to vector<8x8xf32>
    %120 = vector.shape_cast %119 : vector<8x8xf32> to vector<8x8x1xf32>
    %121 = vector.broadcast %120 : vector<8x8x1xf32> to vector<8x8x8xf32>
    %122 = arith.subf %118, %121 : vector<8x8x8xf32>
    %123 = math.exp %122 : vector<8x8x8xf32>
    %cst_51 = arith.constant dense<0.000000e+00> : vector<8x8xf32>
    %124 = vector.multi_reduction <add>, %123, %cst_51 [2] : vector<8x8x8xf32> to vector<8x8xf32>
    %125 = vector.shape_cast %124 : vector<8x8xf32> to vector<8x8x1xf32>
    %126 = vector.broadcast %125 : vector<8x8x1xf32> to vector<8x8x8xf32>
    %127 = arith.divf %123, %126 : vector<8x8x8xf32>
    %128 = arith.truncf %127 : vector<8x8x8xf32> to vector<8x8x8xbf16>
    %129 = arith.truncf %110 : vector<8x8x32xf32> to vector<8x8x32xbf16>
    "tpu.trace_start"() <{level = 10 : i32, message = "hqk,hkd->hqd"}> : () -> ()
    %cst_52 = arith.constant dense<0.000000e+00> : vector<8x8x32xf32>
    %130 = tpu.matmul %128, %129, %cst_52 {dimension_numbers = #tpu.dot_dimension_numbers<[2], [1], [1], [2], [0, 0, 0, 1, 1, 2], [0], [0]>} : vector<8x8x8xbf16>, vector<8x8x32xbf16>, vector<8x8x32xf32> -> vector<8x8x32xf32>
    "tpu.trace_stop"() : () -> ()
    %131 = tpu.transpose %130, [1, 0, 2] : vector<8x8x32xf32> -> vector<8x8x32xf32>
    %132 = vector.shape_cast %131 : vector<8x8x32xf32> to vector<8x256xf32>
    %133 = arith.truncf %132 : vector<8x256xf32> to vector<8x256xbf16>
    %c0_53 = arith.constant 0 : index
    %c0_54 = arith.constant 0 : index
    %134 = vector.load %arg15[%c0_53, %c0_54] : memref<256x256xbf16, #tpu.memory_space<vmem>>, vector<256x256xbf16>
    %cst_55 = arith.constant dense<0.000000e+00> : vector<8x256xf32>
    %135 = tpu.matmul %133, %134, %cst_55 {dimension_numbers = #tpu.dot_dimension_numbers<[1], [0], [0], [1], [0, 0, 1, 1], [], []>} : vector<8x256xbf16>, vector<256x256xbf16>, vector<8x256xf32> -> vector<8x256xf32>
    %c0_56 = arith.constant 0 : index
    %c0_57 = arith.constant 0 : index
    %136 = vector.load %arg16[%c0_56, %c0_57] : memref<1x256xf32, #tpu.memory_space<vmem>>, vector<1x256xf32>
    %137 = vector.broadcast %136 : vector<1x256xf32> to vector<8x256xf32>
    %138 = arith.addf %135, %137 : vector<8x256xf32>
    %139 = arith.addf %82, %138 : vector<8x256xf32>
    %c0_58 = arith.constant 0 : index
    %c0_59 = arith.constant 0 : index
    %140 = vector.load %arg17[%c0_58, %c0_59] : memref<1x256xf32, #tpu.memory_space<vmem>>, vector<1x256xf32>
    %c0_60 = arith.constant 0 : index
    %c0_61 = arith.constant 0 : index
    %141 = vector.load %arg18[%c0_60, %c0_61] : memref<1x256xf32, #tpu.memory_space<vmem>>, vector<1x256xf32>
    %cst_62 = arith.constant dense<0.000000e+00> : vector<8xf32>
    %142 = vector.multi_reduction <add>, %139, %cst_62 [1] : vector<8x256xf32> to vector<8xf32>
    %143 = vector.shape_cast %142 : vector<8xf32> to vector<8x1xf32>
    %cst_63 = arith.constant 2.560000e+02 : f32
    %144 = vector.broadcast %cst_63 : f32 to vector<8x1xf32>
    %145 = arith.divf %143, %144 : vector<8x1xf32>
    %146 = vector.broadcast %145 : vector<8x1xf32> to vector<8x256xf32>
    %147 = arith.subf %139, %146 : vector<8x256xf32>
    %148 = arith.mulf %147, %147 : vector<8x256xf32>
    %cst_64 = arith.constant dense<0.000000e+00> : vector<8xf32>
    %149 = vector.multi_reduction <add>, %148, %cst_64 [1] : vector<8x256xf32> to vector<8xf32>
    %150 = vector.shape_cast %149 : vector<8xf32> to vector<8x1xf32>
    %cst_65 = arith.constant 2.560000e+02 : f32
    %151 = vector.broadcast %cst_65 : f32 to vector<8x1xf32>
    %152 = arith.divf %150, %151 : vector<8x1xf32>
    %153 = vector.broadcast %145 : vector<8x1xf32> to vector<8x256xf32>
    %154 = arith.subf %139, %153 : vector<8x256xf32>
    %cst_66 = arith.constant 9.99999974E-6 : f32
    %155 = vector.broadcast %cst_66 : f32 to vector<8x1xf32>
    %156 = arith.addf %152, %155 : vector<8x1xf32>
    %157 = math.rsqrt %156 : vector<8x1xf32>
    %158 = vector.broadcast %157 : vector<8x1xf32> to vector<8x256xf32>
    %159 = arith.mulf %154, %158 : vector<8x256xf32>
    %160 = vector.broadcast %140 : vector<1x256xf32> to vector<8x256xf32>
    %161 = arith.mulf %159, %160 : vector<8x256xf32>
    %162 = vector.broadcast %141 : vector<1x256xf32> to vector<8x256xf32>
    %163 = arith.addf %161, %162 : vector<8x256xf32>
    %cst_67 = arith.constant 0.000000e+00 : f32
    %164 = vector.broadcast %cst_67 : f32 to vector<8x8x120xf32>
    %165 = tpu.concatenate %127, %164 in 2 : vector<8x8x8xf32>, vector<8x8x120xf32> -> vector<8x8x128xf32>
    %c0_68 = arith.constant 0 : index
    %c0_69 = arith.constant 0 : index
    %c0_70 = arith.constant 0 : index
    %c0_71 = arith.constant 0 : index
    %166 = vector.load %arg28[%c0_68, %c0_69, %c0_70, %c0_71] : memref<1x8x8x128xf32, #tpu.memory_space<vmem>>, vector<1x8x8x128xf32>
    %167 = vector.shape_cast %166 : vector<1x8x8x128xf32> to vector<8x8x128xf32>
    %168 = vector.shape_cast %165 : vector<8x8x128xf32> to vector<1x8x8x128xf32>
    tpu.vector_store %arg28[%c0_68, %c0_69, %c0_70, %c0_71], %168 {strides = array<i32>} : memref<1x8x8x128xf32, #tpu.memory_space<vmem>>, vector<1x8x8x128xf32>,
    %169 = arith.truncf %163 : vector<8x256xf32> to vector<8x256xbf16>
    %c0_72 = arith.constant 0 : index
    %c0_73 = arith.constant 0 : index
    %170 = vector.load %arg19[%c0_72, %c0_73] : memref<256x512xbf16, #tpu.memory_space<vmem>>, vector<256x512xbf16>
    %cst_74 = arith.constant dense<0.000000e+00> : vector<8x512xf32>
    %171 = tpu.matmul %169, %170, %cst_74 {dimension_numbers = #tpu.dot_dimension_numbers<[1], [0], [0], [1], [0, 0, 1, 1], [], []>} : vector<8x256xbf16>, vector<256x512xbf16>, vector<8x512xf32> -> vector<8x512xf32>
    %c0_75 = arith.constant 0 : index
    %c0_76 = arith.constant 0 : index
    %172 = vector.load %arg20[%c0_75, %c0_76] : memref<1x512xf32, #tpu.memory_space<vmem>>, vector<1x512xf32>
    %173 = vector.broadcast %172 : vector<1x512xf32> to vector<8x512xf32>
    %174 = arith.addf %171, %173 : vector<8x512xf32>
    %cst_77 = arith.constant 0.000000e+00 : f32
    %175 = vector.broadcast %cst_77 : f32 to vector<8x512xf32>
    %176 = arith.maximumf %174, %175 : vector<8x512xf32>
    %177 = arith.truncf %176 : vector<8x512xf32> to vector<8x512xbf16>
    %c0_78 = arith.constant 0 : index
    %c0_79 = arith.constant 0 : index
    %178 = vector.load %arg21[%c0_78, %c0_79] : memref<512x256xbf16, #tpu.memory_space<vmem>>, vector<512x256xbf16>
    %cst_80 = arith.constant dense<0.000000e+00> : vector<8x256xf32>
    %179 = tpu.matmul %177, %178, %cst_80 {dimension_numbers = #tpu.dot_dimension_numbers<[1], [0], [0], [1], [0, 0, 1, 1], [], []>} : vector<8x512xbf16>, vector<512x256xbf16>, vector<8x256xf32> -> vector<8x256xf32>
    %c0_81 = arith.constant 0 : index
    %c0_82 = arith.constant 0 : index
    %180 = vector.load %arg22[%c0_81, %c0_82] : memref<1x256xf32, #tpu.memory_space<vmem>>, vector<1x256xf32>
    %181 = vector.broadcast %180 : vector<1x256xf32> to vector<8x256xf32>
    %182 = arith.addf %179, %181 : vector<8x256xf32>
    %183 = arith.addf %163, %182 : vector<8x256xf32>
    %c0_83 = arith.constant 0 : index
    %c0_84 = arith.constant 0 : index
    %184 = vector.load %arg23[%c0_83, %c0_84] : memref<1x256xf32, #tpu.memory_space<vmem>>, vector<1x256xf32>
    %c0_85 = arith.constant 0 : index
    %c0_86 = arith.constant 0 : index
    %185 = vector.load %arg24[%c0_85, %c0_86] : memref<1x256xf32, #tpu.memory_space<vmem>>, vector<1x256xf32>
    %cst_87 = arith.constant dense<0.000000e+00> : vector<8xf32>
    %186 = vector.multi_reduction <add>, %183, %cst_87 [1] : vector<8x256xf32> to vector<8xf32>
    %187 = vector.shape_cast %186 : vector<8xf32> to vector<8x1xf32>
    %cst_88 = arith.constant 2.560000e+02 : f32
    %188 = vector.broadcast %cst_88 : f32 to vector<8x1xf32>
    %189 = arith.divf %187, %188 : vector<8x1xf32>
    %190 = vector.broadcast %189 : vector<8x1xf32> to vector<8x256xf32>
    %191 = arith.subf %183, %190 : vector<8x256xf32>
    %192 = arith.mulf %191, %191 : vector<8x256xf32>
    %cst_89 = arith.constant dense<0.000000e+00> : vector<8xf32>
    %193 = vector.multi_reduction <add>, %192, %cst_89 [1] : vector<8x256xf32> to vector<8xf32>
    %194 = vector.shape_cast %193 : vector<8xf32> to vector<8x1xf32>
    %cst_90 = arith.constant 2.560000e+02 : f32
    %195 = vector.broadcast %cst_90 : f32 to vector<8x1xf32>
    %196 = arith.divf %194, %195 : vector<8x1xf32>
    %197 = vector.broadcast %189 : vector<8x1xf32> to vector<8x256xf32>
    %198 = arith.subf %183, %197 : vector<8x256xf32>
    %cst_91 = arith.constant 9.99999974E-6 : f32
    %199 = vector.broadcast %cst_91 : f32 to vector<8x1xf32>
    %200 = arith.addf %196, %199 : vector<8x1xf32>
    %201 = math.rsqrt %200 : vector<8x1xf32>
    %202 = vector.broadcast %201 : vector<8x1xf32> to vector<8x256xf32>
    %203 = arith.mulf %198, %202 : vector<8x256xf32>
    %204 = vector.broadcast %184 : vector<1x256xf32> to vector<8x256xf32>
    %205 = arith.mulf %203, %204 : vector<8x256xf32>
    %206 = vector.broadcast %185 : vector<1x256xf32> to vector<8x256xf32>
    %207 = arith.addf %205, %206 : vector<8x256xf32>
    %208 = arith.truncf %207 : vector<8x256xf32> to vector<8x256xbf16>
    %c0_92 = arith.constant 0 : index
    %c0_93 = arith.constant 0 : index
    %209 = vector.load %arg25[%c0_92, %c0_93] : memref<256x128xbf16, #tpu.memory_space<vmem>>, vector<256x128xbf16>
    %cst_94 = arith.constant dense<0.000000e+00> : vector<8x128xf32>
    %210 = tpu.matmul %208, %209, %cst_94 {dimension_numbers = #tpu.dot_dimension_numbers<[1], [0], [0], [1], [0, 0, 1, 1], [], []>} : vector<8x256xbf16>, vector<256x128xbf16>, vector<8x128xf32> -> vector<8x128xf32>
    %c0_95 = arith.constant 0 : index
    %c0_96 = arith.constant 0 : index
    %211 = vector.load %arg26[%c0_95, %c0_96] : memref<1x128xf32, #tpu.memory_space<vmem>>, vector<1x128xf32>
    %212 = vector.broadcast %211 : vector<1x128xf32> to vector<8x128xf32>
    %213 = arith.addf %210, %212 : vector<8x128xf32>
    %c0_97 = arith.constant 0 : index
    %c0_98 = arith.constant 0 : index
    %c0_99 = arith.constant 0 : index
    %214 = vector.load %arg27[%c0_97, %c0_98, %c0_99] : memref<1x8x128xf32, #tpu.memory_space<vmem>>, vector<1x8x128xf32>
    %215 = vector.shape_cast %214 : vector<1x8x128xf32> to vector<8x128xf32>
    %216 = vector.shape_cast %213 : vector<8x128xf32> to vector<1x8x128xf32>
    tpu.vector_store %arg27[%c0_97, %c0_98, %c0_99], %216 {strides = array<i32>} : memref<1x8x128xf32, #tpu.memory_space<vmem>>, vector<1x8x128xf32>,
    return
  }
  func.func @transform_0(%arg0: i32) -> (i32, i32, i32) {
    %c0_i32 = arith.constant 0 : i32
    %c0_i32_0 = arith.constant 0 : i32
    %c0_i32_1 = arith.constant 0 : i32
    return %arg0, %c0_i32, %c0_i32_0 : i32, i32, i32
  }
  func.func @transform_1(%arg0: i32) -> (i32, i32, i32) {
    %c0_i32 = arith.constant 0 : i32
    %c0_i32_0 = arith.constant 0 : i32
    %c0_i32_1 = arith.constant 0 : i32
    return %arg0, %c0_i32, %c0_i32_0 : i32, i32, i32
  }
  func.func @transform_2(%arg0: i32) -> (i32, i32, i32) {
    %c0_i32 = arith.constant 0 : i32
    %c0_i32_0 = arith.constant 0 : i32
    %c0_i32_1 = arith.constant 0 : i32
    return %arg0, %c0_i32, %c0_i32_0 : i32, i32, i32
  }
  func.func @transform_3(%arg0: i32) -> (i32, i32, i32) {
    %c0_i32 = arith.constant 0 : i32
    %c0_i32_0 = arith.constant 0 : i32
    %c0_i32_1 = arith.constant 0 : i32
    return %arg0, %c0_i32, %c0_i32_0 : i32, i32, i32
  }
  func.func @transform_4(%arg0: i32) -> (i32, i32) {
    %c0_i32 = arith.constant 0 : i32
    %c0_i32_0 = arith.constant 0 : i32
    %c0_i32_1 = arith.constant 0 : i32
    return %c0_i32, %c0_i32_0 : i32, i32
  }
  func.func @transform_5(%arg0: i32) -> (i32, i32) {
    %c0_i32 = arith.constant 0 : i32
    %c0_i32_0 = arith.constant 0 : i32
    %c0_i32_1 = arith.constant 0 : i32
    return %c0_i32, %c0_i32_0 : i32, i32
  }
  func.func @transform_6(%arg0: i32) -> (i32, i32) {
    %c0_i32 = arith.constant 0 : i32
    %c0_i32_0 = arith.constant 0 : i32
    %c0_i32_1 = arith.constant 0 : i32
    return %c0_i32, %c0_i32_0 : i32, i32
  }
  func.func @transform_7(%arg0: i32) -> (i32, i32) {
    %c0_i32 = arith.constant 0 : i32
    %c0_i32_0 = arith.constant 0 : i32
    %c0_i32_1 = arith.constant 0 : i32
    return %c0_i32, %c0_i32_0 : i32, i32
  }
  func.func @transform_8(%arg0: i32) -> (i32, i32) {
    %c0_i32 = arith.constant 0 : i32
    %c0_i32_0 = arith.constant 0 : i32
    %c0_i32_1 = arith.constant 0 : i32
    return %c0_i32, %c0_i32_0 : i32, i32
  }
  func.func @transform_9(%arg0: i32) -> (i32, i32) {
    %c0_i32 = arith.constant 0 : i32
    %c0_i32_0 = arith.constant 0 : i32
    %c0_i32_1 = arith.constant 0 : i32
    return %c0_i32, %c0_i32_0 : i32, i32
  }
  func.func @transform_10(%arg0: i32) -> (i32, i32) {
    %c0_i32 = arith.constant 0 : i32
    %c0_i32_0 = arith.constant 0 : i32
    %c0_i32_1 = arith.constant 0 : i32
    return %c0_i32, %c0_i32_0 : i32, i32
  }
  func.func @transform_11(%arg0: i32) -> (i32, i32) {
    %c0_i32 = arith.constant 0 : i32
    %c0_i32_0 = arith.constant 0 : i32
    %c0_i32_1 = arith.constant 0 : i32
    return %c0_i32, %c0_i32_0 : i32, i32
  }
  func.func @transform_12(%arg0: i32) -> (i32, i32) {
    %c0_i32 = arith.constant 0 : i32
    %c0_i32_0 = arith.constant 0 : i32
    %c0_i32_1 = arith.constant 0 : i32
    return %c0_i32, %c0_i32_0 : i32, i32
  }
  func.func @transform_13(%arg0: i32) -> (i32, i32) {
    %c0_i32 = arith.constant 0 : i32
    %c0_i32_0 = arith.constant 0 : i32
    %c0_i32_1 = arith.constant 0 : i32
    return %c0_i32, %c0_i32_0 : i32, i32
  }
  func.func @transform_14(%arg0: i32) -> (i32, i32) {
    %c0_i32 = arith.constant 0 : i32
    %c0_i32_0 = arith.constant 0 : i32
    %c0_i32_1 = arith.constant 0 : i32
    return %c0_i32, %c0_i32_0 : i32, i32
  }
  func.func @transform_15(%arg0: i32) -> (i32, i32) {
    %c0_i32 = arith.constant 0 : i32
    %c0_i32_0 = arith.constant 0 : i32
    %c0_i32_1 = arith.constant 0 : i32
    return %c0_i32, %c0_i32_0 : i32, i32
  }
  func.func @transform_16(%arg0: i32) -> (i32, i32) {
    %c0_i32 = arith.constant 0 : i32
    %c0_i32_0 = arith.constant 0 : i32
    %c0_i32_1 = arith.constant 0 : i32
    return %c0_i32, %c0_i32_0 : i32, i32
  }
  func.func @transform_17(%arg0: i32) -> (i32, i32) {
    %c0_i32 = arith.constant 0 : i32
    %c0_i32_0 = arith.constant 0 : i32
    %c0_i32_1 = arith.constant 0 : i32
    return %c0_i32, %c0_i32_0 : i32, i32
  }
  func.func @transform_18(%arg0: i32) -> (i32, i32) {
    %c0_i32 = arith.constant 0 : i32
    %c0_i32_0 = arith.constant 0 : i32
    %c0_i32_1 = arith.constant 0 : i32
    return %c0_i32, %c0_i32_0 : i32, i32
  }
  func.func @transform_19(%arg0: i32) -> (i32, i32) {
    %c0_i32 = arith.constant 0 : i32
    %c0_i32_0 = arith.constant 0 : i32
    %c0_i32_1 = arith.constant 0 : i32
    return %c0_i32, %c0_i32_0 : i32, i32
  }
  func.func @transform_20(%arg0: i32) -> (i32, i32) {
    %c0_i32 = arith.constant 0 : i32
    %c0_i32_0 = arith.constant 0 : i32
    %c0_i32_1 = arith.constant 0 : i32
    return %c0_i32, %c0_i32_0 : i32, i32
  }
  func.func @transform_21(%arg0: i32) -> (i32, i32) {
    %c0_i32 = arith.constant 0 : i32
    %c0_i32_0 = arith.constant 0 : i32
    %c0_i32_1 = arith.constant 0 : i32
    return %c0_i32, %c0_i32_0 : i32, i32
  }
  func.func @transform_22(%arg0: i32) -> (i32, i32) {
    %c0_i32 = arith.constant 0 : i32
    %c0_i32_0 = arith.constant 0 : i32
    %c0_i32_1 = arith.constant 0 : i32
    return %c0_i32, %c0_i32_0 : i32, i32
  }
  func.func @transform_23(%arg0: i32) -> (i32, i32) {
    %c0_i32 = arith.constant 0 : i32
    %c0_i32_0 = arith.constant 0 : i32
    %c0_i32_1 = arith.constant 0 : i32
    return %c0_i32, %c0_i32_0 : i32, i32
  }
  func.func @transform_24(%arg0: i32) -> (i32, i32) {
    %c0_i32 = arith.constant 0 : i32
    %c0_i32_0 = arith.constant 0 : i32
    %c0_i32_1 = arith.constant 0 : i32
    return %c0_i32, %c0_i32_0 : i32, i32
  }
  func.func @transform_25(%arg0: i32) -> (i32, i32) {
    %c0_i32 = arith.constant 0 : i32
    %c0_i32_0 = arith.constant 0 : i32
    %c0_i32_1 = arith.constant 0 : i32
    return %c0_i32, %c0_i32_0 : i32, i32
  }
  func.func @transform_26(%arg0: i32) -> (i32, i32, i32) {
    %c0_i32 = arith.constant 0 : i32
    %c0_i32_0 = arith.constant 0 : i32
    %c0_i32_1 = arith.constant 0 : i32
    return %arg0, %c0_i32, %c0_i32_0 : i32, i32, i32
  }
  func.func @transform_27(%arg0: i32) -> (i32, i32, i32, i32) {
    %c0_i32 = arith.constant 0 : i32
    %c0_i32_0 = arith.constant 0 : i32
    %c0_i32_1 = arith.constant 0 : i32
    %c0_i32_2 = arith.constant 0 : i32
    return %arg0, %c0_i32, %c0_i32_0, %c0_i32_1 : i32, i32, i32, i32
  }
}

</mosaic_0001>

<bundles_post_ra>
// kernel: net_forward.2
= control target key start
LH: loop header
LB: loop body
LE: loop exit
PB: predicated region body
PF: predicated region fallthrough
CT: control target
= control target key end

     0   :  { %s6717_s0 = inlined_call_operand.vmem [shape: f32[2,8,256], index: 0, kind: input, shape index: {}]   ;;  %s6718_s1 = inlined_call_operand.vmem [shape: f32[2,1,8], index: 1, kind: input, shape index: {}]   ;;  %s6719_s2 = inlined_call_operand.hbm [shape: bf16[256,768], index: 2, kind: input, shape index: {}]   ;;  %s6720_s3 = inlined_call_operand.vmem [shape: f32[1,768], index: 3, kind: input, shape index: {}]   ;;  %s6721_s4 = inlined_call_operand.hbm [shape: bf16[256,256], index: 4, kind: input, shape index: {}]   ;;  %s6722_s5 = inlined_call_operand.vmem [shape: f32[1,256], index: 5, kind: input, shape index: {}]   ;;  %s6723_s6 = inlined_call_operand.vmem [shape: f32[1,256], index: 6, kind: input, shape index: {}]   ;;  %s6724_s7 = inlined_call_operand.vmem [shape: f32[1,256], index: 7, kind: input, shape index: {}]   ;;  %s6725_s8 = inlined_call_operand.vmem [shape: bf16[256,512], index: 8, kind: input, shape index: {}]   ;;  %s6726_s9 = inlined_call_operand.vmem [shape: f32[1,512], index: 9, kind: input, shape index: {}]   ;;  %s6727_s10 = inlined_call_operand.hbm [shape: bf16[512,256], index: 10, kind: input, shape index: {}]   ;;  %s6728_s11 = inlined_call_operand.vmem [shape: f32[1,256], index: 11, kind: input, shape index: {}]   ;;  %s6729_s12 = inlined_call_operand.vmem [shape: f32[1,256], index: 12, kind: input, shape index: {}]   ;;  %s6730_s13 = inlined_call_operand.vmem [shape: f32[1,256], index: 13, kind: input, shape index: {}]   ;;  %s6731_s14 = inlined_call_operand.vmem [shape: f32[2,8,256], index: 14, kind: output, shape index: {}]  }
   0x1   :  { %6736 = sst [smem:[#allocation10_spill]] %s6730_s13 }
   0x2   :  { %6737 = sst [smem:[#allocation11_spill]] %s6731_s14 }
   0x3   :  { %19 = vsyncpa [#allocation3], 0 }
   0x4   :  { %20 = vsyncpa [#allocation5], 0  ;;  %s5867_s29 = smov 0  }
   0x5 LB: > { %6738 = sst [smem:[#allocation9_spill]] %s5776_s29  ;;  %s5778_s30 = smov [#allocation4]   ;;  %s5776_s29 = sphi %s5867_s29, %s26_s29  }
   0x6   : > { %s389_s15 = sshll.u32 %s5778_s30, 4  ;;  %s5873_s16 = sadd.s32 4294967295, %s5776_s29   ;;  %s5882_s15 = int_to_ptr.vmem [resolvable:$true] %s389_s15 }
   0x7   : > { %p4741_p0 = scmp.ge.s32.totalorder %s5776_s29, 1  ;;  %p361_p1 = scmp.lt.s32.totalorder %s5776_s29, 3 }
   0x8   : > { %p6734_p2 = scmp.eq.s32.totalorder %s5873_s16, 0  ;;  %s5779_s18 = smov [#allocation2]  }
   0x9   : > { %p5878_p3 = pnand %p4741_p0, %p361_p1  ;;  %s373_s19 = sshll.u32 %s5779_s18, 4  ;;  %s5886_s19 = int_to_ptr.vmem [resolvable:$true] %s373_s19 }
   0xa   : > { %s5780_s21 = smov [#allocation6]   ;;  %s5678_s25 = scalar_lea.hbm %s6721_s4, 4096 }
   0xb   : > { %s6739_s17 = scalar_select %p5878_p3, 1, 0 }
   0xc   : > { %p5203_p4 = pneg %p5878_p3  ;;  %s5894_s22 = sshll.u32 %s5780_s21, 4  ;;  %s418_s22 = int_to_ptr.vmem [resolvable:$true] %s5894_s22 }
   0xd   : > { %p5679_p6 = scmp.ne.s32.totalorder %s6721_s4, %s5678_s25  ;;  %p5685_p10 = scmp.lt.u32.totalorder %s5678_s25, %s6721_s4 }
   0xe   : > { %p5890_p5 = pnand %p6734_p2, %p5203_p4 }
  0x10   : > { %p5904_p7 = pneg %p5890_p5 }
  0x12   : > { %p5681_p8 = pnand %p5904_p7, %p5679_p6 }
  0x14   : > { %p5682_p9 = pneg %p5681_p8 }
  0x16   : > { %p5687_p11 = pnand %p5685_p10, %p5682_p9 }
  0x18   : > { %5690 = shalt.err (!%p5687_p11)
}
  0x19   : > { %s5691_s21 = scalar_lea.vmem %s5882_s15, 4096  ;;  %p5699_p1 = scmp.lt.s32.totalorder %s5882_s15, %s5882_s15 }
  0x1a   : > { %p5692_p12 = scmp.ne.s32.totalorder %s5882_s15, %s5691_s21  ;;  %p5700_p4 = scmp.lt.s32.totalorder %s5691_s21, %s5691_s21 }
  0x1c   : > { %p5694_p13 = pnand %p5692_p12, %p5904_p7  ;;  %p5701_p6 = por %p5700_p4, %p5699_p1 }
  0x1e   : > { %p5695_p0 = pneg %p5694_p13 }
  0x20   : > { %p5702_p8 = pnand %p5701_p6, %p5695_p0 }
  0x22   : > { %5705 = shalt.err (!%p5702_p8)
}
  0x23   : > { %s6733_s23 = smov 128   ;;  %s5782_s24 = smov 8  }
  0x24   : > { %5209 = dma.hbm_to_vmem [thread:$0]  (!%p5890_p5), %s6721_s4, 4096, %s5882_s15, [#allocation5], %s6733_s23, %s6733_s23, %s5782_s24  }
  0x25   : > { %s5706_s18 = scalar_lea.hbm %s6719_s2, 12288 }
  0x26   : > { %p5707_p9 = scmp.ne.s32.totalorder %s6719_s2, %s5706_s18  ;;  %p5713_p12 = scmp.lt.u32.totalorder %s5706_s18, %s6719_s2 }
  0x28   : > { %p5709_p10 = pnand %p5707_p9, %p5904_p7 }
  0x2a   : > { %p5710_p11 = pneg %p5709_p10 }
  0x2c   : > { %p5715_p13 = pnand %p5713_p12, %p5710_p11 }
  0x2e   : > { %5718 = shalt.err (!%p5715_p13)
}
  0x2f   : > { %s5719_s15 = scalar_lea.vmem %s5886_s19, 12288  ;;  %p5727_p6 = scmp.lt.s32.totalorder %s5886_s19, %s5886_s19 }
  0x30   : > { %p5720_p0 = scmp.ne.s32.totalorder %s5886_s19, %s5719_s15  ;;  %p5728_p8 = scmp.lt.s32.totalorder %s5719_s15, %s5719_s15 }
  0x32   : > { %p5722_p1 = pnand %p5720_p0, %p5904_p7  ;;  %p5729_p9 = por %p5728_p8, %p5727_p6 }
  0x34   : > { %p5723_p4 = pneg %p5722_p1 }
  0x36   : > { %p5730_p10 = pnand %p5729_p9, %p5723_p4 }
  0x38   : > { %5733 = shalt.err (!%p5730_p10)
}
  0x39   : > { %s5783_s29 = smov 384   ;;  %s5784_s13 = smov 24  }
  0x3a   : > { %5206 = dma.hbm_to_vmem [thread:$0]  (!%p5890_p5), %s6719_s2, 12288, %s5886_s19, [#allocation3], %s5783_s29, %s5783_s29, %s5784_s13  }
  0x3b   : > { %s5734_s30 = scalar_lea.hbm %s6727_s10, 8192 }
  0x3c   : > { %p5735_p11 = scmp.ne.s32.totalorder %s6727_s10, %s5734_s30  ;;  %p5741_p0 = scmp.lt.u32.totalorder %s5734_s30, %s6727_s10 }
  0x3e   : > { %p5737_p12 = pnand %p5735_p11, %p5904_p7 }
  0x40   : > { %p5738_p13 = pneg %p5737_p12 }
  0x42   : > { %p5743_p1 = pnand %p5741_p0, %p5738_p13 }
  0x44   : > { %5746 = shalt.err (!%p5743_p1)
}
  0x45   : > { %s5747_s14 = scalar_lea.vmem %s418_s22, 8192  ;;  %p5755_p9 = scmp.lt.s32.totalorder %s418_s22, %s418_s22 }
  0x46   : > { %p5748_p4 = scmp.ne.s32.totalorder %s418_s22, %s5747_s14  ;;  %p5756_p10 = scmp.lt.s32.totalorder %s5747_s14, %s5747_s14 }
  0x48   : > { %p5750_p6 = pnand %p5748_p4, %p5904_p7  ;;  %p5757_p2 = por %p5756_p10, %p5755_p9 }
  0x4a   : > { %p5751_p8 = pneg %p5750_p6 }
  0x4c   : > { %p5758_p3 = pnand %p5757_p2, %p5751_p8 }
  0x4e   : > { %5761 = shalt.err (!%p5758_p3)
}
  0x4f   : > { %s6742_s19 = smov 128   ;;  %p6743_p11 = scmp.ne.s32.totalorder %s6739_s17, 0 }
  0x50   : > { %5212 = dma.hbm_to_vmem [thread:$0]  (!%p5890_p5), %s6727_s10, 8192, %s418_s22, [#allocation5], %s6742_s19, %s6742_s19, %s5782_s24  }
  0x51   : > { %456 = sbr.rel (%p6743_p11) target bundleno = 2791 (0xae7), region = 76  ;;  %p6744_p7 = scmp.eq.s32.totalorder (!%p6743_p11), %s5873_s16, 0 }
  0x58   : > { %5767 = dma.done.wait (%p6744_p7), [#allocation3], 12288   ;;  %p6745_p12 = pmov %p6744_p7 }
  0x59   : > { %p6746_p2 = pmov %p6744_p7 }
  0x5a   : > { %5769 = vsyncadd (%p6745_p12), [#allocation3], 4294955008 }
  0x5b   : > { %5771 = dma.done.wait (%p6746_p2), [#allocation5], 12288   ;;  %p6747_p3 = pmov %p6746_p2 }
  0x5c   : > { %v5256_v0 = vld [vmem:[#allocation2 + $0xc] ss:$24 sps:$4 sm:$0xff]   ;;  %v5258_v1 = vld [vmem:[#allocation2 + $0x8] ss:$24 sps:$4 sm:$0xff]   ;;  %v5261_v3 = vld [vmem:[#allocation2 + $0x3c] ss:$24 sps:$4 sm:$0xff]  }
  0x5d   : > { %5773 = vsyncadd (%p6747_p3), [#allocation5], 4294955008  ;;  %1180 = vmatprep.subr.bf16.mxu1 %v5256_v0  ;;  %v5259_v2 = vld [vmem:[#allocation2 + $0x4] ss:$24 sps:$4 sm:$0xff]   ;;  %v5263_v4 = vld [vmem:[#allocation2] ss:$24 sps:$4 sm:$0xff]  }
  0x5e   : > { %1181 = vmatpush1.bf16.msra.mxu1 %v5258_v1  ;;  %v5264_v5 = vld [vmem:[#allocation2 + $0x38] ss:$24 sps:$4 sm:$0xff]   ;;  %1139 = vmatprep.subr.bf16.mxu0 %v5259_v2  ;;  %v5265_v6 = vld [vmem:[#allocation2 + $0x34] ss:$24 sps:$4 sm:$0xff]   ;;  %v5270_v9 = vld [vmem:[#allocation2 + $0x68] ss:$24 sps:$4 sm:$0xff]  }
  0x5f   : > { %1182 = vmatprep.subr.bf16.mxu1 %v5261_v3  ;;  %1140 = vmatpush1.bf16.msra.mxu0 %v5263_v4  ;;  %v5267_v7 = vld [vmem:[#allocation2 + $0x6c] ss:$24 sps:$4 sm:$0xff]   ;;  %v5269_v8 = vld [vmem:[#allocation2 + $0x30] ss:$24 sps:$4 sm:$0xff]   ;;  %v5273_v11 = vld [vmem:[#allocation2 + $0x9c] ss:$24 sps:$4 sm:$0xff]   ;;  %v629_v4 = vlaneseq }
  0x60   : > { %1141 = vmatprep.subr.bf16.mxu0 %v5265_v6  ;;  %v5271_v10 = vld [vmem:[#allocation2 + $0x64] ss:$24 sps:$4 sm:$0xff]   ;;  %v5275_v12 = vld [vmem:[#allocation2 + $0x60] ss:$24 sps:$4 sm:$0xff]   ;;  %v5277_v13 = vld [vmem:[#allocation2 + $0x94] ss:$24 sps:$4 sm:$0xff]  }
  0x61   : > { %v5276_v14 = vld [vmem:[#allocation2 + $0x98] ss:$24 sps:$4 sm:$0xff]   ;;  %v5279_v15 = vld [vmem:[#allocation2 + $0xcc] ss:$24 sps:$4 sm:$0xff]   ;;  %v5282_v18 = vld [vmem:[#allocation2 + $0xc8] ss:$24 sps:$4 sm:$0xff]  }
  0x62   : > { %1183 = vmatpush1.bf16.msra.mxu1 %v5264_v5  ;;  %v5281_v16 = vld [vmem:[#allocation2 + $0x90] ss:$24 sps:$4 sm:$0xff]   ;;  %v5283_v17 = vld [vmem:[#allocation2 + $0xc4] ss:$24 sps:$4 sm:$0xff]   ;;  %v5287_v20 = vld [vmem:[#allocation2 + $0xc0] ss:$24 sps:$4 sm:$0xff]  }
  0x63   : > { %1184 = vmatprep.subr.bf16.mxu1 %v5267_v7  ;;  %1142 = vmatpush1.bf16.msra.mxu0 %v5269_v8  ;;  %v5285_v19 = vld [vmem:[#allocation2 + $0xfc] ss:$24 sps:$4 sm:$0xff]   ;;  %v5288_v22 = vld [vmem:[#allocation2 + $0xf8] ss:$24 sps:$4 sm:$0xff]   ;;  %v5291_v23 = vld [vmem:[#allocation2 + $0x12c] ss:$24 sps:$4 sm:$0xff]  }
  0x64   : > { %1143 = vmatprep.subr.bf16.mxu0 %v5271_v10  ;;  %v5289_v21 = vld [vmem:[#allocation2 + $0xf4] ss:$24 sps:$4 sm:$0xff]   ;;  %v5293_v24 = vld [vmem:[#allocation2 + $0xf0] ss:$24 sps:$4 sm:$0xff]   ;;  %v5295_v25 = vld [vmem:[#allocation2 + $0x124] ss:$24 sps:$4 sm:$0xff]  }
  0x65   : > { %v5294_v26 = vld [vmem:[#allocation2 + $0x128] ss:$24 sps:$4 sm:$0xff]   ;;  %v5297_v27 = vld [vmem:[#allocation2 + $0x15c] ss:$24 sps:$4 sm:$0xff]   ;;  %v5300_v30 = vld [vmem:[#allocation2 + $0x158] ss:$24 sps:$4 sm:$0xff]  }
  0x66   : > { %1185 = vmatpush1.bf16.msra.mxu1 %v5270_v9  ;;  %v5299_v28 = vld [vmem:[#allocation2 + $0x120] ss:$24 sps:$4 sm:$0xff]   ;;  %v5301_v29 = vld [vmem:[#allocation2 + $0x154] ss:$24 sps:$4 sm:$0xff]   ;;  %p513_p5 = scmp.lt.s32.totalorder %s5873_s16, 1  ;;  %v6001_v5 = vshrl.u32 %v629_v4, 7 }
  0x67   : > { %1186 = vmatprep.subr.bf16.mxu1 %v5273_v11  ;;  %1144 = vmatpush1.bf16.msra.mxu0 %v5275_v12  ;;  %v5303_v31 = vld [vmem:[#allocation2 + $0x18c] ss:$24 sps:$4 sm:$0xff]   ;;  %v5305_v32 = vld [vmem:[#allocation2 + $0x150] ss:$24 sps:$4 sm:$0xff]   ;;  %v5309_v35 = vld [vmem:[#allocation2 + $0x1bc] ss:$24 sps:$4 sm:$0xff]  }
  0x68   : > { %1145 = vmatprep.subr.bf16.mxu0 %v5277_v13  ;;  %v5307_v33 = vld [vmem:[#allocation2 + $0x184] ss:$24 sps:$4 sm:$0xff]   ;;  %v5306_v34 = vld [vmem:[#allocation2 + $0x188] ss:$24 sps:$4 sm:$0xff]   ;;  %s6752_s16 = smov (!%p513_p5, %s5873_s16), 1  ;;  %v639_v6 = vsub.s32 2, %v6001_v5 }
  0x69   : > { %v5311_v36 = vld [vmem:[#allocation2 + $0x180] ss:$24 sps:$4 sm:$0xff]   ;;  %v5313_v37 = vld [vmem:[#allocation2 + $0x1b4] ss:$24 sps:$4 sm:$0xff]   ;;  %s5061_s17 = sshll.u32 %s6752_s16, 4  ;;  %v6010_v8 = vsub.s32 0, %v6001_v5  ;;  %s520_s21 = scalar_lea.vmem %s6718_s1, %s6752_s16 }
  0x6a   : > { %1187 = vmatpush1.bf16.msra.mxu1 %v5276_v14  ;;  %v5312_v38 = vld [vmem:[#allocation2 + $0x1b8] ss:$24 sps:$4 sm:$0xff]   ;;  %v5315_v39 = vld [vmem:[#allocation2 + $0x1ec] ss:$24 sps:$4 sm:$0xff]   ;;  %s5993_s28 = scalar_lea.vmem %s6717_s0, %s5061_s17  ;;  %v5318_v42 = vld [vmem:[#allocation2 + $0x1e8] ss:$24 sps:$4 sm:$0xff]  }
  0x6b   : > { %1188 = vmatprep.subr.bf16.mxu1 %v5279_v15  ;;  %1146 = vmatpush1.bf16.msra.mxu0 %v5281_v16  ;;  %v5317_v40 = vld [vmem:[#allocation2 + $0x1b0] ss:$24 sps:$4 sm:$0xff]   ;;  %v5319_v41 = vld [vmem:[#allocation2 + $0x1e4] ss:$24 sps:$4 sm:$0xff]   ;;  %v5323_v44 = vld [vmem:[#allocation2 + $0x1e0] ss:$24 sps:$4 sm:$0xff]  }
  0x6c   : > { %1147 = vmatprep.subr.bf16.mxu0 %v5283_v17  ;;  %v5321_v43 = vld [vmem:[#allocation2 + $0x21c] ss:$24 sps:$4 sm:$0xff]   ;;  %v528_v45 = vld [vmem:[%s5993_s28 + $0x8] sm:$0xff]  ;;  %v5324_v48 = vld [vmem:[#allocation2 + $0x218] ss:$24 sps:$4 sm:$0xff]   ;;  %s5785_s25 = smov 32  }
  0x6d   : > { %v5325_v46 = vld [vmem:[#allocation2 + $0x214] ss:$24 sps:$4 sm:$0xff]   ;;  %v530_v47 = vpack.c.bf16 %v528_v45, %v528_v45  ;;  %v5329_v50 = vld [vmem:[#allocation2 + $0x210] ss:$24 sps:$4 sm:$0xff]   ;;  %v5331_v51 = vld [vmem:[#allocation2 + $0x244] ss:$24 sps:$4 sm:$0xff]  }
  0x6e   : > { %1189 = vmatpush1.bf16.msra.mxu1 %v5282_v18  ;;  %v5327_v49 = vld [vmem:[#allocation2 + $0x24c] ss:$24 sps:$4 sm:$0xff]   ;;  %v5330_v52 = vld [vmem:[#allocation2 + $0x248] ss:$24 sps:$4 sm:$0xff]   ;;  %v5333_v53 = vld [vmem:[#allocation2 + $0x27c] ss:$24 sps:$4 sm:$0xff]  }
  0x6f   : > { %1190 = vmatprep.subr.bf16.mxu1 %v5285_v19  ;;  %1148 = vmatpush1.bf16.msra.mxu0 %v5287_v20  ;;  %v5335_v54 = vld [vmem:[#allocation2 + $0x240] ss:$24 sps:$4 sm:$0xff]   ;;  %v5337_v55 = vld [vmem:[#allocation2 + $0x274] ss:$24 sps:$4 sm:$0xff]   ;;  %v5341_v58 = vld [vmem:[#allocation2 + $0x270] ss:$24 sps:$4 sm:$0xff]  }
  0x70   : > { %1149 = vmatprep.subr.bf16.mxu0 %v5289_v21  ;;  %1212 = vmatprep.mubr.bf16.mxu1 %v530_v47  ;;  %v5336_v56 = vld [vmem:[#allocation2 + $0x278] ss:$24 sps:$4 sm:$0xff]   ;;  %v5339_v57 = vld [vmem:[#allocation2 + $0x2ac] ss:$24 sps:$4 sm:$0xff]   ;;  %v5342_v60 = vld [vmem:[#allocation2 + $0x2a8] ss:$24 sps:$4 sm:$0xff]  }
  0x71   : > { %1171 = vmatprep.mubr.bf16.mxu0 %v530_v47  ;;  %v5343_v59 = vld [vmem:[#allocation2 + $0x2a4] ss:$24 sps:$4 sm:$0xff]   ;;  %v5347_v62 = vld [vmem:[#allocation2 + $0x2a0] ss:$24 sps:$4 sm:$0xff]   ;;  %v5349_v63 = vld [vmem:[#allocation2 + $0x2d4] ss:$24 sps:$4 sm:$0xff]  }
  0x72   : > { %1191 = vmatpush1.bf16.msra.mxu1 %v5288_v22  ;;  %v5345_v61 = vld [vmem:[#allocation2 + $0x2dc] ss:$24 sps:$4 sm:$0xff]   ;;  %v5348_v0 = vld [vmem:[#allocation2 + $0x2d8] ss:$24 sps:$4 sm:$0xff]   ;;  %v527_v1 = vld [vmem:[%s5993_s28] sm:$0xff]  ;;  %s5786_s26 = smov 96  }
  0x73   : > { %1192 = vmatprep.subr.bf16.mxu1 %v5291_v23  ;;  %1150 = vmatpush1.bf16.msra.mxu0 %v5293_v24  ;;  %v5351_v2 = vld [vmem:[#allocation2 + $0x2d0] ss:$24 sps:$4 sm:$0xff]   ;;  %v5997_v3 = vpack.c.bf16 %v527_v1, %v527_v1  ;;  %v6007_v7 = vld [vmem:[%s6720_s3] sm:$0x3f]  ;;  %v643_v20 = vsub.s32 3, %v6001_v5  ;;  %s5787_s27 = smov 64  }
  0x74   : > { %1151 = vmatprep.subr.bf16.mxu0 %v5295_v25  ;;  %v640_v9 = vrot.slane %v6007_v7, %v639_v6  ;;  %v632_v10 = vrot.slane %v6007_v7, %v6010_v8  ;;  %v6034_v23 = vsub.s32 1, %v6001_v5  ;;  %vm5789_vm0 = vmmov 0   ;;  %v5378_v45 = vld [vmem:[#allocation2 + $0x194] ss:$24 sps:$4 sm:$0xff]   ;;  %s6748_s18 = sld [smem:[#allocation10_spill]]  ;;  %s6749_s14 = sld [smem:[#allocation11_spill]] }
  0x75   : > { %v644_v22 = vrot.slane %v6007_v7, %v643_v20  ;;  %v5791_v1 = vmov 1934713408   ;;  %vm2157_vm1 = vcmask 261120   ;;  %vm2548_vm2 = vcmask 64512  }
  0x76   : > { %1193 = vmatpush1.bf16.msra.mxu1 %v5294_v26  ;;  %v636_v25 = vrot.slane %v6007_v7, %v6034_v23  ;;  %vm2656_vm3 = vcmask 1043456   ;;  %vm3319_vm4 = vcmask 523264   ;;  %vm3321_vm5 = vcmask 785408  }
  0x77   : > { %1194 = vmatprep.subr.bf16.mxu1 %v5297_v27  ;;  %1152 = vmatpush1.bf16.msra.mxu0 %v5299_v28  ;;  %v5788_v27 = vmov 0.0   ;;  %v5352_v28 = vld [vmem:[#allocation2 + $0x10] ss:$24 sps:$4 sm:$0xff]  }
  0x78   : > { %1153 = vmatprep.subr.bf16.mxu0 %v5301_v29  ;;  %v5354_v29 = vld [vmem:[#allocation2 + $0x14] ss:$24 sps:$4 sm:$0xff]  }
  0x7a   : > { %1195 = vmatpush1.bf16.msra.mxu1 %v5300_v30  ;;  %v5357_v30 = vld [vmem:[#allocation2 + $0x44] ss:$24 sps:$4 sm:$0xff]   ;;  %s525_s19 = scalar_lea.vmem %s6749_s14, %s5061_s17 }
  0x7b   : > { %1196 = vmatprep.subr.bf16.mxu1 %v5303_v31  ;;  %1154 = vmatpush1.bf16.msra.mxu0 %v5305_v32  ;;  %v5355_v31 = vld [vmem:[#allocation2 + $0x40] ss:$24 sps:$4 sm:$0xff]   ;;  %v5358_v32 = vld [vmem:[#allocation2 + $0x70] ss:$24 sps:$4 sm:$0xff]  }
  0x7c   : > { %1155 = vmatprep.subr.bf16.mxu0 %v5307_v33  ;;  %v5360_v33 = vld [vmem:[#allocation2 + $0x74] ss:$24 sps:$4 sm:$0xff]  }
  0x7e   : > { %1197 = vmatpush1.bf16.msra.mxu1 %v5306_v34  ;;  %v5363_v34 = vld [vmem:[#allocation2 + $0xa4] ss:$24 sps:$4 sm:$0xff]  }
  0x7f   : > { %1198 = vmatprep.subr.bf16.mxu1 %v5309_v35  ;;  %1156 = vmatpush1.bf16.msra.mxu0 %v5311_v36  ;;  %v5361_v35 = vld [vmem:[#allocation2 + $0xa0] ss:$24 sps:$4 sm:$0xff]   ;;  %v5364_v36 = vld [vmem:[#allocation2 + $0xd0] ss:$24 sps:$4 sm:$0xff]  }
  0x80   : > { %1157 = vmatprep.subr.bf16.mxu0 %v5313_v37  ;;  %v5366_v37 = vld [vmem:[#allocation2 + $0xd4] ss:$24 sps:$4 sm:$0xff]  }
  0x82   : > { %1199 = vmatpush1.bf16.msra.mxu1 %v5312_v38  ;;  %v5369_v38 = vld [vmem:[#allocation2 + $0x104] ss:$24 sps:$4 sm:$0xff]  }
  0x83   : > { %1200 = vmatprep.subr.bf16.mxu1 %v5315_v39  ;;  %1158 = vmatpush1.bf16.msra.mxu0 %v5317_v40  ;;  %v5367_v39 = vld [vmem:[#allocation2 + $0x100] ss:$24 sps:$4 sm:$0xff]   ;;  %v5370_v40 = vld [vmem:[#allocation2 + $0x130] ss:$24 sps:$4 sm:$0xff]  }
  0x84   : > { %1159 = vmatprep.subr.bf16.mxu0 %v5319_v41  ;;  %v5372_v41 = vld [vmem:[#allocation2 + $0x134] ss:$24 sps:$4 sm:$0xff]  }
  0x86   : > { %1201 = vmatpush1.bf16.msra.mxu1 %v5318_v42  ;;  %v5375_v42 = vld [vmem:[#allocation2 + $0x164] ss:$24 sps:$4 sm:$0xff]  }
  0x87   : > { %1202 = vmatprep.subr.bf16.mxu1 %v5321_v43  ;;  %1160 = vmatpush1.bf16.msra.mxu0 %v5323_v44  ;;  %v5373_v43 = vld [vmem:[#allocation2 + $0x160] ss:$24 sps:$4 sm:$0xff]   ;;  %v5376_v44 = vld [vmem:[#allocation2 + $0x190] ss:$24 sps:$4 sm:$0xff]  }
  0x88   : > { %1161 = vmatprep.subr.bf16.mxu0 %v5325_v46  ;;  %v5381_v46 = vld [vmem:[#allocation2 + $0x1c4] ss:$24 sps:$4 sm:$0xff]  }
  0x8a   : > { %1203 = vmatpush1.bf16.msra.mxu1 %v5324_v48  ;;  %v5382_v48 = vld [vmem:[#allocation2 + $0x1f0] ss:$24 sps:$4 sm:$0xff]  }
  0x8b   : > { %1204 = vmatprep.subr.bf16.mxu1 %v5327_v49  ;;  %1162 = vmatpush1.bf16.msra.mxu0 %v5329_v50  ;;  %v5384_v49 = vld [vmem:[#allocation2 + $0x1f4] ss:$24 sps:$4 sm:$0xff]   ;;  %v5387_v50 = vld [vmem:[#allocation2 + $0x224] ss:$24 sps:$4 sm:$0xff]  }
  0x8c   : > { %1163 = vmatprep.subr.bf16.mxu0 %v5331_v51  ;;  %v5385_v51 = vld [vmem:[#allocation2 + $0x220] ss:$24 sps:$4 sm:$0xff]  }
  0x8e   : > { %1205 = vmatpush1.bf16.msra.mxu1 %v5330_v52  ;;  %v5390_v52 = vld [vmem:[#allocation2 + $0x254] ss:$24 sps:$4 sm:$0xff]  }
  0x8f   : > { %1206 = vmatprep.subr.bf16.mxu1 %v5333_v53  ;;  %1164 = vmatpush1.bf16.msra.mxu0 %v5335_v54  ;;  %v5388_v53 = vld [vmem:[#allocation2 + $0x250] ss:$24 sps:$4 sm:$0xff]   ;;  %v5393_v54 = vld [vmem:[#allocation2 + $0x284] ss:$24 sps:$4 sm:$0xff]  }
  0x90   : > { %1165 = vmatprep.subr.bf16.mxu0 %v5337_v55  ;;  %v5391_v55 = vld [vmem:[#allocation2 + $0x280] ss:$24 sps:$4 sm:$0xff]  }
  0x92   : > { %1207 = vmatpush1.bf16.msra.mxu1 %v5336_v56  ;;  %v5396_v56 = vld [vmem:[#allocation2 + $0x2b4] ss:$24 sps:$4 sm:$0xff]  }
  0x93   : > { %1208 = vmatprep.subr.bf16.mxu1 %v5339_v57  ;;  %1166 = vmatpush1.bf16.msra.mxu0 %v5341_v58  ;;  %v5394_v57 = vld [vmem:[#allocation2 + $0x2b0] ss:$24 sps:$4 sm:$0xff]   ;;  %v5399_v58 = vld [vmem:[#allocation2 + $0x2e4] ss:$24 sps:$4 sm:$0xff]  }
  0x94   : > { %1167 = vmatprep.subr.bf16.mxu0 %v5343_v59  ;;  %v5397_v59 = vld [vmem:[#allocation2 + $0x2e0] ss:$24 sps:$4 sm:$0xff]  }
  0x96   : > { %1209 = vmatpush1.bf16.msra.mxu1 %v5342_v60  ;;  %v5790_v60 = vmov 1983009808  }
  0x97   : > { %1210 = vmatprep.subr.bf16.mxu1 %v5345_v61  ;;  %1168 = vmatpush1.bf16.msra.mxu0 %v5347_v62  ;;  %v1288_v61 = vunpack.c.l.s4 %v5790_v60 }
  0x98   : > { %1169 = vmatprep.subr.bf16.mxu0 %v5349_v63 }
  0x9a   : > { %1211 = vmatpush1.bf16.msra.mxu1 %v5348_v0  ;;  %v1289_v0 = vunpack.c.0.s8 %v1288_v61 }
  0x9b   : > { %1170 = vmatpush1.bf16.msra.mxu0 %v5351_v2  ;;  %5095 = vmatprep.subr.bf16.mxu1 %v5788_v27  ;;  %v1352_v2 = vunpack.c.l.s4 %v5791_v1 }
  0x9c   : > { %1221 = vmatprep.subr.bf16.mxu0 %v5354_v29 }
  0x9d   : > { %1213 = vmatmul.mubr.bf16.vlgmr.msra.gmra.mrb[0].mxu1 %v5997_v3 }
  0x9e   : > { %1172 = vmatmul.mubr.bf16.vlgmr.msra.gmra.mrb[0].mxu0 %v5997_v3  ;;  %5097 = vmatprep.mubr.msk.bf16.mxu1 %vm5789_vm0, %v5788_v27 }
  0x9f   : > { %1253 = vmatprep.mubr.bf16.mxu0 %v530_v47  ;;  %1222 = vmatpush1.bf16.msra.mxu0 %v5352_v28  ;;  %v5379_v47 = vld [vmem:[#allocation2 + $0x1c0] ss:$24 sps:$4 sm:$0xff]  }
  0xa0   : > { %1223 = vmatprep.subr.bf16.mxu0 %v5357_v30 }
  0xa3   : > { %1224 = vmatpush1.bf16.msra.mxu0 %v5355_v31 }
  0xa4   : > { %1225 = vmatprep.subr.bf16.mxu0 %v5360_v33 }
  0xa7   : > { %1226 = vmatpush1.bf16.msra.mxu0 %v5358_v32 }
  0xa8   : > { %1227 = vmatprep.subr.bf16.mxu0 %v5363_v34 }
  0xab   : > { %1228 = vmatpush1.bf16.msra.mxu0 %v5361_v35 }
  0xac   : > { %1229 = vmatprep.subr.bf16.mxu0 %v5366_v37 }
  0xaf   : > { %1230 = vmatpush1.bf16.msra.mxu0 %v5364_v36 }
  0xb0   : > { %1231 = vmatprep.subr.bf16.mxu0 %v5369_v38 }
  0xb3   : > { %1232 = vmatpush1.bf16.msra.mxu0 %v5367_v39 }
  0xb4   : > { %1233 = vmatprep.subr.bf16.mxu0 %v5372_v41 }
  0xb7   : > { %1234 = vmatpush1.bf16.msra.mxu0 %v5370_v40 }
  0xb8   : > { %1235 = vmatprep.subr.bf16.mxu0 %v5375_v42 }
  0xbb   : > { %1236 = vmatpush1.bf16.msra.mxu0 %v5373_v43 }
  0xbc   : > { %1237 = vmatprep.subr.bf16.mxu0 %v5378_v45 }
  0xbf   : > { %1238 = vmatpush1.bf16.msra.mxu0 %v5376_v44 }
  0xc0   : > { %1239 = vmatprep.subr.bf16.mxu0 %v5381_v46 }
  0xc3   : > { %1240 = vmatpush1.bf16.msra.mxu0 %v5379_v47 }
  0xc4   : > { %1241 = vmatprep.subr.bf16.mxu0 %v5384_v49 }
  0xc7   : > { %1242 = vmatpush1.bf16.msra.mxu0 %v5382_v48 }
  0xc8   : > { %1243 = vmatprep.subr.bf16.mxu0 %v5387_v50 }
  0xcb   : > { %1244 = vmatpush1.bf16.msra.mxu0 %v5385_v51 }
  0xcc   : > { %1245 = vmatprep.subr.bf16.mxu0 %v5390_v52 }
  0xcf   : > { %1246 = vmatpush1.bf16.msra.mxu0 %v5388_v53 }
  0xd0   : > { %1247 = vmatprep.subr.bf16.mxu0 %v5393_v54 }
  0xd3   : > { %1248 = vmatpush1.bf16.msra.mxu0 %v5391_v55 }
  0xd4   : > { %1249 = vmatprep.subr.bf16.mxu0 %v5396_v56 }
  0xd7   : > { %1250 = vmatpush1.bf16.msra.mxu0 %v5394_v57 }
  0xd8   : > { %1251 = vmatprep.subr.bf16.mxu0 %v5399_v58 }
  0xdb   : > { %1252 = vmatpush1.bf16.msra.mxu0 %v5397_v59 }
  0xde   : > { %1254 = vmatmul.mubr.bf16.vlgmr.msra.gmra.mrb[4].mxu0 %v5997_v3 }
 0x170   : > { %v1214_v11 = vpop.f32.mrb[0].mxu1 }
 0x171   : > { %v6017_v12 = vadd.f32 %v1214_v11, %v640_v9  ;;  %v1216_v13 = vpop.f32.mrb[1].mxu1  ;;  %v1173_v15 = vpop.f32.mrb[0].mxu0 }
 0x172   : > { %v1218_v14 = vpop.f32.mrb[2].mxu1  ;;  %v6023_v17 = vadd.f32 %v1173_v15, %v632_v10  ;;  %v1175_v18 = vpop.f32.mrb[1].mxu0  ;;  %v6040_v24 = vadd.f32 %v1216_v13, %v644_v22  ;;  %v6065_v13 = vsub.s32 %v1289_v0, %v6001_v5 }
 0x173   : > { %v1219_v16 = vpop.f32.mrb[3].mxu1  ;;  %1564 = vrot.lane.b32.xlu1 %v6017_v12, %s5785_s25  ;;  %1558 = vrot.lane.b32.xlu0 %v6017_v12, %s5786_s26  ;;  %v1177_v19 = vpop.f32.mrb[2].mxu0  ;;  %v6048_v26 = vadd.f32 %v1175_v18, %v636_v25  ;;  %v1353_v14 = vunpack.c.0.s8 %v1352_v2 }
 0x174   : > { %v1178_v21 = vpop.f32.mrb[3].mxu0 }
 0x177   : > { %1561 = vrot.lane.b32.xlu0 %v6017_v12, %s5787_s27  ;;  %1266 = vrot.lane.b32.xlu1 %v6023_v17, %s5786_s26 }
 0x17b   : > { %1269 = vrot.lane.b32.xlu0 %v6023_v17, %s5787_s27  ;;  %1272 = vrot.lane.b32.xlu1 %v6023_v17, %s5785_s25 }
 0x17f   : > { %1568 = vrot.lane.b32.xlu0 %v6040_v24, %s5786_s26  ;;  %1571 = vrot.lane.b32.xlu1 %v6040_v24, %s5787_s27 }
 0x183   : > { %1574 = vrot.lane.b32.xlu0 %v6040_v24, %s5785_s25  ;;  %1276 = vrot.lane.b32.xlu1 %v6048_v26, %s5786_s26 }
 0x187   : > { %1279 = vrot.lane.b32.xlu0 %v6048_v26, %s5787_s27  ;;  %1282 = vrot.lane.b32.xlu1 %v6048_v26, %s5785_s25 }
 0x1e5   : > { %v1565_v62 = vpop.permute.xlu1 %1564  ;;  %v1559_v63 = vpop.permute.xlu0 %1558 }
 0x1e6   : > { %v1593_v15 = vcombine.low %v1559_v63, %v1565_v62  ;;  %v1594_v16 = vcombine.high %v1559_v63, %v1565_v62 }
 0x1e8   : > { %v1601_v30 = vrot.slane %v1593_v15, %v6065_v13  ;;  %v1608_v31 = vrot.slane %v1594_v16, %v6065_v13 }
 0x1e9   : > { %v1562_v4 = vpop.permute.xlu0 %1561  ;;  %v1267_v9 = vpop.permute.xlu1 %1266 }
 0x1ea   : > { %v1577_v10 = vcombine.low %v6017_v12, %v1562_v4  ;;  %v1578_v11 = vcombine.high %v6017_v12, %v1562_v4  ;;  %v6072_v12 = vsub.s32 %v1353_v14, %v6001_v5 }
 0x1ec   : > { %v1585_v21 = vrot.slane %v1577_v10, %v6065_v13  ;;  %v1592_v3 = vrot.slane %v1578_v11, %v6065_v13 }
 0x1ed   : > { %v1270_v18 = vpop.permute.xlu0 %1269  ;;  %v1273_v19 = vpop.permute.xlu1 %1272 }
 0x1ee   : > { %v1285_v22 = vcombine.low %v6023_v17, %v1270_v18  ;;  %v1286_v25 = vcombine.high %v6023_v17, %v1270_v18  ;;  %v1301_v28 = vcombine.low %v1267_v9, %v1273_v19  ;;  %v1302_v29 = vcombine.high %v1267_v9, %v1273_v19 }
 0x1ef   : > { %v1641_v36 = vcombine.low %v1585_v21, %v1601_v30  ;;  %v1642_v37 = vcombine.high %v1585_v21, %v1601_v30  ;;  %v1657_v17 = vcombine.low %v1592_v3, %v1608_v31  ;;  %v1658_v38 = vcombine.high %v1592_v3, %v1608_v31 }
 0x1f0   : > { %v1293_v32 = vrot.slane %v1285_v22, %v6065_v13  ;;  %v1300_v33 = vrot.slane %v1286_v25, %v6065_v13  ;;  %v1309_v34 = vrot.slane %v1301_v28, %v6065_v13  ;;  %v1316_v35 = vrot.slane %v1302_v29, %v6065_v13 }
 0x1f1   : > { %v1649_v43 = vrot.slane %v1641_v36, %v6072_v12  ;;  %v1656_v44 = vrot.slane %v1642_v37, %v6072_v12  ;;  %v1665_v45 = vrot.slane %v1657_v17, %v6072_v12  ;;  %v1672_v46 = vrot.slane %v1658_v38, %v6072_v12  ;;  %v1569_v51 = vpop.permute.xlu0 %1568  ;;  %v1572_v60 = vpop.permute.xlu1 %1571 }
 0x1f2   : > { %v1349_v39 = vcombine.low %v1293_v32, %v1309_v34  ;;  %v1350_v40 = vcombine.high %v1293_v32, %v1309_v34  ;;  %v1365_v41 = vcombine.low %v1300_v33, %v1316_v35  ;;  %v1366_v42 = vcombine.high %v1300_v33, %v1316_v35 }
 0x1f3   : > { %v4859_v52 = vcombine.low %v1649_v43, %v1656_v44  ;;  %v4861_v53 = vcombine.high %v1649_v43, %v1656_v44  ;;  %v4863_v54 = vcombine.low %v1665_v45, %v1672_v46  ;;  %v4865_v55 = vcombine.high %v1665_v45, %v1672_v46 }
 0x1f4   : > { %v1357_v47 = vrot.slane %v1349_v39, %v6072_v12  ;;  %v1364_v48 = vrot.slane %v1350_v40, %v6072_v12  ;;  %v1373_v49 = vrot.slane %v1365_v41, %v6072_v12  ;;  %v1380_v50 = vrot.slane %v1366_v42, %v6072_v12 }
 0x1f5   : > { %v1721_v61 = vrot.slane %v4859_v52, %v6065_v13  ;;  %v1737_v62 = vrot.slane %v4861_v53, %v6065_v13  ;;  %v1753_v63 = vrot.slane %v4863_v54, %v6065_v13  ;;  %v1769_v0 = vrot.slane %v4865_v55, %v6065_v13  ;;  %v1575_v1 = vpop.permute.xlu0 %1574  ;;  %v1277_v15 = vpop.permute.xlu1 %1276 }
 0x1f6   : > { %v4851_v56 = vcombine.low %v1357_v47, %v1364_v48  ;;  %v4853_v57 = vcombine.high %v1357_v47, %v1364_v48  ;;  %v4855_v58 = vcombine.low %v1373_v49, %v1380_v50  ;;  %v4857_v59 = vcombine.high %v1373_v49, %v1380_v50 }
 0x1f7   : > { %v1625_v11 = vcombine.low %v1569_v51, %v1575_v1  ;;  %v1626_v14 = vcombine.high %v1569_v51, %v1575_v1  ;;  %v1777_v16 = vcombine.low %v1721_v61, %v1737_v62  ;;  %v1809_v18 = vcombine.low %v1753_v63, %v1769_v0 }
 0x1f8   : > { %v6093_v2 = vrot.slane %v4851_v56, %v6065_v13  ;;  %v6096_v4 = vrot.slane %v4853_v57, %v6065_v13  ;;  %v6099_v9 = vrot.slane %v4855_v58, %v6065_v13  ;;  %v6102_v10 = vrot.slane %v4857_v59, %v6065_v13 }
 0x1f9   : > { %v1609_v19 = vcombine.low %v6040_v24, %v1572_v60  ;;  %v1610_v21 = vcombine.high %v6040_v24, %v1572_v60  ;;  %v1785_v25 = vrot.slane %v1777_v16, %v6072_v12  ;;  %v1817_v28 = vrot.slane %v1809_v18, %v6072_v12  ;;  %v1280_v24 = vpop.permute.xlu0 %1279  ;;  %v1283_v34 = vpop.permute.xlu1 %1282 }
 0x1fa   : > { %v1485_v3 = vcombine.low %v6093_v2, %v6096_v4  ;;  %v1517_v22 = vcombine.low %v6099_v9, %v6102_v10  ;;  %v1633_v29 = vrot.slane %v1625_v11, %v6065_v13  ;;  %v1640_v30 = vrot.slane %v1626_v14, %v6065_v13 }
 0x1fb   : > { %v1841_v31 = vcombine.low %v1785_v25, %v1817_v28  ;;  %v1617_v32 = vrot.slane %v1609_v19, %v6065_v13  ;;  %v1624_v33 = vrot.slane %v1610_v21, %v6065_v13  ;;  %v1842_v42 = vcombine.high %v1785_v25, %v1817_v28 }
 0x1fc   : > { %v1493_v36 = vrot.slane %v1485_v3, %v6072_v12  ;;  %v1525_v37 = vrot.slane %v1517_v22, %v6072_v12  ;;  %v1778_v43 = vcombine.high %v1721_v61, %v1737_v62  ;;  %v1810_v44 = vcombine.high %v1753_v63, %v1769_v0 }
 0x1fd   : > { %v2149_v35 = vpack.c.bf16 %v1841_v31, %v1841_v31  ;;  %v1673_v17 = vcombine.low %v1617_v32, %v1633_v29  ;;  %v1674_v38 = vcombine.high %v1617_v32, %v1633_v29  ;;  %v1689_v39 = vcombine.low %v1624_v33, %v1640_v30 }
 0x1fe   : > { %v1690_v40 = vcombine.high %v1624_v33, %v1640_v30  ;;  %v1317_v45 = vcombine.low %v6048_v26, %v1280_v24  ;;  %v1318_v46 = vcombine.high %v6048_v26, %v1280_v24  ;;  %v1333_v47 = vcombine.low %v1277_v15, %v1283_v34 }
 0x1ff   : > { %v2162_v41 = vsel %vm2157_vm1, %v2149_v35, 0  ;;  %v1334_v48 = vcombine.high %v1277_v15, %v1283_v34  ;;  %v1549_v49 = vcombine.low %v1493_v36, %v1525_v37  ;;  %v1681_v50 = vrot.slane %v1673_v17, %v6072_v12 }
 0x200   : > { %5096 = vmatpush3.bf16.xpose.msra.mxu1 %v2162_v41  ;;  %v1688_v51 = vrot.slane %v1674_v38, %v6072_v12  ;;  %v1697_v52 = vrot.slane %v1689_v39, %v6072_v12  ;;  %v1704_v53 = vrot.slane %v1690_v40, %v6072_v12  ;;  %v2150_v54 = vpack.c.bf16 %v1842_v42, %v1842_v42 }
 0x201   : > { %5101 = vmatprep.subr.bf16.mxu1 %v5788_v27  ;;  %v1792_v55 = vrot.slane %v1778_v43, %v6072_v12  ;;  %v1824_v56 = vrot.slane %v1810_v44, %v6072_v12  ;;  %v1325_v26 = vrot.slane %v1317_v45, %v6065_v13  ;;  %v1332_v57 = vrot.slane %v1318_v46, %v6065_v13 }
 0x202   : > { %v1341_v58 = vrot.slane %v1333_v47, %v6065_v13  ;;  %v1348_v59 = vrot.slane %v1334_v48, %v6065_v13  ;;  %v2141_v60 = vpack.c.bf16 %v1549_v49, %v1549_v49  ;;  %v4860_v61 = vcombine.low %v1681_v50, %v1688_v51 }
 0x203   : > { %v4862_v62 = vcombine.high %v1681_v50, %v1688_v51  ;;  %v4864_v63 = vcombine.low %v1697_v52, %v1704_v53  ;;  %v4866_v0 = vcombine.high %v1697_v52, %v1704_v53  ;;  %v2208_v1 = vsel %vm2157_vm1, %v2150_v54, 0 }
 0x204   : > { %v1843_v11 = vcombine.low %v1792_v55, %v1824_v56  ;;  %v1381_v14 = vcombine.low %v1325_v26, %v1341_v58  ;;  %v1382_v15 = vcombine.high %v1325_v26, %v1341_v58  ;;  %v1397_v16 = vcombine.low %v1332_v57, %v1348_v59 }
 0x205   : > { %v1486_v18 = vcombine.high %v6093_v2, %v6096_v4  ;;  %v1518_v19 = vcombine.high %v6099_v9, %v6102_v10  ;;  %v1398_v21 = vcombine.high %v1332_v57, %v1348_v59  ;;  %v1550_v3 = vcombine.high %v1493_v36, %v1525_v37 }
 0x206   : > { %v1728_v22 = vrot.slane %v4860_v61, %v6065_v13  ;;  %v1744_v25 = vrot.slane %v4862_v62, %v6065_v13  ;;  %v1760_v28 = vrot.slane %v4864_v63, %v6065_v13  ;;  %v1776_v29 = vrot.slane %v4866_v0, %v6065_v13 }
 0x207   : > { %5098 = vmatmul.mubr.msk.bf16.vlgmr.msra.gmra.mrb[4].mxu1 %vm2157_vm1, %v2141_v60  ;;  %v2151_v30 = vpack.c.bf16 %v1843_v11, %v1843_v11  ;;  %v1389_v31 = vrot.slane %v1381_v14, %v6072_v12  ;;  %v1396_v2 = vrot.slane %v1382_v15, %v6072_v12  ;;  %v1405_v4 = vrot.slane %v1397_v16, %v6072_v12 }
 0x208   : > { %5102 = vmatpush3.bf16.xpose.msra.mxu1 %v2208_v1  ;;  %5103 = vmatprep.mubr.msk.bf16.mxu1 %vm5789_vm0, %v5788_v27  ;;  %v1412_v9 = vrot.slane %v1398_v21, %v6072_v12  ;;  %v2142_v10 = vpack.c.bf16 %v1550_v3, %v1550_v3  ;;  %v1500_v32 = vrot.slane %v1486_v18, %v6072_v12 }
 0x209   : > { %5107 = vmatprep.subr.bf16.mxu1 %v5788_v27  ;;  %v1532_v33 = vrot.slane %v1518_v19, %v6072_v12  ;;  %v2254_v24 = vsel %vm2157_vm1, %v2151_v30, 0  ;;  %v1844_v34 = vcombine.high %v1792_v55, %v1824_v56  ;;  %v1793_v35 = vcombine.low %v1728_v22, %v1744_v25 }
 0x20a   : > { %v1825_v36 = vcombine.low %v1760_v28, %v1776_v29  ;;  %v4852_v37 = vcombine.low %v1389_v31, %v1396_v2  ;;  %v4854_v17 = vcombine.high %v1389_v31, %v1396_v2  ;;  %v4856_v38 = vcombine.low %v1405_v4, %v1412_v9 }
 0x20b   : > { %v4858_v39 = vcombine.high %v1405_v4, %v1412_v9  ;;  %v1551_v40 = vcombine.low %v1500_v32, %v1532_v33  ;;  %v2152_v41 = vpack.c.bf16 %v1844_v34, %v1844_v34  ;;  %v1801_v42 = vrot.slane %v1793_v35, %v6072_v12  ;;  %v1262_v34 = vld [vmem:[%s520_s21] sm:$0x1] }
 0x20c   : > { %v1833_v43 = vrot.slane %v1825_v36, %v6072_v12  ;;  %v1436_v44 = vrot.slane %v4852_v37, %v6065_v13  ;;  %v1452_v45 = vrot.slane %v4854_v17, %v6065_v13  ;;  %v1468_v46 = vrot.slane %v4856_v38, %v6065_v13 }
 0x20d   : > { %v1484_v47 = vrot.slane %v4858_v39, %v6065_v13  ;;  %v2143_v48 = vpack.c.bf16 %v1551_v40, %v1551_v40  ;;  %v2300_v49 = vsel %vm2157_vm1, %v2152_v41, 0  ;;  %v1552_v53 = vcombine.high %v1500_v32, %v1532_v33 }
 0x20e   : > { %v1845_v50 = vcombine.low %v1801_v42, %v1833_v43  ;;  %v1501_v51 = vcombine.low %v1436_v44, %v1452_v45  ;;  %v1846_v58 = vcombine.high %v1801_v42, %v1833_v43  ;;  %v1794_v59 = vcombine.high %v1728_v22, %v1744_v25 }
 0x20f   : > { %5104 = vmatmul.mubr.msk.bf16.vlgmr.msra.gmra.mrb[8].mxu1 %vm2157_vm1, %v2142_v10  ;;  %v1533_v52 = vcombine.low %v1468_v46, %v1484_v47  ;;  %v2144_v55 = vpack.c.bf16 %v1552_v53, %v1552_v53  ;;  %v1826_v60 = vcombine.high %v1760_v28, %v1776_v29  ;;  %v1502_v15 = vcombine.high %v1436_v44, %v1452_v45  ;;  %v6196_v10 = vpop.f32.mrb[4].mxu0 }
 0x210   : > { %5108 = vmatpush3.bf16.xpose.msra.mxu1 %v2254_v24  ;;  %5109 = vmatprep.mubr.msk.bf16.mxu1 %vm5789_vm0, %v5788_v27  ;;  %v2153_v54 = vpack.c.bf16 %v1845_v50, %v1845_v50  ;;  %v1509_v56 = vrot.slane %v1501_v51, %v6072_v12  ;;  %v2154_v62 = vpack.c.bf16 %v1846_v58, %v1846_v58  ;;  %v6198_v32 = vpop.f32.mrb[5].mxu0  ;;  %v4850_v35 = vadd.f32 -1.0, %v1262_v34 }
 0x211   : > { %5113 = vmatprep.subr.bf16.mxu1 %v5788_v27  ;;  %v1541_v26 = vrot.slane %v1533_v52, %v6072_v12  ;;  %v1808_v63 = vrot.slane %v1794_v59, %v6072_v12  ;;  %v1840_v0 = vrot.slane %v1826_v60, %v6072_v12  ;;  %v1534_v16 = vcombine.high %v1468_v46, %v1484_v47  ;;  %v1259_v33 = vpop.f32.mrb[6].mxu0 }
 0x212   : > { %v2346_v57 = vsel %vm2157_vm1, %v2153_v54, 0  ;;  %v2392_v11 = vsel %vm2157_vm1, %v2154_v62, 0  ;;  %v1516_v3 = vrot.slane %v1502_v15, %v6072_v12  ;;  %v1260_v24 = vpop.f32.mrb[7].mxu0  ;;  %v1264_v36 = vmul.f32 1e+10, %v4850_v35 }
 0x213   : > { %v1553_v61 = vcombine.low %v1509_v56, %v1541_v26  ;;  %v1847_v14 = vcombine.low %v1808_v63, %v1840_v0  ;;  %v1554_v18 = vcombine.high %v1509_v56, %v1541_v26  ;;  %v1548_v22 = vrot.slane %v1534_v16, %v6072_v12 }
 0x214   : > { %v1848_v28 = vcombine.high %v1808_v63, %v1840_v0  ;;  %v6205_v37 = vrot.slane %v1264_v36, %v6010_v8 }
 0x215   : > { %v2145_v1 = vpack.c.bf16 %v1553_v61, %v1553_v61  ;;  %v2155_v19 = vpack.c.bf16 %v1847_v14, %v1847_v14  ;;  %v2146_v21 = vpack.c.bf16 %v1554_v18, %v1554_v18  ;;  %v1555_v29 = vcombine.low %v1516_v3, %v1548_v22 }
 0x216   : > { %v2156_v30 = vpack.c.bf16 %v1848_v28, %v1848_v28  ;;  %v1556_v4 = vcombine.high %v1516_v3, %v1548_v22 }
 0x217   : > { %5110 = vmatmul.mubr.msk.bf16.vlgmr.msra.gmra.mrb[12].mxu1 %vm2157_vm1, %v2143_v48  ;;  %v2438_v25 = vsel %vm2157_vm1, %v2155_v19, 0  ;;  %v2147_v31 = vpack.c.bf16 %v1555_v29, %v1555_v29 }
 0x218   : > { %5114 = vmatpush3.bf16.xpose.msra.mxu1 %v2300_v49  ;;  %5115 = vmatprep.mubr.msk.bf16.mxu1 %vm5789_vm0, %v5788_v27  ;;  %v2484_v2 = vsel %vm2157_vm1, %v2156_v30, 0  ;;  %v2148_v9 = vpack.c.bf16 %v1556_v4, %v1556_v4 }
 0x219   : > { %5119 = vmatprep.subr.bf16.mxu1 %v5788_v27 }
 0x21f   : > { %5116 = vmatmul.mubr.msk.bf16.vlgmr.msra.gmra.mrb[16].mxu1 %vm2157_vm1, %v2144_v55 }
 0x220   : > { %5120 = vmatpush3.bf16.xpose.msra.mxu1 %v2346_v57  ;;  %5121 = vmatprep.mubr.msk.bf16.mxu1 %vm5789_vm0, %v5788_v27 }
 0x221   : > { %5125 = vmatprep.subr.bf16.mxu1 %v5788_v27 }
 0x227   : > { %5122 = vmatmul.mubr.msk.bf16.vlgmr.msra.gmra.mrb[20].mxu1 %vm2157_vm1, %v2145_v1 }
 0x228   : > { %5126 = vmatpush3.bf16.xpose.msra.mxu1 %v2392_v11  ;;  %5127 = vmatprep.mubr.msk.bf16.mxu1 %vm5789_vm0, %v5788_v27 }
 0x229   : > { %5131 = vmatprep.subr.bf16.mxu1 %v5788_v27 }
 0x22f   : > { %5128 = vmatmul.mubr.msk.bf16.vlgmr.msra.gmra.mrb[24].mxu1 %vm2157_vm1, %v2146_v21 }
 0x230   : > { %5132 = vmatpush3.bf16.xpose.msra.mxu1 %v2438_v25  ;;  %5133 = vmatprep.mubr.msk.bf16.mxu1 %vm5789_vm0, %v5788_v27 }
 0x231   : > { %5137 = vmatprep.subr.bf16.mxu1 %v5788_v27 }
 0x237   : > { %5134 = vmatmul.mubr.msk.bf16.vlgmr.msra.gmra.mrb[28].mxu1 %vm2157_vm1, %v2147_v31 }
 0x238   : > { %5138 = vmatpush3.bf16.xpose.msra.mxu1 %v2484_v2  ;;  %5139 = vmatprep.mubr.msk.bf16.mxu1 %vm5789_vm0, %v5788_v27 }
 0x239   : > { %5143 = vmatprep.subr.bf16.mxu1 %v5788_v27 }
 0x23f   : > { %5140 = vmatmul.mubr.msk.bf16.vlgmr.msra.gmra.mrb[32].mxu1 %vm2157_vm1, %v2148_v9 }
 0x240   : > { %5145 = vmatprep.mubr.msk.bf16.mxu1 %vm5789_vm0, %v5788_v27 }
 0x2da   : > { %v2198_v17 = vpop.f32.mrb[4].mxu1 }
 0x2db   : > { %v2526_v38 = vmul.f32 0.17677669, %v2198_v17  ;;  %v5099_v39 = vpop.f32.mrb[5].mxu1 }
 0x2dc   : > { %v2201_v40 = vpop.f32.mrb[6].mxu1 }
 0x2dd   : > { %v5100_v41 = vpop.f32.mrb[7].mxu1  ;;  %v6208_v42 = vadd.f32 %v6205_v37, %v2526_v38  ;;  %v647_v40 = vsub.s32 4, %v6001_v5 }
 0x2df   : > { %v2549_v43 = vsel %vm2548_vm2, %v6208_v42, -inf }
 0x2e0   : > { %2550 = vmax.xlane.f32.xlu0 %v2549_v43  ;;  %v648_v43 = vrot.slane %v6007_v7, %v647_v40 }
 0x2e2   : > { %v2244_v44 = vpop.f32.mrb[8].mxu1 }
 0x2e3   : > { %v2527_v45 = vmul.f32 0.17677669, %v2244_v44  ;;  %v5105_v46 = vpop.f32.mrb[9].mxu1  ;;  %v1256_v44 = vadd.f32 %v6196_v10, %v648_v43 }
 0x2e4   : > { %v2247_v47 = vpop.f32.mrb[10].mxu1 }
 0x2e5   : > { %v5106_v48 = vpop.f32.mrb[11].mxu1  ;;  %v6213_v49 = vadd.f32 %v6205_v37, %v2527_v45  ;;  %v651_v45 = vsub.s32 5, %v6001_v5 }
 0x2e7   : > { %v2552_v50 = vsel %vm2548_vm2, %v6213_v49, -inf  ;;  %v652_v46 = vrot.slane %v6007_v7, %v651_v45 }
 0x2e8   : > { %2553 = vmax.xlane.f32.xlu1 %v2552_v50 }
 0x2ea   : > { %v2290_v51 = vpop.f32.mrb[12].mxu1 }
 0x2eb   : > { %v2528_v52 = vmul.f32 0.17677669, %v2290_v51  ;;  %v5111_v53 = vpop.f32.mrb[13].mxu1 }
 0x2ec   : > { %v2293_v54 = vpop.f32.mrb[14].mxu1 }
 0x2ed   : > { %v5112_v55 = vpop.f32.mrb[15].mxu1  ;;  %v6218_v56 = vadd.f32 %v6205_v37, %v2528_v52 }
 0x2ef   : > { %v2555_v26 = vsel %vm2548_vm2, %v6218_v56, -inf }
 0x2f0   : > { %2556 = vmax.xlane.f32.xlu0 %v2555_v26 }
 0x2f2   : > { %v2336_v57 = vpop.f32.mrb[16].mxu1 }
 0x2f3   : > { %v2529_v58 = vmul.f32 0.17677669, %v2336_v57  ;;  %v5117_v59 = vpop.f32.mrb[17].mxu1 }
 0x2f4   : > { %v2339_v60 = vpop.f32.mrb[18].mxu1 }
 0x2f5   : > { %v5118_v61 = vpop.f32.mrb[19].mxu1  ;;  %v6223_v62 = vadd.f32 %v6205_v37, %v2529_v58 }
 0x2f7   : > { %v2558_v63 = vsel %vm2548_vm2, %v6223_v62, -inf }
 0x2f8   : > { %2559 = vmax.xlane.f32.xlu0 %v2558_v63 }
 0x2fa   : > { %v2382_v0 = vpop.f32.mrb[20].mxu1 }
 0x2fb   : > { %v2530_v1 = vmul.f32 0.17677669, %v2382_v0  ;;  %v5123_v11 = vpop.f32.mrb[21].mxu1 }
 0x2fc   : > { %v2385_v14 = vpop.f32.mrb[22].mxu1 }
 0x2fd   : > { %v5124_v15 = vpop.f32.mrb[23].mxu1  ;;  %v6228_v16 = vadd.f32 %v6205_v37, %v2530_v1 }
 0x2ff   : > { %v2561_v18 = vsel %vm2548_vm2, %v6228_v16, -inf }
 0x300   : > { %2562 = vmax.xlane.f32.xlu1 %v2561_v18 }
 0x302   : > { %v2428_v19 = vpop.f32.mrb[24].mxu1 }
 0x303   : > { %v2531_v21 = vmul.f32 0.17677669, %v2428_v19  ;;  %v5129_v3 = vpop.f32.mrb[25].mxu1 }
 0x304   : > { %v2431_v22 = vpop.f32.mrb[26].mxu1 }
 0x305   : > { %v5130_v25 = vpop.f32.mrb[27].mxu1  ;;  %v6233_v28 = vadd.f32 %v6205_v37, %v2531_v21 }
 0x307   : > { %v2564_v29 = vsel %vm2548_vm2, %v6233_v28, -inf }
 0x308   : > { %2565 = vmax.xlane.f32.xlu0 %v2564_v29 }
 0x30a   : > { %v2474_v30 = vpop.f32.mrb[28].mxu1 }
 0x30b   : > { %v2532_v31 = vmul.f32 0.17677669, %v2474_v30  ;;  %v5135_v2 = vpop.f32.mrb[29].mxu1 }
 0x30c   : > { %v2477_v4 = vpop.f32.mrb[30].mxu1 }
 0x30d   : > { %v5136_v9 = vpop.f32.mrb[31].mxu1  ;;  %v6238_v33 = vadd.f32 %v6205_v37, %v2532_v31 }
 0x30f   : > { %v2567_v24 = vsel %vm2548_vm2, %v6238_v33, -inf }
 0x310   : > { %2568 = vmax.xlane.f32.xlu1 %v2567_v24 }
 0x312   : > { %v2520_v34 = vpop.f32.mrb[32].mxu1 }
 0x313   : > { %v2533_v35 = vmul.f32 0.17677669, %v2520_v34  ;;  %v5141_v36 = vpop.f32.mrb[33].mxu1 }
 0x314   : > { %v2523_v17 = vpop.f32.mrb[34].mxu1 }
 0x315   : > { %v5142_v38 = vpop.f32.mrb[35].mxu1  ;;  %v6243_v39 = vadd.f32 %v6205_v37, %v2533_v35  ;;  %v6255_v37 = vadd.f32 %v6198_v32, %v652_v46 }
 0x317   : > { %v2570_v41 = vsel %vm2548_vm2, %v6243_v39, -inf }
 0x318   : > { %2571 = vmax.xlane.f32.xlu0 %v2570_v41 }
 0x321   : > { %1853 = vrot.lane.b32.xlu1 %v1256_v44, %s5787_s27 }
 0x325   : > { %1856 = vrot.lane.b32.xlu1 %v1256_v44, %s5785_s25 }
 0x329   : > { %1860 = vrot.lane.b32.xlu1 %v6255_v37, %s5786_s26 }
 0x32e   : > { %1850 = vrot.lane.b32.xlu0 %v1256_v44, %s5786_s26 }
 0x36d   : > { %v2551_v47 = vpop.xlane.xlu0 %2550 }
 0x36e   : > { %v2573_v48 = vsub.f32 %v6208_v42, %v2551_v47 }
 0x370   : > { %v2581_v10 = vmul.f32 1.442695, %v2573_v48 }
 0x372   : > { %5640 = vpow2.f32 %v2581_v10 }
 0x375   : > { %v2554_v50 = vpop.xlane.xlu1 %2553 }
 0x376   : > { %v2574_v51 = vsub.f32 %v6213_v49, %v2554_v50 }
 0x378   : > { %v2583_v52 = vmul.f32 1.442695, %v2574_v51 }
 0x37a   : > { %5642 = vpow2.f32 %v2583_v52 }
 0x37c   : > { %v6262_v7 = vpop.eup %5640 }
 0x37d   : > { %v2557_v53 = vpop.xlane.xlu0 %2556  ;;  %v2597_v32 = vsel %vm2548_vm2, %v6262_v7, 0.0 }
 0x37e   : > { %v2575_v54 = vsub.f32 %v6218_v56, %v2557_v53  ;;  %2598 = vadd.xlane.f32.xlu1 %v2597_v32 }
 0x380   : > { %v2585_v55 = vmul.f32 1.442695, %v2575_v54 }
 0x382   : > { %5644 = vpow2.f32 %v2585_v55 }
 0x384   : > { %v6267_v26 = vpop.eup %5642 }
 0x385   : > { %v2560_v42 = vpop.xlane.xlu0 %2559  ;;  %v2600_v57 = vsel %vm2548_vm2, %v6267_v26, 0.0 }
 0x386   : > { %v2576_v49 = vsub.f32 %v6223_v62, %v2560_v42  ;;  %2601 = vadd.xlane.f32.xlu0 %v2600_v57 }
 0x388   : > { %v2587_v58 = vmul.f32 1.442695, %v2576_v49 }
 0x38a   : > { %5646 = vpow2.f32 %v2587_v58 }
 0x38c   : > { %v6272_v59 = vpop.eup %5644 }
 0x38d   : > { %v2563_v60 = vpop.xlane.xlu1 %2562  ;;  %v2603_v56 = vsel %vm2548_vm2, %v6272_v59, 0.0 }
 0x38e   : > { %v2577_v61 = vsub.f32 %v6228_v16, %v2563_v60  ;;  %2604 = vadd.xlane.f32.xlu1 %v2603_v56 }
 0x390   : > { %v2589_v63 = vmul.f32 1.442695, %v2577_v61 }
 0x392   : > { %5648 = vpow2.f32 %v2589_v63 }
 0x394   : > { %v6277_v0 = vpop.eup %5646 }
 0x395   : > { %v2606_v1 = vsel %vm2548_vm2, %v6277_v0, 0.0  ;;  %v2566_v15 = vpop.xlane.xlu0 %2565 }
 0x396   : > { %2607 = vadd.xlane.f32.xlu0 %v2606_v1  ;;  %v2578_v9 = vsub.f32 %v6233_v28, %v2566_v15 }
 0x398   : > { %v2591_v43 = vmul.f32 1.442695, %v2578_v9 }
 0x39a   : > { %5650 = vpow2.f32 %v2591_v43 }
 0x39c   : > { %v6281_v62 = vpop.eup %5648 }
 0x39d   : > { %v2569_v11 = vpop.xlane.xlu1 %2568  ;;  %v2609_v14 = vsel %vm2548_vm2, %v6281_v62, 0.0 }
 0x39e   : > { %2610 = vadd.xlane.f32.xlu0 %v2609_v14  ;;  %v2579_v63 = vsub.f32 %v6238_v33, %v2569_v11 }
 0x39f   : > { %1866 = vrot.lane.b32.xlu1 %v6255_v37, %s5785_s25 }
 0x3a0   : > { %v2593_v15 = vmul.f32 1.442695, %v2579_v63 }
 0x3a1   : > { %v1854_v16 = vpop.permute.xlu1 %1853 }
 0x3a2   : > { %v1869_v21 = vcombine.low %v1256_v44, %v1854_v16  ;;  %v1870_v3 = vcombine.high %v1256_v44, %v1854_v16  ;;  %5652 = vpow2.f32 %v2593_v15 }
 0x3a4   : > { %v1877_v30 = vrot.slane %v1869_v21, %v6065_v13  ;;  %v1884_v31 = vrot.slane %v1870_v3, %v6065_v13  ;;  %v6308_v14 = vpop.eup %5650 }
 0x3a5   : > { %v2572_v18 = vpop.xlane.xlu0 %2571  ;;  %v1857_v19 = vpop.permute.xlu1 %1856 }
 0x3a6   : > { %v2580_v16 = vsub.f32 %v6243_v39, %v2572_v18 }
 0x3a8   : > { %v2595_v21 = vmul.f32 1.442695, %v2580_v16 }
 0x3a9   : > { %v1851_v22 = vpop.permute.xlu0 %1850  ;;  %v1861_v39 = vpop.permute.xlu1 %1860 }
 0x3aa   : > { %v1885_v25 = vcombine.low %v1851_v22, %v1857_v19  ;;  %v1886_v29 = vcombine.high %v1851_v22, %v1857_v19  ;;  %v2612_v19 = vsel %vm2548_vm2, %v6308_v14, 0.0  ;;  %5654 = vpow2.f32 %v2595_v21 }
 0x3ac   : > { %v1893_v2 = vrot.slane %v1885_v25, %v6065_v13  ;;  %v1900_v4 = vrot.slane %v1886_v29, %v6065_v13  ;;  %v6314_v3 = vpop.eup %5652 }
 0x3ad   : > { %v2615_v33 = vsel %vm2548_vm2, %v6314_v3, 0.0 }
 0x3ae   : > { %v1933_v24 = vcombine.low %v1877_v30, %v1893_v2  ;;  %v1934_v34 = vcombine.high %v1877_v30, %v1893_v2  ;;  %v1949_v35 = vcombine.low %v1884_v31, %v1900_v4  ;;  %v1950_v36 = vcombine.high %v1884_v31, %v1900_v4 }
 0x3b0   : > { %v1941_v17 = vrot.slane %v1933_v24, %v6072_v12  ;;  %v1948_v38 = vrot.slane %v1934_v34, %v6072_v12  ;;  %v1957_v40 = vrot.slane %v1949_v35, %v6072_v12  ;;  %v1964_v41 = vrot.slane %v1950_v36, %v6072_v12 }
 0x3b2   : > { %v4867_v44 = vcombine.low %v1941_v17, %v1948_v38  ;;  %v4869_v45 = vcombine.high %v1941_v17, %v1948_v38  ;;  %v4871_v46 = vcombine.low %v1957_v40, %v1964_v41  ;;  %v4873_v47 = vcombine.high %v1957_v40, %v1964_v41 }
 0x3b4   : > { %v2013_v48 = vrot.slane %v4867_v44, %v6065_v13  ;;  %v2029_v28 = vrot.slane %v4869_v45, %v6065_v13  ;;  %v2045_v10 = vrot.slane %v4871_v46, %v6065_v13  ;;  %v2061_v50 = vrot.slane %v4873_v47, %v6065_v13  ;;  %1863 = vrot.lane.b32.xlu0 %v6255_v37, %s5787_s27  ;;  %v6318_v11 = vpop.eup %5654 }
 0x3b5   : > { %v2618_v22 = vsel %vm2548_vm2, %v6318_v11, 0.0 }
 0x3b6   : > { %v2069_v51 = vcombine.low %v2013_v48, %v2029_v28  ;;  %v2101_v52 = vcombine.low %v2045_v10, %v2061_v50  ;;  %v2070_v53 = vcombine.high %v2013_v48, %v2029_v28  ;;  %v2102_v32 = vcombine.high %v2045_v10, %v2061_v50 }
 0x3b8   : > { %v2077_v54 = vrot.slane %v2069_v51, %v6072_v12  ;;  %v2109_v55 = vrot.slane %v2101_v52, %v6072_v12  ;;  %v2084_v42 = vrot.slane %v2070_v53, %v6072_v12  ;;  %v2116_v57 = vrot.slane %v2102_v32, %v6072_v12 }
 0x3ba   : > { %v2133_v49 = vcombine.low %v2077_v54, %v2109_v55  ;;  %v2134_v58 = vcombine.high %v2077_v54, %v2109_v55  ;;  %v2135_v60 = vcombine.low %v2084_v42, %v2116_v57  ;;  %v2136_v56 = vcombine.high %v2084_v42, %v2116_v57 }
 0x3bc   : > { %v2645_v61 = vpack.c.bf16 %v2133_v49, %v2133_v49  ;;  %v2646_v31 = vpack.c.bf16 %v2134_v58, %v2134_v58  ;;  %v2647_v35 = vpack.c.bf16 %v2135_v60, %v2135_v60  ;;  %v2648_v41 = vpack.c.bf16 %v2136_v56, %v2136_v56 }
 0x3be   : > { %v2658_v1 = vsel %vm2656_vm3, %v2645_v61, 0  ;;  %v2704_v4 = vsel %vm2656_vm3, %v2646_v31, 0  ;;  %v2750_v17 = vsel %vm2656_vm3, %v2647_v35, 0  ;;  %v2796_v45 = vsel %vm2656_vm3, %v2648_v41, 0 }
 0x3bf   : > { %5144 = vmatpush3.bf16.msra.mxu1 %v2658_v1 }
 0x3c0   : > { %5149 = vmatprep.subr.bf16.mxu1 %v5788_v27 }
 0x3c3   : > { %2613 = vadd.xlane.f32.xlu1 %v2612_v19 }
 0x3d3   : > { %2616 = vadd.xlane.f32.xlu0 %v2615_v33 }
 0x3d7   : > { %2619 = vadd.xlane.f32.xlu0 %v2618_v22 }
 0x40b   : > { %v2599_v18 = vpop.xlane.xlu1 %2598 }
 0x40c   : > { %5656 = vrcp.f32 %v2599_v18 }
 0x413   : > { %v2602_v25 = vpop.xlane.xlu0 %2601 }
 0x414   : > { %5658 = vrcp.f32 %v2602_v25 }
 0x416   : > { %v5657_v29 = vpop.eup %5656 }
 0x417   : > { %v2622_v30 = vmul.f32 %v5657_v29, %v6262_v7 }
 0x419   : > { %v2637_v2 = vpack.c.bf16 %v2622_v30, %v2622_v30 }
 0x41b   : > { %5146 = vmatmul.mubr.msk.bf16.vlgmr.msra.gmra.mrb[36].mxu1 %vm2548_vm2, %v2637_v2  ;;  %v2605_v9 = vpop.xlane.xlu1 %2604 }
 0x41c   : > { %5150 = vmatpush3.bf16.msra.mxu1 %v2704_v4  ;;  %5660 = vrcp.f32 %v2605_v9  ;;  %5151 = vmatprep.mubr.msk.bf16.mxu1 %vm5789_vm0, %v5788_v27 }
 0x41d   : > { %5155 = vmatprep.subr.bf16.mxu1 %v5788_v27 }
 0x41e   : > { %v5659_v24 = vpop.eup %5658 }
 0x41f   : > { %v2624_v34 = vmul.f32 %v5659_v24, %v6267_v26  ;;  %v1867_v26 = vpop.permute.xlu1 %1866 }
 0x420   : > { %v1917_v47 = vcombine.low %v1861_v39, %v1867_v26  ;;  %v1918_v48 = vcombine.high %v1861_v39, %v1867_v26 }
 0x421   : > { %v2638_v36 = vpack.c.bf16 %v2624_v34, %v2624_v34 }
 0x422   : > { %v1925_v52 = vrot.slane %v1917_v47, %v6065_v13  ;;  %v1932_v53 = vrot.slane %v1918_v48, %v6065_v13 }
 0x423   : > { %v2608_v7 = vpop.xlane.xlu0 %2607  ;;  %5152 = vmatmul.mubr.msk.bf16.vlgmr.msra.gmra.mrb[40].mxu1 %vm2548_vm2, %v2638_v36 }
 0x424   : > { %5662 = vrcp.f32 %v2608_v7  ;;  %5156 = vmatpush3.bf16.msra.mxu1 %v2750_v17  ;;  %5157 = vmatprep.mubr.msk.bf16.mxu1 %vm5789_vm0, %v5788_v27 }
 0x425   : > { %5161 = vmatprep.subr.bf16.mxu1 %v5788_v27 }
 0x426   : > { %v5661_v38 = vpop.eup %5660 }
 0x427   : > { %v2626_v40 = vmul.f32 %v5661_v38, %v6272_v59 }
 0x429   : > { %v2639_v43 = vpack.c.bf16 %v2626_v40, %v2626_v40 }
 0x42b   : > { %v2611_v44 = vpop.xlane.xlu0 %2610  ;;  %5158 = vmatmul.mubr.msk.bf16.vlgmr.msra.gmra.mrb[44].mxu1 %vm2548_vm2, %v2639_v43 }
 0x42c   : > { %5162 = vmatpush3.bf16.msra.mxu1 %v2796_v45  ;;  %5163 = vmatprep.mubr.msk.bf16.mxu1 %vm5789_vm0, %v5788_v27  ;;  %5664 = vrcp.f32 %v2611_v44 }
 0x42d   : > { %5167 = vmatprep.subr.bf16.mxu1 %v5788_v27 }
 0x42e   : > { %v5663_v46 = vpop.eup %5662 }
 0x42f   : > { %v2628_v28 = vmul.f32 %v5663_v46, %v6277_v0  ;;  %v1864_v59 = vpop.permute.xlu0 %1863 }
 0x430   : > { %v1901_v10 = vcombine.low %v6255_v37, %v1864_v59  ;;  %v1902_v50 = vcombine.high %v6255_v37, %v1864_v59 }
 0x431   : > { %v2640_v51 = vpack.c.bf16 %v2628_v28, %v2628_v28 }
 0x432   : > { %v1909_v32 = vrot.slane %v1901_v10, %v6065_v13  ;;  %v1916_v54 = vrot.slane %v1902_v50, %v6065_v13 }
 0x433   : > { %5164 = vmatmul.mubr.msk.bf16.vlgmr.msra.gmra.mrb[48].mxu1 %vm2548_vm2, %v2640_v51 }
 0x434   : > { %v1965_v55 = vcombine.low %v1909_v32, %v1925_v52  ;;  %v1966_v42 = vcombine.high %v1909_v32, %v1925_v52  ;;  %v1981_v57 = vcombine.low %v1916_v54, %v1932_v53  ;;  %v1982_v0 = vcombine.high %v1916_v54, %v1932_v53  ;;  %5169 = vmatprep.mubr.msk.bf16.mxu1 %vm5789_vm0, %v5788_v27  ;;  %v5400_v53 = vld [vmem:[#allocation4] ss:$8 sps:$4 sm:$0xff]   ;;  %v5402_v32 = vld [vmem:[#allocation4 + $0x4] ss:$8 sps:$4 sm:$0xff]   ;;  %v5405_v54 = vld [vmem:[#allocation4 + $0x14] ss:$8 sps:$4 sm:$0xff]  }
 0x435   : > { %3532 = vmatprep.subr.bf16.mxu0 %v5402_v32 }
 0x436   : > { %v1973_v37 = vrot.slane %v1965_v55, %v6072_v12  ;;  %v1980_v49 = vrot.slane %v1966_v42, %v6072_v12  ;;  %v1989_v58 = vrot.slane %v1981_v57, %v6072_v12  ;;  %v1996_v60 = vrot.slane %v1982_v0, %v6072_v12  ;;  %v5665_v25 = vpop.eup %5664  ;;  %3533 = vmatpush1.bf16.msra.mxu0 %v5400_v53  ;;  %v5408_v55 = vld [vmem:[#allocation4 + $0x24] ss:$8 sps:$4 sm:$0xff]   ;;  %v5406_v42 = vld [vmem:[#allocation4 + $0x20] ss:$8 sps:$4 sm:$0xff]   ;;  %v5411_v57 = vld [vmem:[#allocation4 + $0x34] ss:$8 sps:$4 sm:$0xff]  }
 0x437   : > { %v2630_v31 = vmul.f32 %v5665_v25, %v6281_v62  ;;  %3534 = vmatprep.subr.bf16.mxu0 %v5405_v54  ;;  %v5433_v54 = vld [vmem:[#allocation4 + $0xb0] ss:$8 sps:$4 sm:$0xff]  }
 0x438   : > { %v4868_v56 = vcombine.low %v1973_v37, %v1980_v49  ;;  %v4870_v61 = vcombine.high %v1973_v37, %v1980_v49  ;;  %v4872_v63 = vcombine.low %v1989_v58, %v1996_v60  ;;  %v4874_v1 = vcombine.high %v1989_v58, %v1996_v60  ;;  %v5414_v49 = vld [vmem:[#allocation4 + $0x44] ss:$8 sps:$4 sm:$0xff]   ;;  %v5412_v60 = vld [vmem:[#allocation4 + $0x40] ss:$8 sps:$4 sm:$0xff]  }
 0x439   : > { %v2641_v24 = vpack.c.bf16 %v2630_v31, %v2630_v31  ;;  %v5426_v31 = vld [vmem:[#allocation4 + $0x84] ss:$8 sps:$4 sm:$0xff]  }
 0x43a   : > { %v2020_v15 = vrot.slane %v4868_v56, %v6065_v13  ;;  %v2036_v16 = vrot.slane %v4870_v61, %v6065_v13  ;;  %v2052_v19 = vrot.slane %v4872_v63, %v6065_v13  ;;  %v2068_v21 = vrot.slane %v4874_v1, %v6065_v13  ;;  %v5417_v56 = vld [vmem:[#allocation4 + $0x54] ss:$8 sps:$4 sm:$0xff]   ;;  %v5415_v1 = vld [vmem:[#allocation4 + $0x50] ss:$8 sps:$4 sm:$0xff]  }
 0x43c   : > { %v2085_v33 = vcombine.low %v2020_v15, %v2036_v16  ;;  %v2117_v22 = vcombine.low %v2052_v19, %v2068_v21  ;;  %v2086_v62 = vcombine.high %v2020_v15, %v2036_v16  ;;  %v2118_v36 = vcombine.high %v2052_v19, %v2068_v21  ;;  %v5420_v16 = vld [vmem:[#allocation4 + $0x64] ss:$8 sps:$4 sm:$0xff]   ;;  %v5418_v21 = vld [vmem:[#allocation4 + $0x60] ss:$8 sps:$4 sm:$0xff]  }
 0x43e   : > { %v2093_v39 = vrot.slane %v2085_v33, %v6072_v12  ;;  %v2125_v18 = vrot.slane %v2117_v22, %v6072_v12  ;;  %v2100_v7 = vrot.slane %v2086_v62, %v6072_v12  ;;  %v2132_v17 = vrot.slane %v2118_v36, %v6072_v12  ;;  %v5423_v33 = vld [vmem:[#allocation4 + $0x74] ss:$8 sps:$4 sm:$0xff]   ;;  %v5427_v36 = vld [vmem:[#allocation4 + $0x90] ss:$8 sps:$4 sm:$0xff]  }
 0x440   : > { %v2137_v29 = vcombine.low %v2093_v39, %v2125_v18  ;;  %v2138_v30 = vcombine.high %v2093_v39, %v2125_v18  ;;  %v2139_v38 = vcombine.low %v2100_v7, %v2132_v17  ;;  %v2140_v47 = vcombine.high %v2100_v7, %v2132_v17  ;;  %v5432_v17 = vld [vmem:[#allocation4 + $0xa4] ss:$8 sps:$4 sm:$0xff]  }
 0x442   : > { %v2649_v2 = vpack.c.bf16 %v2137_v29, %v2137_v29  ;;  %v2650_v9 = vpack.c.bf16 %v2138_v30, %v2138_v30  ;;  %v2651_v43 = vpack.c.bf16 %v2139_v38, %v2139_v38  ;;  %v2652_v28 = vpack.c.bf16 %v2140_v47, %v2140_v47  ;;  %v5421_v29 = vld [vmem:[#allocation4 + $0x70] ss:$8 sps:$4 sm:$0xff]  }
 0x444   : > { %v2842_v4 = vsel %vm2656_vm3, %v2649_v2, 0  ;;  %v2888_v34 = vsel %vm2656_vm3, %v2650_v9, 0  ;;  %v2934_v45 = vsel %vm2656_vm3, %v2651_v43, 0  ;;  %v2980_v50 = vsel %vm2656_vm3, %v2652_v28, 0  ;;  %v5429_v9 = vld [vmem:[#allocation4 + $0x94] ss:$8 sps:$4 sm:$0xff]  }
 0x445   : > { %5168 = vmatpush3.bf16.msra.mxu1 %v2842_v4  ;;  %v5424_v4 = vld [vmem:[#allocation4 + $0x80] ss:$8 sps:$4 sm:$0xff]  }
 0x446   : > { %5173 = vmatprep.subr.bf16.mxu1 %v5788_v27 }
 0x448   : > { %5170 = vmatmul.mubr.msk.bf16.vlgmr.msra.gmra.mrb[52].mxu1 %vm2548_vm2, %v2641_v24 }
 0x449   : > { %5174 = vmatpush3.bf16.msra.mxu1 %v2888_v34  ;;  %5175 = vmatprep.mubr.msk.bf16.mxu1 %vm5789_vm0, %v5788_v27 }
 0x44a   : > { %5179 = vmatprep.subr.bf16.mxu1 %v5788_v27 }
 0x450   : > { %v2614_v35 = vpop.xlane.xlu1 %2613 }
 0x451   : > { %5666 = vrcp.f32 %v2614_v35 }
 0x45b   : > { %v5667_v40 = vpop.eup %5666 }
 0x45c   : > { %v2632_v41 = vmul.f32 %v5667_v40, %v6308_v14 }
 0x45e   : > { %v2642_v26 = vpack.c.bf16 %v2632_v41, %v2632_v41 }
 0x460   : > { %v2617_v44 = vpop.xlane.xlu0 %2616  ;;  %5176 = vmatmul.mubr.msk.bf16.vlgmr.msra.gmra.mrb[56].mxu1 %vm2548_vm2, %v2642_v26 }
 0x461   : > { %5668 = vrcp.f32 %v2617_v44  ;;  %5180 = vmatpush3.bf16.msra.mxu1 %v2934_v45  ;;  %5181 = vmatprep.mubr.msk.bf16.mxu1 %vm5789_vm0, %v5788_v27 }
 0x462   : > { %5185 = vmatprep.subr.bf16.mxu1 %v5788_v27 }
 0x464   : > { %v2620_v46 = vpop.xlane.xlu0 %2619 }
 0x465   : > { %5670 = vrcp.f32 %v2620_v46 }
 0x46b   : > { %v5669_v48 = vpop.eup %5668 }
 0x46c   : > { %v2634_v14 = vmul.f32 %v5669_v48, %v6314_v3  ;;  %v5403_v3 = vld [vmem:[#allocation4 + $0x10] ss:$8 sps:$4 sm:$0xff]   ;;  %v5430_v48 = vld [vmem:[#allocation4 + $0xa0] ss:$8 sps:$4 sm:$0xff]  }
 0x46d   : > { %3535 = vmatpush1.bf16.msra.mxu0 %v5403_v3  ;;  %v5438_v3 = vld [vmem:[#allocation4 + $0xc4] ss:$8 sps:$4 sm:$0xff]  }
 0x46e   : > { %v2643_v59 = vpack.c.bf16 %v2634_v14, %v2634_v14  ;;  %3536 = vmatprep.subr.bf16.mxu0 %v5408_v55  ;;  %v5435_v14 = vld [vmem:[#allocation4 + $0xb4] ss:$8 sps:$4 sm:$0xff]  }
 0x46f   : > { %v5671_v10 = vpop.eup %5670 }
 0x470   : > { %5182 = vmatmul.mubr.msk.bf16.vlgmr.msra.gmra.mrb[60].mxu1 %vm2548_vm2, %v2643_v59  ;;  %v2636_v51 = vmul.f32 %v5671_v10, %v6318_v11 }
 0x471   : > { %5186 = vmatpush3.bf16.msra.mxu1 %v2980_v50  ;;  %5187 = vmatprep.mubr.msk.bf16.mxu1 %vm5789_vm0, %v5788_v27  ;;  %v5409_v27 = vld [vmem:[#allocation4 + $0x30] ss:$8 sps:$4 sm:$0xff]  }
 0x472   : > { %v2644_v52 = vpack.c.bf16 %v2636_v51, %v2636_v51  ;;  %3537 = vmatpush1.bf16.msra.mxu0 %v5406_v42 }
 0x473   : > { %3538 = vmatprep.subr.bf16.mxu0 %v5411_v57 }
 0x476   : > { %3539 = vmatpush1.bf16.msra.mxu0 %v5409_v27 }
 0x477   : > { %3540 = vmatprep.subr.bf16.mxu0 %v5414_v49 }
 0x478   : > { %5188 = vmatmul.mubr.msk.bf16.vlgmr.msra.gmra.mrb[64].mxu1 %vm2548_vm2, %v2644_v52 }
 0x47a   : > { %3541 = vmatpush1.bf16.msra.mxu0 %v5412_v60  ;;  %v5441_v60 = vld [vmem:[#allocation4 + $0xd4] ss:$8 sps:$4 sm:$0xff]  }
 0x47b   : > { %3542 = vmatprep.subr.bf16.mxu0 %v5417_v56 }
 0x47e   : > { %3543 = vmatpush1.bf16.msra.mxu0 %v5415_v1 }
 0x47f   : > { %3544 = vmatprep.subr.bf16.mxu0 %v5420_v16 }
 0x482   : > { %3545 = vmatpush1.bf16.msra.mxu0 %v5418_v21 }
 0x483   : > { %3546 = vmatprep.subr.bf16.mxu0 %v5423_v33  ;;  %v5439_v33 = vld [vmem:[#allocation4 + $0xd0] ss:$8 sps:$4 sm:$0xff]  }
 0x486   : > { %3547 = vmatpush1.bf16.msra.mxu0 %v5421_v29 }
 0x487   : > { %3548 = vmatprep.subr.bf16.mxu0 %v5426_v31 }
 0x48a   : > { %3549 = vmatpush1.bf16.msra.mxu0 %v5424_v4 }
 0x48b   : > { %3550 = vmatprep.subr.bf16.mxu0 %v5429_v9 }
 0x48e   : > { %3551 = vmatpush1.bf16.msra.mxu0 %v5427_v36 }
 0x48f   : > { %3552 = vmatprep.subr.bf16.mxu0 %v5432_v17 }
 0x492   : > { %3553 = vmatpush1.bf16.msra.mxu0 %v5430_v48 }
 0x493   : > { %3554 = vmatprep.subr.bf16.mxu0 %v5435_v14 }
 0x496   : > { %3555 = vmatpush1.bf16.msra.mxu0 %v5433_v54  ;;  %v5442_v54 = vld [vmem:[#allocation4 + $0xe0] ss:$8 sps:$4 sm:$0xff]  }
 0x497   : > { %3556 = vmatprep.subr.bf16.mxu0 %v5438_v3  ;;  %v5444_v3 = vld [vmem:[#allocation4 + $0xe4] ss:$8 sps:$4 sm:$0xff]  }
 0x4ee   : > { %v2694_v0 = vpop.f32.mrb[36].mxu1 }
 0x4ef   : > { %v5147_v37 = vpop.f32.mrb[37].mxu1 }
 0x4f0   : > { %v2697_v11 = vpop.f32.mrb[38].mxu1 }
 0x4f1   : > { %v5148_v58 = vpop.f32.mrb[39].mxu1 }
 0x4f2   : > { %v5436_v58 = vld [vmem:[#allocation4 + $0xc0] ss:$8 sps:$4 sm:$0xff]  }
 0x4f3   : > { %3557 = vmatpush1.bf16.msra.mxu0 %v5436_v58 }
 0x4f4   : > { %3558 = vmatprep.subr.bf16.mxu0 %v5441_v60 }
 0x4f6   : > { %v2740_v61 = vpop.f32.mrb[40].mxu1 }
 0x4f7   : > { %v5153_v63 = vpop.f32.mrb[41].mxu1  ;;  %3559 = vmatpush1.bf16.msra.mxu0 %v5439_v33 }
 0x4f8   : > { %v2743_v15 = vpop.f32.mrb[42].mxu1  ;;  %3560 = vmatprep.subr.bf16.mxu0 %v5444_v3  ;;  %v5454_v3 = vld [vmem:[%s6725_s8 + $0x20] ss:$16 sps:$4 sm:$0xff]  }
 0x4f9   : > { %v5154_v19 = vpop.f32.mrb[43].mxu1 }
 0x4fb   : > { %3561 = vmatpush1.bf16.msra.mxu0 %v5442_v54  ;;  %v5459_v54 = vld [vmem:[%s6725_s8 + $0x2c] ss:$16 sps:$4 sm:$0xff]  }
 0x4fe   : > { %v2786_v22 = vpop.f32.mrb[44].mxu1 }
 0x4ff   : > { %v3022_v39 = vcombine.low %v2694_v0, %v2786_v22  ;;  %v3023_v18 = vcombine.high %v2694_v0, %v2786_v22  ;;  %v5159_v25 = vpop.f32.mrb[45].mxu1 }
 0x500   : > { %v2789_v30 = vpop.f32.mrb[46].mxu1 }
 0x501   : > { %v5160_v2 = vpop.f32.mrb[47].mxu1  ;;  %v3030_v38 = vrot.slane %v3022_v39, %v6065_v13  ;;  %v3037_v40 = vrot.slane %v3023_v18, %v6065_v13 }
 0x506   : > { %v2832_v24 = vpop.f32.mrb[48].mxu1 }
 0x507   : > { %v3038_v34 = vcombine.low %v2740_v61, %v2832_v24  ;;  %v3039_v35 = vcombine.high %v2740_v61, %v2832_v24  ;;  %v5165_v62 = vpop.f32.mrb[49].mxu1 }
 0x508   : > { %v2835_v7 = vpop.f32.mrb[50].mxu1 }
 0x509   : > { %v3046_v41 = vrot.slane %v3038_v34, %v6065_v13  ;;  %v3053_v43 = vrot.slane %v3039_v35, %v6065_v13  ;;  %v5166_v26 = vpop.f32.mrb[51].mxu1 }
 0x50b   : > { %v3086_v44 = vcombine.low %v3030_v38, %v3046_v41  ;;  %v3087_v45 = vcombine.high %v3030_v38, %v3046_v41  ;;  %v3102_v46 = vcombine.low %v3037_v40, %v3053_v43  ;;  %v3103_v47 = vcombine.high %v3037_v40, %v3053_v43 }
 0x50d   : > { %v3094_v28 = vrot.slane %v3086_v44, %v6072_v12  ;;  %v3101_v59 = vrot.slane %v3087_v45, %v6072_v12  ;;  %v3110_v10 = vrot.slane %v3102_v46, %v6072_v12  ;;  %v3117_v50 = vrot.slane %v3103_v47, %v6072_v12 }
 0x50f   : > { %v4891_v51 = vcombine.low %v3094_v28, %v3101_v59  ;;  %v4893_v52 = vcombine.high %v3094_v28, %v3101_v59  ;;  %v4895_v53 = vcombine.low %v3110_v10, %v3117_v50  ;;  %v4897_v32 = vcombine.high %v3110_v10, %v3117_v50 }
 0x511   : > { %v3166_v55 = vrot.slane %v4891_v51, %v6065_v13  ;;  %v3182_v42 = vrot.slane %v4893_v52, %v6065_v13  ;;  %v3198_v57 = vrot.slane %v4895_v53, %v6065_v13  ;;  %v3214_v0 = vrot.slane %v4897_v32, %v6065_v13 }
 0x513   : > { %v3223_v37 = vcombine.high %v3166_v55, %v3182_v42  ;;  %v3255_v27 = vcombine.high %v3198_v57, %v3214_v0  ;;  %v3222_v11 = vcombine.low %v3166_v55, %v3182_v42  ;;  %v3254_v49 = vcombine.low %v3198_v57, %v3214_v0 }
 0x515   : > { %v6396_v56 = vrot.slane %v3223_v37, %v6072_v12  ;;  %v6399_v61 = vrot.slane %v3255_v27, %v6072_v12  ;;  %v6402_v63 = vrot.slane %v3222_v11, %v6072_v12  ;;  %v6405_v1 = vrot.slane %v3254_v49, %v6072_v12 }
 0x517   : > { %v3288_v15 = vcombine.low %v6396_v56, %v6399_v61  ;;  %v3286_v16 = vcombine.low %v6402_v63, %v6405_v1  ;;  %v3287_v19 = vcombine.high %v6402_v63, %v6405_v1  ;;  %v3289_v21 = vcombine.high %v6396_v56, %v6399_v61  ;;  %v3360_v63 = vld [vmem:[%s6722_s5] sm:$0x3] }
 0x518   : > { %v3365_v1 = vrot.slane %v3360_v63, %v6010_v8 }
 0x51b   : > { %v2878_v22 = vpop.f32.mrb[52].mxu1 }
 0x51c   : > { %v5171_v39 = vpop.f32.mrb[53].mxu1 }
 0x51d   : > { %v2881_v18 = vpop.f32.mrb[54].mxu1  ;;  %v5445_v39 = vld [vmem:[#allocation4 + $0xf0] ss:$8 sps:$4 sm:$0xff]  }
 0x51e   : > { %v5172_v25 = vpop.f32.mrb[55].mxu1  ;;  %v5447_v18 = vld [vmem:[#allocation4 + $0xf4] ss:$8 sps:$4 sm:$0xff]  }
 0x51f   : > { %3562 = vmatprep.subr.bf16.mxu0 %v5447_v18  ;;  %v5480_v18 = vld [vmem:[%s6725_s8 + $0xa4] ss:$16 sps:$4 sm:$0xff]  }
 0x520   : > { %3563 = vmatpush1.bf16.msra.mxu0 %v5445_v39  ;;  %v5475_v39 = vld [vmem:[%s6725_s8 + $0x88] ss:$16 sps:$4 sm:$0xff]  }
 0x533   : > { %v2924_v29 = vpop.f32.mrb[56].mxu1 }
 0x534   : > { %v5177_v30 = vpop.f32.mrb[57].mxu1 }
 0x535   : > { %v2927_v31 = vpop.f32.mrb[58].mxu1 }
 0x536   : > { %v5178_v2 = vpop.f32.mrb[59].mxu1 }
 0x543   : > { %v2970_v4 = vpop.f32.mrb[60].mxu1 }
 0x544   : > { %v3054_v9 = vcombine.low %v2878_v22, %v2970_v4  ;;  %v3055_v24 = vcombine.high %v2878_v22, %v2970_v4  ;;  %v5183_v34 = vpop.f32.mrb[61].mxu1 }
 0x545   : > { %v2973_v35 = vpop.f32.mrb[62].mxu1 }
 0x546   : > { %v5184_v62 = vpop.f32.mrb[63].mxu1  ;;  %v3062_v41 = vrot.slane %v3054_v9, %v6065_v13  ;;  %v3069_v43 = vrot.slane %v3055_v24, %v6065_v13 }
 0x54b   : > { %v3016_v36 = vpop.f32.mrb[64].mxu1 }
 0x54c   : > { %v3070_v7 = vcombine.low %v2924_v29, %v3016_v36  ;;  %v3071_v17 = vcombine.high %v2924_v29, %v3016_v36  ;;  %v5189_v38 = vpop.f32.mrb[65].mxu1 }
 0x54d   : > { %v3019_v40 = vpop.f32.mrb[66].mxu1 }
 0x54e   : > { %v3078_v26 = vrot.slane %v3070_v7, %v6065_v13  ;;  %v3085_v44 = vrot.slane %v3071_v17, %v6065_v13  ;;  %v5190_v45 = vpop.f32.mrb[67].mxu1 }
 0x550   : > { %v3118_v46 = vcombine.low %v3062_v41, %v3078_v26  ;;  %v3119_v47 = vcombine.high %v3062_v41, %v3078_v26  ;;  %v3134_v48 = vcombine.low %v3069_v43, %v3085_v44  ;;  %v3135_v14 = vcombine.high %v3069_v43, %v3085_v44 }
 0x552   : > { %v3126_v28 = vrot.slane %v3118_v46, %v6072_v12  ;;  %v3133_v59 = vrot.slane %v3119_v47, %v6072_v12  ;;  %v3142_v10 = vrot.slane %v3134_v48, %v6072_v12  ;;  %v3149_v50 = vrot.slane %v3135_v14, %v6072_v12  ;;  %v5676_v47 = vld [vmem:[%s5993_s28] sm:$0xff] }
 0x554   : > { %v4892_v51 = vcombine.low %v3126_v28, %v3133_v59  ;;  %v4894_v52 = vcombine.high %v3126_v28, %v3133_v59  ;;  %v4896_v53 = vcombine.low %v3142_v10, %v3149_v50  ;;  %v4898_v32 = vcombine.high %v3142_v10, %v3149_v50  ;;  %v5677_v28 = vld [vmem:[%s5993_s28 + $0x8] sm:$0xff]  ;;  %v5448_v50 = vld [vmem:[%s6725_s8] ss:$16 sps:$4 sm:$0xff]  }
 0x556   : > { %v3173_v55 = vrot.slane %v4892_v51, %v6065_v13  ;;  %v3189_v42 = vrot.slane %v4894_v52, %v6065_v13  ;;  %v3205_v57 = vrot.slane %v4896_v53, %v6065_v13  ;;  %v3221_v0 = vrot.slane %v4898_v32, %v6065_v13  ;;  %v5450_v51 = vld [vmem:[%s6725_s8 + $0x4] ss:$16 sps:$4 sm:$0xff]   ;;  %v5451_v52 = vld [vmem:[%s6725_s8 + $0x8] ss:$16 sps:$4 sm:$0xff]   ;;  %v5453_v53 = vld [vmem:[%s6725_s8 + $0xc] ss:$16 sps:$4 sm:$0xff]  }
 0x557   : > { %v5456_v32 = vld [vmem:[%s6725_s8 + $0x24] ss:$16 sps:$4 sm:$0xff]   ;;  %4028 = vmatprep.subr.bf16.mxu1 %v5450_v51  ;;  %4069 = vmatprep.subr.bf16.mxu0 %v5453_v53  ;;  %v5531_v53 = vld [vmem:[%s6725_s8 + $0x1ac] ss:$16 sps:$4 sm:$0xff]  }
 0x558   : > { %v3239_v37 = vcombine.high %v3173_v55, %v3189_v42  ;;  %v3271_v27 = vcombine.high %v3205_v57, %v3221_v0  ;;  %v3238_v11 = vcombine.low %v3173_v55, %v3189_v42  ;;  %v3270_v49 = vcombine.low %v3205_v57, %v3221_v0  ;;  %4029 = vmatpush1.bf16.msra.mxu1 %v5448_v50  ;;  %v5457_v55 = vld [vmem:[%s6725_s8 + $0x28] ss:$16 sps:$4 sm:$0xff]   ;;  %v5462_v42 = vld [vmem:[%s6725_s8 + $0x44] ss:$16 sps:$4 sm:$0xff]   ;;  %v5465_v57 = vld [vmem:[%s6725_s8 + $0x4c] ss:$16 sps:$4 sm:$0xff]  }
 0x559   : > { %4030 = vmatprep.subr.bf16.mxu1 %v5456_v32  ;;  %v5460_v0 = vld [vmem:[%s6725_s8 + $0x40] ss:$16 sps:$4 sm:$0xff]   ;;  %v5528_v51 = vld [vmem:[%s6725_s8 + $0x1a4] ss:$16 sps:$4 sm:$0xff]  }
 0x55a   : > { %v3253_v58 = vrot.slane %v3239_v37, %v6072_v12  ;;  %v3285_v60 = vrot.slane %v3271_v27, %v6072_v12  ;;  %v3246_v33 = vrot.slane %v3238_v11, %v6072_v12  ;;  %v3278_v22 = vrot.slane %v3270_v49, %v6072_v12  ;;  %v5463_v37 = vld [vmem:[%s6725_s8 + $0x48] ss:$16 sps:$4 sm:$0xff]   ;;  %v5468_v27 = vld [vmem:[%s6725_s8 + $0x64] ss:$16 sps:$4 sm:$0xff]   ;;  %v5471_v11 = vld [vmem:[%s6725_s8 + $0x6c] ss:$16 sps:$4 sm:$0xff]  }
 0x55b   : > { %v5466_v49 = vld [vmem:[%s6725_s8 + $0x60] ss:$16 sps:$4 sm:$0xff]   ;;  %v5534_v32 = vld [vmem:[%s6725_s8 + $0x1c4] ss:$16 sps:$4 sm:$0xff]  }
 0x55c   : > { %v3292_v25 = vcombine.low %v3253_v58, %v3285_v60  ;;  %v3291_v29 = vcombine.high %v3246_v33, %v3278_v22  ;;  %v3290_v30 = vcombine.low %v3246_v33, %v3278_v22  ;;  %v3293_v13 = vcombine.high %v3253_v58, %v3285_v60  ;;  %4031 = vmatpush1.bf16.msra.mxu1 %v5454_v3  ;;  %v5469_v58 = vld [vmem:[%s6725_s8 + $0x68] ss:$16 sps:$4 sm:$0xff]   ;;  %v5474_v60 = vld [vmem:[%s6725_s8 + $0x84] ss:$16 sps:$4 sm:$0xff]   ;;  %v5477_v33 = vld [vmem:[%s6725_s8 + $0x8c] ss:$16 sps:$4 sm:$0xff]  }
 0x55d   : > { %4032 = vmatprep.subr.bf16.mxu1 %v5462_v42  ;;  %v5472_v22 = vld [vmem:[%s6725_s8 + $0x80] ss:$16 sps:$4 sm:$0xff]   ;;  %v5540_v42 = vld [vmem:[%s6725_s8 + $0x1e4] ss:$16 sps:$4 sm:$0xff]  }
 0x55e   : > { %v5246_v31 = vpack.i.bf16 %v3288_v15, %v3292_v25  ;;  %v5241_v2 = vpack.i.bf16 %v3287_v19, %v3291_v29  ;;  %v5251_v12 = vpack.i.bf16 %v3289_v21, %v3293_v13  ;;  %v5483_v25 = vld [vmem:[%s6725_s8 + $0xac] ss:$16 sps:$4 sm:$0xff]   ;;  %v5478_v29 = vld [vmem:[%s6725_s8 + $0xa0] ss:$16 sps:$4 sm:$0xff]   ;;  %v5486_v13 = vld [vmem:[%s6725_s8 + $0xc4] ss:$16 sps:$4 sm:$0xff]  }
 0x55f   : > { %v5526_v50 = vld [vmem:[%s6725_s8 + $0x1a0] ss:$16 sps:$4 sm:$0xff]  }
 0x560   : > { %5247 = vrot.lane.b32.xlu0 %v5246_v31, %s5787_s27  ;;  %5242 = vrot.lane.b32.xlu1 %v5241_v2, %s5785_s25  ;;  %v5489_v31 = vld [vmem:[%s6725_s8 + $0xcc] ss:$16 sps:$4 sm:$0xff]   ;;  %v5484_v2 = vld [vmem:[%s6725_s8 + $0xc0] ss:$16 sps:$4 sm:$0xff]  }
 0x561   : > { %4033 = vmatpush1.bf16.msra.mxu1 %v5460_v0  ;;  %v5532_v3 = vld [vmem:[%s6725_s8 + $0x1c0] ss:$16 sps:$4 sm:$0xff]  }
 0x562   : > { %4034 = vmatprep.subr.bf16.mxu1 %v5468_v27  ;;  %v5538_v0 = vld [vmem:[%s6725_s8 + $0x1e0] ss:$16 sps:$4 sm:$0xff]   ;;  %v5546_v27 = vld [vmem:[#allocation6 + $0x4] ss:$8 sps:$4 sm:$0xff]  }
 0x564   : > { %5252 = vrot.lane.b32.xlu1 %v5251_v12, %s5786_s26  ;;  %v5487_v12 = vld [vmem:[%s6725_s8 + $0xc8] ss:$16 sps:$4 sm:$0xff]  }
 0x565   : > { %4035 = vmatpush1.bf16.msra.mxu1 %v5466_v49 }
 0x566   : > { %4036 = vmatprep.subr.bf16.mxu1 %v5474_v60 }
 0x569   : > { %4037 = vmatpush1.bf16.msra.mxu1 %v5472_v22  ;;  %v3576_v22 = vld [vmem:[%s6724_s7] sm:$0x3] }
 0x56a   : > { %4038 = vmatprep.subr.bf16.mxu1 %v5480_v18 }
 0x56d   : > { %4039 = vmatpush1.bf16.msra.mxu1 %v5478_v29 }
 0x56e   : > { %4040 = vmatprep.subr.bf16.mxu1 %v5486_v13  ;;  %v3611_v13 = vrot.slane %v3576_v22, %v6010_v8 }
 0x571   : > { %4041 = vmatpush1.bf16.msra.mxu1 %v5484_v2 }
 0x5d2   : > { %v5248_v4 = vpop.permute.xlu0 %5247  ;;  %v5243_v9 = vpop.permute.xlu1 %5242 }
 0x5d3   : > { %v5245_v24 = vunpack.i.h.bf16 %v5243_v9  ;;  %v5244_v34 = vunpack.i.l.bf16 %v5243_v9  ;;  %v5250_v35 = vunpack.i.h.bf16 %v5248_v4  ;;  %v5249_v15 = vunpack.i.l.bf16 %v5248_v4  ;;  %v5492_v4 = vld [vmem:[%s6725_s8 + $0xe4] ss:$16 sps:$4 sm:$0xff]   ;;  %v5495_v9 = vld [vmem:[%s6725_s8 + $0xec] ss:$16 sps:$4 sm:$0xff]  }
 0x5d4   : > { %4042 = vmatprep.subr.bf16.mxu1 %v5492_v4 }
 0x5d5   : > { %v3318_v19 = vsel %vm2157_vm1, %v3286_v16, %v5245_v24  ;;  %v3323_v56 = vsel %vm2157_vm1, %v3290_v30, %v5244_v34  ;;  %v3369_v16 = vrot.slane %v3360_v63, %v6034_v23  ;;  %v5481_v30 = vld [vmem:[%s6725_s8 + $0xa8] ss:$16 sps:$4 sm:$0xff]   ;;  %v5490_v24 = vld [vmem:[%s6725_s8 + $0xe0] ss:$16 sps:$4 sm:$0xff]  }
 0x5d6   : > { %v5253_v61 = vpop.permute.xlu1 %5252  ;;  %v3320_v36 = vsel %vm3319_vm4, %v3318_v19, %v5250_v35  ;;  %v3324_v7 = vsel %vm3319_vm4, %v3323_v56, %v5249_v15  ;;  %v5493_v34 = vld [vmem:[%s6725_s8 + $0xe8] ss:$16 sps:$4 sm:$0xff]   ;;  %v5498_v35 = vld [vmem:[%s6725_s8 + $0x104] ss:$16 sps:$4 sm:$0xff]   ;;  %v5501_v15 = vld [vmem:[%s6725_s8 + $0x10c] ss:$16 sps:$4 sm:$0xff]   ;;  %4043 = vmatpush1.bf16.msra.mxu1 %v5490_v24 }
 0x5d7   : > { %v5255_v21 = vunpack.i.h.bf16 %v5253_v61  ;;  %v5254_v62 = vunpack.i.l.bf16 %v5253_v61  ;;  %v5496_v19 = vld [vmem:[%s6725_s8 + $0x100] ss:$16 sps:$4 sm:$0xff]   ;;  %4044 = vmatprep.subr.bf16.mxu1 %v5498_v35  ;;  %v5499_v56 = vld [vmem:[%s6725_s8 + $0x108] ss:$16 sps:$4 sm:$0xff]   ;;  %v5504_v61 = vld [vmem:[%s6725_s8 + $0x124] ss:$16 sps:$4 sm:$0xff]  }
 0x5d8   : > { %v5544_v35 = vld [vmem:[#allocation6] ss:$8 sps:$4 sm:$0xff]  }
 0x5d9   : > { %v3322_v17 = vsel %vm3321_vm5, %v3320_v36, %v5255_v21  ;;  %v3325_v38 = vsel %vm3321_vm5, %v3324_v7, %v5254_v62  ;;  %v5507_v21 = vld [vmem:[%s6725_s8 + $0x12c] ss:$16 sps:$4 sm:$0xff]   ;;  %v5502_v62 = vld [vmem:[%s6725_s8 + $0x120] ss:$16 sps:$4 sm:$0xff]   ;;  %v5505_v36 = vld [vmem:[%s6725_s8 + $0x128] ss:$16 sps:$4 sm:$0xff]  }
 0x5da   : > { %v3326_v40 = vpack.c.bf16 %v3322_v17, %v3322_v17  ;;  %v3327_v41 = vpack.c.bf16 %v3325_v38, %v3325_v38  ;;  %4045 = vmatpush1.bf16.msra.mxu1 %v5496_v19  ;;  %v5552_v19 = vld [vmem:[#allocation6 + $0x14] ss:$8 sps:$4 sm:$0xff]  }
 0x5db   : > { %4046 = vmatprep.subr.bf16.mxu1 %v5504_v61  ;;  %v5550_v61 = vld [vmem:[#allocation6 + $0x10] ss:$8 sps:$4 sm:$0xff]  }
 0x5dc   : > { %3564 = vmatprep.mubr.bf16.mxu0 %v3327_v41 }
 0x5dd   : > { %3565 = vmatmul.mubr.bf16.vlgmr.msra.gmra.mrb[8].mxu0 %v3326_v40 }
 0x5de   : > { %4070 = vmatpush1.bf16.msra.mxu0 %v5451_v52  ;;  %4047 = vmatpush1.bf16.msra.mxu1 %v5502_v62  ;;  %v5529_v52 = vld [vmem:[%s6725_s8 + $0x1a8] ss:$16 sps:$4 sm:$0xff]   ;;  %v5558_v62 = vld [vmem:[#allocation6 + $0x24] ss:$8 sps:$4 sm:$0xff]  }
 0x5df   : > { %4071 = vmatprep.subr.bf16.mxu0 %v5459_v54  ;;  %v5537_v54 = vld [vmem:[%s6725_s8 + $0x1cc] ss:$16 sps:$4 sm:$0xff]  }
 0x5e2   : > { %4072 = vmatpush1.bf16.msra.mxu0 %v5457_v55  ;;  %v5535_v55 = vld [vmem:[%s6725_s8 + $0x1c8] ss:$16 sps:$4 sm:$0xff]  }
 0x5e3   : > { %4073 = vmatprep.subr.bf16.mxu0 %v5465_v57  ;;  %v5543_v57 = vld [vmem:[%s6725_s8 + $0x1ec] ss:$16 sps:$4 sm:$0xff]  }
 0x5e6   : > { %4074 = vmatpush1.bf16.msra.mxu0 %v5463_v37  ;;  %v5541_v37 = vld [vmem:[%s6725_s8 + $0x1e8] ss:$16 sps:$4 sm:$0xff]  }
 0x5e7   : > { %4075 = vmatprep.subr.bf16.mxu0 %v5471_v11  ;;  %v5549_v11 = vld [vmem:[#allocation6 + $0x104] ss:$8 sps:$4 sm:$0xff]  }
 0x5ea   : > { %4076 = vmatpush1.bf16.msra.mxu0 %v5469_v58 }
 0x5eb   : > { %4077 = vmatprep.subr.bf16.mxu0 %v5477_v33  ;;  %v3575_v33 = vld [vmem:[%s6723_s6] sm:$0x3] }
 0x5ec   : > { %v3602_v18 = vrot.slane %v3575_v33, %v6034_v23 }
 0x5ee   : > { %4078 = vmatpush1.bf16.msra.mxu0 %v5475_v39  ;;  %v3598_v39 = vrot.slane %v3575_v33, %v6010_v8  ;;  %v5610_v33 = vld [vmem:[#allocation6 + $0xb0] ss:$8 sps:$4 sm:$0xff]  }
 0x5ef   : > { %4079 = vmatprep.subr.bf16.mxu0 %v5483_v25 }
 0x5f2   : > { %4080 = vmatpush1.bf16.msra.mxu0 %v5481_v30 }
 0x5f3   : > { %4081 = vmatprep.subr.bf16.mxu0 %v5489_v31  ;;  %v3615_v31 = vrot.slane %v3576_v22, %v6034_v23  ;;  %v5613_v22 = vld [vmem:[#allocation6 + $0x1b0] ss:$8 sps:$4 sm:$0xff]  }
 0x5f6   : > { %4082 = vmatpush1.bf16.msra.mxu0 %v5487_v12 }
 0x5f7   : > { %4083 = vmatprep.subr.bf16.mxu0 %v5495_v9 }
 0x5fa   : > { %4084 = vmatpush1.bf16.msra.mxu0 %v5493_v34 }
 0x5fb   : > { %4085 = vmatprep.subr.bf16.mxu0 %v5501_v15  ;;  %v5547_v15 = vld [vmem:[#allocation6 + $0x100] ss:$8 sps:$4 sm:$0xff]  }
 0x5fe   : > { %4086 = vmatpush1.bf16.msra.mxu0 %v5499_v56  ;;  %v5555_v56 = vld [vmem:[#allocation6 + $0x114] ss:$8 sps:$4 sm:$0xff]  }
 0x5ff   : > { %4087 = vmatprep.subr.bf16.mxu0 %v5507_v21  ;;  %v5553_v21 = vld [vmem:[#allocation6 + $0x110] ss:$8 sps:$4 sm:$0xff]  }
 0x602   : > { %4088 = vmatpush1.bf16.msra.mxu0 %v5505_v36  ;;  %v5561_v36 = vld [vmem:[#allocation6 + $0x124] ss:$8 sps:$4 sm:$0xff]  }
 0x6b0   : > { %v3566_v43 = vpop.f32.mrb[8].mxu0 }
 0x6b1   : > { %v3567_v26 = vadd.f32 %v3566_v43, %v3365_v1  ;;  %v3568_v44 = vpop.f32.mrb[9].mxu0  ;;  %v5513_v43 = vld [vmem:[%s6725_s8 + $0x14c] ss:$16 sps:$4 sm:$0xff]  }
 0x6b2   : > { %v3569_v45 = vadd.f32 %v3568_v44, %v3369_v16  ;;  %v3570_v46 = vpop.f32.mrb[10].mxu0  ;;  %v5510_v16 = vld [vmem:[%s6725_s8 + $0x144] ss:$16 sps:$4 sm:$0xff]   ;;  %v5511_v44 = vld [vmem:[%s6725_s8 + $0x148] ss:$16 sps:$4 sm:$0xff]   ;;  %4089 = vmatprep.subr.bf16.mxu0 %v5513_v43 }
 0x6b3   : > { %v6454_v48 = vadd.f32 %v5676_v47, %v3567_v26  ;;  %v3571_v14 = vpop.f32.mrb[11].mxu0  ;;  %v5508_v26 = vld [vmem:[%s6725_s8 + $0x140] ss:$16 sps:$4 sm:$0xff]   ;;  %4048 = vmatprep.subr.bf16.mxu1 %v5510_v16  ;;  %4090 = vmatpush1.bf16.msra.mxu0 %v5511_v44  ;;  %v5519_v46 = vld [vmem:[%s6725_s8 + $0x16c] ss:$16 sps:$4 sm:$0xff]  }
 0x6b4   : > { %v6457_v59 = vadd.f32 %v5677_v28, %v3569_v45  ;;  %4049 = vmatpush1.bf16.msra.mxu1 %v5508_v26  ;;  %v5516_v45 = vld [vmem:[%s6725_s8 + $0x164] ss:$16 sps:$4 sm:$0xff]   ;;  %v5514_v47 = vld [vmem:[%s6725_s8 + $0x160] ss:$16 sps:$4 sm:$0xff]   ;;  %4091 = vmatprep.subr.bf16.mxu0 %v5519_v46  ;;  %v5525_v28 = vld [vmem:[%s6725_s8 + $0x18c] ss:$16 sps:$4 sm:$0xff]  }
 0x6b5   : > { %4050 = vmatprep.subr.bf16.mxu1 %v5516_v45  ;;  %v5522_v14 = vld [vmem:[%s6725_s8 + $0x184] ss:$16 sps:$4 sm:$0xff]   ;;  %v5568_v43 = vld [vmem:[#allocation6 + $0x40] ss:$8 sps:$4 sm:$0xff]   ;;  %v5574_v46 = vld [vmem:[#allocation6 + $0x50] ss:$8 sps:$4 sm:$0xff]  }
 0x6b6   : > { %v3577_v10 = vadd.f32 %v6457_v59, %v6454_v48  ;;  %v5573_v16 = vld [vmem:[#allocation6 + $0x144] ss:$8 sps:$4 sm:$0xff]   ;;  %v5571_v26 = vld [vmem:[#allocation6 + $0x140] ss:$8 sps:$4 sm:$0xff]   ;;  %v5576_v44 = vld [vmem:[#allocation6 + $0x54] ss:$8 sps:$4 sm:$0xff]  }
 0x6b7   : > { %v5579_v45 = vld [vmem:[#allocation6 + $0x154] ss:$8 sps:$4 sm:$0xff]  }
 0x6b8   : > { %3578 = vadd.xlane.f32.xlu1 %v3577_v10  ;;  %4051 = vmatpush1.bf16.msra.mxu1 %v5514_v47  ;;  %v5523_v10 = vld [vmem:[%s6725_s8 + $0x188] ss:$16 sps:$4 sm:$0xff]  }
 0x6b9   : > { %4052 = vmatprep.subr.bf16.mxu1 %v5522_v14  ;;  %v5577_v47 = vld [vmem:[#allocation6 + $0x150] ss:$8 sps:$4 sm:$0xff]   ;;  %v5585_v14 = vld [vmem:[#allocation6 + $0x164] ss:$8 sps:$4 sm:$0xff]  }
 0x745   : > { %v3579_v7 = vpop.xlane.xlu1 %3578 }
 0x746   : > { %v3581_v17 = vmul.f32 0.00390625, %v3579_v7  ;;  %v5556_v7 = vld [vmem:[#allocation6 + $0x20] ss:$8 sps:$4 sm:$0xff]  }
 0x748   : > { %v6582_v38 = vsub.f32 %v6454_v48, %v3581_v17  ;;  %v6585_v40 = vsub.f32 %v6457_v59, %v3581_v17  ;;  %v5517_v48 = vld [vmem:[%s6725_s8 + $0x168] ss:$16 sps:$4 sm:$0xff]   ;;  %v5520_v59 = vld [vmem:[%s6725_s8 + $0x180] ss:$16 sps:$4 sm:$0xff]  }
 0x749   : > { %4092 = vmatpush1.bf16.msra.mxu0 %v5517_v48  ;;  %4053 = vmatpush1.bf16.msra.mxu1 %v5520_v59  ;;  %v5559_v17 = vld [vmem:[#allocation6 + $0x120] ss:$8 sps:$4 sm:$0xff]   ;;  %v5582_v48 = vld [vmem:[#allocation6 + $0x64] ss:$8 sps:$4 sm:$0xff]  }
 0x74a   : > { %v3584_v41 = vmul.f32 %v6582_v38, %v6582_v38  ;;  %v3585_v63 = vmul.f32 %v6585_v40, %v6585_v40  ;;  %4093 = vmatprep.subr.bf16.mxu0 %v5525_v28  ;;  %4054 = vmatprep.subr.bf16.mxu1 %v5528_v51  ;;  %v5580_v28 = vld [vmem:[#allocation6 + $0x60] ss:$8 sps:$4 sm:$0xff]   ;;  %v5586_v51 = vld [vmem:[#allocation6 + $0x70] ss:$8 sps:$4 sm:$0xff]  }
 0x74b   : > { %v5583_v59 = vld [vmem:[#allocation6 + $0x160] ss:$8 sps:$4 sm:$0xff]  }
 0x74c   : > { %v3586_v1 = vadd.f32 %v3585_v63, %v3584_v41  ;;  %v5562_v41 = vld [vmem:[#allocation6 + $0x30] ss:$8 sps:$4 sm:$0xff]  }
 0x74d   : > { %4094 = vmatpush1.bf16.msra.mxu0 %v5523_v10  ;;  %4055 = vmatpush1.bf16.msra.mxu1 %v5526_v50  ;;  %v5565_v63 = vld [vmem:[#allocation6 + $0x130] ss:$8 sps:$4 sm:$0xff]   ;;  %v5588_v10 = vld [vmem:[#allocation6 + $0x74] ss:$8 sps:$4 sm:$0xff]  }
 0x74e   : > { %3587 = vadd.xlane.f32.xlu0 %v3586_v1  ;;  %4095 = vmatprep.subr.bf16.mxu0 %v5531_v53  ;;  %v5570_v1 = vld [vmem:[#allocation6 + $0x44] ss:$8 sps:$4 sm:$0xff]   ;;  %v5591_v50 = vld [vmem:[#allocation6 + $0x174] ss:$8 sps:$4 sm:$0xff]  }
 0x74f   : > { %4056 = vmatprep.subr.bf16.mxu1 %v5534_v32  ;;  %v5594_v53 = vld [vmem:[#allocation6 + $0x84] ss:$8 sps:$4 sm:$0xff]  }
 0x750   : > { %v5597_v32 = vld [vmem:[#allocation6 + $0x184] ss:$8 sps:$4 sm:$0xff]  }
 0x751   : > { %4096 = vmatpush1.bf16.msra.mxu0 %v5529_v52  ;;  %4057 = vmatpush1.bf16.msra.mxu1 %v5532_v3  ;;  %v5589_v52 = vld [vmem:[#allocation6 + $0x170] ss:$8 sps:$4 sm:$0xff]   ;;  %v5595_v3 = vld [vmem:[#allocation6 + $0x180] ss:$8 sps:$4 sm:$0xff]  }
 0x752   : > { %4097 = vmatprep.subr.bf16.mxu0 %v5537_v54  ;;  %4058 = vmatprep.subr.bf16.mxu1 %v5540_v42  ;;  %v5592_v54 = vld [vmem:[#allocation6 + $0x80] ss:$8 sps:$4 sm:$0xff]   ;;  %v5603_v42 = vld [vmem:[#allocation6 + $0x194] ss:$8 sps:$4 sm:$0xff]  }
 0x755   : > { %4098 = vmatpush1.bf16.msra.mxu0 %v5535_v55  ;;  %4059 = vmatpush1.bf16.msra.mxu1 %v5538_v0  ;;  %v5600_v55 = vld [vmem:[#allocation6 + $0x94] ss:$8 sps:$4 sm:$0xff]   ;;  %v5601_v0 = vld [vmem:[#allocation6 + $0x190] ss:$8 sps:$4 sm:$0xff]  }
 0x756   : > { %4099 = vmatprep.subr.bf16.mxu0 %v5543_v57  ;;  %4514 = vmatprep.subr.bf16.mxu1 %v5546_v27  ;;  %v5598_v57 = vld [vmem:[#allocation6 + $0x90] ss:$8 sps:$4 sm:$0xff]   ;;  %v5609_v27 = vld [vmem:[#allocation6 + $0x1a4] ss:$8 sps:$4 sm:$0xff]  }
 0x759   : > { %4100 = vmatpush1.bf16.msra.mxu0 %v5541_v37  ;;  %v5606_v37 = vld [vmem:[#allocation6 + $0xa4] ss:$8 sps:$4 sm:$0xff]  }
 0x75a   : > { %4555 = vmatprep.subr.bf16.mxu0 %v5549_v11  ;;  %v5604_v11 = vld [vmem:[#allocation6 + $0xa0] ss:$8 sps:$4 sm:$0xff]  }
 0x7db   : > { %v3588_v49 = vpop.xlane.xlu0 %3587 }
 0x7dc   : > { %v3589_v58 = vmul.f32 0.00390625, %v3588_v49  ;;  %v5607_v49 = vld [vmem:[#allocation6 + $0x1a0] ss:$8 sps:$4 sm:$0xff]  }
 0x7de   : > { %v3590_v60 = vadd.f32 1e-05, %v3589_v58  ;;  %v5612_v58 = vld [vmem:[#allocation6 + $0xb4] ss:$8 sps:$4 sm:$0xff]  }
 0x7e0   : > { %5672 = vrsqrt.f32 %v3590_v60  ;;  %v5615_v60 = vld [vmem:[#allocation6 + $0x1b4] ss:$8 sps:$4 sm:$0xff]  }
 0x7ea   : > { %v5673_v25 = vpop.eup %5672 }
 0x7eb   : > { %v3592_v29 = vmul.f32 %v5673_v25, %v6582_v38  ;;  %v3593_v30 = vmul.f32 %v5673_v25, %v6585_v40  ;;  %v5564_v38 = vld [vmem:[#allocation6 + $0x34] ss:$8 sps:$4 sm:$0xff]   ;;  %v5616_v25 = vld [vmem:[#allocation6 + $0xc0] ss:$8 sps:$4 sm:$0xff]  }
 0x7ec   : > { %v5567_v40 = vld [vmem:[#allocation6 + $0x134] ss:$8 sps:$4 sm:$0xff]  }
 0x7ed   : > { %v3606_v2 = vmul.f32 %v3602_v18, %v3593_v30  ;;  %v3605_v12 = vmul.f32 %v3598_v39, %v3592_v29  ;;  %v5618_v39 = vld [vmem:[#allocation6 + $0xc4] ss:$8 sps:$4 sm:$0xff]   ;;  %v5619_v29 = vld [vmem:[#allocation6 + $0x1c0] ss:$8 sps:$4 sm:$0xff]   ;;  %v5624_v30 = vld [vmem:[#allocation6 + $0xd4] ss:$8 sps:$4 sm:$0xff]  }
 0x7ee   : > { %v5621_v18 = vld [vmem:[#allocation6 + $0x1c4] ss:$8 sps:$4 sm:$0xff]  }
 0x7ef   : > { %v6675_v4 = vadd.f32 %v3615_v31, %v3606_v2  ;;  %v6677_v9 = vadd.f32 %v3611_v13, %v3605_v12  ;;  %v5627_v13 = vld [vmem:[#allocation6 + $0x1d4] ss:$8 sps:$4 sm:$0xff]   ;;  %v5622_v31 = vld [vmem:[#allocation6 + $0xd0] ss:$8 sps:$4 sm:$0xff]   ;;  %v5630_v12 = vld [vmem:[#allocation6 + $0xe4] ss:$8 sps:$4 sm:$0xff]  }
 0x7f0   : > { %v5625_v2 = vld [vmem:[#allocation6 + $0x1d0] ss:$8 sps:$4 sm:$0xff]  }
 0x7f1   : > { %v3621_v24 = vpack.c.bf16 %v6675_v4, %v6675_v4  ;;  %v3620_v34 = vpack.c.bf16 %v6677_v9, %v6677_v9 }
 0x7f3   : > { %4060 = vmatprep.mubr.bf16.mxu1 %v3621_v24  ;;  %4101 = vmatprep.mubr.bf16.mxu0 %v3621_v24  ;;  %v5633_v24 = vld [vmem:[#allocation6 + $0x1e4] ss:$8 sps:$4 sm:$0xff]  }
 0x7f4   : > { %4061 = vmatmul.mubr.bf16.vlgmr.msra.gmra.mrb[68].mxu1 %v3620_v34  ;;  %4102 = vmatmul.mubr.bf16.vlgmr.msra.gmra.mrb[12].mxu0 %v3620_v34  ;;  %v5628_v34 = vld [vmem:[#allocation6 + $0xe0] ss:$8 sps:$4 sm:$0xff]  }
 0x7f5   : > { %4515 = vmatpush1.bf16.msra.mxu1 %v5544_v35  ;;  %4556 = vmatpush1.bf16.msra.mxu0 %v5547_v15  ;;  %v5631_v35 = vld [vmem:[#allocation6 + $0x1e0] ss:$8 sps:$4 sm:$0xff]   ;;  %v5636_v15 = vld [vmem:[#allocation6 + $0xf4] ss:$8 sps:$4 sm:$0xff]  }
 0x7f6   : > { %4516 = vmatprep.subr.bf16.mxu1 %v5552_v19  ;;  %4557 = vmatprep.subr.bf16.mxu0 %v5555_v56  ;;  %v5639_v19 = vld [vmem:[#allocation6 + $0x1f4] ss:$8 sps:$4 sm:$0xff]   ;;  %v5634_v56 = vld [vmem:[#allocation6 + $0xf0] ss:$8 sps:$4 sm:$0xff]  }
 0x7f9   : > { %4517 = vmatpush1.bf16.msra.mxu1 %v5550_v61  ;;  %4558 = vmatpush1.bf16.msra.mxu0 %v5553_v21  ;;  %v5637_v61 = vld [vmem:[#allocation6 + $0x1f0] ss:$8 sps:$4 sm:$0xff]   ;;  %v3686_v21 = vld [vmem:[%s6726_s9] sm:$0xf] }
 0x7fa   : > { %4518 = vmatprep.subr.bf16.mxu1 %v5558_v62  ;;  %4559 = vmatprep.subr.bf16.mxu0 %v5561_v36  ;;  %v3691_v62 = vrot.slane %v3686_v21, %v6010_v8  ;;  %v3699_v36 = vrot.slane %v3686_v21, %v639_v6 }
 0x7fd   : > { %4519 = vmatpush1.bf16.msra.mxu1 %v5556_v7  ;;  %4560 = vmatpush1.bf16.msra.mxu0 %v5559_v17  ;;  %v3695_v7 = vrot.slane %v3686_v21, %v6034_v23  ;;  %v3703_v17 = vrot.slane %v3686_v21, %v643_v20 }
 0x7fe   : > { %4520 = vmatprep.subr.bf16.mxu1 %v5564_v38  ;;  %4561 = vmatprep.subr.bf16.mxu0 %v5567_v40 }
 0x801   : > { %4521 = vmatpush1.bf16.msra.mxu1 %v5562_v41  ;;  %4562 = vmatpush1.bf16.msra.mxu0 %v5565_v63 }
 0x802   : > { %4522 = vmatprep.subr.bf16.mxu1 %v5570_v1  ;;  %4563 = vmatprep.subr.bf16.mxu0 %v5573_v16 }
 0x805   : > { %4523 = vmatpush1.bf16.msra.mxu1 %v5568_v43  ;;  %4564 = vmatpush1.bf16.msra.mxu0 %v5571_v26 }
 0x806   : > { %4524 = vmatprep.subr.bf16.mxu1 %v5576_v44  ;;  %4565 = vmatprep.subr.bf16.mxu0 %v5579_v45 }
 0x809   : > { %4525 = vmatpush1.bf16.msra.mxu1 %v5574_v46  ;;  %4566 = vmatpush1.bf16.msra.mxu0 %v5577_v47 }
 0x80a   : > { %4526 = vmatprep.subr.bf16.mxu1 %v5582_v48  ;;  %4567 = vmatprep.subr.bf16.mxu0 %v5585_v14 }
 0x80d   : > { %4527 = vmatpush1.bf16.msra.mxu1 %v5580_v28  ;;  %4568 = vmatpush1.bf16.msra.mxu0 %v5583_v59 }
 0x80e   : > { %4528 = vmatprep.subr.bf16.mxu1 %v5588_v10  ;;  %4569 = vmatprep.subr.bf16.mxu0 %v5591_v50  ;;  %v4182_v50 = vld [vmem:[%s6728_s11] sm:$0x3] }
 0x811   : > { %4529 = vmatpush1.bf16.msra.mxu1 %v5586_v51  ;;  %4570 = vmatpush1.bf16.msra.mxu0 %v5589_v52  ;;  %v4187_v51 = vrot.slane %v4182_v50, %v6010_v8  ;;  %v4191_v52 = vrot.slane %v4182_v50, %v6034_v23 }
 0x812   : > { %4530 = vmatprep.subr.bf16.mxu1 %v5594_v53  ;;  %4571 = vmatprep.subr.bf16.mxu0 %v5597_v32 }
 0x815   : > { %4531 = vmatpush1.bf16.msra.mxu1 %v5592_v54  ;;  %4572 = vmatpush1.bf16.msra.mxu0 %v5595_v3 }
 0x816   : > { %4532 = vmatprep.subr.bf16.mxu1 %v5600_v55  ;;  %4573 = vmatprep.subr.bf16.mxu0 %v5603_v42 }
 0x819   : > { %4533 = vmatpush1.bf16.msra.mxu1 %v5598_v57  ;;  %4574 = vmatpush1.bf16.msra.mxu0 %v5601_v0 }
 0x81a   : > { %4534 = vmatprep.subr.bf16.mxu1 %v5606_v37  ;;  %4575 = vmatprep.subr.bf16.mxu0 %v5609_v27 }
 0x81d   : > { %4535 = vmatpush1.bf16.msra.mxu1 %v5604_v11  ;;  %4576 = vmatpush1.bf16.msra.mxu0 %v5607_v49 }
 0x81e   : > { %4536 = vmatprep.subr.bf16.mxu1 %v5612_v58  ;;  %4577 = vmatprep.subr.bf16.mxu0 %v5615_v60 }
 0x821   : > { %4537 = vmatpush1.bf16.msra.mxu1 %v5610_v33  ;;  %4578 = vmatpush1.bf16.msra.mxu0 %v5613_v22 }
 0x822   : > { %4538 = vmatprep.subr.bf16.mxu1 %v5618_v39  ;;  %4579 = vmatprep.subr.bf16.mxu0 %v5621_v18 }
 0x825   : > { %4539 = vmatpush1.bf16.msra.mxu1 %v5616_v25  ;;  %4580 = vmatpush1.bf16.msra.mxu0 %v5619_v29 }
 0x826   : > { %4540 = vmatprep.subr.bf16.mxu1 %v5624_v30  ;;  %4581 = vmatprep.subr.bf16.mxu0 %v5627_v13 }
 0x829   : > { %4541 = vmatpush1.bf16.msra.mxu1 %v5622_v31  ;;  %4582 = vmatpush1.bf16.msra.mxu0 %v5625_v2 }
 0x82a   : > { %4542 = vmatprep.subr.bf16.mxu1 %v5630_v12  ;;  %4583 = vmatprep.subr.bf16.mxu0 %v5633_v24 }
 0x82d   : > { %4543 = vmatpush1.bf16.msra.mxu1 %v5628_v34  ;;  %4584 = vmatpush1.bf16.msra.mxu0 %v5631_v35 }
 0x82e   : > { %4544 = vmatprep.subr.bf16.mxu1 %v5636_v15  ;;  %4585 = vmatprep.subr.bf16.mxu0 %v5639_v19 }
 0x831   : > { %4545 = vmatpush1.bf16.msra.mxu1 %v5634_v56  ;;  %4586 = vmatpush1.bf16.msra.mxu0 %v5637_v61 }
 0x8c7   : > { %v4062_v38 = vpop.f32.mrb[68].mxu1  ;;  %v4103_v40 = vpop.f32.mrb[12].mxu0 }
 0x8c8   : > { %v4063_v41 = vadd.f32 %v4062_v38, %v3691_v62  ;;  %v4104_v63 = vadd.f32 %v4103_v40, %v3699_v36  ;;  %v4064_v1 = vpop.f32.mrb[69].mxu1  ;;  %v4105_v16 = vpop.f32.mrb[13].mxu0 }
 0x8c9   : > { %v4065_v43 = vadd.f32 %v4064_v1, %v3695_v7  ;;  %v4106_v26 = vadd.f32 %v4105_v16, %v3703_v17  ;;  %v4066_v44 = vpop.f32.mrb[70].mxu1  ;;  %v4107_v45 = vpop.f32.mrb[14].mxu0 }
 0x8ca   : > { %v4110_v46 = vmax.f32 %v4063_v41, 0.0  ;;  %v4112_v47 = vmax.f32 %v4104_v63, 0.0  ;;  %v4067_v48 = vpop.f32.mrb[71].mxu1  ;;  %v4108_v14 = vpop.f32.mrb[15].mxu0 }
 0x8cb   : > { %v4111_v6 = vmax.f32 %v4065_v43, 0.0  ;;  %v4113_v28 = vmax.f32 %v4106_v26, 0.0 }
 0x8cc   : > { %v4114_v5 = vpack.c.bf16 %v4110_v46, %v4110_v46  ;;  %v4116_v20 = vpack.c.bf16 %v4112_v47, %v4112_v47 }
 0x8cd   : > { %v4115_v59 = vpack.c.bf16 %v4111_v6, %v4111_v6  ;;  %v4117_v10 = vpack.c.bf16 %v4113_v28, %v4113_v28 }
 0x8cf   : > { %4546 = vmatprep.mubr.bf16.mxu1 %v4115_v59  ;;  %4587 = vmatprep.mubr.bf16.mxu0 %v4117_v10 }
 0x8d0   : > { %4547 = vmatmul.mubr.bf16.vlgmr.msra.gmra.mrb[72].mxu1 %v4114_v5  ;;  %4588 = vmatmul.mubr.bf16.vlgmr.msra.gmra.mrb[16].mxu0 %v4116_v20 }
 0x9a3   : > { %v4548_v53 = vpop.f32.mrb[72].mxu1  ;;  %v4589_v32 = vpop.f32.mrb[16].mxu0 }
 0x9a4   : > { %v4549_v54 = vadd.f32 %v4548_v53, %v4187_v51  ;;  %v4550_v3 = vpop.f32.mrb[73].mxu1  ;;  %v4591_v55 = vpop.f32.mrb[17].mxu0 }
 0x9a5   : > { %v4551_v42 = vadd.f32 %v4550_v3, %v4191_v52  ;;  %v4552_v57 = vpop.f32.mrb[74].mxu1  ;;  %v4593_v0 = vpop.f32.mrb[18].mxu0 }
 0x9a6   : > { %v4590_v37 = vadd.f32 %v4589_v32, %v4549_v54  ;;  %v4553_v27 = vpop.f32.mrb[75].mxu1  ;;  %v4594_v11 = vpop.f32.mrb[19].mxu0 }
 0x9a7   : > { %v4592_v49 = vadd.f32 %v4591_v55, %v4551_v42 }
 0x9a8   : > { %v4596_v58 = vadd.f32 %v4590_v37, %v6677_v9  ;;  %v4598_v9 = vld [vmem:[%s6729_s12] sm:$0x3] }
 0x9a9   : > { %v4597_v60 = vadd.f32 %v4592_v49, %v6675_v4  ;;  %v4599_v4 = vld [vmem:[%s6748_s18] sm:$0x3]  ;;  %v4620_v24 = vrot.slane %v4598_v9, %v6010_v8  ;;  %v4624_v34 = vrot.slane %v4598_v9, %v6034_v23 }
 0x9aa   : > { %v4633_v15 = vrot.slane %v4599_v4, %v6010_v8  ;;  %v4637_v19 = vrot.slane %v4599_v4, %v6034_v23 }
 0x9ab   : > { %v4600_v33 = vadd.f32 %v4597_v60, %v4596_v58 }
 0x9ad   : > { %4601 = vadd.xlane.f32.xlu0 %v4600_v33 }
 0xa3a   : > { %v4602_v22 = vpop.xlane.xlu0 %4601 }
 0xa3b   : > { %v4603_v39 = vmul.f32 0.00390625, %v4602_v22 }
 0xa3d   : > { %v4604_v18 = vsub.f32 %v4596_v58, %v4603_v39  ;;  %v4605_v25 = vsub.f32 %v4597_v60, %v4603_v39 }
 0xa3f   : > { %v4606_v29 = vmul.f32 %v4604_v18, %v4604_v18  ;;  %v4607_v30 = vmul.f32 %v4605_v25, %v4605_v25 }
 0xa41   : > { %v4608_v13 = vadd.f32 %v4607_v30, %v4606_v29 }
 0xa43   : > { %4609 = vadd.xlane.f32.xlu1 %v4608_v13 }
 0xad0   : > { %v4610_v31 = vpop.xlane.xlu1 %4609 }
 0xad1   : > { %v4611_v2 = vmul.f32 0.00390625, %v4610_v31 }
 0xad3   : > { %v4612_v12 = vadd.f32 1e-05, %v4611_v2 }
 0xad5   : > { %5674 = vrsqrt.f32 %v4612_v12 }
 0xadf   : > { %v5675_v35 = vpop.eup %5674 }
 0xae0   : > { %v4614_v56 = vmul.f32 %v5675_v35, %v4604_v18  ;;  %v4615_v61 = vmul.f32 %v5675_v35, %v4605_v25 }
 0xae2   : > { %v4627_v21 = vmul.f32 %v4620_v24, %v4614_v56  ;;  %v4628_v62 = vmul.f32 %v4624_v34, %v4615_v61 }
 0xae4   : > { %v4640_v36 = vadd.f32 %v4633_v15, %v4627_v21  ;;  %v4641_v7 = vadd.f32 %v4637_v19, %v4628_v62 }
 0xae6   : > { %4642 = vst [vmem:[%s525_s19] sm:$0xff] %v4640_v36  ;;  %4643 = vst [vmem:[%s525_s19 + $0x8] sm:$0xff] %v4641_v7 }
 0xae7 PF: > { %s6750_s23 = sld [smem:[#allocation9_spill]] }
 0xaed   : > { %s26_s29 = sadd.s32 1, %s6750_s23  }
 0xaee   : > { %p23_p13 = scmp.ge.s32.totalorder %s26_s29, 4  }
 0xaf0   :  { %25 = sbr.rel (!%p23_p13) target bundleno = 5 (0x5), region = 122 }
 0xaf7   :  { %4665 = vsyncpa [#allocation3], 1 }
 0xaf8   :  { %4667 = vsyncpa [#allocation3 + $0x1], 1 }
 0xaf9   :  { %4668 = vsyncpa [#allocation5], 1 }

// kernel: net_forward.3
= control target key start
LH: loop header
LB: loop body
LE: loop exit
PB: predicated region body
PF: predicated region fallthrough
CT: control target
= control target key end

     0   :  { %s12839_s0 = inlined_call_operand.vmem [shape: f32[2,8,256], index: 0, kind: input, shape index: {}]   ;;  %s12840_s1 = inlined_call_operand.vmem [shape: f32[2,8,256], index: 1, kind: input, shape index: {}]   ;;  %s12841_s2 = inlined_call_operand.vmem [shape: f32[2,1,8], index: 2, kind: input, shape index: {}]   ;;  %s12842_s3 = inlined_call_operand.vmem [shape: f32[2,1,8], index: 3, kind: input, shape index: {}]   ;;  %s12843_s4 = inlined_call_operand.vmem [shape: bf16[256,768], index: 4, kind: input, shape index: {}]   ;;  %s12844_s5 = inlined_call_operand.vmem [shape: f32[1,768], index: 5, kind: input, shape index: {}]   ;;  %s12845_s6 = inlined_call_operand.hbm [shape: bf16[256,256], index: 6, kind: input, shape index: {}]   ;;  %s12846_s7 = inlined_call_operand.vmem [shape: f32[1,256], index: 7, kind: input, shape index: {}]   ;;  %s12847_s8 = inlined_call_operand.vmem [shape: f32[1,256], index: 8, kind: input, shape index: {}]   ;;  %s12848_s9 = inlined_call_operand.vmem [shape: f32[1,256], index: 9, kind: input, shape index: {}]   ;;  %s12849_s10 = inlined_call_operand.hbm [shape: bf16[256,256], index: 10, kind: input, shape index: {}]   ;;  %s12850_s11 = inlined_call_operand.vmem [shape: f32[1,256], index: 11, kind: input, shape index: {}]   ;;  %s12851_s12 = inlined_call_operand.vmem [shape: bf16[256,512], index: 12, kind: input, shape index: {}]   ;;  %s12852_s13 = inlined_call_operand.vmem [shape: f32[1,512], index: 13, kind: input, shape index: {}]   ;;  %s12853_s14 = inlined_call_operand.hbm [shape: bf16[256,256], index: 14, kind: input, shape index: {}]   ;;  %s12854_s15 = inlined_call_operand.vmem [shape: f32[1,256], index: 15, kind: input, shape index: {}]   ;;  %s12855_s16 = inlined_call_operand.vmem [shape: f32[1,256], index: 16, kind: input, shape index: {}]   ;;  %s12856_s17 = inlined_call_operand.vmem [shape: f32[1,256], index: 17, kind: input, shape index: {}]   ;;  %s12857_s18 = inlined_call_operand.vmem [shape: bf16[256,512], index: 18, kind: input, shape index: {}]   ;;  %s12858_s19 = inlined_call_operand.vmem [shape: f32[1,512], index: 19, kind: input, shape index: {}]   ;;  %s12859_s20 = inlined_call_operand.vmem [shape: bf16[512,256], index: 20, kind: input, shape index: {}]   ;;  %s12860_s21 = inlined_call_operand.hbm [shape: f32[1,256], index: 21, kind: input, shape index: {}]   ;;  %s12861_s22 = inlined_call_operand.hbm [shape: f32[1,256], index: 22, kind: input, shape index: {}]   ;;  %s12862_s23 = inlined_call_operand.hbm [shape: f32[1,256], index: 23, kind: input, shape index: {}]   ;;  %s12863_s24 = inlined_call_operand.vmem [shape: bf16[256,128], index: 24, kind: input, shape index: {}]   ;;  %s12864_s25 = inlined_call_operand.vmem [shape: f32[1,128], index: 25, kind: input, shape index: {}]   ;;  %s12865_s26 = inlined_call_operand.hbm [shape: f32[2,8,128], index: 26, kind: output, shape index: {0}]   ;;  %s12866_s27 = inlined_call_operand.hbm [shape: f32[2,8,8,128], index: 27, kind: output, shape index: {1}]  }
   0x1   :  { %12887 = sst [smem:[#allocation29_spill]] %s12839_s0 }
   0x2   :  { %12888 = sst [smem:[#allocation30_spill]] %s12840_s1 }
   0x3   :  { %12889 = sst [smem:[#allocation31_spill]] %s12841_s2 }
   0x4   :  { %12890 = sst [smem:[#allocation32_spill]] %s12842_s3 }
   0x5   :  { %12891 = sst [smem:[#allocation33_spill]] %s12843_s4 }
   0x6   :  { %12892 = sst [smem:[#allocation34_spill]] %s12844_s5 }
   0x7   :  { %12893 = sst [smem:[#allocation35_spill]] %s12845_s6 }
   0x8   :  { %12894 = sst [smem:[#allocation36_spill]] %s12846_s7 }
   0x9   :  { %12895 = sst [smem:[#allocation37_spill]] %s12847_s8 }
   0xa   :  { %12896 = sst [smem:[#allocation38_spill]] %s12848_s9 }
   0xb   :  { %12897 = sst [smem:[#allocation39_spill]] %s12849_s10 }
   0xc   :  { %12898 = sst [smem:[#allocation40_spill]] %s12850_s11 }
   0xd   :  { %12899 = sst [smem:[#allocation41_spill]] %s12851_s12 }
   0xe   :  { %12900 = sst [smem:[#allocation42_spill]] %s12858_s19 }
   0xf   :  { %12901 = sst [smem:[#allocation43_spill]] %s12860_s21 }
  0x10   :  { %12902 = sst [smem:[#allocation44_spill]] %s12863_s24 }
  0x11   :  { %12903 = sst [smem:[#allocation45_spill]] %s12864_s25 }
  0x12   :  { %12904 = sst [smem:[#allocation46_spill]] %s12865_s26 }
  0x13   :  { %12905 = sst [smem:[#allocation47_spill]] %s12866_s27 }
  0x14   :  { %33 = vsyncpa [#allocation3], 0 }
  0x15   :  { %34 = vsyncpa [#allocation6], 0 }
  0x16   :  { %35 = vsyncpa [#allocation9], 0 }
  0x17   :  { %36 = vsyncpa [#allocation12], 0 }
  0x18   :  { %37 = vsyncpa [#allocation4], 0 }
  0x19   :  { %39 = vsyncpa [#allocation4 + $0x1], 0 }
  0x1a   :  { %40 = vsyncpa [#allocation15], 0 }
  0x1b   :  { %42 = vsyncpa [#allocation15 + $0x1], 0  ;;  %s10643_s7 = smov 0   ;;  %s10645_s4 = smov 0  }
  0x1c   :  { %s10647_s8 = smov 0   ;;  %s10649_s30 = smov 0  }
  0x1d LB: > { %12906 = sst [smem:[#allocation22_spill]] %s10470_s7  ;;  %s10664_s9 = sadd.s32 4294967295, %s10482_s30   ;;  %s10482_s30 = sphi %s10649_s30, %s12954_s30   ;;  %s10478_s8 = sphi %s10647_s8, %s12956_s8   ;;  %s10474_s4 = sphi %s10645_s4, %s12958_s4   ;;  %s10470_s7 = sphi %s10643_s7, %s12957_s7  }
  0x1e   : > { %12907 = sst [smem:[#allocation23_spill]] %s10478_s8  ;;  %s8583_s5 = sadd.s32 4294967294, %s10482_s30  }
  0x1f   : > { %12908 = sst [smem:[#allocation24_spill]] %s10482_s30  ;;  %s10668_s28 = sadd.s32 1, %s10482_s30  }
  0x20   : > { %12909 = sst [smem:[#allocation25_spill]] %s10668_s28  ;;  %s621_s0 = sadd.s32 1, %s10478_s8 }
  0x21   : > { %s618_s10 = ssub.s32 %s10482_s30, %s10668_s28  ;;  %p631_p0 = scmp.ne.s32.totalorder %s10478_s8, %s10474_s4 }
  0x22   : > { %p619_p1 = scmp.eq.s32.totalorder %s618_s10, 0  ;;  %p632_p2 = scmp.eq.s32.totalorder %s10664_s9, 1 }
  0x23   : > { %p637_p3 = scmp.ne.s32.totalorder %s10474_s4, %s10470_s7  ;;  %p638_p4 = scmp.eq.s32.totalorder %s8583_s5, 1 }
  0x24   : > { %s10679_s29 = scalar_select %p619_p1, %s10478_s8, %s621_s0  }
  0x25   : > { %p10681_p5 = por %p632_p2, %p631_p0  ;;  %p10685_p6 = por %p638_p4, %p637_p3 }
  0x26   : > { %12910 = sst [smem:[#allocation26_spill]] %s10679_s29  ;;  %p8584_p7 = scmp.ge.s32.totalorder %s10482_s30, 1 }
  0x27   : > { %s12911_s1 = scalar_select %p10681_p5, 1, 0 }
  0x28   : > { %s12913_s6 = scalar_select %p10685_p6, 1, 0 }
  0x29   : > { %12912 = sst [smem:[#allocation27_spill]] %s12911_s1  ;;  %p671_p8 = scmp.lt.s32.totalorder %s10482_s30, 3 }
  0x2a   : > { %12914 = sst [smem:[#allocation28_spill]] %s12913_s6  ;;  %p12878_p9 = scmp.eq.s32.totalorder %s10664_s9, 0 }
  0x2b   : > { %p10692_p10 = pnand %p8584_p7, %p671_p8  ;;  %s10484_s2 = smov [#allocation5]  }
  0x2c   : > { %s711_s3 = sshll.u32 %s10484_s2, 4  ;;  %s10485_s0 = smov [#allocation8]   ;;  %s10698_s3 = int_to_ptr.vmem [resolvable:$true] %s711_s3 }
  0x2d   : > { %s12915_s11 = scalar_select %p10692_p10, 1, 0 }
  0x2e   : > { %p9422_p11 = pneg %p10692_p10  ;;  %s765_s10 = sshll.u32 %s10485_s0, 4  ;;  %s10706_s10 = int_to_ptr.vmem [resolvable:$true] %s765_s10 }
  0x2f   : > { %s10486_s29 = smov [#allocation2]   ;;  %s12917_s7 = sld [smem:[#allocation39_spill]] }
  0x30   : > { %p10702_p12 = pnand %p12878_p9, %p9422_p11  ;;  %s10708_s8 = sshll.u32 %s10486_s29, 4  ;;  %s690_s8 = int_to_ptr.vmem [resolvable:$true] %s10708_s8 }
  0x32   : > { %p10718_p0 = pneg %p10702_p12 }
  0x35   : > { %s12918_s26 = smov %s12917_s7  ;;  %s10204_s30 = scalar_lea.hbm %s12917_s7, 4096 }
  0x36   : > { %p10205_p13 = scmp.ne.s32.totalorder %s12918_s26, %s10204_s30  ;;  %p10211_p3 = scmp.lt.u32.totalorder %s10204_s30, %s12918_s26 }
  0x38   : > { %p10207_p1 = pnand %p10718_p0, %p10205_p13 }
  0x3a   : > { %p10208_p2 = pneg %p10207_p1 }
  0x3c   : > { %p10213_p4 = pnand %p10211_p3, %p10208_p2 }
  0x3e   : > { %10216 = shalt.err (!%p10213_p4)
}
  0x3f   : > { %s10217_s25 = scalar_lea.vmem %s10698_s3, 4096  ;;  %p10225_p9 = scmp.lt.s32.totalorder %s10698_s3, %s10698_s3 }
  0x40   : > { %p10218_p7 = scmp.ne.s32.totalorder %s10698_s3, %s10217_s25  ;;  %p10226_p6 = scmp.lt.s32.totalorder %s10217_s25, %s10217_s25 }
  0x42   : > { %p10220_p8 = pnand %p10218_p7, %p10718_p0  ;;  %p10227_p13 = por %p10226_p6, %p10225_p9 }
  0x44   : > { %p10221_p11 = pneg %p10220_p8 }
  0x46   : > { %p10228_p1 = pnand %p10227_p13, %p10221_p11 }
  0x48   : > { %10231 = shalt.err (!%p10228_p1)
}
  0x49   : > { %s10487_s7 = smov 128   ;;  %s10488_s30 = smov 8  }
  0x4a   : > { %9428 = dma.hbm_to_vmem [thread:$0]  (!%p10702_p12), %s12918_s26, 4096, %s10698_s3, [#allocation6], %s10487_s7, %s10487_s7, %s10488_s30  }
  0x4b   : > { %s12920_s21 = sld [smem:[#allocation43_spill]] }
  0x51   : > { %s10232_s29 = scalar_lea.hbm %s12920_s21, 32 }
  0x52   : > { %p10233_p6 = scmp.ne.s32.totalorder %s12920_s21, %s10232_s29  ;;  %p10239_p3 = scmp.lt.u32.totalorder %s10232_s29, %s12920_s21 }
  0x54   : > { %p10235_p9 = pnand %p10233_p6, %p10718_p0 }
  0x56   : > { %p10236_p2 = pneg %p10235_p9 }
  0x58   : > { %p10241_p4 = pnand %p10239_p3, %p10236_p2 }
  0x5a   : > { %10244 = shalt.err (!%p10241_p4)
}
  0x5b   : > { %s10245_s3 = scalar_lea.vmem %s10706_s10, 32  ;;  %p10253_p13 = scmp.lt.s32.totalorder %s10706_s10, %s10706_s10 }
  0x5c   : > { %p10246_p7 = scmp.ne.s32.totalorder %s10706_s10, %s10245_s3  ;;  %p10254_p1 = scmp.lt.s32.totalorder %s10245_s3, %s10245_s3 }
  0x5e   : > { %p10248_p8 = pnand %p10246_p7, %p10718_p0  ;;  %p10255_p6 = por %p10254_p1, %p10253_p13 }
  0x60   : > { %p10249_p11 = pneg %p10248_p8 }
  0x62   : > { %p10256_p9 = pnand %p10255_p6, %p10249_p11 }
  0x64   : > { %10259 = shalt.err (!%p10256_p9)
}
  0x65   : > { %9434 = dma.hbm_to_vmem [thread:$0]  (!%p10702_p12), %s12920_s21, 32, %s10706_s10, [#allocation9]  }
  0x66   : > { %s12921_s6 = sld [smem:[#allocation35_spill]] }
  0x6c   : > { %s10260_s2 = scalar_lea.hbm %s12921_s6, 4096 }
  0x6d   : > { %p10261_p2 = scmp.ne.s32.totalorder %s12921_s6, %s10260_s2  ;;  %p10267_p7 = scmp.lt.u32.totalorder %s10260_s2, %s12921_s6 }
  0x6f   : > { %p10263_p3 = pnand %p10261_p2, %p10718_p0 }
  0x71   : > { %p10264_p4 = pneg %p10263_p3 }
  0x73   : > { %p10269_p8 = pnand %p10267_p7, %p10264_p4 }
  0x75   : > { %10272 = shalt.err (!%p10269_p8)
}
  0x76   : > { %s10273_s19 = scalar_lea.vmem %s690_s8, 4096  ;;  %p10281_p6 = scmp.lt.s32.totalorder %s690_s8, %s690_s8 }
  0x77   : > { %p10274_p11 = scmp.ne.s32.totalorder %s690_s8, %s10273_s19  ;;  %p10282_p9 = scmp.lt.s32.totalorder %s10273_s19, %s10273_s19 }
  0x79   : > { %p10276_p13 = pnand %p10274_p11, %p10718_p0  ;;  %p10283_p5 = por %p10282_p9, %p10281_p6 }
  0x7b   : > { %p10277_p1 = pneg %p10276_p13 }
  0x7d   : > { %p10284_p10 = pnand %p10283_p5, %p10277_p1 }
  0x7f   : > { %10287 = shalt.err (!%p10284_p10)
}
  0x80   : > { %9425 = dma.hbm_to_vmem [thread:$0]  (!%p10702_p12), %s12921_s6, 4096, %s690_s8, [#allocation3], %s10487_s7, %s10487_s7, %s10488_s30  }
  0x81   : > { %s10489_s1 = smov [#allocation7]   ;;  %s10490_s2 = smov [#allocation10]  }
  0x82   : > { %s733_s28 = sshll.u32 %s10489_s1, 4  ;;  %s776_s0 = sshll.u32 %s10490_s2, 4  ;;  %s734_s28 = int_to_ptr.vmem [resolvable:$true] %s733_s28  ;;  %s777_s0 = int_to_ptr.vmem [resolvable:$true] %s776_s0 }
  0x83   : > { %s10288_s3 = scalar_lea.hbm %s12853_s14, 4096 }
  0x84   : > { %p10289_p5 = scmp.ne.s32.totalorder %s12853_s14, %s10288_s3  ;;  %p10295_p3 = scmp.lt.u32.totalorder %s10288_s3, %s12853_s14 }
  0x86   : > { %p10291_p10 = pnand %p10289_p5, %p10718_p0 }
  0x88   : > { %p10292_p2 = pneg %p10291_p10 }
  0x8a   : > { %p10297_p4 = pnand %p10295_p3, %p10292_p2 }
  0x8c   : > { %10300 = shalt.err (!%p10297_p4)
}
  0x8d   : > { %s10301_s8 = scalar_lea.vmem %s734_s28, 4096  ;;  %p10309_p13 = scmp.lt.s32.totalorder %s734_s28, %s734_s28 }
  0x8e   : > { %p10302_p7 = scmp.ne.s32.totalorder %s734_s28, %s10301_s8  ;;  %p10310_p1 = scmp.lt.s32.totalorder %s10301_s8, %s10301_s8 }
  0x90   : > { %p10304_p8 = pnand %p10302_p7, %p10718_p0  ;;  %p10311_p6 = por %p10310_p1, %p10309_p13 }
  0x92   : > { %p10305_p11 = pneg %p10304_p8 }
  0x94   : > { %p10312_p9 = pnand %p10311_p6, %p10305_p11 }
  0x96   : > { %10315 = shalt.err (!%p10312_p9)
}
  0x97   : > { %9431 = dma.hbm_to_vmem [thread:$0]  (!%p10702_p12), %s12853_s14, 4096, %s734_s28, [#allocation6], %s10487_s7, %s10487_s7, %s10488_s30  }
  0x98   : > { %s10316_s2 = scalar_lea.hbm %s12861_s22, 32 }
  0x99   : > { %p10317_p5 = scmp.ne.s32.totalorder %s12861_s22, %s10316_s2  ;;  %p10323_p3 = scmp.lt.u32.totalorder %s10316_s2, %s12861_s22 }
  0x9b   : > { %p10319_p10 = pnand %p10317_p5, %p10718_p0 }
  0x9d   : > { %p10320_p2 = pneg %p10319_p10 }
  0x9f   : > { %p10325_p4 = pnand %p10323_p3, %p10320_p2 }
  0xa1   : > { %10328 = shalt.err (!%p10325_p4)
}
  0xa2   : > { %s10329_s10 = scalar_lea.vmem %s777_s0, 32  ;;  %p10337_p13 = scmp.lt.s32.totalorder %s777_s0, %s777_s0 }
  0xa3   : > { %p10330_p7 = scmp.ne.s32.totalorder %s777_s0, %s10329_s10  ;;  %p10338_p1 = scmp.lt.s32.totalorder %s10329_s10, %s10329_s10 }
  0xa5   : > { %p10332_p8 = pnand %p10330_p7, %p10718_p0  ;;  %p10339_p6 = por %p10338_p1, %p10337_p13 }
  0xa7   : > { %p10333_p11 = pneg %p10332_p8 }
  0xa9   : > { %p10340_p9 = pnand %p10339_p6, %p10333_p11 }
  0xab   : > { %10343 = shalt.err (!%p10340_p9)
}
  0xac   : > { %9437 = dma.hbm_to_vmem [thread:$0]  (!%p10702_p12), %s12861_s22, 32, %s777_s0, [#allocation9]  }
  0xad   : > { %s10491_s28 = smov [#allocation11]   ;;  %s10344_s24 = scalar_lea.hbm %s12862_s23, 32 }
  0xae   : > { %s787_s8 = sshll.u32 %s10491_s28, 4  ;;  %p10345_p5 = scmp.ne.s32.totalorder %s12862_s23, %s10344_s24  ;;  %s788_s8 = int_to_ptr.vmem [resolvable:$true] %s787_s8 }
  0xaf   : > { %p10351_p3 = scmp.lt.u32.totalorder %s10344_s24, %s12862_s23 }
  0xb0   : > { %p10347_p10 = pnand %p10345_p5, %p10718_p0 }
  0xb2   : > { %p10348_p2 = pneg %p10347_p10 }
  0xb4   : > { %p10353_p4 = pnand %p10351_p3, %p10348_p2 }
  0xb6   : > { %10356 = shalt.err (!%p10353_p4)
}
  0xb7   : > { %s10357_s0 = scalar_lea.vmem %s788_s8, 32  ;;  %p10365_p13 = scmp.lt.s32.totalorder %s788_s8, %s788_s8 }
  0xb8   : > { %p10358_p7 = scmp.ne.s32.totalorder %s788_s8, %s10357_s0  ;;  %p10366_p1 = scmp.lt.s32.totalorder %s10357_s0, %s10357_s0 }
  0xba   : > { %p10360_p8 = pnand %p10358_p7, %p10718_p0  ;;  %p10367_p6 = por %p10366_p1, %p10365_p13 }
  0xbc   : > { %p10361_p11 = pneg %p10360_p8 }
  0xbe   : > { %p10368_p9 = pnand %p10367_p6, %p10361_p11 }
  0xc0   : > { %10371 = shalt.err (!%p10368_p9)
}
  0xc1   : > { %9440 = dma.hbm_to_vmem [thread:$0]  (!%p10702_p12), %s12862_s23, 32, %s788_s8, [#allocation12]  }
  0xc2   : > { %p12922_p5 = scmp.ne.s32.totalorder %s12915_s11, 0 }
  0xc3   : > { %p12923_p10 = scmp.eq.s32.totalorder (!%p12922_p5), %s10664_s9, 0 }
  0xc4   : > { %834 = sbr.rel (%p12922_p5) target bundleno = 5035 (0x13ab), region = 124 }
  0xcb   : > { %10445 = dma.done.wait (%p12923_p10), [#allocation3], 4096   ;;  %p12924_p0 = pmov %p12923_p10 }
  0xcd   : > { %10447 = vsyncadd (%p12924_p0), [#allocation3], 4294963200  ;;  %p12925_p2 = pmov %p12924_p0 }
  0xce   : > { %p12926_p3 = pmov %p12924_p0 }
  0xcf   : > { %10449 = dma.done.wait (%p12925_p2), [#allocation6], 8192  }
  0xd0   : > { %10451 = vsyncadd (%p12926_p3), [#allocation6], 4294959104  ;;  %p12927_p4 = pmov %p12924_p0 }
  0xd1   : > { %p12928_p12 = pmov %p12924_p0 }
  0xd2   : > { %10453 = dma.done.wait (%p12927_p4), [#allocation9], 64  }
  0xd3   : > { %10455 = vsyncadd (%p12928_p12), [#allocation9], 4294967232  ;;  %p12929_p7 = pmov %p12924_p0 }
  0xd4   : > { %p12930_p8 = pmov %p12924_p0 }
  0xd5   : > { %10457 = dma.done.wait (%p12929_p7), [#allocation12], 32  }
  0xd6   : > { %10459 = vsyncadd (%p12930_p8), [#allocation12], 4294967264  ;;  %s12931_s5 = sld [smem:[#allocation33_spill]]  ;;  %p942_p11 = scmp.lt.s32.totalorder %s10664_s9, 1  ;;  %v1061_v34 = vlaneseq  ;;  %v10492_v46 = vmov 0.0   ;;  %vm10496_vm1 = vmmov 0  }
  0xd7   : > { %s12932_s30 = sld [smem:[#allocation29_spill]]  ;;  %s12933_s26 = sld [smem:[#allocation31_spill]]  ;;  %vm2603_vm2 = vcmask 261120   ;;  %vm2988_vm3 = vcmask 64512   ;;  %vm3096_vm4 = vcmask 1043456   ;;  %vm3759_vm5 = vcmask 523264  }
  0xd8   : > { %s10969_s10 = scalar_select %p942_p11, %s10664_s9, 1  ;;  %v1697_v37 = vand.u32 127, %v1061_v34  ;;  %v10980_v40 = vshrl.u32 %v1061_v34, 7  ;;  %vm3761_vm6 = vcmask 785408  }
  0xd9   : > { %s12934_s3 = sld [smem:[#allocation34_spill]]  ;;  %s10493_s19 = smov 32  }
  0xda   : > { %s9113_s2 = sshll.u32 %s10969_s10, 4  ;;  %vm1698_vm0 = vcmp.le.s32.totalorder %v1697_v37, %v10980_v40  ;;  %s10494_s27 = smov 96  }
  0xdb   : > { %v8701_v47 = vsel %vm1698_vm0, 1.0, %v10492_v46  ;;  %s10495_s11 = smov 64   ;;  %s12935_s12 = sld [smem:[#allocation41_spill]] }
  0xdc   : > { %v9540_v0 = vld [vmem:[%s12931_s5 + $0xc] ss:$24 sps:$4 sm:$0xff]   ;;  %v9542_v1 = vld [vmem:[%s12931_s5 + $0x8] ss:$24 sps:$4 sm:$0xff]   ;;  %v9545_v3 = vld [vmem:[%s12931_s5 + $0x3c] ss:$24 sps:$4 sm:$0xff]  }
  0xdd   : > { %1612 = vmatprep.subr.bf16.mxu1 %v9540_v0  ;;  %v9543_v2 = vld [vmem:[%s12931_s5 + $0x4] ss:$24 sps:$4 sm:$0xff]   ;;  %v9547_v4 = vld [vmem:[%s12931_s5] ss:$24 sps:$4 sm:$0xff]   ;;  %v9549_v6 = vld [vmem:[%s12931_s5 + $0x34] ss:$24 sps:$4 sm:$0xff]   ;;  %s11001_s28 = scalar_lea.vmem %s12932_s30, %s9113_s2  ;;  %s954_s24 = scalar_lea.vmem %s12933_s26, %s10969_s10 }
  0xde   : > { %1613 = vmatpush1.bf16.msra.mxu1 %v9542_v1  ;;  %v9548_v5 = vld [vmem:[%s12931_s5 + $0x38] ss:$24 sps:$4 sm:$0xff]   ;;  %1571 = vmatprep.subr.bf16.mxu0 %v9543_v2  ;;  %v9551_v7 = vld [vmem:[%s12931_s5 + $0x6c] ss:$24 sps:$4 sm:$0xff]   ;;  %v9554_v9 = vld [vmem:[%s12931_s5 + $0x68] ss:$24 sps:$4 sm:$0xff]  }
  0xdf   : > { %1614 = vmatprep.subr.bf16.mxu1 %v9545_v3  ;;  %1572 = vmatpush1.bf16.msra.mxu0 %v9547_v4  ;;  %v9553_v8 = vld [vmem:[%s12931_s5 + $0x30] ss:$24 sps:$4 sm:$0xff]   ;;  %v9555_v10 = vld [vmem:[%s12931_s5 + $0x64] ss:$24 sps:$4 sm:$0xff]   ;;  %v9559_v12 = vld [vmem:[%s12931_s5 + $0x60] ss:$24 sps:$4 sm:$0xff]  }
  0xe0   : > { %1573 = vmatprep.subr.bf16.mxu0 %v9549_v6  ;;  %v9557_v11 = vld [vmem:[%s12931_s5 + $0x9c] ss:$24 sps:$4 sm:$0xff]   ;;  %v9560_v14 = vld [vmem:[%s12931_s5 + $0x98] ss:$24 sps:$4 sm:$0xff]   ;;  %v9563_v15 = vld [vmem:[%s12931_s5 + $0xcc] ss:$24 sps:$4 sm:$0xff]  }
  0xe1   : > { %v9561_v13 = vld [vmem:[%s12931_s5 + $0x94] ss:$24 sps:$4 sm:$0xff]   ;;  %v9565_v16 = vld [vmem:[%s12931_s5 + $0x90] ss:$24 sps:$4 sm:$0xff]   ;;  %v9567_v17 = vld [vmem:[%s12931_s5 + $0xc4] ss:$24 sps:$4 sm:$0xff]  }
  0xe2   : > { %1615 = vmatpush1.bf16.msra.mxu1 %v9548_v5  ;;  %v9566_v18 = vld [vmem:[%s12931_s5 + $0xc8] ss:$24 sps:$4 sm:$0xff]   ;;  %v9569_v19 = vld [vmem:[%s12931_s5 + $0xfc] ss:$24 sps:$4 sm:$0xff]   ;;  %v9572_v22 = vld [vmem:[%s12931_s5 + $0xf8] ss:$24 sps:$4 sm:$0xff]  }
  0xe3   : > { %1616 = vmatprep.subr.bf16.mxu1 %v9551_v7  ;;  %1574 = vmatpush1.bf16.msra.mxu0 %v9553_v8  ;;  %v9571_v20 = vld [vmem:[%s12931_s5 + $0xc0] ss:$24 sps:$4 sm:$0xff]   ;;  %v9573_v21 = vld [vmem:[%s12931_s5 + $0xf4] ss:$24 sps:$4 sm:$0xff]   ;;  %v9577_v24 = vld [vmem:[%s12931_s5 + $0xf0] ss:$24 sps:$4 sm:$0xff]  }
  0xe4   : > { %1575 = vmatprep.subr.bf16.mxu0 %v9555_v10  ;;  %v9575_v23 = vld [vmem:[%s12931_s5 + $0x12c] ss:$24 sps:$4 sm:$0xff]   ;;  %v9578_v26 = vld [vmem:[%s12931_s5 + $0x128] ss:$24 sps:$4 sm:$0xff]   ;;  %v9581_v27 = vld [vmem:[%s12931_s5 + $0x15c] ss:$24 sps:$4 sm:$0xff]  }
  0xe5   : > { %v9579_v25 = vld [vmem:[%s12931_s5 + $0x124] ss:$24 sps:$4 sm:$0xff]   ;;  %v9583_v28 = vld [vmem:[%s12931_s5 + $0x120] ss:$24 sps:$4 sm:$0xff]   ;;  %v9585_v29 = vld [vmem:[%s12931_s5 + $0x154] ss:$24 sps:$4 sm:$0xff]  }
  0xe6   : > { %1617 = vmatpush1.bf16.msra.mxu1 %v9554_v9  ;;  %v9584_v30 = vld [vmem:[%s12931_s5 + $0x158] ss:$24 sps:$4 sm:$0xff]   ;;  %v9587_v31 = vld [vmem:[%s12931_s5 + $0x18c] ss:$24 sps:$4 sm:$0xff]   ;;  %v9590_v35 = vld [vmem:[%s12931_s5 + $0x188] ss:$24 sps:$4 sm:$0xff]  }
  0xe7   : > { %1618 = vmatprep.subr.bf16.mxu1 %v9557_v11  ;;  %1576 = vmatpush1.bf16.msra.mxu0 %v9559_v12  ;;  %v9589_v32 = vld [vmem:[%s12931_s5 + $0x150] ss:$24 sps:$4 sm:$0xff]   ;;  %v9591_v33 = vld [vmem:[%s12931_s5 + $0x184] ss:$24 sps:$4 sm:$0xff]   ;;  %v9595_v38 = vld [vmem:[%s12931_s5 + $0x180] ss:$24 sps:$4 sm:$0xff]  }
  0xe8   : > { %1577 = vmatprep.subr.bf16.mxu0 %v9561_v13  ;;  %v9593_v36 = vld [vmem:[%s12931_s5 + $0x1bc] ss:$24 sps:$4 sm:$0xff]   ;;  %v9596_v41 = vld [vmem:[%s12931_s5 + $0x1b8] ss:$24 sps:$4 sm:$0xff]   ;;  %v9599_v42 = vld [vmem:[%s12931_s5 + $0x1ec] ss:$24 sps:$4 sm:$0xff]  }
  0xe9   : > { %v9597_v39 = vld [vmem:[%s12931_s5 + $0x1b4] ss:$24 sps:$4 sm:$0xff]   ;;  %v9601_v43 = vld [vmem:[%s12931_s5 + $0x1b0] ss:$24 sps:$4 sm:$0xff]   ;;  %v9603_v44 = vld [vmem:[%s12931_s5 + $0x1e4] ss:$24 sps:$4 sm:$0xff]  }
  0xea   : > { %1619 = vmatpush1.bf16.msra.mxu1 %v9560_v14  ;;  %v9602_v45 = vld [vmem:[%s12931_s5 + $0x1e8] ss:$24 sps:$4 sm:$0xff]   ;;  %v9605_v48 = vld [vmem:[%s12931_s5 + $0x21c] ss:$24 sps:$4 sm:$0xff]   ;;  %v9608_v55 = vld [vmem:[%s12931_s5 + $0x218] ss:$24 sps:$4 sm:$0xff]  }
  0xeb   : > { %1620 = vmatprep.subr.bf16.mxu1 %v9563_v15  ;;  %1578 = vmatpush1.bf16.msra.mxu0 %v9565_v16  ;;  %v9607_v49 = vld [vmem:[%s12931_s5 + $0x1e0] ss:$24 sps:$4 sm:$0xff]   ;;  %v960_v50 = vld [vmem:[%s11001_s28 + $0x8] sm:$0xff]  ;;  %v9615_v58 = vld [vmem:[%s12931_s5 + $0x244] ss:$24 sps:$4 sm:$0xff]   ;;  %v11084_v11 = vsub.s32 2, %v10980_v40 }
  0xec   : > { %1579 = vmatprep.subr.bf16.mxu0 %v9567_v17  ;;  %v8702_v51 = vld [vmem:[%s954_s24] ss:$0 sm:$0xff]  ;;  %v9609_v52 = vld [vmem:[%s12931_s5 + $0x214] ss:$24 sps:$4 sm:$0xff]   ;;  %v962_v53 = vpack.c.bf16 %v960_v50, %v960_v50  ;;  %v9613_v57 = vld [vmem:[%s12931_s5 + $0x210] ss:$24 sps:$4 sm:$0xff]  }
  0xed   : > { %v11021_v54 = vmul.f32 %v8702_v51, %v8701_v47  ;;  %v9611_v56 = vld [vmem:[%s12931_s5 + $0x24c] ss:$24 sps:$4 sm:$0xff]   ;;  %v9614_v59 = vld [vmem:[%s12931_s5 + $0x248] ss:$24 sps:$4 sm:$0xff]   ;;  %v9617_v60 = vld [vmem:[%s12931_s5 + $0x27c] ss:$24 sps:$4 sm:$0xff]  }
  0xee   : > { %1621 = vmatpush1.bf16.msra.mxu1 %v9566_v18  ;;  %1644 = vmatprep.mubr.bf16.mxu1 %v962_v53  ;;  %v9619_v61 = vld [vmem:[%s12931_s5 + $0x240] ss:$24 sps:$4 sm:$0xff]   ;;  %v9621_v62 = vld [vmem:[%s12931_s5 + $0x274] ss:$24 sps:$4 sm:$0xff]   ;;  %v9625_v1 = vld [vmem:[%s12931_s5 + $0x270] ss:$24 sps:$4 sm:$0xff]  }
  0xef   : > { %1622 = vmatprep.subr.bf16.mxu1 %v9569_v19  ;;  %1580 = vmatpush1.bf16.msra.mxu0 %v9571_v20  ;;  %v9620_v63 = vld [vmem:[%s12931_s5 + $0x278] ss:$24 sps:$4 sm:$0xff]   ;;  %v9623_v0 = vld [vmem:[%s12931_s5 + $0x2ac] ss:$24 sps:$4 sm:$0xff]   ;;  %v9626_v3 = vld [vmem:[%s12931_s5 + $0x2a8] ss:$24 sps:$4 sm:$0xff]  }
  0xf0   : > { %1581 = vmatprep.subr.bf16.mxu0 %v9573_v21  ;;  %1603 = vmatprep.mubr.bf16.mxu0 %v962_v53  ;;  %v9627_v2 = vld [vmem:[%s12931_s5 + $0x2a4] ss:$24 sps:$4 sm:$0xff]   ;;  %v9631_v5 = vld [vmem:[%s12931_s5 + $0x2a0] ss:$24 sps:$4 sm:$0xff]   ;;  %v9633_v6 = vld [vmem:[%s12931_s5 + $0x2d4] ss:$24 sps:$4 sm:$0xff]  }
  0xf1   : > { %v9629_v4 = vld [vmem:[%s12931_s5 + $0x2dc] ss:$24 sps:$4 sm:$0xff]   ;;  %v9632_v7 = vld [vmem:[%s12931_s5 + $0x2d8] ss:$24 sps:$4 sm:$0xff]   ;;  %v959_v8 = vld [vmem:[%s11001_s28] sm:$0xff]  ;;  %v11092_v13 = vsub.s32 0, %v10980_v40 }
  0xf2   : > { %1623 = vmatpush1.bf16.msra.mxu1 %v9572_v22  ;;  %v9635_v9 = vld [vmem:[%s12931_s5 + $0x2d0] ss:$24 sps:$4 sm:$0xff]   ;;  %v11078_v10 = vpack.c.bf16 %v959_v8, %v959_v8  ;;  %v11089_v12 = vld [vmem:[%s12934_s3] sm:$0x3f]  ;;  %v9644_v37 = vld [vmem:[%s12931_s5 + $0x74] ss:$24 sps:$4 sm:$0xff]  }
  0xf3   : > { %1624 = vmatprep.subr.bf16.mxu1 %v9575_v23  ;;  %1582 = vmatpush1.bf16.msra.mxu0 %v9577_v24  ;;  %v1072_v14 = vrot.slane %v11089_v12, %v11084_v11  ;;  %v1064_v15 = vrot.slane %v11089_v12, %v11092_v13  ;;  %v9641_v34 = vld [vmem:[%s12931_s5 + $0x44] ss:$24 sps:$4 sm:$0xff]   ;;  %v9656_v47 = vld [vmem:[%s12931_s5 + $0x134] ss:$24 sps:$4 sm:$0xff]   ;;  %v9660_v50 = vld [vmem:[%s12931_s5 + $0x190] ss:$24 sps:$4 sm:$0xff]  }
  0xf4   : > { %1583 = vmatprep.subr.bf16.mxu0 %v9579_v25  ;;  %v11107_v25 = vsub.s32 3, %v10980_v40  ;;  %v9662_v51 = vld [vmem:[%s12931_s5 + $0x194] ss:$24 sps:$4 sm:$0xff]   ;;  %v10498_v8 = vmov 1934713408   ;;  %s12936_s0 = sld [smem:[#allocation36_spill]] }
  0xf5   : > { %s12937_s21 = sld [smem:[#allocation30_spill]]  ;;  %s12941_s25 = sld [smem:[#allocation32_spill]] }
  0xf6   : > { %1625 = vmatpush1.bf16.msra.mxu1 %v9578_v26  ;;  %s12939_s24 = sld [smem:[#allocation38_spill]]  ;;  %s12945_s8 = sld [smem:[#allocation47_spill]] }
  0xf7   : > { %1626 = vmatprep.subr.bf16.mxu1 %v9581_v27  ;;  %1584 = vmatpush1.bf16.msra.mxu0 %v9583_v28  ;;  %v11114_v27 = vsub.s32 1, %v10980_v40  ;;  %v1076_v28 = vrot.slane %v11089_v12, %v11107_v25  ;;  %s10499_s29 = smov [#allocation14]  }
  0xf8   : > { %1585 = vmatprep.subr.bf16.mxu0 %v9585_v29 }
  0xfa   : > { %1627 = vmatpush1.bf16.msra.mxu1 %v9584_v30  ;;  %v1068_v30 = vrot.slane %v11089_v12, %v11114_v27 }
  0xfb   : > { %1628 = vmatprep.subr.bf16.mxu1 %v9587_v31  ;;  %1586 = vmatpush1.bf16.msra.mxu0 %v9589_v32  ;;  %v9636_v32 = vld [vmem:[%s12931_s5 + $0x10] ss:$24 sps:$4 sm:$0xff]   ;;  %s11682_s26 = scalar_lea.vmem %s12937_s21, %s9113_s2  ;;  %s12938_s21 = sld [smem:[#allocation37_spill]] }
  0xfc   : > { %1587 = vmatprep.subr.bf16.mxu0 %v9591_v33  ;;  %v9638_v33 = vld [vmem:[%s12931_s5 + $0x14] ss:$24 sps:$4 sm:$0xff]   ;;  %s10376_s2 = sshll.u32 %s10499_s29, 4  ;;  %s10377_s2 = int_to_ptr.vmem [resolvable:$false] %s10376_s2 }
  0xfe   : > { %1629 = vmatpush1.bf16.msra.mxu1 %v9590_v35  ;;  %v9639_v35 = vld [vmem:[%s12931_s5 + $0x40] ss:$24 sps:$4 sm:$0xff]  }
  0xff   : > { %1630 = vmatprep.subr.bf16.mxu1 %v9593_v36  ;;  %1588 = vmatpush1.bf16.msra.mxu0 %v9595_v38  ;;  %v9642_v36 = vld [vmem:[%s12931_s5 + $0x70] ss:$24 sps:$4 sm:$0xff]   ;;  %v9647_v38 = vld [vmem:[%s12931_s5 + $0xa4] ss:$24 sps:$4 sm:$0xff]  }
 0x100   : > { %1589 = vmatprep.subr.bf16.mxu0 %v9597_v39  ;;  %v9645_v39 = vld [vmem:[%s12931_s5 + $0xa0] ss:$24 sps:$4 sm:$0xff]  }
 0x102   : > { %1631 = vmatpush1.bf16.msra.mxu1 %v9596_v41  ;;  %v9648_v41 = vld [vmem:[%s12931_s5 + $0xd0] ss:$24 sps:$4 sm:$0xff]  }
 0x103   : > { %1632 = vmatprep.subr.bf16.mxu1 %v9599_v42  ;;  %1590 = vmatpush1.bf16.msra.mxu0 %v9601_v43  ;;  %v9650_v42 = vld [vmem:[%s12931_s5 + $0xd4] ss:$24 sps:$4 sm:$0xff]   ;;  %v9653_v43 = vld [vmem:[%s12931_s5 + $0x104] ss:$24 sps:$4 sm:$0xff]  }
 0x104   : > { %1591 = vmatprep.subr.bf16.mxu0 %v9603_v44  ;;  %v9651_v44 = vld [vmem:[%s12931_s5 + $0x100] ss:$24 sps:$4 sm:$0xff]  }
 0x106   : > { %1633 = vmatpush1.bf16.msra.mxu1 %v9602_v45  ;;  %v9654_v45 = vld [vmem:[%s12931_s5 + $0x130] ss:$24 sps:$4 sm:$0xff]  }
 0x107   : > { %1634 = vmatprep.subr.bf16.mxu1 %v9605_v48  ;;  %1592 = vmatpush1.bf16.msra.mxu0 %v9607_v49  ;;  %v9659_v48 = vld [vmem:[%s12931_s5 + $0x164] ss:$24 sps:$4 sm:$0xff]   ;;  %v9657_v49 = vld [vmem:[%s12931_s5 + $0x160] ss:$24 sps:$4 sm:$0xff]  }
 0x108   : > { %1593 = vmatprep.subr.bf16.mxu0 %v9609_v52  ;;  %v9665_v52 = vld [vmem:[%s12931_s5 + $0x1c4] ss:$24 sps:$4 sm:$0xff]  }
 0x10a   : > { %1635 = vmatpush1.bf16.msra.mxu1 %v9608_v55  ;;  %v9666_v55 = vld [vmem:[%s12931_s5 + $0x1f0] ss:$24 sps:$4 sm:$0xff]  }
 0x10b   : > { %1636 = vmatprep.subr.bf16.mxu1 %v9611_v56  ;;  %1594 = vmatpush1.bf16.msra.mxu0 %v9613_v57  ;;  %v9668_v56 = vld [vmem:[%s12931_s5 + $0x1f4] ss:$24 sps:$4 sm:$0xff]   ;;  %v9671_v57 = vld [vmem:[%s12931_s5 + $0x224] ss:$24 sps:$4 sm:$0xff]  }
 0x10c   : > { %1595 = vmatprep.subr.bf16.mxu0 %v9615_v58  ;;  %v9669_v58 = vld [vmem:[%s12931_s5 + $0x220] ss:$24 sps:$4 sm:$0xff]  }
 0x10e   : > { %1637 = vmatpush1.bf16.msra.mxu1 %v9614_v59  ;;  %v9674_v59 = vld [vmem:[%s12931_s5 + $0x254] ss:$24 sps:$4 sm:$0xff]  }
 0x10f   : > { %1638 = vmatprep.subr.bf16.mxu1 %v9617_v60  ;;  %1596 = vmatpush1.bf16.msra.mxu0 %v9619_v61  ;;  %v9672_v60 = vld [vmem:[%s12931_s5 + $0x250] ss:$24 sps:$4 sm:$0xff]   ;;  %v9677_v61 = vld [vmem:[%s12931_s5 + $0x284] ss:$24 sps:$4 sm:$0xff]  }
 0x110   : > { %1597 = vmatprep.subr.bf16.mxu0 %v9621_v62  ;;  %v9675_v62 = vld [vmem:[%s12931_s5 + $0x280] ss:$24 sps:$4 sm:$0xff]  }
 0x112   : > { %1639 = vmatpush1.bf16.msra.mxu1 %v9620_v63  ;;  %v9680_v63 = vld [vmem:[%s12931_s5 + $0x2b4] ss:$24 sps:$4 sm:$0xff]  }
 0x113   : > { %1640 = vmatprep.subr.bf16.mxu1 %v9623_v0  ;;  %1598 = vmatpush1.bf16.msra.mxu0 %v9625_v1  ;;  %v9678_v0 = vld [vmem:[%s12931_s5 + $0x2b0] ss:$24 sps:$4 sm:$0xff]   ;;  %v9683_v1 = vld [vmem:[%s12931_s5 + $0x2e4] ss:$24 sps:$4 sm:$0xff]  }
 0x114   : > { %1599 = vmatprep.subr.bf16.mxu0 %v9627_v2  ;;  %v9681_v2 = vld [vmem:[%s12931_s5 + $0x2e0] ss:$24 sps:$4 sm:$0xff]  }
 0x116   : > { %1641 = vmatpush1.bf16.msra.mxu1 %v9626_v3  ;;  %v10497_v3 = vmov 1983009808  }
 0x117   : > { %1642 = vmatprep.subr.bf16.mxu1 %v9629_v4  ;;  %1600 = vmatpush1.bf16.msra.mxu0 %v9631_v5  ;;  %v1734_v4 = vunpack.c.l.s4 %v10497_v3 }
 0x118   : > { %1601 = vmatprep.subr.bf16.mxu0 %v9633_v6 }
 0x11a   : > { %1643 = vmatpush1.bf16.msra.mxu1 %v9632_v7  ;;  %v1735_v7 = vunpack.c.0.s8 %v1734_v4 }
 0x11b   : > { %9202 = vmatprep.subr.bf16.mxu1 %v10492_v46  ;;  %1602 = vmatpush1.bf16.msra.mxu0 %v9635_v9  ;;  %v1798_v9 = vunpack.c.l.s4 %v10498_v8 }
 0x11c   : > { %1653 = vmatprep.subr.bf16.mxu0 %v9638_v33 }
 0x11d   : > { %1645 = vmatmul.mubr.bf16.vlgmr.msra.gmra.mrb[0].mxu1 %v11078_v10 }
 0x11e   : > { %1604 = vmatmul.mubr.bf16.vlgmr.msra.gmra.mrb[0].mxu0 %v11078_v10  ;;  %9204 = vmatprep.mubr.msk.bf16.mxu1 %vm10496_vm1, %v10492_v46 }
 0x11f   : > { %1685 = vmatprep.mubr.bf16.mxu0 %v962_v53  ;;  %1654 = vmatpush1.bf16.msra.mxu0 %v9636_v32  ;;  %v9663_v53 = vld [vmem:[%s12931_s5 + $0x1c0] ss:$24 sps:$4 sm:$0xff]  }
 0x120   : > { %1655 = vmatprep.subr.bf16.mxu0 %v9641_v34 }
 0x123   : > { %1656 = vmatpush1.bf16.msra.mxu0 %v9639_v35 }
 0x124   : > { %1657 = vmatprep.subr.bf16.mxu0 %v9644_v37 }
 0x127   : > { %1658 = vmatpush1.bf16.msra.mxu0 %v9642_v36 }
 0x128   : > { %1659 = vmatprep.subr.bf16.mxu0 %v9647_v38 }
 0x12b   : > { %1660 = vmatpush1.bf16.msra.mxu0 %v9645_v39 }
 0x12c   : > { %1661 = vmatprep.subr.bf16.mxu0 %v9650_v42 }
 0x12f   : > { %1662 = vmatpush1.bf16.msra.mxu0 %v9648_v41 }
 0x130   : > { %1663 = vmatprep.subr.bf16.mxu0 %v9653_v43 }
 0x133   : > { %1664 = vmatpush1.bf16.msra.mxu0 %v9651_v44 }
 0x134   : > { %1665 = vmatprep.subr.bf16.mxu0 %v9656_v47 }
 0x137   : > { %1666 = vmatpush1.bf16.msra.mxu0 %v9654_v45 }
 0x138   : > { %1667 = vmatprep.subr.bf16.mxu0 %v9659_v48 }
 0x13b   : > { %1668 = vmatpush1.bf16.msra.mxu0 %v9657_v49 }
 0x13c   : > { %1669 = vmatprep.subr.bf16.mxu0 %v9662_v51 }
 0x13f   : > { %1670 = vmatpush1.bf16.msra.mxu0 %v9660_v50 }
 0x140   : > { %1671 = vmatprep.subr.bf16.mxu0 %v9665_v52 }
 0x143   : > { %1672 = vmatpush1.bf16.msra.mxu0 %v9663_v53 }
 0x144   : > { %1673 = vmatprep.subr.bf16.mxu0 %v9668_v56 }
 0x147   : > { %1674 = vmatpush1.bf16.msra.mxu0 %v9666_v55 }
 0x148   : > { %1675 = vmatprep.subr.bf16.mxu0 %v9671_v57 }
 0x14b   : > { %1676 = vmatpush1.bf16.msra.mxu0 %v9669_v58 }
 0x14c   : > { %1677 = vmatprep.subr.bf16.mxu0 %v9674_v59 }
 0x14f   : > { %1678 = vmatpush1.bf16.msra.mxu0 %v9672_v60 }
 0x150   : > { %1679 = vmatprep.subr.bf16.mxu0 %v9677_v61 }
 0x153   : > { %1680 = vmatpush1.bf16.msra.mxu0 %v9675_v62 }
 0x154   : > { %1681 = vmatprep.subr.bf16.mxu0 %v9680_v63 }
 0x157   : > { %1682 = vmatpush1.bf16.msra.mxu0 %v9678_v0 }
 0x158   : > { %1683 = vmatprep.subr.bf16.mxu0 %v9683_v1 }
 0x15b   : > { %1684 = vmatpush1.bf16.msra.mxu0 %v9681_v2 }
 0x15c   : > { %9274 = vmatprep.subr.bf16.mxu0 %v10492_v46 }
 0x15e   : > { %1686 = vmatmul.mubr.bf16.vlgmr.msra.gmra.mrb[4].mxu0 %v11078_v10 }
 0x15f   : > { %9276 = vmatprep.mubr.msk.bf16.mxu0 %vm10496_vm1, %v10492_v46 }
 0x1f0   : > { %v1646_v16 = vpop.f32.mrb[0].mxu1 }
 0x1f1   : > { %v11098_v17 = vadd.f32 %v1646_v16, %v1072_v14  ;;  %v1648_v18 = vpop.f32.mrb[1].mxu1  ;;  %v1605_v20 = vpop.f32.mrb[0].mxu0 }
 0x1f2   : > { %v1650_v19 = vpop.f32.mrb[2].mxu1  ;;  %v11104_v22 = vadd.f32 %v1605_v20, %v1064_v15  ;;  %v1607_v23 = vpop.f32.mrb[1].mxu0  ;;  %v11122_v29 = vadd.f32 %v1648_v18, %v1076_v28  ;;  %v1799_v20 = vunpack.c.0.s8 %v1798_v9 }
 0x1f3   : > { %v1651_v21 = vpop.f32.mrb[3].mxu1  ;;  %2010 = vrot.lane.b32.xlu1 %v11098_v17, %s10493_s19  ;;  %2004 = vrot.lane.b32.xlu0 %v11098_v17, %s10494_s27  ;;  %v1609_v24 = vpop.f32.mrb[2].mxu0  ;;  %v11130_v31 = vadd.f32 %v1607_v23, %v1068_v30  ;;  %v11245_v19 = vsub.s32 %v1735_v7, %v10980_v40 }
 0x1f4   : > { %v1610_v26 = vpop.f32.mrb[3].mxu0 }
 0x1f7   : > { %2007 = vrot.lane.b32.xlu0 %v11098_v17, %s10495_s11  ;;  %1712 = vrot.lane.b32.xlu1 %v11104_v22, %s10494_s27 }
 0x1fb   : > { %1715 = vrot.lane.b32.xlu0 %v11104_v22, %s10495_s11  ;;  %1718 = vrot.lane.b32.xlu1 %v11104_v22, %s10493_s19 }
 0x1ff   : > { %2014 = vrot.lane.b32.xlu0 %v11122_v29, %s10494_s27  ;;  %2017 = vrot.lane.b32.xlu1 %v11122_v29, %s10495_s11 }
 0x203   : > { %2020 = vrot.lane.b32.xlu0 %v11122_v29, %s10493_s19  ;;  %1722 = vrot.lane.b32.xlu1 %v11130_v31, %s10494_s27 }
 0x207   : > { %1725 = vrot.lane.b32.xlu0 %v11130_v31, %s10495_s11  ;;  %1728 = vrot.lane.b32.xlu1 %v11130_v31, %s10493_s19 }
 0x265   : > { %v2011_v5 = vpop.permute.xlu1 %2010  ;;  %v2005_v6 = vpop.permute.xlu0 %2004 }
 0x266   : > { %v2039_v21 = vcombine.low %v2005_v6, %v2011_v5  ;;  %v2040_v23 = vcombine.high %v2005_v6, %v2011_v5 }
 0x268   : > { %v2047_v35 = vrot.slane %v2039_v21, %v11245_v19  ;;  %v2054_v36 = vrot.slane %v2040_v23, %v11245_v19 }
 0x269   : > { %v2008_v14 = vpop.permute.xlu0 %2007  ;;  %v1713_v15 = vpop.permute.xlu1 %1712 }
 0x26a   : > { %v2023_v16 = vcombine.low %v11098_v17, %v2008_v14  ;;  %v2024_v18 = vcombine.high %v11098_v17, %v2008_v14  ;;  %v11252_v17 = vsub.s32 %v1799_v20, %v10980_v40 }
 0x26c   : > { %v2031_v26 = vrot.slane %v2023_v16, %v11245_v19  ;;  %v2038_v28 = vrot.slane %v2024_v18, %v11245_v19 }
 0x26d   : > { %v1716_v24 = vpop.permute.xlu0 %1715  ;;  %v1719_v10 = vpop.permute.xlu1 %1718 }
 0x26e   : > { %v1731_v30 = vcombine.low %v11104_v22, %v1716_v24  ;;  %v1732_v32 = vcombine.high %v11104_v22, %v1716_v24  ;;  %v1747_v33 = vcombine.low %v1713_v15, %v1719_v10  ;;  %v1748_v34 = vcombine.high %v1713_v15, %v1719_v10 }
 0x26f   : > { %v2087_v42 = vcombine.low %v2031_v26, %v2047_v35  ;;  %v2088_v43 = vcombine.high %v2031_v26, %v2047_v35  ;;  %v2103_v22 = vcombine.low %v2038_v28, %v2054_v36  ;;  %v2104_v44 = vcombine.high %v2038_v28, %v2054_v36 }
 0x270   : > { %v1739_v37 = vrot.slane %v1731_v30, %v11245_v19  ;;  %v1746_v38 = vrot.slane %v1732_v32, %v11245_v19  ;;  %v1755_v39 = vrot.slane %v1747_v33, %v11245_v19  ;;  %v1762_v41 = vrot.slane %v1748_v34, %v11245_v19 }
 0x271   : > { %v2095_v50 = vrot.slane %v2087_v42, %v11252_v17  ;;  %v2102_v51 = vrot.slane %v2088_v43, %v11252_v17  ;;  %v2111_v52 = vrot.slane %v2103_v22, %v11252_v17  ;;  %v2118_v53 = vrot.slane %v2104_v44, %v11252_v17  ;;  %v2015_v59 = vpop.permute.xlu0 %2014  ;;  %v2018_v4 = vpop.permute.xlu1 %2017 }
 0x272   : > { %v1795_v45 = vcombine.low %v1739_v37, %v1755_v39  ;;  %v1796_v47 = vcombine.high %v1739_v37, %v1755_v39  ;;  %v1811_v48 = vcombine.low %v1746_v38, %v1762_v41  ;;  %v1812_v49 = vcombine.high %v1746_v38, %v1762_v41 }
 0x273   : > { %v8712_v60 = vcombine.low %v2095_v50, %v2102_v51  ;;  %v8714_v61 = vcombine.high %v2095_v50, %v2102_v51  ;;  %v8716_v62 = vcombine.low %v2111_v52, %v2118_v53  ;;  %v8718_v63 = vcombine.high %v2111_v52, %v2118_v53 }
 0x274   : > { %v1803_v55 = vrot.slane %v1795_v45, %v11252_v17  ;;  %v1810_v56 = vrot.slane %v1796_v47, %v11252_v17  ;;  %v1819_v57 = vrot.slane %v1811_v48, %v11252_v17  ;;  %v1826_v58 = vrot.slane %v1812_v49, %v11252_v17 }
 0x275   : > { %v2167_v5 = vrot.slane %v8712_v60, %v11245_v19  ;;  %v2183_v6 = vrot.slane %v8714_v61, %v11245_v19  ;;  %v2199_v7 = vrot.slane %v8716_v62, %v11245_v19  ;;  %v2215_v8 = vrot.slane %v8718_v63, %v11245_v19  ;;  %v2021_v9 = vpop.permute.xlu0 %2020  ;;  %v1723_v23 = vpop.permute.xlu1 %1722 }
 0x276   : > { %v8704_v0 = vcombine.low %v1803_v55, %v1810_v56  ;;  %v8706_v1 = vcombine.high %v1803_v55, %v1810_v56  ;;  %v8708_v2 = vcombine.low %v1819_v57, %v1826_v58  ;;  %v8710_v3 = vcombine.high %v1819_v57, %v1826_v58 }
 0x277   : > { %v2071_v20 = vcombine.low %v2015_v59, %v2021_v9  ;;  %v2072_v21 = vcombine.high %v2015_v59, %v2021_v9  ;;  %v2223_v24 = vcombine.low %v2167_v5, %v2183_v6  ;;  %v2255_v10 = vcombine.low %v2199_v7, %v2215_v8 }
 0x278   : > { %v11273_v14 = vrot.slane %v8704_v0, %v11245_v19  ;;  %v11276_v15 = vrot.slane %v8706_v1, %v11245_v19  ;;  %v11279_v16 = vrot.slane %v8708_v2, %v11245_v19  ;;  %v11282_v18 = vrot.slane %v8710_v3, %v11245_v19 }
 0x279   : > { %v2055_v26 = vcombine.low %v11122_v29, %v2018_v4  ;;  %v2056_v28 = vcombine.high %v11122_v29, %v2018_v4  ;;  %v2231_v33 = vrot.slane %v2223_v24, %v11252_v17  ;;  %v2263_v34 = vrot.slane %v2255_v10, %v11252_v17  ;;  %v1726_v29 = vpop.permute.xlu0 %1725  ;;  %v1729_v41 = vpop.permute.xlu1 %1728 }
 0x27a   : > { %v1931_v30 = vcombine.low %v11273_v14, %v11276_v15  ;;  %v1963_v32 = vcombine.low %v11279_v16, %v11282_v18  ;;  %v2079_v35 = vrot.slane %v2071_v20, %v11245_v19  ;;  %v2086_v36 = vrot.slane %v2072_v21, %v11245_v19 }
 0x27b   : > { %v2287_v37 = vcombine.low %v2231_v33, %v2263_v34  ;;  %v2063_v38 = vrot.slane %v2055_v26, %v11245_v19  ;;  %v2070_v39 = vrot.slane %v2056_v28, %v11245_v19  ;;  %v2288_v50 = vcombine.high %v2231_v33, %v2263_v34 }
 0x27c   : > { %v1939_v43 = vrot.slane %v1931_v30, %v11252_v17  ;;  %v1971_v22 = vrot.slane %v1963_v32, %v11252_v17  ;;  %v2224_v51 = vcombine.high %v2167_v5, %v2183_v6  ;;  %v2256_v52 = vcombine.high %v2199_v7, %v2215_v8 }
 0x27d   : > { %v2595_v42 = vpack.c.bf16 %v2287_v37, %v2287_v37  ;;  %v2119_v44 = vcombine.low %v2063_v38, %v2079_v35  ;;  %v2120_v45 = vcombine.high %v2063_v38, %v2079_v35  ;;  %v2135_v47 = vcombine.low %v2070_v39, %v2086_v36 }
 0x27e   : > { %v2136_v48 = vcombine.high %v2070_v39, %v2086_v36  ;;  %v1763_v53 = vcombine.low %v11130_v31, %v1726_v29  ;;  %v1764_v55 = vcombine.high %v11130_v31, %v1726_v29  ;;  %v1779_v56 = vcombine.low %v1723_v23, %v1729_v41 }
 0x27f   : > { %v2608_v49 = vsel %vm2603_vm2, %v2595_v42, 0  ;;  %v1780_v57 = vcombine.high %v1723_v23, %v1729_v41  ;;  %v1995_v58 = vcombine.low %v1939_v43, %v1971_v22  ;;  %v2127_v59 = vrot.slane %v2119_v44, %v11252_v17 }
 0x280   : > { %9203 = vmatpush3.bf16.xpose.msra.mxu1 %v2608_v49  ;;  %v2134_v60 = vrot.slane %v2120_v45, %v11252_v17  ;;  %v2143_v61 = vrot.slane %v2135_v47, %v11252_v17  ;;  %v2150_v62 = vrot.slane %v2136_v48, %v11252_v17  ;;  %v2596_v63 = vpack.c.bf16 %v2288_v50, %v2288_v50 }
 0x281   : > { %9208 = vmatprep.subr.bf16.mxu1 %v10492_v46  ;;  %v2238_v0 = vrot.slane %v2224_v51, %v11252_v17  ;;  %v2270_v1 = vrot.slane %v2256_v52, %v11252_v17  ;;  %v1771_v31 = vrot.slane %v1763_v53, %v11245_v19  ;;  %v1778_v2 = vrot.slane %v1764_v55, %v11245_v19 }
 0x282   : > { %v1787_v3 = vrot.slane %v1779_v56, %v11245_v19  ;;  %v1794_v4 = vrot.slane %v1780_v57, %v11245_v19  ;;  %v2587_v5 = vpack.c.bf16 %v1995_v58, %v1995_v58  ;;  %v8713_v6 = vcombine.low %v2127_v59, %v2134_v60 }
 0x283   : > { %v8715_v7 = vcombine.high %v2127_v59, %v2134_v60  ;;  %v8717_v8 = vcombine.low %v2143_v61, %v2150_v62  ;;  %v8719_v9 = vcombine.high %v2143_v61, %v2150_v62  ;;  %v2654_v20 = vsel %vm2603_vm2, %v2596_v63, 0 }
 0x284   : > { %v2289_v21 = vcombine.low %v2238_v0, %v2270_v1  ;;  %v1827_v23 = vcombine.low %v1771_v31, %v1787_v3  ;;  %v1828_v24 = vcombine.high %v1771_v31, %v1787_v3  ;;  %v1843_v10 = vcombine.low %v1778_v2, %v1794_v4 }
 0x285   : > { %v1932_v26 = vcombine.high %v11273_v14, %v11276_v15  ;;  %v1964_v28 = vcombine.high %v11279_v16, %v11282_v18  ;;  %v1844_v30 = vcombine.high %v1778_v2, %v1794_v4  ;;  %v1996_v32 = vcombine.high %v1939_v43, %v1971_v22 }
 0x286   : > { %v2174_v33 = vrot.slane %v8713_v6, %v11245_v19  ;;  %v2190_v34 = vrot.slane %v8715_v7, %v11245_v19  ;;  %v2206_v35 = vrot.slane %v8717_v8, %v11245_v19  ;;  %v2222_v36 = vrot.slane %v8719_v9, %v11245_v19 }
 0x287   : > { %9205 = vmatmul.mubr.msk.bf16.vlgmr.msra.gmra.mrb[4].mxu1 %vm2603_vm2, %v2587_v5  ;;  %v2597_v37 = vpack.c.bf16 %v2289_v21, %v2289_v21  ;;  %v1835_v38 = vrot.slane %v1827_v23, %v11252_v17  ;;  %v1842_v14 = vrot.slane %v1828_v24, %v11252_v17  ;;  %v1851_v15 = vrot.slane %v1843_v10, %v11252_v17 }
 0x288   : > { %9209 = vmatpush3.bf16.xpose.msra.mxu1 %v2654_v20  ;;  %9210 = vmatprep.mubr.msk.bf16.mxu1 %vm10496_vm1, %v10492_v46  ;;  %v1858_v16 = vrot.slane %v1844_v30, %v11252_v17  ;;  %v2588_v18 = vpack.c.bf16 %v1996_v32, %v1996_v32  ;;  %v1946_v39 = vrot.slane %v1932_v26, %v11252_v17 }
 0x289   : > { %9214 = vmatprep.subr.bf16.mxu1 %v10492_v46  ;;  %v1978_v29 = vrot.slane %v1964_v28, %v11252_v17  ;;  %v2700_v41 = vsel %vm2603_vm2, %v2597_v37, 0  ;;  %v2290_v42 = vcombine.high %v2238_v0, %v2270_v1  ;;  %v2239_v43 = vcombine.low %v2174_v33, %v2190_v34 }
 0x28a   : > { %v2271_v22 = vcombine.low %v2206_v35, %v2222_v36  ;;  %v8705_v44 = vcombine.low %v1835_v38, %v1842_v14  ;;  %v8707_v45 = vcombine.high %v1835_v38, %v1842_v14  ;;  %v8709_v47 = vcombine.low %v1851_v15, %v1858_v16 }
 0x28b   : > { %v8711_v48 = vcombine.high %v1851_v15, %v1858_v16  ;;  %v1997_v49 = vcombine.low %v1946_v39, %v1978_v29  ;;  %v2598_v50 = vpack.c.bf16 %v2290_v42, %v2290_v42  ;;  %v2247_v51 = vrot.slane %v2239_v43, %v11252_v17 }
 0x28c   : > { %v2279_v52 = vrot.slane %v2271_v22, %v11252_v17  ;;  %v1882_v53 = vrot.slane %v8705_v44, %v11245_v19  ;;  %v1898_v55 = vrot.slane %v8707_v45, %v11245_v19  ;;  %v1914_v56 = vrot.slane %v8709_v47, %v11245_v19 }
 0x28d   : > { %v1930_v57 = vrot.slane %v8711_v48, %v11245_v19  ;;  %v2589_v58 = vpack.c.bf16 %v1997_v49, %v1997_v49  ;;  %v2746_v59 = vsel %vm2603_vm2, %v2598_v50, 0  ;;  %v1998_v63 = vcombine.high %v1946_v39, %v1978_v29  ;;  %v11376_v39 = vpop.f32.mrb[4].mxu0 }
 0x28e   : > { %v2291_v60 = vcombine.low %v2247_v51, %v2279_v52  ;;  %v1947_v61 = vcombine.low %v1882_v53, %v1898_v55  ;;  %v2292_v4 = vcombine.high %v2247_v51, %v2279_v52  ;;  %v2240_v5 = vcombine.high %v2174_v33, %v2190_v34  ;;  %v11378_v29 = vpop.f32.mrb[5].mxu0 }
 0x28f   : > { %9211 = vmatmul.mubr.msk.bf16.vlgmr.msra.gmra.mrb[8].mxu1 %vm2603_vm2, %v2588_v18  ;;  %v1979_v62 = vcombine.low %v1914_v56, %v1930_v57  ;;  %v2590_v1 = vpack.c.bf16 %v1998_v63, %v1998_v63  ;;  %v2272_v6 = vcombine.high %v2206_v35, %v2222_v36  ;;  %v1948_v10 = vcombine.high %v1882_v53, %v1898_v55 }
 0x290   : > { %9215 = vmatpush3.bf16.xpose.msra.mxu1 %v2700_v41  ;;  %9216 = vmatprep.mubr.msk.bf16.mxu1 %vm10496_vm1, %v10492_v46  ;;  %v2599_v0 = vpack.c.bf16 %v2291_v60, %v2291_v60  ;;  %v1955_v31 = vrot.slane %v1947_v61, %v11252_v17  ;;  %v2600_v8 = vpack.c.bf16 %v2292_v4, %v2292_v4  ;;  %v1691_v41 = vpop.f32.mrb[6].mxu0  ;;  %v8703_v43 = vadd.f32 -1.0, %v11021_v54 }
 0x291   : > { %9220 = vmatprep.subr.bf16.mxu1 %v10492_v46  ;;  %v1987_v2 = vrot.slane %v1979_v62, %v11252_v17  ;;  %v2254_v9 = vrot.slane %v2240_v5, %v11252_v17  ;;  %v2286_v20 = vrot.slane %v2272_v6, %v11252_v17  ;;  %v1980_v26 = vcombine.high %v1914_v56, %v1930_v57  ;;  %v1692_v42 = vpop.f32.mrb[7].mxu0 }
 0x292   : > { %v2792_v3 = vsel %vm2603_vm2, %v2599_v0, 0  ;;  %v2838_v23 = vsel %vm2603_vm2, %v2600_v8, 0  ;;  %v1962_v33 = vrot.slane %v1948_v10, %v11252_v17  ;;  %v11381_v22 = vmul.f32 1e+10, %v8703_v43 }
 0x293   : > { %v1999_v7 = vcombine.low %v1955_v31, %v1987_v2  ;;  %v2293_v24 = vcombine.low %v2254_v9, %v2286_v20  ;;  %v2000_v28 = vcombine.high %v1955_v31, %v1987_v2  ;;  %v1994_v34 = vrot.slane %v1980_v26, %v11252_v17 }
 0x294   : > { %v2294_v36 = vcombine.high %v2254_v9, %v2286_v20 }
 0x295   : > { %v2591_v21 = vpack.c.bf16 %v1999_v7, %v1999_v7  ;;  %v2601_v30 = vpack.c.bf16 %v2293_v24, %v2293_v24  ;;  %v2592_v32 = vpack.c.bf16 %v2000_v28, %v2000_v28  ;;  %v2001_v37 = vcombine.low %v1962_v33, %v1994_v34 }
 0x296   : > { %v2602_v38 = vpack.c.bf16 %v2294_v36, %v2294_v36  ;;  %v2002_v16 = vcombine.high %v1962_v33, %v1994_v34 }
 0x297   : > { %9217 = vmatmul.mubr.msk.bf16.vlgmr.msra.gmra.mrb[12].mxu1 %vm2603_vm2, %v2589_v58  ;;  %v2884_v35 = vsel %vm2603_vm2, %v2601_v30, 0  ;;  %v2593_v14 = vpack.c.bf16 %v2001_v37, %v2001_v37 }
 0x298   : > { %9221 = vmatpush3.bf16.xpose.msra.mxu1 %v2746_v59  ;;  %9222 = vmatprep.mubr.msk.bf16.mxu1 %vm10496_vm1, %v10492_v46  ;;  %v2930_v15 = vsel %vm2603_vm2, %v2602_v38, 0  ;;  %v2594_v18 = vpack.c.bf16 %v2002_v16, %v2002_v16 }
 0x299   : > { %9226 = vmatprep.subr.bf16.mxu1 %v10492_v46 }
 0x29f   : > { %9223 = vmatmul.mubr.msk.bf16.vlgmr.msra.gmra.mrb[16].mxu1 %vm2603_vm2, %v2590_v1 }
 0x2a0   : > { %9227 = vmatpush3.bf16.xpose.msra.mxu1 %v2792_v3  ;;  %9228 = vmatprep.mubr.msk.bf16.mxu1 %vm10496_vm1, %v10492_v46 }
 0x2a1   : > { %9232 = vmatprep.subr.bf16.mxu1 %v10492_v46 }
 0x2a7   : > { %9229 = vmatmul.mubr.msk.bf16.vlgmr.msra.gmra.mrb[20].mxu1 %vm2603_vm2, %v2591_v21 }
 0x2a8   : > { %9233 = vmatpush3.bf16.xpose.msra.mxu1 %v2838_v23  ;;  %9234 = vmatprep.mubr.msk.bf16.mxu1 %vm10496_vm1, %v10492_v46 }
 0x2a9   : > { %9238 = vmatprep.subr.bf16.mxu1 %v10492_v46 }
 0x2af   : > { %9235 = vmatmul.mubr.msk.bf16.vlgmr.msra.gmra.mrb[24].mxu1 %vm2603_vm2, %v2592_v32 }
 0x2b0   : > { %9239 = vmatpush3.bf16.xpose.msra.mxu1 %v2884_v35  ;;  %9240 = vmatprep.mubr.msk.bf16.mxu1 %vm10496_vm1, %v10492_v46 }
 0x2b1   : > { %9244 = vmatprep.subr.bf16.mxu1 %v10492_v46 }
 0x2b7   : > { %9241 = vmatmul.mubr.msk.bf16.vlgmr.msra.gmra.mrb[28].mxu1 %vm2603_vm2, %v2593_v14 }
 0x2b8   : > { %9245 = vmatpush3.bf16.xpose.msra.mxu1 %v2930_v15  ;;  %9246 = vmatprep.mubr.msk.bf16.mxu1 %vm10496_vm1, %v10492_v46 }
 0x2b9   : > { %9250 = vmatprep.subr.bf16.mxu1 %v10492_v46 }
 0x2bf   : > { %9247 = vmatmul.mubr.msk.bf16.vlgmr.msra.gmra.mrb[32].mxu1 %vm2603_vm2, %v2594_v18 }
 0x2c0   : > { %9252 = vmatprep.mubr.msk.bf16.mxu1 %vm10496_vm1, %v10492_v46 }
 0x35a   : > { %v2644_v44 = vpop.f32.mrb[4].mxu1 }
 0x35b   : > { %v2972_v45 = vmul.f32 0.17677669, %v2644_v44  ;;  %v9206_v47 = vpop.f32.mrb[5].mxu1 }
 0x35c   : > { %v2647_v48 = vpop.f32.mrb[6].mxu1 }
 0x35d   : > { %v9207_v49 = vpop.f32.mrb[7].mxu1  ;;  %v11384_v50 = vadd.f32 %v2972_v45, %v11381_v22  ;;  %v1079_v48 = vsub.s32 4, %v10980_v40 }
 0x35f   : > { %v2989_v51 = vsel %vm2988_vm3, %v11384_v50, -inf }
 0x360   : > { %2990 = vmax.xlane.f32.xlu0 %v2989_v51  ;;  %v1080_v51 = vrot.slane %v11089_v12, %v1079_v48 }
 0x362   : > { %v2690_v52 = vpop.f32.mrb[8].mxu1 }
 0x363   : > { %v2973_v53 = vmul.f32 0.17677669, %v2690_v52  ;;  %v9212_v55 = vpop.f32.mrb[9].mxu1  ;;  %v1688_v52 = vadd.f32 %v11376_v39, %v1080_v51 }
 0x364   : > { %v2693_v56 = vpop.f32.mrb[10].mxu1 }
 0x365   : > { %v9213_v54 = vpop.f32.mrb[11].mxu1  ;;  %v11389_v57 = vadd.f32 %v2973_v53, %v11381_v22 }
 0x367   : > { %v2992_v58 = vsel %vm2988_vm3, %v11389_v57, -inf }
 0x368   : > { %2993 = vmax.xlane.f32.xlu1 %v2992_v58 }
 0x36a   : > { %v2736_v59 = vpop.f32.mrb[12].mxu1 }
 0x36b   : > { %v2974_v60 = vmul.f32 0.17677669, %v2736_v59  ;;  %v9218_v61 = vpop.f32.mrb[13].mxu1 }
 0x36c   : > { %v2739_v62 = vpop.f32.mrb[14].mxu1 }
 0x36d   : > { %v9219_v63 = vpop.f32.mrb[15].mxu1  ;;  %v2982_v0 = vadd.f32 %v2974_v60, %v11381_v22 }
 0x36f   : > { %v2995_v1 = vsel %vm2988_vm3, %v2982_v0, -inf }
 0x370   : > { %2996 = vmax.xlane.f32.xlu0 %v2995_v1 }
 0x372   : > { %v2782_v31 = vpop.f32.mrb[16].mxu1 }
 0x373   : > { %v2975_v2 = vmul.f32 0.17677669, %v2782_v31  ;;  %v9224_v3 = vpop.f32.mrb[17].mxu1 }
 0x374   : > { %v2785_v4 = vpop.f32.mrb[18].mxu1 }
 0x375   : > { %v9225_v5 = vpop.f32.mrb[19].mxu1  ;;  %v2983_v6 = vadd.f32 %v2975_v2, %v11381_v22 }
 0x377   : > { %v2998_v7 = vsel %vm2988_vm3, %v2983_v6, -inf }
 0x378   : > { %2999 = vmax.xlane.f32.xlu0 %v2998_v7 }
 0x37a   : > { %v2828_v8 = vpop.f32.mrb[20].mxu1 }
 0x37b   : > { %v2976_v9 = vmul.f32 0.17677669, %v2828_v8  ;;  %v9230_v20 = vpop.f32.mrb[21].mxu1  ;;  %v1083_v8 = vsub.s32 5, %v10980_v40 }
 0x37c   : > { %v2831_v21 = vpop.f32.mrb[22].mxu1 }
 0x37d   : > { %v9231_v23 = vpop.f32.mrb[23].mxu1  ;;  %v2984_v24 = vadd.f32 %v2976_v9, %v11381_v22  ;;  %v1084_v9 = vrot.slane %v11089_v12, %v1083_v8 }
 0x37f   : > { %v3001_v10 = vsel %vm2988_vm3, %v2984_v24, -inf  ;;  %v11443_v21 = vadd.f32 %v11378_v29, %v1084_v9 }
 0x380   : > { %3002 = vmax.xlane.f32.xlu1 %v3001_v10 }
 0x382   : > { %v2874_v26 = vpop.f32.mrb[24].mxu1 }
 0x383   : > { %v2977_v28 = vmul.f32 0.17677669, %v2874_v26  ;;  %v9236_v30 = vpop.f32.mrb[25].mxu1 }
 0x384   : > { %v2877_v32 = vpop.f32.mrb[26].mxu1 }
 0x385   : > { %v9237_v33 = vpop.f32.mrb[27].mxu1  ;;  %v11400_v34 = vadd.f32 %v2977_v28, %v11381_v22 }
 0x387   : > { %v3004_v35 = vsel %vm2988_vm3, %v11400_v34, -inf }
 0x388   : > { %3005 = vmax.xlane.f32.xlu0 %v3004_v35 }
 0x38a   : > { %v2920_v36 = vpop.f32.mrb[28].mxu1 }
 0x38b   : > { %v2978_v37 = vmul.f32 0.17677669, %v2920_v36  ;;  %v9242_v38 = vpop.f32.mrb[29].mxu1 }
 0x38c   : > { %v2923_v14 = vpop.f32.mrb[30].mxu1 }
 0x38d   : > { %v9243_v15 = vpop.f32.mrb[31].mxu1  ;;  %v11405_v16 = vadd.f32 %v2978_v37, %v11381_v22 }
 0x38f   : > { %v3007_v18 = vsel %vm2988_vm3, %v11405_v16, -inf }
 0x390   : > { %3008 = vmax.xlane.f32.xlu1 %v3007_v18 }
 0x392   : > { %v2966_v41 = vpop.f32.mrb[32].mxu1 }
 0x393   : > { %v2979_v42 = vmul.f32 0.17677669, %v2966_v41  ;;  %v9248_v43 = vpop.f32.mrb[33].mxu1 }
 0x394   : > { %v2969_v44 = vpop.f32.mrb[34].mxu1 }
 0x395   : > { %v9249_v45 = vpop.f32.mrb[35].mxu1  ;;  %v11410_v47 = vadd.f32 %v2979_v42, %v11381_v22 }
 0x397   : > { %v3010_v49 = vsel %vm2988_vm3, %v11410_v47, -inf }
 0x398   : > { %3011 = vmax.xlane.f32.xlu0 %v3010_v49 }
 0x3a1   : > { %2299 = vrot.lane.b32.xlu1 %v1688_v52, %s10495_s11 }
 0x3a5   : > { %2302 = vrot.lane.b32.xlu1 %v1688_v52, %s10493_s19 }
 0x3ae   : > { %2296 = vrot.lane.b32.xlu0 %v1688_v52, %s10494_s27 }
 0x3ed   : > { %v2991_v53 = vpop.xlane.xlu0 %2990 }
 0x3ee   : > { %v3013_v22 = vsub.f32 %v11384_v50, %v2991_v53 }
 0x3f0   : > { %v3021_v55 = vmul.f32 1.442695, %v3013_v22 }
 0x3f2   : > { %10132 = vpow2.f32 %v3021_v55 }
 0x3f5   : > { %v2994_v56 = vpop.xlane.xlu1 %2993 }
 0x3f6   : > { %v3014_v54 = vsub.f32 %v11389_v57, %v2994_v56 }
 0x3f8   : > { %v3023_v58 = vmul.f32 1.442695, %v3014_v54 }
 0x3fa   : > { %10134 = vpow2.f32 %v3023_v58 }
 0x3fc   : > { %v11422_v59 = vpop.eup %10132 }
 0x3fd   : > { %v2997_v60 = vpop.xlane.xlu0 %2996  ;;  %v3037_v39 = vsel %vm2988_vm3, %v11422_v59, 0.0 }
 0x3fe   : > { %v3015_v61 = vsub.f32 %v2982_v0, %v2997_v60  ;;  %3038 = vadd.xlane.f32.xlu1 %v3037_v39 }
 0x400   : > { %v3025_v62 = vmul.f32 1.442695, %v3015_v61 }
 0x402   : > { %10136 = vpow2.f32 %v3025_v62 }
 0x404   : > { %v11426_v63 = vpop.eup %10134 }
 0x405   : > { %v3000_v50 = vpop.xlane.xlu0 %2999  ;;  %v3040_v1 = vsel %vm2988_vm3, %v11426_v63, 0.0 }
 0x406   : > { %v3016_v31 = vsub.f32 %v2983_v6, %v3000_v50  ;;  %3041 = vadd.xlane.f32.xlu0 %v3040_v1 }
 0x408   : > { %v3027_v57 = vmul.f32 1.442695, %v3016_v31 }
 0x40a   : > { %10138 = vpow2.f32 %v3027_v57 }
 0x40c   : > { %v11430_v2 = vpop.eup %10136 }
 0x40d   : > { %v3003_v3 = vpop.xlane.xlu1 %3002  ;;  %v3043_v4 = vsel %vm2988_vm3, %v11430_v2, 0.0 }
 0x40e   : > { %v3017_v0 = vsub.f32 %v2984_v24, %v3003_v3  ;;  %3044 = vadd.xlane.f32.xlu1 %v3043_v4 }
 0x410   : > { %v3029_v5 = vmul.f32 1.442695, %v3017_v0 }
 0x412   : > { %10140 = vpow2.f32 %v3029_v5 }
 0x414   : > { %v11434_v7 = vpop.eup %10138 }
 0x415   : > { %v3046_v6 = vsel %vm2988_vm3, %v11434_v7, 0.0  ;;  %v3006_v40 = vpop.xlane.xlu0 %3005 }
 0x416   : > { %3047 = vadd.xlane.f32.xlu0 %v3046_v6  ;;  %v3018_v14 = vsub.f32 %v11400_v34, %v3006_v40 }
 0x418   : > { %v3031_v49 = vmul.f32 1.442695, %v3018_v14 }
 0x41a   : > { %10142 = vpow2.f32 %v3031_v49 }
 0x41c   : > { %v11440_v20 = vpop.eup %10140 }
 0x41d   : > { %v3009_v23 = vpop.xlane.xlu1 %3008  ;;  %v3049_v24 = vsel %vm2988_vm3, %v11440_v20, 0.0 }
 0x41e   : > { %3050 = vadd.xlane.f32.xlu0 %v3049_v24  ;;  %v3019_v8 = vsub.f32 %v11405_v16, %v3009_v23 }
 0x41f   : > { %2309 = vrot.lane.b32.xlu1 %v11443_v21, %s10495_s11 }
 0x420   : > { %v3033_v24 = vmul.f32 1.442695, %v3019_v8 }
 0x421   : > { %v2300_v10 = vpop.permute.xlu1 %2299 }
 0x422   : > { %v2315_v30 = vcombine.low %v1688_v52, %v2300_v10  ;;  %v2316_v32 = vcombine.high %v1688_v52, %v2300_v10  ;;  %10144 = vpow2.f32 %v3033_v24 }
 0x424   : > { %v2323_v29 = vrot.slane %v2315_v30, %v11245_v19  ;;  %v2330_v36 = vrot.slane %v2316_v32, %v11245_v19  ;;  %v11470_v9 = vpop.eup %10142 }
 0x425   : > { %v3012_v26 = vpop.xlane.xlu0 %3011  ;;  %v2303_v28 = vpop.permute.xlu1 %2302  ;;  %v3052_v40 = vsel %vm2988_vm3, %v11470_v9, 0.0 }
 0x426   : > { %v3020_v16 = vsub.f32 %v11410_v47, %v3012_v26 }
 0x428   : > { %v3035_v23 = vmul.f32 1.442695, %v3020_v16 }
 0x429   : > { %v2297_v12 = vpop.permute.xlu0 %2296 }
 0x42a   : > { %v2331_v33 = vcombine.low %v2297_v12, %v2303_v28  ;;  %v2332_v35 = vcombine.high %v2297_v12, %v2303_v28  ;;  %10146 = vpow2.f32 %v3035_v23 }
 0x42c   : > { %v2339_v37 = vrot.slane %v2331_v33, %v11245_v19  ;;  %v2346_v38 = vrot.slane %v2332_v35, %v11245_v19  ;;  %v11475_v10 = vpop.eup %10144 }
 0x42d   : > { %v3055_v28 = vsel %vm2988_vm3, %v11475_v10, 0.0 }
 0x42e   : > { %v2379_v15 = vcombine.low %v2323_v29, %v2339_v37  ;;  %v2380_v18 = vcombine.high %v2323_v29, %v2339_v37  ;;  %v2395_v41 = vcombine.low %v2330_v36, %v2346_v38  ;;  %v2396_v42 = vcombine.high %v2330_v36, %v2346_v38 }
 0x430   : > { %v2387_v43 = vrot.slane %v2379_v15, %v11252_v17  ;;  %v2394_v44 = vrot.slane %v2380_v18, %v11252_v17  ;;  %v2403_v45 = vrot.slane %v2395_v41, %v11252_v17  ;;  %v2410_v48 = vrot.slane %v2396_v42, %v11252_v17 }
 0x432   : > { %v8720_v51 = vcombine.low %v2387_v43, %v2394_v44  ;;  %v8722_v52 = vcombine.high %v2387_v43, %v2394_v44  ;;  %v8724_v53 = vcombine.low %v2403_v45, %v2410_v48  ;;  %v8726_v22 = vcombine.high %v2403_v45, %v2410_v48 }
 0x434   : > { %v2459_v55 = vrot.slane %v8720_v51, %v11245_v19  ;;  %v2475_v34 = vrot.slane %v8722_v52, %v11245_v19  ;;  %v2491_v56 = vrot.slane %v8724_v53, %v11245_v19  ;;  %v2507_v54 = vrot.slane %v8726_v22, %v11245_v19  ;;  %2306 = vrot.lane.b32.xlu0 %v11443_v21, %s10494_s27  ;;  %v11482_v30 = vpop.eup %10146 }
 0x435   : > { %v3058_v32 = vsel %vm2988_vm3, %v11482_v30, 0.0 }
 0x436   : > { %v2515_v58 = vcombine.low %v2459_v55, %v2475_v34  ;;  %v2547_v60 = vcombine.low %v2491_v56, %v2507_v54  ;;  %v2516_v39 = vcombine.high %v2459_v55, %v2475_v34  ;;  %v2548_v61 = vcombine.high %v2491_v56, %v2507_v54 }
 0x438   : > { %v2523_v62 = vrot.slane %v2515_v58, %v11252_v17  ;;  %v2555_v50 = vrot.slane %v2547_v60, %v11252_v17  ;;  %v2530_v1 = vrot.slane %v2516_v39, %v11252_v17  ;;  %v2562_v31 = vrot.slane %v2548_v61, %v11252_v17 }
 0x43a   : > { %v2579_v57 = vcombine.low %v2523_v62, %v2555_v50  ;;  %v2580_v3 = vcombine.high %v2523_v62, %v2555_v50  ;;  %v2581_v4 = vcombine.low %v2530_v1, %v2562_v31  ;;  %v2582_v0 = vcombine.high %v2530_v1, %v2562_v31 }
 0x43c   : > { %v3085_v5 = vpack.c.bf16 %v2579_v57, %v2579_v57  ;;  %v3086_v36 = vpack.c.bf16 %v2580_v3, %v2580_v3  ;;  %v3087_v15 = vpack.c.bf16 %v2581_v4, %v2581_v4  ;;  %v3088_v44 = vpack.c.bf16 %v2582_v0, %v2582_v0 }
 0x43e   : > { %v3098_v6 = vsel %vm3096_vm4, %v3085_v5, 0  ;;  %v3144_v47 = vsel %vm3096_vm4, %v3086_v36, 0  ;;  %v3190_v41 = vsel %vm3096_vm4, %v3087_v15, 0 }
 0x43f   : > { %9251 = vmatpush3.bf16.msra.mxu1 %v3098_v6 }
 0x440   : > { %9256 = vmatprep.subr.bf16.mxu1 %v10492_v46 }
 0x443   : > { %3053 = vadd.xlane.f32.xlu1 %v3052_v40 }
 0x453   : > { %3056 = vadd.xlane.f32.xlu0 %v3055_v28 }
 0x454   : > { %2312 = vrot.lane.b32.xlu1 %v11443_v21, %s10493_s19 }
 0x478   : > { %3059 = vadd.xlane.f32.xlu1 %v3058_v32 }
 0x48b   : > { %v3039_v12 = vpop.xlane.xlu1 %3038 }
 0x48c   : > { %10148 = vrcp.f32 %v3039_v12 }
 0x493   : > { %v3042_v33 = vpop.xlane.xlu0 %3041 }
 0x494   : > { %10150 = vrcp.f32 %v3042_v33 }
 0x496   : > { %v10149_v35 = vpop.eup %10148 }
 0x497   : > { %v3062_v29 = vmul.f32 %v10149_v35, %v11422_v59 }
 0x499   : > { %v3077_v37 = vpack.c.bf16 %v3062_v29, %v3062_v29 }
 0x49b   : > { %9253 = vmatmul.mubr.msk.bf16.vlgmr.msra.gmra.mrb[36].mxu1 %vm2988_vm3, %v3077_v37  ;;  %v3045_v26 = vpop.xlane.xlu1 %3044 }
 0x49c   : > { %9257 = vmatpush3.bf16.msra.mxu1 %v3144_v47  ;;  %10152 = vrcp.f32 %v3045_v26  ;;  %9258 = vmatprep.mubr.msk.bf16.mxu1 %vm10496_vm1, %v10492_v46 }
 0x49d   : > { %9262 = vmatprep.subr.bf16.mxu1 %v10492_v46 }
 0x49e   : > { %v10151_v38 = vpop.eup %10150 }
 0x49f   : > { %v3064_v14 = vmul.f32 %v10151_v38, %v11426_v63  ;;  %v3236_v63 = vsel %vm3096_vm4, %v3088_v44, 0 }
 0x4a1   : > { %v3078_v18 = vpack.c.bf16 %v3064_v14, %v3064_v14 }
 0x4a3   : > { %v3048_v59 = vpop.xlane.xlu0 %3047  ;;  %9259 = vmatmul.mubr.msk.bf16.vlgmr.msra.gmra.mrb[40].mxu1 %vm2988_vm3, %v3078_v18 }
 0x4a4   : > { %10154 = vrcp.f32 %v3048_v59  ;;  %9263 = vmatpush3.bf16.msra.mxu1 %v3190_v41  ;;  %9264 = vmatprep.mubr.msk.bf16.mxu1 %vm10496_vm1, %v10492_v46 }
 0x4a5   : > { %9268 = vmatprep.subr.bf16.mxu1 %v10492_v46 }
 0x4a6   : > { %v10153_v42 = vpop.eup %10152 }
 0x4a7   : > { %v3066_v43 = vmul.f32 %v10153_v42, %v11430_v2  ;;  %v2310_v2 = vpop.permute.xlu1 %2309 }
 0x4a8   : > { %v2347_v22 = vcombine.low %v11443_v21, %v2310_v2  ;;  %v2348_v55 = vcombine.high %v11443_v21, %v2310_v2 }
 0x4a9   : > { %v3079_v45 = vpack.c.bf16 %v3066_v43, %v3066_v43 }
 0x4aa   : > { %v2355_v60 = vrot.slane %v2347_v22, %v11245_v19 }
 0x4ab   : > { %9265 = vmatmul.mubr.msk.bf16.vlgmr.msra.gmra.mrb[44].mxu1 %vm2988_vm3, %v3079_v45  ;;  %v3051_v52 = vpop.xlane.xlu0 %3050 }
 0x4ac   : > { %9269 = vmatpush3.bf16.msra.mxu1 %v3236_v63  ;;  %9270 = vmatprep.mubr.msk.bf16.mxu1 %vm10496_vm1, %v10492_v46  ;;  %10156 = vrcp.f32 %v3051_v52 }
 0x4ad   : > { %9280 = vmatprep.subr.bf16.mxu1 %v10492_v46 }
 0x4ae   : > { %v10155_v48 = vpop.eup %10154 }
 0x4af   : > { %v3068_v49 = vmul.f32 %v10155_v48, %v11434_v7  ;;  %v2307_v34 = vpop.permute.xlu0 %2306  ;;  %v2362_v7 = vrot.slane %v2348_v55, %v11245_v19 }
 0x4b1   : > { %v3080_v51 = vpack.c.bf16 %v3068_v49, %v3068_v49 }
 0x4b3   : > { %9271 = vmatmul.mubr.msk.bf16.vlgmr.msra.gmra.mrb[48].mxu1 %vm2988_vm3, %v3080_v51 }
 0x4b4   : > { %9282 = vmatprep.mubr.msk.bf16.mxu1 %vm10496_vm1, %v10492_v46 }
 0x4b6   : > { %v10157_v35 = vpop.eup %10156 }
 0x4b7   : > { %v3070_v41 = vmul.f32 %v10157_v35, %v11440_v20 }
 0x4b9   : > { %v3081_v51 = vpack.c.bf16 %v3070_v41, %v3070_v41 }
 0x4d0   : > { %v3054_v53 = vpop.xlane.xlu1 %3053 }
 0x4d1   : > { %10158 = vrcp.f32 %v3054_v53 }
 0x4d4   : > { %v2313_v56 = vpop.permute.xlu1 %2312 }
 0x4d5   : > { %v2363_v54 = vcombine.low %v2307_v34, %v2313_v56  ;;  %v2364_v58 = vcombine.high %v2307_v34, %v2313_v56 }
 0x4d7   : > { %v2371_v39 = vrot.slane %v2363_v54, %v11245_v19  ;;  %v2378_v61 = vrot.slane %v2364_v58, %v11245_v19 }
 0x4d9   : > { %v2411_v62 = vcombine.low %v2355_v60, %v2371_v39  ;;  %v2412_v50 = vcombine.high %v2355_v60, %v2371_v39  ;;  %v2427_v1 = vcombine.low %v2362_v7, %v2378_v61  ;;  %v2428_v31 = vcombine.high %v2362_v7, %v2378_v61 }
 0x4db   : > { %v2419_v21 = vrot.slane %v2411_v62, %v11252_v17  ;;  %v2426_v57 = vrot.slane %v2412_v50, %v11252_v17  ;;  %v2435_v3 = vrot.slane %v2427_v1, %v11252_v17  ;;  %v2442_v4 = vrot.slane %v2428_v31, %v11252_v17  ;;  %v10159_v26 = vpop.eup %10158 }
 0x4dc   : > { %v3072_v42 = vmul.f32 %v10159_v26, %v11470_v9 }
 0x4dd   : > { %v8721_v0 = vcombine.low %v2419_v21, %v2426_v57  ;;  %v8723_v5 = vcombine.high %v2419_v21, %v2426_v57  ;;  %v8725_v8 = vcombine.low %v2435_v3, %v2442_v4  ;;  %v8727_v6 = vcombine.high %v2435_v3, %v2442_v4 }
 0x4de   : > { %v3082_v2 = vpack.c.bf16 %v3072_v42, %v3072_v42 }
 0x4df   : > { %v2466_v24 = vrot.slane %v8721_v0, %v11245_v19  ;;  %v2482_v40 = vrot.slane %v8723_v5, %v11245_v19  ;;  %v2498_v28 = vrot.slane %v8725_v8, %v11245_v19  ;;  %v2514_v16 = vrot.slane %v8727_v6, %v11245_v19  ;;  %v9684_v0 = vld [vmem:[#allocation2] ss:$8 sps:$4 sm:$0xff]   ;;  %v9686_v5 = vld [vmem:[#allocation2 + $0x4] ss:$8 sps:$4 sm:$0xff]   ;;  %v9687_v8 = vld [vmem:[#allocation2 + $0x10] ss:$8 sps:$4 sm:$0xff]  }
 0x4e0   : > { %v3057_v23 = vpop.xlane.xlu0 %3056  ;;  %v9692_v6 = vld [vmem:[#allocation2 + $0x24] ss:$8 sps:$4 sm:$0xff]  }
 0x4e1   : > { %v2531_v32 = vcombine.low %v2466_v24, %v2482_v40  ;;  %v2563_v12 = vcombine.low %v2498_v28, %v2514_v16  ;;  %v2532_v33 = vcombine.high %v2466_v24, %v2482_v40  ;;  %10160 = vrcp.f32 %v3057_v23 }
 0x4e2   : > { %v2564_v29 = vcombine.high %v2498_v28, %v2514_v16 }
 0x4e3   : > { %v2539_v36 = vrot.slane %v2531_v32, %v11252_v17  ;;  %v2571_v37 = vrot.slane %v2563_v12, %v11252_v17  ;;  %v2546_v47 = vrot.slane %v2532_v33, %v11252_v17  ;;  %v9690_v32 = vld [vmem:[#allocation2 + $0x20] ss:$8 sps:$4 sm:$0xff]  }
 0x4e4   : > { %v2578_v38 = vrot.slane %v2564_v29, %v11252_v17 }
 0x4e5   : > { %v2583_v14 = vcombine.low %v2539_v36, %v2571_v37  ;;  %v2584_v15 = vcombine.high %v2539_v36, %v2571_v37  ;;  %v9695_v37 = vld [vmem:[#allocation2 + $0x34] ss:$8 sps:$4 sm:$0xff]  }
 0x4e6   : > { %v2585_v18 = vcombine.low %v2546_v47, %v2578_v38  ;;  %v2586_v59 = vcombine.high %v2546_v47, %v2578_v38 }
 0x4e7   : > { %v3089_v43 = vpack.c.bf16 %v2583_v14, %v2583_v14  ;;  %v3090_v44 = vpack.c.bf16 %v2584_v15, %v2584_v15  ;;  %v9693_v15 = vld [vmem:[#allocation2 + $0x30] ss:$8 sps:$4 sm:$0xff]  }
 0x4e8   : > { %v3091_v48 = vpack.c.bf16 %v2585_v18, %v2585_v18  ;;  %v3092_v49 = vpack.c.bf16 %v2586_v59, %v2586_v59 }
 0x4e9   : > { %v3282_v45 = vsel %vm3096_vm4, %v3089_v43, 0  ;;  %v3328_v63 = vsel %vm3096_vm4, %v3090_v44, 0  ;;  %v9698_v43 = vld [vmem:[#allocation2 + $0x44] ss:$8 sps:$4 sm:$0xff]  }
 0x4ea   : > { %9275 = vmatpush3.bf16.msra.mxu0 %v3282_v45  ;;  %9281 = vmatpush3.bf16.msra.mxu1 %v3328_v63  ;;  %v3374_v20 = vsel %vm3096_vm4, %v3091_v48, 0  ;;  %v3420_v9 = vsel %vm3096_vm4, %v3092_v49, 0  ;;  %v9696_v49 = vld [vmem:[#allocation2 + $0x40] ss:$8 sps:$4 sm:$0xff]  }
 0x4eb   : > { %9286 = vmatprep.subr.bf16.mxu0 %v10492_v46  ;;  %9292 = vmatprep.subr.bf16.mxu1 %v10492_v46  ;;  %v10161_v52 = vpop.eup %10160 }
 0x4ec   : > { %v3074_v53 = vmul.f32 %v10161_v52, %v11475_v10 }
 0x4ed   : > { %9277 = vmatmul.mubr.msk.bf16.vlgmr.msra.gmra.mrb[8].mxu0 %vm2988_vm3, %v3081_v51  ;;  %9283 = vmatmul.mubr.msk.bf16.vlgmr.msra.gmra.mrb[52].mxu1 %vm2988_vm3, %v3082_v2 }
 0x4ee   : > { %9287 = vmatpush3.bf16.msra.mxu0 %v3374_v20  ;;  %9293 = vmatpush3.bf16.msra.mxu1 %v3420_v9  ;;  %v3083_v22 = vpack.c.bf16 %v3074_v53, %v3074_v53  ;;  %v9701_v9 = vld [vmem:[#allocation2 + $0x54] ss:$8 sps:$4 sm:$0xff]  }
 0x4ef   : > { %9288 = vmatprep.mubr.msk.bf16.mxu0 %vm10496_vm1, %v10492_v46  ;;  %9294 = vmatprep.mubr.msk.bf16.mxu1 %vm10496_vm1, %v10492_v46 }
 0x4f0   : > { %3972 = vmatprep.subr.bf16.mxu0 %v9686_v5  ;;  %v9716_v5 = vld [vmem:[#allocation2 + $0xa4] ss:$8 sps:$4 sm:$0xff]  }
 0x4f5   : > { %9289 = vmatmul.mubr.msk.bf16.vlgmr.msra.gmra.mrb[12].mxu0 %vm2988_vm3, %v3083_v22 }
 0x4f6   : > { %3973 = vmatpush1.bf16.msra.mxu0 %v9684_v0  ;;  %v9711_v0 = vld [vmem:[#allocation2 + $0x90] ss:$8 sps:$4 sm:$0xff]  }
 0x505   : > { %v3060_v55 = vpop.xlane.xlu1 %3059 }
 0x506   : > { %10162 = vrcp.f32 %v3060_v55 }
 0x510   : > { %v10163_v34 = vpop.eup %10162 }
 0x511   : > { %v3076_v56 = vmul.f32 %v10163_v34, %v11482_v30  ;;  %v9689_v30 = vld [vmem:[#allocation2 + $0x14] ss:$8 sps:$4 sm:$0xff]  }
 0x512   : > { %3974 = vmatprep.subr.bf16.mxu0 %v9689_v30  ;;  %v9714_v30 = vld [vmem:[#allocation2 + $0xa0] ss:$8 sps:$4 sm:$0xff]  }
 0x513   : > { %v3084_v54 = vpack.c.bf16 %v3076_v56, %v3076_v56  ;;  %3975 = vmatpush1.bf16.msra.mxu0 %v9687_v8  ;;  %v9699_v56 = vld [vmem:[#allocation2 + $0x50] ss:$8 sps:$4 sm:$0xff]   ;;  %v9719_v8 = vld [vmem:[#allocation2 + $0xb4] ss:$8 sps:$4 sm:$0xff]  }
 0x514   : > { %3976 = vmatprep.subr.bf16.mxu0 %v9692_v6  ;;  %v9717_v6 = vld [vmem:[#allocation2 + $0xb0] ss:$8 sps:$4 sm:$0xff]  }
 0x515   : > { %9295 = vmatmul.mubr.msk.bf16.vlgmr.msra.gmra.mrb[56].mxu1 %vm2988_vm3, %v3084_v54 }
 0x517   : > { %3977 = vmatpush1.bf16.msra.mxu0 %v9690_v32 }
 0x518   : > { %3978 = vmatprep.subr.bf16.mxu0 %v9695_v37 }
 0x51b   : > { %3979 = vmatpush1.bf16.msra.mxu0 %v9693_v15 }
 0x51c   : > { %3980 = vmatprep.subr.bf16.mxu0 %v9698_v43 }
 0x51f   : > { %3981 = vmatpush1.bf16.msra.mxu0 %v9696_v49 }
 0x520   : > { %3982 = vmatprep.subr.bf16.mxu0 %v9701_v9 }
 0x523   : > { %3983 = vmatpush1.bf16.msra.mxu0 %v9699_v56 }
 0x56e   : > { %v3134_v58 = vpop.f32.mrb[36].mxu1 }
 0x56f   : > { %v9254_v60 = vpop.f32.mrb[37].mxu1 }
 0x570   : > { %v3137_v10 = vpop.f32.mrb[38].mxu1 }
 0x571   : > { %v9255_v7 = vpop.f32.mrb[39].mxu1 }
 0x572   : > { %v9704_v7 = vld [vmem:[#allocation2 + $0x64] ss:$8 sps:$4 sm:$0xff]  }
 0x573   : > { %3984 = vmatprep.subr.bf16.mxu0 %v9704_v7 }
 0x576   : > { %v3180_v39 = vpop.f32.mrb[40].mxu1 }
 0x577   : > { %v9260_v61 = vpop.f32.mrb[41].mxu1 }
 0x578   : > { %v3183_v62 = vpop.f32.mrb[42].mxu1 }
 0x579   : > { %v9261_v50 = vpop.f32.mrb[43].mxu1 }
 0x57e   : > { %v3226_v1 = vpop.f32.mrb[44].mxu1 }
 0x57f   : > { %v3462_v31 = vcombine.low %v3134_v58, %v3226_v1  ;;  %v3463_v21 = vcombine.high %v3134_v58, %v3226_v1  ;;  %v9266_v57 = vpop.f32.mrb[45].mxu1  ;;  %v9702_v1 = vld [vmem:[#allocation2 + $0x60] ss:$8 sps:$4 sm:$0xff]  }
 0x580   : > { %v3229_v3 = vpop.f32.mrb[46].mxu1  ;;  %3985 = vmatpush1.bf16.msra.mxu0 %v9702_v1  ;;  %v9710_v57 = vld [vmem:[#allocation2 + $0x84] ss:$8 sps:$4 sm:$0xff]  }
 0x581   : > { %v9267_v4 = vpop.f32.mrb[47].mxu1  ;;  %v3470_v12 = vrot.slane %v3462_v31, %v11245_v19  ;;  %v3477_v33 = vrot.slane %v3463_v21, %v11245_v19  ;;  %v9707_v31 = vld [vmem:[#allocation2 + $0x74] ss:$8 sps:$4 sm:$0xff]   ;;  %v9705_v21 = vld [vmem:[#allocation2 + $0x70] ss:$8 sps:$4 sm:$0xff]  }
 0x582   : > { %3986 = vmatprep.subr.bf16.mxu0 %v9707_v31  ;;  %v9708_v3 = vld [vmem:[#allocation2 + $0x80] ss:$8 sps:$4 sm:$0xff]   ;;  %v9713_v4 = vld [vmem:[#allocation2 + $0x94] ss:$8 sps:$4 sm:$0xff]  }
 0x584   : > { %3987 = vmatpush1.bf16.msra.mxu0 %v9705_v21  ;;  %v9726_v21 = vld [vmem:[#allocation2 + $0xe0] ss:$8 sps:$4 sm:$0xff]  }
 0x585   : > { %3988 = vmatprep.subr.bf16.mxu0 %v9710_v57  ;;  %v9728_v57 = vld [vmem:[#allocation2 + $0xe4] ss:$8 sps:$4 sm:$0xff]  }
 0x586   : > { %v3272_v24 = vpop.f32.mrb[48].mxu1 }
 0x587   : > { %v3478_v40 = vcombine.low %v3180_v39, %v3272_v24  ;;  %v3479_v28 = vcombine.high %v3180_v39, %v3272_v24  ;;  %v9272_v16 = vpop.f32.mrb[49].mxu1  ;;  %v9722_v24 = vld [vmem:[#allocation2 + $0xc4] ss:$8 sps:$4 sm:$0xff]  }
 0x588   : > { %v3275_v23 = vpop.f32.mrb[50].mxu1  ;;  %3989 = vmatpush1.bf16.msra.mxu0 %v9708_v3  ;;  %v9723_v16 = vld [vmem:[#allocation2 + $0xd0] ss:$8 sps:$4 sm:$0xff]  }
 0x589   : > { %v3486_v35 = vrot.slane %v3478_v40, %v11245_v19  ;;  %v3493_v29 = vrot.slane %v3479_v28, %v11245_v19  ;;  %v9273_v36 = vpop.f32.mrb[51].mxu1  ;;  %3990 = vmatprep.subr.bf16.mxu0 %v9713_v4  ;;  %v9720_v40 = vld [vmem:[#allocation2 + $0xc0] ss:$8 sps:$4 sm:$0xff]   ;;  %v9725_v28 = vld [vmem:[#allocation2 + $0xd4] ss:$8 sps:$4 sm:$0xff]  }
 0x58b   : > { %v3526_v47 = vcombine.low %v3470_v12, %v3486_v35  ;;  %v3527_v26 = vcombine.high %v3470_v12, %v3486_v35  ;;  %v3542_v38 = vcombine.low %v3477_v33, %v3493_v29  ;;  %v3543_v14 = vcombine.high %v3477_v33, %v3493_v29 }
 0x58c   : > { %3991 = vmatpush1.bf16.msra.mxu0 %v9711_v0 }
 0x58d   : > { %v3534_v18 = vrot.slane %v3526_v47, %v11252_v17  ;;  %v3541_v59 = vrot.slane %v3527_v26, %v11252_v17  ;;  %v3550_v41 = vrot.slane %v3542_v38, %v11252_v17  ;;  %v3557_v42 = vrot.slane %v3543_v14, %v11252_v17  ;;  %3992 = vmatprep.subr.bf16.mxu0 %v9716_v5 }
 0x58f   : > { %v8744_v44 = vcombine.low %v3534_v18, %v3541_v59  ;;  %v8746_v45 = vcombine.high %v3534_v18, %v3541_v59  ;;  %v8748_v63 = vcombine.low %v3550_v41, %v3557_v42  ;;  %v8750_v48 = vcombine.high %v3550_v41, %v3557_v42 }
 0x590   : > { %3993 = vmatpush1.bf16.msra.mxu0 %v9714_v30 }
 0x591   : > { %v3606_v51 = vrot.slane %v8744_v44, %v11245_v19  ;;  %v3622_v2 = vrot.slane %v8746_v45, %v11245_v19  ;;  %v3638_v52 = vrot.slane %v8748_v63, %v11245_v19  ;;  %v3654_v20 = vrot.slane %v8750_v48, %v11245_v19  ;;  %3994 = vmatprep.subr.bf16.mxu0 %v9719_v8 }
 0x593   : > { %v3663_v53 = vcombine.high %v3606_v51, %v3622_v2  ;;  %v3695_v22 = vcombine.high %v3638_v52, %v3654_v20  ;;  %v3662_v55 = vcombine.low %v3606_v51, %v3622_v2  ;;  %v3694_v34 = vcombine.low %v3638_v52, %v3654_v20 }
 0x594   : > { %3995 = vmatpush1.bf16.msra.mxu0 %v9717_v6 }
 0x595   : > { %v11557_v54 = vrot.slane %v3663_v53, %v11252_v17  ;;  %v11560_v58 = vrot.slane %v3695_v22, %v11252_v17  ;;  %v11563_v60 = vrot.slane %v3662_v55, %v11252_v17  ;;  %v11566_v10 = vrot.slane %v3694_v34, %v11252_v17  ;;  %3996 = vmatprep.subr.bf16.mxu0 %v9722_v24 }
 0x597   : > { %v3728_v39 = vcombine.low %v11557_v54, %v11560_v58  ;;  %v3726_v61 = vcombine.low %v11563_v60, %v11566_v10  ;;  %v3727_v62 = vcombine.high %v11563_v60, %v11566_v10  ;;  %v3729_v50 = vcombine.high %v11557_v54, %v11560_v58  ;;  %v9732_v60 = vld [vmem:[%s12935_s12] ss:$16 sps:$4 sm:$0xff]   ;;  %v9734_v10 = vld [vmem:[%s12935_s12 + $0x4] ss:$16 sps:$4 sm:$0xff]  }
 0x598   : > { %3997 = vmatpush1.bf16.msra.mxu0 %v9720_v40 }
 0x599   : > { %3998 = vmatprep.subr.bf16.mxu0 %v9725_v28 }
 0x59c   : > { %3999 = vmatpush1.bf16.msra.mxu0 %v9723_v16 }
 0x59d   : > { %4000 = vmatprep.subr.bf16.mxu0 %v9728_v57  ;;  %v10202_v57 = vld [vmem:[%s11001_s28] sm:$0xff] }
 0x5a0   : > { %4001 = vmatpush1.bf16.msra.mxu0 %v9726_v21 }
 0x5c0   : > { %v3318_v23 = vpop.f32.mrb[8].mxu0  ;;  %v3364_v32 = vpop.f32.mrb[52].mxu1 }
 0x5c1   : > { %v9278_v12 = vpop.f32.mrb[9].mxu0  ;;  %v9284_v33 = vpop.f32.mrb[53].mxu1 }
 0x5c2   : > { %v3321_v35 = vpop.f32.mrb[10].mxu0  ;;  %v3367_v29 = vpop.f32.mrb[54].mxu1  ;;  %v9731_v12 = vld [vmem:[#allocation2 + $0xf4] ss:$8 sps:$4 sm:$0xff]  }
 0x5c3   : > { %v9279_v36 = vpop.f32.mrb[11].mxu0  ;;  %v9285_v37 = vpop.f32.mrb[55].mxu1  ;;  %4002 = vmatprep.subr.bf16.mxu0 %v9731_v12  ;;  %v9761_v12 = vld [vmem:[%s12935_s12 + $0x124] ss:$16 sps:$4 sm:$0xff]  }
 0x5c8   : > { %v3410_v47 = vpop.f32.mrb[12].mxu0 }
 0x5c9   : > { %v3494_v26 = vcombine.low %v3318_v23, %v3410_v47  ;;  %v3495_v38 = vcombine.high %v3318_v23, %v3410_v47  ;;  %v9290_v14 = vpop.f32.mrb[13].mxu0 }
 0x5ca   : > { %v3413_v15 = vpop.f32.mrb[14].mxu0 }
 0x5cb   : > { %v9291_v18 = vpop.f32.mrb[15].mxu0  ;;  %v3502_v45 = vrot.slane %v3494_v26, %v11245_v19  ;;  %v3509_v63 = vrot.slane %v3495_v38, %v11245_v19 }
 0x5e8   : > { %v3456_v59 = vpop.f32.mrb[56].mxu1 }
 0x5e9   : > { %v3510_v41 = vcombine.low %v3364_v32, %v3456_v59  ;;  %v3511_v42 = vcombine.high %v3364_v32, %v3456_v59  ;;  %v9296_v43 = vpop.f32.mrb[57].mxu1  ;;  %v9729_v32 = vld [vmem:[#allocation2 + $0xf0] ss:$8 sps:$4 sm:$0xff]  }
 0x5ea   : > { %v3459_v44 = vpop.f32.mrb[58].mxu1  ;;  %4003 = vmatpush1.bf16.msra.mxu0 %v9729_v32  ;;  %v9756_v32 = vld [vmem:[%s12935_s12 + $0x100] ss:$16 sps:$4 sm:$0xff]  }
 0x5eb   : > { %v3518_v48 = vrot.slane %v3510_v41, %v11245_v19  ;;  %v3525_v49 = vrot.slane %v3511_v42, %v11245_v19  ;;  %v9297_v51 = vpop.f32.mrb[59].mxu1  ;;  %4717 = vmatprep.subr.bf16.mxu0 %v9734_v10  ;;  %v9774_v10 = vld [vmem:[%s12935_s12 + $0x1c0] ss:$16 sps:$4 sm:$0xff]  }
 0x5ec   : > { %v9740_v51 = vld [vmem:[%s12935_s12 + $0x44] ss:$16 sps:$4 sm:$0xff]  }
 0x5ed   : > { %v3558_v2 = vcombine.low %v3502_v45, %v3518_v48  ;;  %v3559_v52 = vcombine.high %v3502_v45, %v3518_v48  ;;  %v3574_v20 = vcombine.low %v3509_v63, %v3525_v49  ;;  %v3575_v9 = vcombine.high %v3509_v63, %v3525_v49  ;;  %v9735_v49 = vld [vmem:[%s12935_s12 + $0x20] ss:$16 sps:$4 sm:$0xff]  }
 0x5ef   : > { %v3566_v53 = vrot.slane %v3558_v2, %v11252_v17  ;;  %v3573_v22 = vrot.slane %v3559_v52, %v11252_v17  ;;  %v3582_v55 = vrot.slane %v3574_v20, %v11252_v17  ;;  %v3589_v34 = vrot.slane %v3575_v9, %v11252_v17  ;;  %v9738_v2 = vld [vmem:[%s12935_s12 + $0x40] ss:$16 sps:$4 sm:$0xff]   ;;  %v9743_v52 = vld [vmem:[%s12935_s12 + $0x64] ss:$16 sps:$4 sm:$0xff]  }
 0x5f0   : > { %v9741_v20 = vld [vmem:[%s12935_s12 + $0x60] ss:$16 sps:$4 sm:$0xff]   ;;  %v9746_v9 = vld [vmem:[%s12935_s12 + $0x84] ss:$16 sps:$4 sm:$0xff]  }
 0x5f1   : > { %v8745_v56 = vcombine.low %v3566_v53, %v3573_v22  ;;  %v8747_v7 = vcombine.high %v3566_v53, %v3573_v22  ;;  %v8749_v1 = vcombine.low %v3582_v55, %v3589_v34  ;;  %v8751_v31 = vcombine.high %v3582_v55, %v3589_v34  ;;  %v9744_v53 = vld [vmem:[%s12935_s12 + $0x80] ss:$16 sps:$4 sm:$0xff]  }
 0x5f2   : > { %v3800_v22 = vld [vmem:[%s12936_s0] sm:$0x3] }
 0x5f3   : > { %v3613_v3 = vrot.slane %v8745_v56, %v11245_v19  ;;  %v3629_v4 = vrot.slane %v8747_v7, %v11245_v19  ;;  %v3645_v0 = vrot.slane %v8749_v1, %v11245_v19  ;;  %v3661_v5 = vrot.slane %v8751_v31, %v11245_v19 }
 0x5f4   : > { %v3805_v55 = vrot.slane %v3800_v22, %v11092_v13  ;;  %v3809_v34 = vrot.slane %v3800_v22, %v11114_v27  ;;  %v9804_v22 = vld [vmem:[#allocation5 + $0x80] ss:$8 sps:$4 sm:$0xff]  }
 0x5f5   : > { %v3679_v30 = vcombine.high %v3613_v3, %v3629_v4  ;;  %v3711_v8 = vcombine.high %v3645_v0, %v3661_v5  ;;  %v3678_v6 = vcombine.low %v3613_v3, %v3629_v4  ;;  %v3710_v24 = vcombine.low %v3645_v0, %v3661_v5  ;;  %v10203_v0 = vld [vmem:[%s11001_s28 + $0x8] sm:$0xff] }
 0x5f7   : > { %v3693_v40 = vrot.slane %v3679_v30, %v11252_v17  ;;  %v3725_v28 = vrot.slane %v3711_v8, %v11252_v17  ;;  %v3686_v16 = vrot.slane %v3678_v6, %v11252_v17  ;;  %v3718_v23 = vrot.slane %v3710_v24, %v11252_v17  ;;  %v9747_v8 = vld [vmem:[%s12935_s12 + $0xa0] ss:$16 sps:$4 sm:$0xff]   ;;  %v9749_v6 = vld [vmem:[%s12935_s12 + $0xa4] ss:$16 sps:$4 sm:$0xff]  }
 0x5f8   : > { %v9752_v24 = vld [vmem:[%s12935_s12 + $0xc4] ss:$16 sps:$4 sm:$0xff]  }
 0x5f9   : > { %v3732_v33 = vcombine.low %v3693_v40, %v3725_v28  ;;  %v3731_v35 = vcombine.high %v3686_v16, %v3718_v23  ;;  %v3730_v29 = vcombine.low %v3686_v16, %v3718_v23  ;;  %v3733_v36 = vcombine.high %v3693_v40, %v3725_v28  ;;  %v9750_v40 = vld [vmem:[%s12935_s12 + $0xc0] ss:$16 sps:$4 sm:$0xff]   ;;  %v9755_v28 = vld [vmem:[%s12935_s12 + $0xe4] ss:$16 sps:$4 sm:$0xff]  }
 0x5fa   : > { %v9753_v16 = vld [vmem:[%s12935_s12 + $0xe0] ss:$16 sps:$4 sm:$0xff]   ;;  %v9758_v23 = vld [vmem:[%s12935_s12 + $0x104] ss:$16 sps:$4 sm:$0xff]  }
 0x5fb   : > { %v9515_v37 = vpack.i.bf16 %v3728_v39, %v3732_v33  ;;  %v9510_v47 = vpack.i.bf16 %v3727_v62, %v3731_v35  ;;  %v9520_v26 = vpack.i.bf16 %v3729_v50, %v3733_v36  ;;  %v4308_v33 = vld [vmem:[%s11682_s26 + $0x8] sm:$0xff] }
 0x5fc   : > { %v11691_v35 = vpack.c.bf16 %v4308_v33, %v4308_v33  ;;  %v9782_v36 = vld [vmem:[#allocation5 + $0x4] ss:$8 sps:$4 sm:$0xff]   ;;  %v11748_v33 = vld [vmem:[%s12852_s13] sm:$0xf] }
 0x5fd   : > { %9516 = vrot.lane.b32.xlu1 %v9515_v37, %s10495_s11  ;;  %9511 = vrot.lane.b32.xlu0 %v9510_v47, %s10493_s19  ;;  %v9785_v37 = vld [vmem:[#allocation5 + $0x14] ss:$8 sps:$4 sm:$0xff]   ;;  %v9759_v47 = vld [vmem:[%s12935_s12 + $0x120] ss:$16 sps:$4 sm:$0xff]  }
 0x5fe   : > { %4266 = vmatprep.subr.bf16.mxu1 %v9782_v36 }
 0x601   : > { %9521 = vrot.lane.b32.xlu0 %v9520_v26, %s10494_s27  ;;  %v9764_v26 = vld [vmem:[%s12935_s12 + $0x144] ss:$16 sps:$4 sm:$0xff]  }
 0x66f   : > { %v9517_v38 = vpop.permute.xlu1 %9516  ;;  %v9512_v14 = vpop.permute.xlu0 %9511 }
 0x670   : > { %v9514_v15 = vunpack.i.h.bf16 %v9512_v14  ;;  %v9513_v18 = vunpack.i.l.bf16 %v9512_v14  ;;  %v9519_v59 = vunpack.i.h.bf16 %v9517_v38  ;;  %v9518_v39 = vunpack.i.l.bf16 %v9517_v38  ;;  %v9783_v38 = vld [vmem:[#allocation5 + $0x10] ss:$8 sps:$4 sm:$0xff]   ;;  %v9788_v14 = vld [vmem:[#allocation5 + $0x24] ss:$8 sps:$4 sm:$0xff]  }
 0x672   : > { %v3758_v62 = vsel %vm2603_vm2, %v3726_v61, %v9514_v15  ;;  %v3763_v54 = vsel %vm2603_vm2, %v3730_v29, %v9513_v18  ;;  %v9737_v61 = vld [vmem:[%s12935_s12 + $0x24] ss:$16 sps:$4 sm:$0xff]   ;;  %v9780_v29 = vld [vmem:[#allocation5] ss:$8 sps:$4 sm:$0xff]  }
 0x673   : > { %v9522_v58 = vpop.permute.xlu0 %9521  ;;  %v3760_v42 = vsel %vm3759_vm5, %v3758_v62, %v9519_v59  ;;  %v3764_v43 = vsel %vm3759_vm5, %v3763_v54, %v9518_v39  ;;  %4267 = vmatpush1.bf16.msra.mxu1 %v9780_v29  ;;  %v9762_v15 = vld [vmem:[%s12935_s12 + $0x140] ss:$16 sps:$4 sm:$0xff]   ;;  %v9767_v18 = vld [vmem:[%s12935_s12 + $0x164] ss:$16 sps:$4 sm:$0xff]   ;;  %v4380_v29 = vrot.slane %v11748_v33, %v11092_v13 }
 0x674   : > { %v9524_v50 = vunpack.i.h.bf16 %v9522_v58  ;;  %v9523_v41 = vunpack.i.l.bf16 %v9522_v58  ;;  %4268 = vmatprep.subr.bf16.mxu1 %v9785_v37  ;;  %v9786_v59 = vld [vmem:[#allocation5 + $0x20] ss:$8 sps:$4 sm:$0xff]   ;;  %v9791_v39 = vld [vmem:[#allocation5 + $0x34] ss:$8 sps:$4 sm:$0xff]   ;;  %v9789_v58 = vld [vmem:[#allocation5 + $0x30] ss:$8 sps:$4 sm:$0xff]  }
 0x675   : > { %v9765_v62 = vld [vmem:[%s12935_s12 + $0x160] ss:$16 sps:$4 sm:$0xff]   ;;  %v9770_v54 = vld [vmem:[%s12935_s12 + $0x184] ss:$16 sps:$4 sm:$0xff]  }
 0x676   : > { %v3762_v44 = vsel %vm3761_vm6, %v3760_v42, %v9524_v50  ;;  %v3765_v45 = vsel %vm3761_vm6, %v3764_v43, %v9523_v41  ;;  %v9794_v50 = vld [vmem:[#allocation5 + $0x44] ss:$8 sps:$4 sm:$0xff]   ;;  %v9768_v41 = vld [vmem:[%s12935_s12 + $0x180] ss:$16 sps:$4 sm:$0xff]  }
 0x677   : > { %v3766_v63 = vpack.c.bf16 %v3762_v44, %v3762_v44  ;;  %v3767_v48 = vpack.c.bf16 %v3765_v45, %v3765_v45  ;;  %4269 = vmatpush1.bf16.msra.mxu1 %v9783_v38  ;;  %v9773_v42 = vld [vmem:[%s12935_s12 + $0x1a4] ss:$16 sps:$4 sm:$0xff]   ;;  %v9792_v43 = vld [vmem:[#allocation5 + $0x40] ss:$8 sps:$4 sm:$0xff]  }
 0x678   : > { %4270 = vmatprep.subr.bf16.mxu1 %v9788_v14  ;;  %v9797_v44 = vld [vmem:[#allocation5 + $0x54] ss:$8 sps:$4 sm:$0xff]   ;;  %v9771_v45 = vld [vmem:[%s12935_s12 + $0x1a0] ss:$16 sps:$4 sm:$0xff]  }
 0x679   : > { %4004 = vmatprep.mubr.bf16.mxu0 %v3767_v48  ;;  %v9795_v48 = vld [vmem:[#allocation5 + $0x50] ss:$8 sps:$4 sm:$0xff]  }
 0x67a   : > { %4005 = vmatmul.mubr.bf16.vlgmr.msra.gmra.mrb[16].mxu0 %v3766_v63  ;;  %v9776_v63 = vld [vmem:[%s12935_s12 + $0x1c4] ss:$16 sps:$4 sm:$0xff]  }
 0x67b   : > { %4718 = vmatpush1.bf16.msra.mxu0 %v9732_v60  ;;  %4749 = vmatprep.mubr.bf16.mxu0 %v11691_v35  ;;  %v9800_v60 = vld [vmem:[#allocation5 + $0x64] ss:$8 sps:$4 sm:$0xff]  }
 0x67c   : > { %4719 = vmatprep.subr.bf16.mxu0 %v9737_v61  ;;  %4271 = vmatpush1.bf16.msra.mxu1 %v9786_v59  ;;  %v9779_v61 = vld [vmem:[%s12935_s12 + $0x1e4] ss:$16 sps:$4 sm:$0xff]   ;;  %v4015_v59 = vld [vmem:[%s12938_s21] sm:$0x3]  ;;  %s12946_s21 = smov %s12945_s8 }
 0x67d   : > { %4272 = vmatprep.subr.bf16.mxu1 %v9791_v39  ;;  %v4016_v39 = vld [vmem:[%s12939_s24] sm:$0x3]  ;;  %s12940_s24 = sld [smem:[#allocation40_spill]] }
 0x67f   : > { %4720 = vmatpush1.bf16.msra.mxu0 %v9735_v49  ;;  %v9798_v49 = vld [vmem:[#allocation5 + $0x60] ss:$8 sps:$4 sm:$0xff]  }
 0x680   : > { %4721 = vmatprep.subr.bf16.mxu0 %v9740_v51  ;;  %4273 = vmatpush1.bf16.msra.mxu1 %v9789_v58  ;;  %v9803_v51 = vld [vmem:[#allocation5 + $0x74] ss:$8 sps:$4 sm:$0xff]  }
 0x681   : > { %4274 = vmatprep.subr.bf16.mxu1 %v9794_v50 }
 0x683   : > { %4722 = vmatpush1.bf16.msra.mxu0 %v9738_v2  ;;  %v9777_v2 = vld [vmem:[%s12935_s12 + $0x1e0] ss:$16 sps:$4 sm:$0xff]  }
 0x684   : > { %4723 = vmatprep.subr.bf16.mxu0 %v9743_v52  ;;  %4275 = vmatpush1.bf16.msra.mxu1 %v9792_v43  ;;  %v4307_v52 = vld [vmem:[%s11682_s26] sm:$0xff]  ;;  %v4055_v43 = vrot.slane %v4016_v39, %v11114_v27  ;;  %s957_s26 = scalar_lea.vmem %s12941_s25, %s10969_s10  ;;  %s12119_s10 = sand.u32 1, %s10474_s4  }
 0x685   : > { %4276 = vmatprep.subr.bf16.mxu1 %v9797_v44  ;;  %s8600_s0 = sshll.u32 %s12119_s10, 6  ;;  %s12943_s25 = sld [smem:[#allocation44_spill]] }
 0x686   : > { %s12126_s3 = scalar_lea.vmem [#allocation14], %s8600_s0  ;;  %s8373_s1 = scalar_lea.sflag [#allocation15], %s12119_s10 }
 0x687   : > { %4724 = vmatpush1.bf16.msra.mxu0 %v9741_v20  ;;  %v9801_v20 = vld [vmem:[#allocation5 + $0x70] ss:$8 sps:$4 sm:$0xff]  }
 0x688   : > { %4725 = vmatprep.subr.bf16.mxu0 %v9746_v9  ;;  %4277 = vmatpush1.bf16.msra.mxu1 %v9795_v48  ;;  %v11734_v9 = vpack.c.bf16 %v4307_v52, %v4307_v52  ;;  %v9834_v52 = vld [vmem:[%s12935_s12 + $0x48] ss:$16 sps:$4 sm:$0xff]  }
 0x689   : > { %4278 = vmatprep.subr.bf16.mxu1 %v9800_v60 }
 0x68b   : > { %4726 = vmatpush1.bf16.msra.mxu0 %v9744_v53  ;;  %v9806_v53 = vld [vmem:[#allocation5 + $0x84] ss:$8 sps:$4 sm:$0xff]  }
 0x68c   : > { %4727 = vmatprep.subr.bf16.mxu0 %v9749_v6  ;;  %4279 = vmatpush1.bf16.msra.mxu1 %v9798_v49  ;;  %v9813_v6 = vld [vmem:[#allocation5 + $0xb0] ss:$8 sps:$4 sm:$0xff]   ;;  %v9833_v49 = vld [vmem:[%s12935_s12 + $0x2c] ss:$16 sps:$4 sm:$0xff]  }
 0x68d   : > { %4280 = vmatprep.subr.bf16.mxu1 %v9803_v51  ;;  %v9831_v51 = vld [vmem:[%s12935_s12 + $0x28] ss:$16 sps:$4 sm:$0xff]  }
 0x68f   : > { %4728 = vmatpush1.bf16.msra.mxu0 %v9747_v8  ;;  %v9815_v8 = vld [vmem:[#allocation5 + $0xb4] ss:$8 sps:$4 sm:$0xff]  }
 0x690   : > { %4729 = vmatprep.subr.bf16.mxu0 %v9752_v24  ;;  %4281 = vmatpush1.bf16.msra.mxu1 %v9801_v20  ;;  %v9818_v24 = vld [vmem:[#allocation5 + $0xc4] ss:$8 sps:$4 sm:$0xff]  }
 0x691   : > { %4282 = vmatprep.subr.bf16.mxu1 %v9806_v53  ;;  %v9839_v20 = vld [vmem:[%s12935_s12 + $0x6c] ss:$16 sps:$4 sm:$0xff]  }
 0x692   : > { %v9842_v53 = vld [vmem:[%s12935_s12 + $0x8c] ss:$16 sps:$4 sm:$0xff]  }
 0x693   : > { %4730 = vmatpush1.bf16.msra.mxu0 %v9750_v40  ;;  %v9816_v40 = vld [vmem:[#allocation5 + $0xc0] ss:$8 sps:$4 sm:$0xff]  }
 0x694   : > { %4731 = vmatprep.subr.bf16.mxu0 %v9755_v28  ;;  %4283 = vmatpush1.bf16.msra.mxu1 %v9804_v22  ;;  %v9819_v28 = vld [vmem:[#allocation5 + $0xd0] ss:$8 sps:$4 sm:$0xff]  }
 0x695   : > { %v9840_v22 = vld [vmem:[%s12935_s12 + $0x88] ss:$16 sps:$4 sm:$0xff]  }
 0x697   : > { %4732 = vmatpush1.bf16.msra.mxu0 %v9753_v16  ;;  %v9824_v16 = vld [vmem:[#allocation5 + $0xe4] ss:$8 sps:$4 sm:$0xff]  }
 0x698   : > { %4733 = vmatprep.subr.bf16.mxu0 %v9758_v23  ;;  %v9827_v23 = vld [vmem:[#allocation5 + $0xf4] ss:$8 sps:$4 sm:$0xff]  }
 0x69b   : > { %4734 = vmatpush1.bf16.msra.mxu0 %v9756_v32  ;;  %v9825_v32 = vld [vmem:[#allocation5 + $0xf0] ss:$8 sps:$4 sm:$0xff]  }
 0x69c   : > { %4735 = vmatprep.subr.bf16.mxu0 %v9761_v12  ;;  %v9830_v12 = vld [vmem:[%s12935_s12 + $0xc] ss:$16 sps:$4 sm:$0xff]  }
 0x69f   : > { %4736 = vmatpush1.bf16.msra.mxu0 %v9759_v47 }
 0x6a0   : > { %4737 = vmatprep.subr.bf16.mxu0 %v9764_v26 }
 0x6a3   : > { %4738 = vmatpush1.bf16.msra.mxu0 %v9762_v15 }
 0x6a4   : > { %4739 = vmatprep.subr.bf16.mxu0 %v9767_v18 }
 0x6a7   : > { %4740 = vmatpush1.bf16.msra.mxu0 %v9765_v62  ;;  %v4038_v62 = vrot.slane %v4015_v59, %v11092_v13 }
 0x6a8   : > { %4741 = vmatprep.subr.bf16.mxu0 %v9770_v54  ;;  %v4042_v54 = vrot.slane %v4015_v59, %v11114_v27 }
 0x6ab   : > { %4742 = vmatpush1.bf16.msra.mxu0 %v9768_v41 }
 0x6ac   : > { %4743 = vmatprep.subr.bf16.mxu0 %v9773_v42  ;;  %v4051_v42 = vrot.slane %v4016_v39, %v11092_v13 }
 0x6af   : > { %4744 = vmatpush1.bf16.msra.mxu0 %v9771_v45 }
 0x6b0   : > { %4745 = vmatprep.subr.bf16.mxu0 %v9776_v63 }
 0x6b3   : > { %4746 = vmatpush1.bf16.msra.mxu0 %v9774_v10 }
 0x6b4   : > { %4747 = vmatprep.subr.bf16.mxu0 %v9779_v61  ;;  %v9828_v61 = vld [vmem:[%s12935_s12 + $0x8] ss:$16 sps:$4 sm:$0xff]  }
 0x6b7   : > { %4748 = vmatpush1.bf16.msra.mxu0 %v9777_v2  ;;  %v9836_v2 = vld [vmem:[%s12935_s12 + $0x4c] ss:$16 sps:$4 sm:$0xff]  }
 0x6b8   : > { %9298 = vmatprep.subr.bf16.mxu0 %v10492_v46 }
 0x6ba   : > { %4750 = vmatmul.mubr.bf16.vlgmr.msra.gmra.mrb[20].mxu0 %v11734_v9 }
 0x6bb   : > { %9300 = vmatprep.mubr.msk.bf16.mxu0 %vm10496_vm1, %v10492_v46 }
 0x74d   : > { %v4006_v56 = vpop.f32.mrb[16].mxu0 }
 0x74e   : > { %v4007_v7 = vadd.f32 %v4006_v56, %v3805_v55  ;;  %v4008_v1 = vpop.f32.mrb[17].mxu0  ;;  %v9809_v55 = vld [vmem:[#allocation5 + $0x94] ss:$8 sps:$4 sm:$0xff]  }
 0x74f   : > { %v4009_v31 = vadd.f32 %v4008_v1, %v3809_v34  ;;  %v4010_v21 = vpop.f32.mrb[18].mxu0  ;;  %v9807_v34 = vld [vmem:[#allocation5 + $0x90] ss:$8 sps:$4 sm:$0xff]   ;;  %4284 = vmatprep.subr.bf16.mxu1 %v9809_v55  ;;  %v9845_v55 = vld [vmem:[%s12935_s12 + $0xac] ss:$16 sps:$4 sm:$0xff]  }
 0x750   : > { %v11649_v3 = vadd.f32 %v10202_v57, %v4007_v7  ;;  %v4011_v4 = vpop.f32.mrb[19].mxu0  ;;  %4285 = vmatpush1.bf16.msra.mxu1 %v9807_v34  ;;  %v9843_v34 = vld [vmem:[%s12935_s12 + $0xa8] ss:$16 sps:$4 sm:$0xff]  }
 0x751   : > { %v11652_v5 = vadd.f32 %v10203_v0, %v4009_v31  ;;  %v9812_v0 = vld [vmem:[#allocation5 + $0xa4] ss:$8 sps:$4 sm:$0xff]  }
 0x752   : > { %4286 = vmatprep.subr.bf16.mxu1 %v9812_v0  ;;  %v9855_v0 = vld [vmem:[%s12935_s12 + $0x128] ss:$16 sps:$4 sm:$0xff]  }
 0x753   : > { %v4017_v30 = vadd.f32 %v11652_v5, %v11649_v3 }
 0x755   : > { %4018 = vadd.xlane.f32.xlu1 %v4017_v30  ;;  %v9810_v30 = vld [vmem:[#allocation5 + $0xa0] ss:$8 sps:$4 sm:$0xff]  }
 0x756   : > { %4287 = vmatpush1.bf16.msra.mxu1 %v9810_v30  ;;  %v9860_v30 = vld [vmem:[%s12935_s12 + $0x14c] ss:$16 sps:$4 sm:$0xff]  }
 0x757   : > { %4288 = vmatprep.subr.bf16.mxu1 %v9815_v8  ;;  %v9858_v8 = vld [vmem:[%s12935_s12 + $0x148] ss:$16 sps:$4 sm:$0xff]  }
 0x75a   : > { %4289 = vmatpush1.bf16.msra.mxu1 %v9813_v6  ;;  %v9863_v6 = vld [vmem:[%s12935_s12 + $0x16c] ss:$16 sps:$4 sm:$0xff]  }
 0x75b   : > { %4290 = vmatprep.subr.bf16.mxu1 %v9818_v24  ;;  %v9861_v24 = vld [vmem:[%s12935_s12 + $0x168] ss:$16 sps:$4 sm:$0xff]  }
 0x75e   : > { %4291 = vmatpush1.bf16.msra.mxu1 %v9816_v40  ;;  %v9866_v40 = vld [vmem:[%s12935_s12 + $0x18c] ss:$16 sps:$4 sm:$0xff]  }
 0x78d   : > { %v4751_v36 = vpop.f32.mrb[20].mxu0 }
 0x78e   : > { %v11752_v37 = vadd.f32 %v4751_v36, %v4380_v29  ;;  %v11754_v47 = vpop.f32.mrb[21].mxu0 }
 0x78f   : > { %v4755_v26 = vpop.f32.mrb[22].mxu0 }
 0x790   : > { %5098 = vrot.lane.b32.xlu1 %v11752_v37, %s10495_s11  ;;  %v4756_v38 = vpop.f32.mrb[23].mxu0 }
 0x794   : > { %5101 = vrot.lane.b32.xlu1 %v11752_v37, %s10493_s19 }
 0x7e2   : > { %v4019_v56 = vpop.xlane.xlu1 %4018 }
 0x7e3   : > { %v4021_v7 = vmul.f32 0.00390625, %v4019_v56  ;;  %v9848_v56 = vld [vmem:[%s12935_s12 + $0xcc] ss:$16 sps:$4 sm:$0xff]  }
 0x7e5   : > { %v4022_v1 = vsub.f32 %v11649_v3, %v4021_v7  ;;  %v4023_v31 = vsub.f32 %v11652_v5, %v4021_v7  ;;  %v9821_v3 = vld [vmem:[#allocation5 + $0xd4] ss:$8 sps:$4 sm:$0xff]   ;;  %v9822_v5 = vld [vmem:[#allocation5 + $0xe0] ss:$8 sps:$4 sm:$0xff]  }
 0x7e6   : > { %4292 = vmatprep.subr.bf16.mxu1 %v9821_v3  ;;  %v9846_v7 = vld [vmem:[%s12935_s12 + $0xc8] ss:$16 sps:$4 sm:$0xff]   ;;  %v9869_v3 = vld [vmem:[%s12935_s12 + $0x1ac] ss:$16 sps:$4 sm:$0xff]  }
 0x7e7   : > { %v4024_v21 = vmul.f32 %v4022_v1, %v4022_v1  ;;  %v4025_v57 = vmul.f32 %v4023_v31, %v4023_v31  ;;  %4293 = vmatpush1.bf16.msra.mxu1 %v9819_v28  ;;  %v9864_v28 = vld [vmem:[%s12935_s12 + $0x188] ss:$16 sps:$4 sm:$0xff]  }
 0x7e8   : > { %4294 = vmatprep.subr.bf16.mxu1 %v9824_v16  ;;  %v9867_v16 = vld [vmem:[%s12935_s12 + $0x1a8] ss:$16 sps:$4 sm:$0xff]  }
 0x7e9   : > { %v4026_v4 = vadd.f32 %v4025_v57, %v4024_v21  ;;  %v9854_v21 = vld [vmem:[%s12935_s12 + $0x10c] ss:$16 sps:$4 sm:$0xff]   ;;  %v9852_v57 = vld [vmem:[%s12935_s12 + $0x108] ss:$16 sps:$4 sm:$0xff]  }
 0x7eb   : > { %4027 = vadd.xlane.f32.xlu0 %v4026_v4  ;;  %4295 = vmatpush1.bf16.msra.mxu1 %v9822_v5  ;;  %v9857_v4 = vld [vmem:[%s12935_s12 + $0x12c] ss:$16 sps:$4 sm:$0xff]  }
 0x7ec   : > { %4296 = vmatprep.subr.bf16.mxu1 %v9827_v23 }
 0x7ef   : > { %4297 = vmatpush1.bf16.msra.mxu1 %v9825_v32 }
 0x7f0   : > { %4758 = vmatprep.subr.bf16.mxu1 %v9830_v12 }
 0x801   : > { %5095 = vrot.lane.b32.xlu0 %v11752_v37, %s10494_s27 }
 0x802   : > { %v5099_v5 = vpop.permute.xlu1 %5098 }
 0x803   : > { %v5114_v23 = vcombine.low %v11752_v37, %v5099_v5  ;;  %v5115_v32 = vcombine.high %v11752_v37, %v5099_v5 }
 0x805   : > { %v5122_v36 = vrot.slane %v5114_v23, %v11245_v19  ;;  %v5129_v26 = vrot.slane %v5115_v32, %v11245_v19 }
 0x806   : > { %v5102_v29 = vpop.permute.xlu1 %5101 }
 0x878   : > { %v4028_v14 = vpop.xlane.xlu0 %4027 }
 0x879   : > { %v4029_v15 = vmul.f32 0.00390625, %v4028_v14 }
 0x87b   : > { %v4030_v18 = vadd.f32 1e-05, %v4029_v15 }
 0x87c   : > { %v5096_v12 = vpop.permute.xlu0 %5095 }
 0x87d   : > { %10164 = vrsqrt.f32 %v4030_v18  ;;  %v5130_v38 = vcombine.low %v5096_v12, %v5102_v29  ;;  %v5131_v14 = vcombine.high %v5096_v12, %v5102_v29 }
 0x87f   : > { %v5138_v15 = vrot.slane %v5130_v38, %v11245_v19  ;;  %v5145_v18 = vrot.slane %v5131_v14, %v11245_v19 }
 0x881   : > { %v5178_v59 = vcombine.low %v5122_v36, %v5138_v15  ;;  %v5179_v39 = vcombine.high %v5122_v36, %v5138_v15 }
 0x883   : > { %v5193_v37 = vrot.slane %v5179_v39, %v11252_v17 }
 0x887   : > { %v10165_v58 = vpop.eup %10164 }
 0x888   : > { %v4032_v50 = vmul.f32 %v10165_v58, %v4022_v1  ;;  %v4033_v41 = vmul.f32 %v10165_v58, %v4023_v31  ;;  %v9851_v1 = vld [vmem:[%s12935_s12 + $0xec] ss:$16 sps:$4 sm:$0xff]   ;;  %v9849_v31 = vld [vmem:[%s12935_s12 + $0xe8] ss:$16 sps:$4 sm:$0xff]   ;;  %v5186_v58 = vrot.slane %v5178_v59, %v11252_v17 }
 0x88a   : > { %v4046_v44 = vmul.f32 %v4042_v54, %v4033_v41  ;;  %v4045_v45 = vmul.f32 %v4038_v62, %v4032_v50  ;;  %v5194_v62 = vcombine.low %v5129_v26, %v5145_v18  ;;  %v5195_v54 = vcombine.high %v5129_v26, %v5145_v18 }
 0x88c   : > { %v11772_v63 = vadd.f32 %v4055_v43, %v4046_v44  ;;  %v11774_v48 = vadd.f32 %v4051_v42, %v4045_v45  ;;  %v5202_v50 = vrot.slane %v5194_v62, %v11252_v17  ;;  %v5209_v41 = vrot.slane %v5195_v54, %v11252_v17  ;;  %v9870_v42 = vld [vmem:[%s12935_s12 + $0x1c8] ss:$16 sps:$4 sm:$0xff]   ;;  %v9872_v43 = vld [vmem:[%s12935_s12 + $0x1cc] ss:$16 sps:$4 sm:$0xff]  }
 0x88d   : > { %v9875_v44 = vld [vmem:[%s12935_s12 + $0x1ec] ss:$16 sps:$4 sm:$0xff]   ;;  %v8889_v45 = vcombine.low %v5186_v58, %v5193_v37 }
 0x88e   : > { %v4061_v60 = vpack.c.bf16 %v11772_v63, %v11772_v63  ;;  %v4060_v10 = vpack.c.bf16 %v11774_v48, %v11774_v48 }
 0x890   : > { %4298 = vmatprep.mubr.bf16.mxu1 %v4061_v60  ;;  %v8891_v60 = vcombine.high %v5186_v58, %v5193_v37 }
 0x891   : > { %4299 = vmatmul.mubr.bf16.vlgmr.msra.gmra.mrb[60].mxu1 %v4060_v10  ;;  %v8893_v10 = vcombine.low %v5202_v50, %v5209_v41 }
 0x892   : > { %4759 = vmatpush1.bf16.msra.mxu1 %v9828_v61  ;;  %4790 = vmatprep.mubr.bf16.mxu1 %v11691_v35  ;;  %v9837_v35 = vld [vmem:[%s12935_s12 + $0x68] ss:$16 sps:$4 sm:$0xff]   ;;  %v8895_v61 = vcombine.high %v5202_v50, %v5209_v41 }
 0x893   : > { %4760 = vmatprep.subr.bf16.mxu1 %v9833_v49  ;;  %v9873_v49 = vld [vmem:[%s12935_s12 + $0x1e8] ss:$16 sps:$4 sm:$0xff]  }
 0x896   : > { %4761 = vmatpush1.bf16.msra.mxu1 %v9831_v51  ;;  %v5258_v51 = vrot.slane %v8889_v45, %v11245_v19 }
 0x897   : > { %4762 = vmatprep.subr.bf16.mxu1 %v9836_v2  ;;  %v5274_v2 = vrot.slane %v8891_v60, %v11245_v19 }
 0x89a   : > { %4763 = vmatpush1.bf16.msra.mxu1 %v9834_v52  ;;  %v5290_v52 = vrot.slane %v8893_v10, %v11245_v19 }
 0x89b   : > { %4764 = vmatprep.subr.bf16.mxu1 %v9839_v20  ;;  %v5306_v20 = vrot.slane %v8895_v61, %v11245_v19 }
 0x89e   : > { %4765 = vmatpush1.bf16.msra.mxu1 %v9837_v35  ;;  %v5314_v35 = vcombine.low %v5258_v51, %v5274_v2 }
 0x89f   : > { %4766 = vmatprep.subr.bf16.mxu1 %v9842_v53  ;;  %v5346_v53 = vcombine.low %v5290_v52, %v5306_v20 }
 0x8a2   : > { %4767 = vmatpush1.bf16.msra.mxu1 %v9840_v22  ;;  %v5315_v22 = vcombine.high %v5258_v51, %v5274_v2 }
 0x8a3   : > { %4768 = vmatprep.subr.bf16.mxu1 %v9845_v55  ;;  %v5347_v55 = vcombine.high %v5290_v52, %v5306_v20 }
 0x8a6   : > { %4769 = vmatpush1.bf16.msra.mxu1 %v9843_v34  ;;  %v5322_v34 = vrot.slane %v5314_v35, %v11252_v17 }
 0x8a7   : > { %4770 = vmatprep.subr.bf16.mxu1 %v9848_v56  ;;  %v5354_v56 = vrot.slane %v5346_v53, %v11252_v17 }
 0x8aa   : > { %4771 = vmatpush1.bf16.msra.mxu1 %v9846_v7  ;;  %v5329_v7 = vrot.slane %v5315_v22, %v11252_v17 }
 0x8ab   : > { %4772 = vmatprep.subr.bf16.mxu1 %v9851_v1  ;;  %v5361_v1 = vrot.slane %v5347_v55, %v11252_v17 }
 0x8ae   : > { %4773 = vmatpush1.bf16.msra.mxu1 %v9849_v31  ;;  %v5378_v31 = vcombine.low %v5322_v34, %v5354_v56 }
 0x8af   : > { %4774 = vmatprep.subr.bf16.mxu1 %v9854_v21  ;;  %v5379_v21 = vcombine.high %v5322_v34, %v5354_v56 }
 0x8b2   : > { %4775 = vmatpush1.bf16.msra.mxu1 %v9852_v57  ;;  %v11896_v57 = vcombine.low %v5329_v7, %v5361_v1 }
 0x8b3   : > { %4776 = vmatprep.subr.bf16.mxu1 %v9857_v4  ;;  %v5686_v4 = vpack.c.bf16 %v5378_v31, %v5378_v31 }
 0x8b6   : > { %4777 = vmatpush1.bf16.msra.mxu1 %v9855_v0  ;;  %v5687_v0 = vpack.c.bf16 %v5379_v21, %v5379_v21 }
 0x8b7   : > { %4778 = vmatprep.subr.bf16.mxu1 %v9860_v30  ;;  %v5698_v30 = vsel %vm2603_vm2, %v5686_v4, 0 }
 0x8b8   : > { %9299 = vmatpush3.bf16.xpose.msra.mxu0 %v5698_v30 }
 0x8b9   : > { %9310 = vmatprep.subr.bf16.mxu0 %v10492_v46 }
 0x8ba   : > { %4779 = vmatpush1.bf16.msra.mxu1 %v9858_v8  ;;  %v5744_v8 = vsel %vm2603_vm2, %v5687_v0, 0 }
 0x8bb   : > { %4780 = vmatprep.subr.bf16.mxu1 %v9863_v6  ;;  %v4094_v6 = vld [vmem:[%s12940_s24] sm:$0x3]  ;;  %s12942_s24 = sld [smem:[#allocation42_spill]] }
 0x8bc   : > { %v4103_v12 = vrot.slane %v4094_v6, %v11114_v27 }
 0x8be   : > { %4781 = vmatpush1.bf16.msra.mxu1 %v9861_v24  ;;  %v4099_v24 = vrot.slane %v4094_v6, %v11092_v13 }
 0x8bf   : > { %4782 = vmatprep.subr.bf16.mxu1 %v9866_v40 }
 0x8c2   : > { %4783 = vmatpush1.bf16.msra.mxu1 %v9864_v28  ;;  %v4384_v28 = vrot.slane %v11748_v33, %v11114_v27 }
 0x8c3   : > { %4784 = vmatprep.subr.bf16.mxu1 %v9869_v3 }
 0x8c4   : > { %v4754_v32 = vadd.f32 %v11754_v47, %v4384_v28 }
 0x8c6   : > { %4785 = vmatpush1.bf16.msra.mxu1 %v9867_v16 }
 0x8c7   : > { %4786 = vmatprep.subr.bf16.mxu1 %v9872_v43 }
 0x8ca   : > { %4787 = vmatpush1.bf16.msra.mxu1 %v9870_v42 }
 0x8cb   : > { %4788 = vmatprep.subr.bf16.mxu1 %v9875_v44 }
 0x8ce   : > { %4789 = vmatpush1.bf16.msra.mxu1 %v9873_v49 }
 0x8cf   : > { %9304 = vmatprep.subr.bf16.mxu1 %v10492_v46 }
 0x8d1   : > { %4791 = vmatmul.mubr.bf16.vlgmr.msra.gmra.mrb[64].mxu1 %v11734_v9  ;;  %v11898_v9 = vcombine.high %v5329_v7, %v5361_v1 }
 0x8d2   : > { %9306 = vmatprep.mubr.msk.bf16.mxu1 %vm10496_vm1, %v10492_v46 }
 0x8d7   : > { %9305 = vmatpush3.bf16.xpose.msra.mxu1 %v5744_v8 }
 0x8d8   : > { %9316 = vmatprep.subr.bf16.mxu1 %v10492_v46 }
 0x964   : > { %v4300_v40 = vpop.f32.mrb[60].mxu1 }
 0x965   : > { %v4301_v3 = vadd.f32 %v4300_v40, %v4099_v24  ;;  %v4302_v16 = vpop.f32.mrb[61].mxu1 }
 0x966   : > { %v4304_v5 = vpop.f32.mrb[62].mxu1  ;;  %v11918_v29 = vadd.f32 %v4302_v16, %v4103_v12 }
 0x967   : > { %v4305_v23 = vpop.f32.mrb[63].mxu1  ;;  %4806 = vrot.lane.b32.xlu1 %v4301_v3, %s10495_s11  ;;  %4803 = vrot.lane.b32.xlu0 %v4301_v3, %s10494_s27 }
 0x96b   : > { %5105 = vrot.lane.b32.xlu1 %v4754_v32, %s10494_s27  ;;  %4809 = vrot.lane.b32.xlu0 %v4301_v3, %s10493_s19 }
 0x96f   : > { %5111 = vrot.lane.b32.xlu1 %v4754_v32, %s10493_s19  ;;  %5108 = vrot.lane.b32.xlu0 %v4754_v32, %s10495_s11 }
 0x973   : > { %4816 = vrot.lane.b32.xlu1 %v11918_v29, %s10495_s11  ;;  %4813 = vrot.lane.b32.xlu0 %v11918_v29, %s10494_s27 }
 0x977   : > { %4819 = vrot.lane.b32.xlu0 %v11918_v29, %s10493_s19 }
 0x9a4   : > { %v11926_v47 = vpop.f32.mrb[64].mxu1 }
 0x9a5   : > { %v11928_v36 = vpop.f32.mrb[65].mxu1 }
 0x9a6   : > { %v4796_v26 = vpop.f32.mrb[66].mxu1 }
 0x9a7   : > { %v4797_v38 = vpop.f32.mrb[67].mxu1 }
 0x9d9   : > { %v4807_v14 = vpop.permute.xlu1 %4806  ;;  %v4804_v15 = vpop.permute.xlu0 %4803 }
 0x9da   : > { %v4822_v18 = vcombine.low %v4301_v3, %v4807_v14  ;;  %v4823_v59 = vcombine.high %v4301_v3, %v4807_v14 }
 0x9dc   : > { %v4830_v37 = vrot.slane %v4822_v18, %v11245_v19  ;;  %v4837_v50 = vrot.slane %v4823_v59, %v11245_v19  ;;  %v5688_v18 = vpack.c.bf16 %v11896_v57, %v11896_v57  ;;  %v5689_v59 = vpack.c.bf16 %v11898_v9, %v11898_v9 }
 0x9dd   : > { %v5106_v39 = vpop.permute.xlu1 %5105  ;;  %v4810_v62 = vpop.permute.xlu0 %4809 }
 0x9de   : > { %v4838_v54 = vcombine.low %v4804_v15, %v4810_v62  ;;  %v4839_v58 = vcombine.high %v4804_v15, %v4810_v62 }
 0x9e0   : > { %v4846_v41 = vrot.slane %v4838_v54, %v11245_v19  ;;  %v4853_v42 = vrot.slane %v4839_v58, %v11245_v19 }
 0x9e1   : > { %v5112_v43 = vpop.permute.xlu1 %5111  ;;  %v5109_v44 = vpop.permute.xlu0 %5108 }
 0x9e2   : > { %v4886_v45 = vcombine.low %v4830_v37, %v4846_v41  ;;  %v4887_v60 = vcombine.high %v4830_v37, %v4846_v41  ;;  %v4902_v10 = vcombine.low %v4837_v50, %v4853_v42  ;;  %v4903_v61 = vcombine.high %v4837_v50, %v4853_v42 }
 0x9e3   : > { %v5162_v49 = vcombine.low %v5106_v39, %v5112_v43  ;;  %v5163_v51 = vcombine.high %v5106_v39, %v5112_v43  ;;  %v5146_v2 = vcombine.low %v4754_v32, %v5109_v44  ;;  %v5147_v52 = vcombine.high %v4754_v32, %v5109_v44 }
 0x9e4   : > { %v4894_v20 = vrot.slane %v4886_v45, %v11252_v17  ;;  %v4901_v35 = vrot.slane %v4887_v60, %v11252_v17  ;;  %v4910_v53 = vrot.slane %v4902_v10, %v11252_v17  ;;  %v4917_v22 = vrot.slane %v4903_v61, %v11252_v17 }
 0x9e5   : > { %v5170_v55 = vrot.slane %v5162_v49, %v11245_v19  ;;  %v5177_v34 = vrot.slane %v5163_v51, %v11245_v19  ;;  %v5154_v56 = vrot.slane %v5146_v2, %v11245_v19  ;;  %v5161_v7 = vrot.slane %v5147_v52, %v11245_v19  ;;  %v4814_v1 = vpop.permute.xlu0 %4813  ;;  %v4817_v26 = vpop.permute.xlu1 %4816 }
 0x9e6   : > { %v8881_v31 = vcombine.low %v4894_v20, %v4901_v35  ;;  %v8883_v21 = vcombine.high %v4894_v20, %v4901_v35  ;;  %v8885_v4 = vcombine.low %v4910_v53, %v4917_v22  ;;  %v8887_v0 = vcombine.high %v4910_v53, %v4917_v22 }
 0x9e7   : > { %v5210_v30 = vcombine.low %v5154_v56, %v5170_v55  ;;  %v5211_v8 = vcombine.high %v5154_v56, %v5170_v55  ;;  %v5226_v6 = vcombine.low %v5161_v7, %v5177_v34  ;;  %v5227_v24 = vcombine.high %v5161_v7, %v5177_v34 }
 0x9e8   : > { %v4966_v40 = vrot.slane %v8881_v31, %v11245_v19  ;;  %v4982_v28 = vrot.slane %v8883_v21, %v11245_v19  ;;  %v4998_v3 = vrot.slane %v8885_v4, %v11245_v19  ;;  %v5014_v16 = vrot.slane %v8887_v0, %v11245_v19 }
 0x9e9   : > { %v5218_v5 = vrot.slane %v5210_v30, %v11252_v17  ;;  %v5225_v23 = vrot.slane %v5211_v8, %v11252_v17  ;;  %v5234_v32 = vrot.slane %v5226_v6, %v11252_v17  ;;  %v5241_v12 = vrot.slane %v5227_v24, %v11252_v17  ;;  %v4820_v38 = vpop.permute.xlu0 %4819 }
 0x9ea   : > { %v5022_v14 = vcombine.low %v4966_v40, %v4982_v28  ;;  %v5023_v15 = vcombine.high %v4966_v40, %v4982_v28  ;;  %v5054_v39 = vcombine.low %v4998_v3, %v5014_v16  ;;  %v5055_v62 = vcombine.high %v4998_v3, %v5014_v16 }
 0x9eb   : > { %v8890_v54 = vcombine.low %v5218_v5, %v5225_v23  ;;  %v8892_v58 = vcombine.high %v5218_v5, %v5225_v23  ;;  %v4854_v37 = vcombine.low %v11918_v29, %v4817_v26  ;;  %v4855_v50 = vcombine.high %v11918_v29, %v4817_v26 }
 0x9ec   : > { %v4870_v41 = vcombine.low %v4814_v1, %v4820_v38  ;;  %v4871_v42 = vcombine.high %v4814_v1, %v4820_v38  ;;  %v8894_v45 = vcombine.low %v5234_v32, %v5241_v12  ;;  %v8896_v60 = vcombine.high %v5234_v32, %v5241_v12 }
 0x9ed   : > { %v5265_v43 = vrot.slane %v8890_v54, %v11245_v19  ;;  %v5281_v44 = vrot.slane %v8892_v58, %v11245_v19  ;;  %v4862_v57 = vrot.slane %v4854_v37, %v11245_v19  ;;  %v4869_v9 = vrot.slane %v4855_v50, %v11245_v19 }
 0x9ee   : > { %v4878_v10 = vrot.slane %v4870_v41, %v11245_v19  ;;  %v4885_v61 = vrot.slane %v4871_v42, %v11245_v19  ;;  %v5030_v49 = vrot.slane %v5022_v14, %v11252_v17  ;;  %v5062_v29 = vrot.slane %v5054_v39, %v11252_v17 }
 0x9ef   : > { %v5037_v51 = vrot.slane %v5023_v15, %v11252_v17  ;;  %v5069_v2 = vrot.slane %v5055_v62, %v11252_v17  ;;  %v5297_v22 = vrot.slane %v8894_v45, %v11245_v19  ;;  %v5313_v55 = vrot.slane %v8896_v60, %v11245_v19 }
 0x9f0   : > { %v4918_v52 = vcombine.low %v4862_v57, %v4878_v10  ;;  %v4919_v20 = vcombine.high %v4862_v57, %v4878_v10  ;;  %v4934_v35 = vcombine.low %v4869_v9, %v4885_v61  ;;  %v4935_v53 = vcombine.high %v4869_v9, %v4885_v61 }
 0x9f1   : > { %v5086_v34 = vcombine.low %v5030_v49, %v5062_v29  ;;  %v5087_v56 = vcombine.high %v5030_v49, %v5062_v29  ;;  %v5790_v30 = vsel %vm2603_vm2, %v5688_v18, 0  ;;  %v5088_v8 = vcombine.low %v5037_v51, %v5069_v2 }
 0x9f2   : > { %v4926_v7 = vrot.slane %v4918_v52, %v11252_v17  ;;  %v4933_v1 = vrot.slane %v4919_v20, %v11252_v17  ;;  %v4942_v31 = vrot.slane %v4934_v35, %v11252_v17  ;;  %v4949_v21 = vrot.slane %v4935_v53, %v11252_v17 }
 0x9f3   : > { %v5678_v4 = vpack.c.bf16 %v5086_v34, %v5086_v34  ;;  %v5679_v0 = vpack.c.bf16 %v5087_v56, %v5087_v56  ;;  %v5836_v3 = vsel %vm2603_vm2, %v5689_v59, 0  ;;  %v5330_v16 = vcombine.low %v5265_v43, %v5281_v44 }
 0x9f4   : > { %v8882_v6 = vcombine.low %v4926_v7, %v4933_v1  ;;  %v8884_v24 = vcombine.high %v4926_v7, %v4933_v1  ;;  %v8886_v40 = vcombine.low %v4942_v31, %v4949_v21  ;;  %v8888_v28 = vcombine.high %v4942_v31, %v4949_v21 }
 0x9f5   : > { %9301 = vmatmul.mubr.msk.bf16.vlgmr.msra.gmra.mrb[24].mxu0 %vm2603_vm2, %v5678_v4  ;;  %9307 = vmatmul.mubr.msk.bf16.vlgmr.msra.gmra.mrb[68].mxu1 %vm2603_vm2, %v5679_v0  ;;  %v5362_v5 = vcombine.low %v5297_v22, %v5313_v55  ;;  %v5331_v23 = vcombine.high %v5265_v43, %v5281_v44  ;;  %v5338_v14 = vrot.slane %v5330_v16, %v11252_v17  ;;  %v4799_v4 = vld [vmem:[%s957_s26] sm:$0x1] }
 0x9f6   : > { %v4973_v32 = vrot.slane %v8882_v6, %v11245_v19  ;;  %v4989_v12 = vrot.slane %v8884_v24, %v11245_v19  ;;  %v5005_v26 = vrot.slane %v8886_v40, %v11245_v19  ;;  %v5021_v38 = vrot.slane %v8888_v28, %v11245_v19  ;;  %9311 = vmatpush3.bf16.xpose.msra.mxu0 %v5790_v30 }
 0x9f7   : > { %9317 = vmatpush3.bf16.xpose.msra.mxu1 %v5836_v3  ;;  %9312 = vmatprep.mubr.msk.bf16.mxu0 %vm10496_vm1, %v10492_v46  ;;  %v5370_v15 = vrot.slane %v5362_v5, %v11252_v17  ;;  %v5089_v39 = vcombine.high %v5037_v51, %v5069_v2  ;;  %v5345_v62 = vrot.slane %v5331_v23, %v11252_v17  ;;  %v8880_v0 = vadd.f32 -1.0, %v4799_v4 }
 0x9f8   : > { %v5038_v18 = vcombine.low %v4973_v32, %v4989_v12  ;;  %v5070_v59 = vcombine.low %v5005_v26, %v5021_v38  ;;  %9318 = vmatprep.mubr.msk.bf16.mxu1 %vm10496_vm1, %v10492_v46  ;;  %9322 = vmatprep.subr.bf16.mxu0 %v10492_v46  ;;  %v5363_v37 = vcombine.high %v5297_v22, %v5313_v55 }
 0x9f9   : > { %9328 = vmatprep.subr.bf16.mxu1 %v10492_v46  ;;  %v5382_v54 = vcombine.low %v5338_v14, %v5370_v15  ;;  %v5383_v58 = vcombine.high %v5338_v14, %v5370_v15  ;;  %v5680_v50 = vpack.c.bf16 %v5088_v8, %v5088_v8  ;;  %v5681_v60 = vpack.c.bf16 %v5089_v39, %v5089_v39 }
 0x9fa   : > { %v5046_v41 = vrot.slane %v5038_v18, %v11252_v17  ;;  %v5078_v44 = vrot.slane %v5070_v59, %v11252_v17  ;;  %v5377_v45 = vrot.slane %v5363_v37, %v11252_v17  ;;  %v5039_v49 = vcombine.high %v4973_v32, %v4989_v12 }
 0x9fb   : > { %v5690_v42 = vpack.c.bf16 %v5382_v54, %v5382_v54  ;;  %v5691_v43 = vpack.c.bf16 %v5383_v58, %v5383_v58  ;;  %v5071_v29 = vcombine.high %v5005_v26, %v5021_v38  ;;  %v4801_v30 = vmul.f32 1e+10, %v8880_v0 }
 0x9fc   : > { %v5384_v9 = vcombine.low %v5345_v62, %v5377_v45  ;;  %v5385_v61 = vcombine.high %v5345_v62, %v5377_v45  ;;  %v5090_v51 = vcombine.low %v5046_v41, %v5078_v44  ;;  %v5091_v2 = vcombine.high %v5046_v41, %v5078_v44 }
 0x9fd   : > { %9313 = vmatmul.mubr.msk.bf16.vlgmr.msra.gmra.mrb[28].mxu0 %vm2603_vm2, %v5680_v50  ;;  %v5882_v57 = vsel %vm2603_vm2, %v5690_v42, 0  ;;  %v5928_v10 = vsel %vm2603_vm2, %v5691_v43, 0  ;;  %v5053_v53 = vrot.slane %v5039_v49, %v11252_v17  ;;  %v5085_v22 = vrot.slane %v5071_v29, %v11252_v17 }
 0x9fe   : > { %9319 = vmatmul.mubr.msk.bf16.vlgmr.msra.gmra.mrb[72].mxu1 %vm2603_vm2, %v5681_v60  ;;  %9323 = vmatpush3.bf16.xpose.msra.mxu0 %v5882_v57  ;;  %v5692_v52 = vpack.c.bf16 %v5384_v9, %v5384_v9  ;;  %v5693_v20 = vpack.c.bf16 %v5385_v61, %v5385_v61  ;;  %v5682_v35 = vpack.c.bf16 %v5090_v51, %v5090_v51 }
 0x9ff   : > { %9329 = vmatpush3.bf16.xpose.msra.mxu1 %v5928_v10  ;;  %9324 = vmatprep.mubr.msk.bf16.mxu0 %vm10496_vm1, %v10492_v46  ;;  %v5683_v55 = vpack.c.bf16 %v5091_v2, %v5091_v2  ;;  %v5092_v7 = vcombine.low %v5053_v53, %v5085_v22  ;;  %v5093_v1 = vcombine.high %v5053_v53, %v5085_v22 }
 0xa00   : > { %9330 = vmatprep.mubr.msk.bf16.mxu1 %vm10496_vm1, %v10492_v46  ;;  %9334 = vmatprep.subr.bf16.mxu0 %v10492_v46  ;;  %v5974_v34 = vsel %vm2603_vm2, %v5692_v52, 0  ;;  %v6020_v56 = vsel %vm2603_vm2, %v5693_v20, 0  ;;  %v6074_v8 = vrot.slane %v4801_v30, %v11092_v13 }
 0xa01   : > { %9340 = vmatprep.subr.bf16.mxu1 %v10492_v46  ;;  %v5684_v31 = vpack.c.bf16 %v5092_v7, %v5092_v7  ;;  %v5685_v21 = vpack.c.bf16 %v5093_v1, %v5093_v1 }
 0xa05   : > { %9325 = vmatmul.mubr.msk.bf16.vlgmr.msra.gmra.mrb[32].mxu0 %vm2603_vm2, %v5682_v35 }
 0xa06   : > { %9331 = vmatmul.mubr.msk.bf16.vlgmr.msra.gmra.mrb[76].mxu1 %vm2603_vm2, %v5683_v55  ;;  %9335 = vmatpush3.bf16.xpose.msra.mxu0 %v5974_v34 }
 0xa07   : > { %9341 = vmatpush3.bf16.xpose.msra.mxu1 %v6020_v56  ;;  %9336 = vmatprep.mubr.msk.bf16.mxu0 %vm10496_vm1, %v10492_v46 }
 0xa08   : > { %9342 = vmatprep.mubr.msk.bf16.mxu1 %vm10496_vm1, %v10492_v46  ;;  %9346 = vmatprep.subr.bf16.mxu0 %v10492_v46 }
 0xa09   : > { %9352 = vmatprep.subr.bf16.mxu1 %v10492_v46 }
 0xa0d   : > { %9337 = vmatmul.mubr.msk.bf16.vlgmr.msra.gmra.mrb[36].mxu0 %vm2603_vm2, %v5684_v31 }
 0xa0e   : > { %9343 = vmatmul.mubr.msk.bf16.vlgmr.msra.gmra.mrb[80].mxu1 %vm2603_vm2, %v5685_v21  ;;  %9348 = vmatprep.mubr.msk.bf16.mxu0 %vm10496_vm1, %v10492_v46 }
 0xa0f   : > { %9354 = vmatprep.mubr.msk.bf16.mxu1 %vm10496_vm1, %v10492_v46 }
 0xac8   : > { %v5734_v6 = vpop.f32.mrb[24].mxu0  ;;  %v5780_v24 = vpop.f32.mrb[68].mxu1 }
 0xac9   : > { %v6062_v40 = vmul.f32 0.17677669, %v5734_v6  ;;  %v6063_v28 = vmul.f32 0.17677669, %v5780_v24  ;;  %v9302_v3 = vpop.f32.mrb[25].mxu0  ;;  %v9308_v16 = vpop.f32.mrb[69].mxu1 }
 0xaca   : > { %v5737_v5 = vpop.f32.mrb[26].mxu0  ;;  %v5783_v23 = vpop.f32.mrb[70].mxu1  ;;  %v4388_v3 = vrot.slane %v11748_v33, %v11084_v11 }
 0xacb   : > { %v9303_v32 = vpop.f32.mrb[27].mxu0  ;;  %v9309_v12 = vpop.f32.mrb[71].mxu1  ;;  %v12025_v26 = vadd.f32 %v6074_v8, %v6063_v28  ;;  %v12027_v38 = vadd.f32 %v6074_v8, %v6062_v40 }
 0xacc   : > { %v4793_v16 = vadd.f32 %v11926_v47, %v4388_v3 }
 0xacd   : > { %v6087_v14 = vsel %vm2988_vm3, %v12025_v26, -inf  ;;  %v6084_v15 = vsel %vm2988_vm3, %v12027_v38, -inf }
 0xace   : > { %6088 = vmax.xlane.f32.xlu0 %v6087_v14  ;;  %6085 = vmax.xlane.f32.xlu1 %v6084_v15 }
 0xad0   : > { %v5826_v18 = vpop.f32.mrb[28].mxu0 }
 0xad1   : > { %v6064_v59 = vmul.f32 0.17677669, %v5826_v18  ;;  %v5872_v39 = vpop.f32.mrb[72].mxu1  ;;  %v9314_v62 = vpop.f32.mrb[29].mxu0 }
 0xad2   : > { %v6065_v54 = vmul.f32 0.17677669, %v5872_v39  ;;  %v9320_v58 = vpop.f32.mrb[73].mxu1  ;;  %v5829_v37 = vpop.f32.mrb[30].mxu0 }
 0xad3   : > { %v5875_v50 = vpop.f32.mrb[74].mxu1  ;;  %v9315_v41 = vpop.f32.mrb[31].mxu0  ;;  %v6078_v42 = vadd.f32 %v6074_v8, %v6064_v59 }
 0xad4   : > { %v9321_v43 = vpop.f32.mrb[75].mxu1  ;;  %v6079_v44 = vadd.f32 %v6074_v8, %v6065_v54 }
 0xad5   : > { %v6090_v45 = vsel %vm2988_vm3, %v6078_v42, -inf }
 0xad6   : > { %v6093_v60 = vsel %vm2988_vm3, %v6079_v44, -inf  ;;  %6091 = vmax.xlane.f32.xlu0 %v6090_v45 }
 0xad7   : > { %6094 = vmax.xlane.f32.xlu1 %v6093_v60 }
 0xad8   : > { %v5918_v57 = vpop.f32.mrb[32].mxu0 }
 0xad9   : > { %v6066_v9 = vmul.f32 0.17677669, %v5918_v57  ;;  %v5964_v10 = vpop.f32.mrb[76].mxu1  ;;  %v9326_v61 = vpop.f32.mrb[33].mxu0 }
 0xada   : > { %v6067_v49 = vmul.f32 0.17677669, %v5964_v10  ;;  %v9332_v29 = vpop.f32.mrb[77].mxu1  ;;  %v5921_v51 = vpop.f32.mrb[34].mxu0 }
 0xadb   : > { %v5967_v2 = vpop.f32.mrb[78].mxu1  ;;  %v9327_v52 = vpop.f32.mrb[35].mxu0  ;;  %v6080_v20 = vadd.f32 %v6074_v8, %v6066_v9 }
 0xadc   : > { %v9333_v35 = vpop.f32.mrb[79].mxu1  ;;  %v6081_v53 = vadd.f32 %v6074_v8, %v6067_v49 }
 0xadd   : > { %v6096_v22 = vsel %vm2988_vm3, %v6080_v20, -inf }
 0xade   : > { %v6099_v55 = vsel %vm2988_vm3, %v6081_v53, -inf  ;;  %6097 = vmax.xlane.f32.xlu0 %v6096_v22 }
 0xadf   : > { %6100 = vmax.xlane.f32.xlu1 %v6099_v55 }
 0xae0   : > { %v6010_v34 = vpop.f32.mrb[36].mxu0 }
 0xae1   : > { %v6068_v56 = vmul.f32 0.17677669, %v6010_v34  ;;  %v6056_v7 = vpop.f32.mrb[80].mxu1  ;;  %v9338_v1 = vpop.f32.mrb[37].mxu0 }
 0xae2   : > { %v6069_v31 = vmul.f32 0.17677669, %v6056_v7  ;;  %v9344_v21 = vpop.f32.mrb[81].mxu1  ;;  %v6013_v4 = vpop.f32.mrb[38].mxu0 }
 0xae3   : > { %v6059_v0 = vpop.f32.mrb[82].mxu1  ;;  %v9339_v30 = vpop.f32.mrb[39].mxu0  ;;  %v12037_v6 = vadd.f32 %v6074_v8, %v6068_v56 }
 0xae4   : > { %v9345_v24 = vpop.f32.mrb[83].mxu1  ;;  %v12039_v40 = vadd.f32 %v6074_v8, %v6069_v31  ;;  %v4392_v8 = vrot.slane %v11748_v33, %v11107_v25 }
 0xae5   : > { %v6102_v28 = vsel %vm2988_vm3, %v12037_v6, -inf }
 0xae6   : > { %6103 = vmax.xlane.f32.xlu0 %v6102_v28  ;;  %v6105_v5 = vsel %vm2988_vm3, %v12039_v40, -inf  ;;  %v12054_v23 = vadd.f32 %v11928_v36, %v4392_v8 }
 0xaf0   : > { %5390 = vrot.lane.b32.xlu1 %v4793_v16, %s10495_s11 }
 0xaf4   : > { %5393 = vrot.lane.b32.xlu1 %v4793_v16, %s10493_s19 }
 0xafc   : > { %5387 = vrot.lane.b32.xlu0 %v4793_v16, %s10494_s27 }
 0xb18   : > { %6106 = vmax.xlane.f32.xlu1 %v6105_v5 }
 0xb29   : > { %5397 = vrot.lane.b32.xlu1 %v12054_v23, %s10494_s27 }
 0xb5b   : > { %v6086_v47 = vpop.xlane.xlu1 %6085  ;;  %v6089_v32 = vpop.xlane.xlu0 %6088 }
 0xb5c   : > { %v6108_v12 = vsub.f32 %v12027_v38, %v6086_v47  ;;  %v6109_v14 = vsub.f32 %v12025_v26, %v6089_v32 }
 0xb5e   : > { %v6116_v15 = vmul.f32 1.442695, %v6108_v12  ;;  %v6118_v18 = vmul.f32 1.442695, %v6109_v14 }
 0xb60   : > { %10166 = vpow2.f32 %v6116_v15 }
 0xb61   : > { %10168 = vpow2.f32 %v6118_v18 }
 0xb63   : > { %v6092_v59 = vpop.xlane.xlu0 %6091 }
 0xb64   : > { %v6095_v39 = vpop.xlane.xlu1 %6094  ;;  %v6110_v62 = vsub.f32 %v6078_v42, %v6092_v59 }
 0xb65   : > { %v6111_v33 = vsub.f32 %v6079_v44, %v6095_v39 }
 0xb66   : > { %v6120_v54 = vmul.f32 1.442695, %v6110_v62 }
 0xb67   : > { %v6122_v36 = vmul.f32 1.442695, %v6111_v33 }
 0xb68   : > { %10170 = vpow2.f32 %v6120_v54 }
 0xb69   : > { %10172 = vpow2.f32 %v6122_v36 }
 0xb6a   : > { %v12060_v58 = vpop.eup %10166 }
 0xb6b   : > { %v12062_v37 = vpop.eup %10168  ;;  %v6098_v50 = vpop.xlane.xlu0 %6097  ;;  %v6132_v26 = vsel %vm2988_vm3, %v12060_v58, 0.0 }
 0xb6c   : > { %v6101_v38 = vpop.xlane.xlu1 %6100  ;;  %v6112_v41 = vsub.f32 %v6080_v20, %v6098_v50  ;;  %6133 = vadd.xlane.f32.xlu0 %v6132_v26  ;;  %v6135_v43 = vsel %vm2988_vm3, %v12062_v37, 0.0 }
 0xb6d   : > { %v6113_v42 = vsub.f32 %v6081_v53, %v6101_v38  ;;  %6136 = vadd.xlane.f32.xlu1 %v6135_v43 }
 0xb6e   : > { %v6124_v44 = vmul.f32 1.442695, %v6112_v41 }
 0xb6f   : > { %v6126_v45 = vmul.f32 1.442695, %v6113_v42 }
 0xb70   : > { %10174 = vpow2.f32 %v6124_v44  ;;  %v5391_v60 = vpop.permute.xlu1 %5390 }
 0xb71   : > { %10176 = vpow2.f32 %v6126_v45  ;;  %v5406_v29 = vcombine.low %v4793_v16, %v5391_v60  ;;  %v5407_v51 = vcombine.high %v4793_v16, %v5391_v60 }
 0xb72   : > { %v12068_v57 = vpop.eup %10170 }
 0xb73   : > { %v12070_v9 = vpop.eup %10172  ;;  %v6104_v10 = vpop.xlane.xlu0 %6103  ;;  %v6138_v61 = vsel %vm2988_vm3, %v12068_v57, 0.0  ;;  %v5414_v22 = vrot.slane %v5406_v29, %v11245_v19  ;;  %v5421_v55 = vrot.slane %v5407_v51, %v11245_v19 }
 0xb74   : > { %v6141_v49 = vsel %vm2988_vm3, %v12070_v9, 0.0  ;;  %6139 = vadd.xlane.f32.xlu0 %v6138_v61  ;;  %v5394_v2 = vpop.permute.xlu1 %5393 }
 0xb75   : > { %6142 = vadd.xlane.f32.xlu1 %v6141_v49  ;;  %v6114_v49 = vsub.f32 %v12037_v6, %v6104_v10 }
 0xb77   : > { %v5388_v52 = vpop.permute.xlu0 %5387  ;;  %v6128_v29 = vmul.f32 1.442695, %v6114_v49 }
 0xb78   : > { %v5422_v20 = vcombine.low %v5388_v52, %v5394_v2  ;;  %v5423_v35 = vcombine.high %v5388_v52, %v5394_v2 }
 0xb79   : > { %10178 = vpow2.f32 %v6128_v29 }
 0xb7a   : > { %v12076_v53 = vpop.eup %10174  ;;  %v5430_v34 = vrot.slane %v5422_v20, %v11245_v19  ;;  %v5437_v56 = vrot.slane %v5423_v35, %v11245_v19 }
 0xb7b   : > { %v6144_v7 = vsel %vm2988_vm3, %v12076_v53, 0.0  ;;  %v12084_v1 = vpop.eup %10176 }
 0xb7c   : > { %v5470_v31 = vcombine.low %v5414_v22, %v5430_v34  ;;  %v5471_v21 = vcombine.high %v5414_v22, %v5430_v34  ;;  %v5486_v4 = vcombine.low %v5421_v55, %v5437_v56  ;;  %v5487_v0 = vcombine.high %v5421_v55, %v5437_v56  ;;  %6145 = vadd.xlane.f32.xlu0 %v6144_v7 }
 0xb7d   : > { %v6147_v16 = vsel %vm2988_vm3, %v12084_v1, 0.0 }
 0xb7e   : > { %v5478_v30 = vrot.slane %v5470_v31, %v11252_v17  ;;  %v5485_v24 = vrot.slane %v5471_v21, %v11252_v17  ;;  %v5494_v28 = vrot.slane %v5486_v4, %v11252_v17  ;;  %v5501_v3 = vrot.slane %v5487_v0, %v11252_v17 }
 0xb80   : > { %v8897_v5 = vcombine.low %v5478_v30, %v5485_v24  ;;  %v8899_v8 = vcombine.high %v5478_v30, %v5485_v24  ;;  %v8901_v47 = vcombine.low %v5494_v28, %v5501_v3  ;;  %v8903_v32 = vcombine.high %v5494_v28, %v5501_v3  ;;  %6148 = vadd.xlane.f32.xlu0 %v6147_v16 }
 0xb82   : > { %v5550_v12 = vrot.slane %v8897_v5, %v11245_v19  ;;  %v5566_v14 = vrot.slane %v8899_v8, %v11245_v19  ;;  %v5582_v15 = vrot.slane %v8901_v47, %v11245_v19  ;;  %v5598_v18 = vrot.slane %v8903_v32, %v11245_v19 }
 0xb83   : > { %v12109_v2 = vpop.eup %10178 }
 0xb84   : > { %v5606_v59 = vcombine.low %v5550_v12, %v5566_v14  ;;  %v5638_v39 = vcombine.low %v5582_v15, %v5598_v18  ;;  %v5607_v62 = vcombine.high %v5550_v12, %v5566_v14  ;;  %v5639_v33 = vcombine.high %v5582_v15, %v5598_v18 }
 0xb85   : > { %v6150_v35 = vsel %vm2988_vm3, %v12109_v2, 0.0 }
 0xb86   : > { %5403 = vrot.lane.b32.xlu1 %v12054_v23, %s10493_s19  ;;  %v5614_v54 = vrot.slane %v5606_v59, %v11252_v17  ;;  %v5646_v36 = vrot.slane %v5638_v39, %v11252_v17  ;;  %v5621_v50 = vrot.slane %v5607_v62, %v11252_v17  ;;  %v5653_v26 = vrot.slane %v5639_v33, %v11252_v17 }
 0xb88   : > { %v5670_v38 = vcombine.low %v5614_v54, %v5646_v36  ;;  %v5671_v41 = vcombine.high %v5614_v54, %v5646_v36  ;;  %v5672_v43 = vcombine.low %v5621_v50, %v5653_v26  ;;  %v5673_v42 = vcombine.high %v5621_v50, %v5653_v26 }
 0xb8a   : > { %v6180_v44 = vpack.c.bf16 %v5670_v38, %v5670_v38  ;;  %v6181_v45 = vpack.c.bf16 %v5671_v41, %v5671_v41  ;;  %v6182_v4 = vpack.c.bf16 %v5672_v43, %v5672_v43  ;;  %v6183_v30 = vpack.c.bf16 %v5673_v42, %v5673_v42 }
 0xb8c   : > { %v6192_v60 = vsel %vm3096_vm4, %v6180_v44, 0  ;;  %v6238_v61 = vsel %vm3096_vm4, %v6181_v45, 0  ;;  %v6284_v5 = vsel %vm3096_vm4, %v6182_v4, 0 }
 0xb8d   : > { %9347 = vmatpush3.bf16.msra.mxu0 %v6192_v60  ;;  %9353 = vmatpush3.bf16.msra.mxu1 %v6238_v61 }
 0xb8e   : > { %9358 = vmatprep.subr.bf16.mxu0 %v10492_v46  ;;  %9364 = vmatprep.subr.bf16.mxu1 %v10492_v46 }
 0xb96   : > { %5400 = vrot.lane.b32.xlu0 %v12054_v23, %s10495_s11 }
 0xba5   : > { %v6107_v51 = vpop.xlane.xlu1 %6106 }
 0xba6   : > { %v6115_v52 = vsub.f32 %v12039_v40, %v6107_v51 }
 0xba8   : > { %v6130_v20 = vmul.f32 1.442695, %v6115_v52 }
 0xba9   : > { %v5398_v10 = vpop.permute.xlu1 %5397 }
 0xbaa   : > { %10180 = vpow2.f32 %v6130_v20  ;;  %6151 = vadd.xlane.f32.xlu1 %v6150_v35 }
 0xbb4   : > { %v12114_v22 = vpop.eup %10180 }
 0xbb5   : > { %v6153_v6 = vsel %vm2988_vm3, %v12114_v22, 0.0 }
 0xbb6   : > { %6154 = vadd.xlane.f32.xlu0 %v6153_v6 }
 0xbf9   : > { %v6134_v55 = vpop.xlane.xlu0 %6133 }
 0xbfa   : > { %v6137_v34 = vpop.xlane.xlu1 %6136  ;;  %10182 = vrcp.f32 %v6134_v55 }
 0xbfb   : > { %10184 = vrcp.f32 %v6137_v34 }
 0xc01   : > { %v6140_v40 = vpop.xlane.xlu0 %6139 }
 0xc02   : > { %v6143_v56 = vpop.xlane.xlu1 %6142  ;;  %10186 = vrcp.f32 %v6140_v40 }
 0xc03   : > { %10188 = vrcp.f32 %v6143_v56 }
 0xc04   : > { %v10183_v7 = vpop.eup %10182 }
 0xc05   : > { %v10185_v31 = vpop.eup %10184  ;;  %v6157_v21 = vmul.f32 %v10183_v7, %v12060_v58 }
 0xc06   : > { %v6159_v0 = vmul.f32 %v10185_v31, %v12062_v37  ;;  %v6330_v37 = vsel %vm3096_vm4, %v6183_v30, 0  ;;  %v5404_v12 = vpop.permute.xlu1 %5403 }
 0xc07   : > { %v7151_v24 = vsel %vm2988_vm3, %v6157_v21, 0.0  ;;  %v6172_v28 = vpack.c.bf16 %v6157_v21, %v6157_v21  ;;  %v5454_v62 = vcombine.low %v5398_v10, %v5404_v12  ;;  %v5455_v33 = vcombine.high %v5398_v10, %v5404_v12 }
 0xc08   : > { %v7152_v3 = vsel %vm2988_vm3, %v6159_v0, 0.0  ;;  %v6173_v16 = vpack.c.bf16 %v6159_v0, %v6159_v0  ;;  %7159 = vst [vmem:[%s12126_s3] sm:$0xff] %v7151_v24 }
 0xc09   : > { %9349 = vmatmul.mubr.msk.bf16.vlgmr.msra.gmra.mrb[40].mxu0 %vm2988_vm3, %v6172_v28  ;;  %v6146_v58 = vpop.xlane.xlu0 %6145  ;;  %7160 = vst [vmem:[%s12126_s3 + $0x8] sm:$0xff] %v7152_v3  ;;  %v5462_v26 = vrot.slane %v5454_v62, %v11245_v19  ;;  %v5469_v38 = vrot.slane %v5455_v33, %v11245_v19 }
 0xc0a   : > { %9355 = vmatmul.mubr.msk.bf16.vlgmr.msra.gmra.mrb[84].mxu1 %vm2988_vm3, %v6173_v16  ;;  %9359 = vmatpush3.bf16.msra.mxu0 %v6284_v5  ;;  %10190 = vrcp.f32 %v6146_v58 }
 0xc0b   : > { %9365 = vmatpush3.bf16.msra.mxu1 %v6330_v37  ;;  %9360 = vmatprep.mubr.msk.bf16.mxu0 %vm10496_vm1, %v10492_v46 }
 0xc0c   : > { %v10187_v8 = vpop.eup %10186  ;;  %9366 = vmatprep.mubr.msk.bf16.mxu1 %vm10496_vm1, %v10492_v46  ;;  %9370 = vmatprep.subr.bf16.mxu0 %v10492_v46 }
 0xc0d   : > { %v10189_v47 = vpop.eup %10188  ;;  %v6161_v32 = vmul.f32 %v10187_v8, %v12068_v57  ;;  %v6149_v14 = vpop.xlane.xlu0 %6148  ;;  %9376 = vmatprep.subr.bf16.mxu1 %v10492_v46 }
 0xc0e   : > { %v6163_v15 = vmul.f32 %v10189_v47, %v12070_v9  ;;  %10192 = vrcp.f32 %v6149_v14 }
 0xc0f   : > { %v7153_v18 = vsel %vm2988_vm3, %v6161_v32, 0.0  ;;  %v6174_v59 = vpack.c.bf16 %v6161_v32, %v6161_v32 }
 0xc10   : > { %v7154_v39 = vsel %vm2988_vm3, %v6163_v15, 0.0  ;;  %v6175_v54 = vpack.c.bf16 %v6163_v15, %v6163_v15  ;;  %7161 = vst [vmem:[%s12126_s3 + $0x10] sm:$0xff] %v7153_v18 }
 0xc11   : > { %9361 = vmatmul.mubr.msk.bf16.vlgmr.msra.gmra.mrb[44].mxu0 %vm2988_vm3, %v6174_v59  ;;  %v5401_v36 = vpop.permute.xlu0 %5400  ;;  %7162 = vst [vmem:[%s12126_s3 + $0x18] sm:$0xff] %v7154_v39 }
 0xc12   : > { %9367 = vmatmul.mubr.msk.bf16.vlgmr.msra.gmra.mrb[88].mxu1 %vm2988_vm3, %v6175_v54  ;;  %v5438_v57 = vcombine.low %v12054_v23, %v5401_v36  ;;  %v5439_v9 = vcombine.high %v12054_v23, %v5401_v36  ;;  %9372 = vmatprep.mubr.msk.bf16.mxu0 %vm10496_vm1, %v10492_v46 }
 0xc13   : > { %9378 = vmatprep.mubr.msk.bf16.mxu1 %vm10496_vm1, %v10492_v46 }
 0xc14   : > { %v10191_v50 = vpop.eup %10190  ;;  %v5446_v41 = vrot.slane %v5438_v57, %v11245_v19  ;;  %v5453_v43 = vrot.slane %v5439_v9, %v11245_v19 }
 0xc15   : > { %v6165_v42 = vmul.f32 %v10191_v50, %v12076_v53 }
 0xc16   : > { %v5502_v44 = vcombine.low %v5446_v41, %v5462_v26  ;;  %v5503_v23 = vcombine.high %v5446_v41, %v5462_v26  ;;  %v5518_v45 = vcombine.low %v5453_v43, %v5469_v38  ;;  %v5519_v60 = vcombine.high %v5453_v43, %v5469_v38 }
 0xc17   : > { %v7155_v61 = vsel %vm2988_vm3, %v6165_v42, 0.0  ;;  %v6176_v18 = vpack.c.bf16 %v6165_v42, %v6165_v42  ;;  %v9878_v42 = vld [vmem:[#allocation7 + $0x4] ss:$8 sps:$4 sm:$0xff]  }
 0xc18   : > { %v10193_v49 = vpop.eup %10192  ;;  %v5510_v29 = vrot.slane %v5502_v44, %v11252_v17  ;;  %v5517_v51 = vrot.slane %v5503_v23, %v11252_v17  ;;  %v5526_v52 = vrot.slane %v5518_v45, %v11252_v17  ;;  %v5533_v20 = vrot.slane %v5519_v60, %v11252_v17  ;;  %7163 = vst [vmem:[%s12126_s3 + $0x20] sm:$0xff] %v7155_v61  ;;  %v9879_v44 = vld [vmem:[#allocation7 + $0x10] ss:$8 sps:$4 sm:$0xff]   ;;  %v9884_v23 = vld [vmem:[#allocation7 + $0x24] ss:$8 sps:$4 sm:$0xff]  }
 0xc19   : > { %v6167_v35 = vmul.f32 %v10193_v49, %v12084_v1  ;;  %v9882_v45 = vld [vmem:[#allocation7 + $0x20] ss:$8 sps:$4 sm:$0xff]   ;;  %v9887_v60 = vld [vmem:[#allocation7 + $0x34] ss:$8 sps:$4 sm:$0xff]   ;;  %v9890_v61 = vld [vmem:[#allocation7 + $0x44] ss:$8 sps:$4 sm:$0xff]  }
 0xc1a   : > { %v8898_v53 = vcombine.low %v5510_v29, %v5517_v51  ;;  %v8900_v6 = vcombine.high %v5510_v29, %v5517_v51  ;;  %v8902_v10 = vcombine.low %v5526_v52, %v5533_v20  ;;  %v8904_v55 = vcombine.high %v5526_v52, %v5533_v20  ;;  %v9888_v49 = vld [vmem:[#allocation7 + $0x40] ss:$8 sps:$4 sm:$0xff]   ;;  %v9893_v29 = vld [vmem:[#allocation7 + $0x54] ss:$8 sps:$4 sm:$0xff]   ;;  %v9891_v51 = vld [vmem:[#allocation7 + $0x50] ss:$8 sps:$4 sm:$0xff]  }
 0xc1b   : > { %v7156_v34 = vsel %vm2988_vm3, %v6167_v35, 0.0  ;;  %v6177_v59 = vpack.c.bf16 %v6167_v35, %v6167_v35  ;;  %v9896_v52 = vld [vmem:[#allocation7 + $0x64] ss:$8 sps:$4 sm:$0xff]   ;;  %v9894_v20 = vld [vmem:[#allocation7 + $0x60] ss:$8 sps:$4 sm:$0xff]  }
 0xc1c   : > { %v5557_v40 = vrot.slane %v8898_v53, %v11245_v19  ;;  %v5573_v56 = vrot.slane %v8900_v6, %v11245_v19  ;;  %v5589_v7 = vrot.slane %v8902_v10, %v11245_v19  ;;  %v5605_v31 = vrot.slane %v8904_v55, %v11245_v19  ;;  %7164 = vst [vmem:[%s12126_s3 + $0x28] sm:$0xff] %v7156_v34  ;;  %v9899_v35 = vld [vmem:[#allocation7 + $0x74] ss:$8 sps:$4 sm:$0xff]   ;;  %v9897_v53 = vld [vmem:[#allocation7 + $0x70] ss:$8 sps:$4 sm:$0xff]  }
 0xc1d   : > { %v9902_v6 = vld [vmem:[#allocation7 + $0x84] ss:$8 sps:$4 sm:$0xff]  }
 0xc1e   : > { %v5622_v21 = vcombine.low %v5557_v40, %v5573_v56  ;;  %v5654_v4 = vcombine.low %v5589_v7, %v5605_v31  ;;  %v5623_v0 = vcombine.high %v5557_v40, %v5573_v56  ;;  %v5655_v30 = vcombine.high %v5589_v7, %v5605_v31  ;;  %v9900_v7 = vld [vmem:[#allocation7 + $0x80] ss:$8 sps:$4 sm:$0xff]  }
 0xc20   : > { %v5630_v1 = vrot.slane %v5622_v21, %v11252_v17  ;;  %v5662_v24 = vrot.slane %v5654_v4, %v11252_v17  ;;  %v5637_v28 = vrot.slane %v5623_v0, %v11252_v17  ;;  %v5669_v3 = vrot.slane %v5655_v30, %v11252_v17  ;;  %v9905_v4 = vld [vmem:[#allocation7 + $0x94] ss:$8 sps:$4 sm:$0xff]   ;;  %v9903_v30 = vld [vmem:[#allocation7 + $0x90] ss:$8 sps:$4 sm:$0xff]  }
 0xc22   : > { %v5674_v16 = vcombine.low %v5630_v1, %v5662_v24  ;;  %v5675_v5 = vcombine.high %v5630_v1, %v5662_v24  ;;  %v5676_v58 = vcombine.low %v5637_v28, %v5669_v3  ;;  %v5677_v37 = vcombine.high %v5637_v28, %v5669_v3  ;;  %v9908_v1 = vld [vmem:[#allocation7 + $0xa4] ss:$8 sps:$4 sm:$0xff]  }
 0xc24   : > { %v6184_v8 = vpack.c.bf16 %v5674_v16, %v5674_v16  ;;  %v6185_v47 = vpack.c.bf16 %v5675_v5, %v5675_v5  ;;  %v6186_v14 = vpack.c.bf16 %v5676_v58, %v5676_v58  ;;  %v6187_v15 = vpack.c.bf16 %v5677_v37, %v5677_v37 }
 0xc26   : > { %v6376_v32 = vsel %vm3096_vm4, %v6184_v8, 0  ;;  %v6422_v12 = vsel %vm3096_vm4, %v6185_v47, 0  ;;  %v6468_v39 = vsel %vm3096_vm4, %v6186_v14, 0  ;;  %v6514_v62 = vsel %vm3096_vm4, %v6187_v15, 0 }
 0xc27   : > { %9371 = vmatpush3.bf16.msra.mxu0 %v6376_v32  ;;  %9377 = vmatpush3.bf16.msra.mxu1 %v6422_v12  ;;  %v9906_v32 = vld [vmem:[#allocation7 + $0xa0] ss:$8 sps:$4 sm:$0xff]  }
 0xc28   : > { %9382 = vmatprep.subr.bf16.mxu0 %v10492_v46  ;;  %9388 = vmatprep.subr.bf16.mxu1 %v10492_v46 }
 0xc2a   : > { %9373 = vmatmul.mubr.msk.bf16.vlgmr.msra.gmra.mrb[48].mxu0 %vm2988_vm3, %v6176_v18  ;;  %9379 = vmatmul.mubr.msk.bf16.vlgmr.msra.gmra.mrb[92].mxu1 %vm2988_vm3, %v6177_v59  ;;  %v9911_v59 = vld [vmem:[#allocation7 + $0xb4] ss:$8 sps:$4 sm:$0xff]  }
 0xc2b   : > { %9383 = vmatpush3.bf16.msra.mxu0 %v6468_v39  ;;  %9389 = vmatpush3.bf16.msra.mxu1 %v6514_v62 }
 0xc2c   : > { %9384 = vmatprep.mubr.msk.bf16.mxu0 %vm10496_vm1, %v10492_v46  ;;  %9390 = vmatprep.mubr.msk.bf16.mxu1 %vm10496_vm1, %v10492_v46  ;;  %v9876_v46 = vld [vmem:[#allocation7] ss:$8 sps:$4 sm:$0xff]  }
 0xc2d   : > { %7064 = vmatprep.subr.bf16.mxu0 %v9878_v42 }
 0xc37   : > { %v6152_v33 = vpop.xlane.xlu1 %6151 }
 0xc38   : > { %10194 = vrcp.f32 %v6152_v33 }
 0xc42   : > { %v10195_v54 = vpop.eup %10194 }
 0xc43   : > { %v6169_v36 = vmul.f32 %v10195_v54, %v12109_v2  ;;  %v6155_v57 = vpop.xlane.xlu0 %6154  ;;  %v9881_v2 = vld [vmem:[#allocation7 + $0x14] ss:$8 sps:$4 sm:$0xff]  }
 0xc44   : > { %10196 = vrcp.f32 %v6155_v57 }
 0xc45   : > { %v7157_v9 = vsel %vm2988_vm3, %v6169_v36, 0.0  ;;  %v6178_v50 = vpack.c.bf16 %v6169_v36, %v6169_v36 }
 0xc46   : > { %7165 = vst [vmem:[%s12126_s3 + $0x30] sm:$0xff] %v7157_v9 }
 0xc47   : > { %9385 = vmatmul.mubr.msk.bf16.vlgmr.msra.gmra.mrb[52].mxu0 %vm2988_vm3, %v6178_v50  ;;  %v9909_v50 = vld [vmem:[#allocation7 + $0xb0] ss:$8 sps:$4 sm:$0xff]  }
 0xc48   : > { %7065 = vmatpush1.bf16.msra.mxu0 %v9876_v46 }
 0xc49   : > { %7066 = vmatprep.subr.bf16.mxu0 %v9881_v2 }
 0xc4c   : > { %7067 = vmatpush1.bf16.msra.mxu0 %v9879_v44 }
 0xc4d   : > { %7068 = vmatprep.subr.bf16.mxu0 %v9884_v23 }
 0xc4e   : > { %v10197_v26 = vpop.eup %10196 }
 0xc4f   : > { %v6171_v38 = vmul.f32 %v10197_v26, %v12114_v22  ;;  %v9885_v22 = vld [vmem:[#allocation7 + $0x30] ss:$8 sps:$4 sm:$0xff]   ;;  %v9914_v26 = vld [vmem:[#allocation7 + $0xc4] ss:$8 sps:$4 sm:$0xff]  }
 0xc50   : > { %7069 = vmatpush1.bf16.msra.mxu0 %v9882_v45  ;;  %v9912_v45 = vld [vmem:[#allocation7 + $0xc0] ss:$8 sps:$4 sm:$0xff]  }
 0xc51   : > { %v7158_v41 = vsel %vm2988_vm3, %v6171_v38, 0.0  ;;  %v6179_v43 = vpack.c.bf16 %v6171_v38, %v6171_v38  ;;  %7070 = vmatprep.subr.bf16.mxu0 %v9887_v60  ;;  %v9917_v60 = vld [vmem:[#allocation7 + $0xd4] ss:$8 sps:$4 sm:$0xff]  }
 0xc52   : > { %7166 = vst [vmem:[%s12126_s3 + $0x38] sm:$0xff] %v7158_v41 }
 0xc53   : > { %9391 = vmatmul.mubr.msk.bf16.vlgmr.msra.gmra.mrb[96].mxu1 %vm2988_vm3, %v6179_v43 }
 0xc54   : > { %7071 = vmatpush1.bf16.msra.mxu0 %v9885_v22 }
 0xc55   : > { %7072 = vmatprep.subr.bf16.mxu0 %v9890_v61 }
 0xc58   : > { %7073 = vmatpush1.bf16.msra.mxu0 %v9888_v49 }
 0xc59   : > { %7074 = vmatprep.subr.bf16.mxu0 %v9893_v29 }
 0xc5c   : > { %7075 = vmatpush1.bf16.msra.mxu0 %v9891_v51 }
 0xc5d   : > { %7076 = vmatprep.subr.bf16.mxu0 %v9896_v52 }
 0xc60   : > { %7077 = vmatpush1.bf16.msra.mxu0 %v9894_v20 }
 0xc61   : > { %7078 = vmatprep.subr.bf16.mxu0 %v9899_v35 }
 0xc64   : > { %7079 = vmatpush1.bf16.msra.mxu0 %v9897_v53  ;;  %v9915_v53 = vld [vmem:[#allocation7 + $0xd0] ss:$8 sps:$4 sm:$0xff]  }
 0xc65   : > { %7080 = vmatprep.subr.bf16.mxu0 %v9902_v6 }
 0xc68   : > { %7081 = vmatpush1.bf16.msra.mxu0 %v9900_v7 }
 0xc69   : > { %7082 = vmatprep.subr.bf16.mxu0 %v9905_v4 }
 0xc6c   : > { %7083 = vmatpush1.bf16.msra.mxu0 %v9903_v30 }
 0xc6d   : > { %7084 = vmatprep.subr.bf16.mxu0 %v9908_v1 }
 0xc70   : > { %7085 = vmatpush1.bf16.msra.mxu0 %v9906_v32 }
 0xc71   : > { %7086 = vmatprep.subr.bf16.mxu0 %v9911_v59 }
 0xc74   : > { %7087 = vmatpush1.bf16.msra.mxu0 %v9909_v50 }
 0xc75   : > { %7088 = vmatprep.subr.bf16.mxu0 %v9914_v26 }
 0xc78   : > { %7089 = vmatpush1.bf16.msra.mxu0 %v9912_v45  ;;  %v9920_v45 = vld [vmem:[#allocation7 + $0xe4] ss:$8 sps:$4 sm:$0xff]  }
 0xc79   : > { %7090 = vmatprep.subr.bf16.mxu0 %v9917_v60 }
 0xc7c   : > { %7091 = vmatpush1.bf16.msra.mxu0 %v9915_v53 }
 0xc7d   : > { %7092 = vmatprep.subr.bf16.mxu0 %v9920_v45  ;;  %v9941_v45 = vld [vmem:[%s12857_s18 + $0x4c] ss:$16 sps:$4 sm:$0xff]  }
 0xcdc   : > { %v6228_v10 = vpop.f32.mrb[40].mxu0 }
 0xcdd   : > { %v6274_v55 = vpop.f32.mrb[84].mxu1  ;;  %v9350_v34 = vpop.f32.mrb[41].mxu0 }
 0xcde   : > { %v9356_v40 = vpop.f32.mrb[85].mxu1  ;;  %v6231_v56 = vpop.f32.mrb[42].mxu0 }
 0xcdf   : > { %v6277_v31 = vpop.f32.mrb[86].mxu1  ;;  %v9351_v21 = vpop.f32.mrb[43].mxu0 }
 0xce0   : > { %v9357_v0 = vpop.f32.mrb[87].mxu1 }
 0xce4   : > { %v6320_v24 = vpop.f32.mrb[44].mxu0 }
 0xce5   : > { %v6556_v28 = vcombine.low %v6228_v10, %v6320_v24  ;;  %v6557_v3 = vcombine.high %v6228_v10, %v6320_v24  ;;  %v6366_v16 = vpop.f32.mrb[88].mxu1  ;;  %v9362_v5 = vpop.f32.mrb[45].mxu0 }
 0xce6   : > { %v6572_v58 = vcombine.low %v6274_v55, %v6366_v16  ;;  %v6573_v37 = vcombine.high %v6274_v55, %v6366_v16  ;;  %v9368_v8 = vpop.f32.mrb[89].mxu1  ;;  %v6323_v47 = vpop.f32.mrb[46].mxu0 }
 0xce7   : > { %v6564_v12 = vrot.slane %v6556_v28, %v11245_v19  ;;  %v6571_v14 = vrot.slane %v6557_v3, %v11245_v19  ;;  %v6369_v15 = vpop.f32.mrb[90].mxu1  ;;  %v9363_v18 = vpop.f32.mrb[47].mxu0 }
 0xce8   : > { %v6580_v39 = vrot.slane %v6572_v58, %v11245_v19  ;;  %v6587_v62 = vrot.slane %v6573_v37, %v11245_v19  ;;  %v9369_v33 = vpop.f32.mrb[91].mxu1 }
 0xcea   : > { %v6620_v54 = vcombine.low %v6564_v12, %v6580_v39  ;;  %v6621_v36 = vcombine.high %v6564_v12, %v6580_v39  ;;  %v6636_v57 = vcombine.low %v6571_v14, %v6587_v62  ;;  %v6637_v9 = vcombine.high %v6571_v14, %v6587_v62 }
 0xcec   : > { %v6628_v38 = vrot.slane %v6620_v54, %v11252_v17  ;;  %v6635_v41 = vrot.slane %v6621_v36, %v11252_v17  ;;  %v6644_v43 = vrot.slane %v6636_v57, %v11252_v17  ;;  %v6651_v46 = vrot.slane %v6637_v9, %v11252_v17 }
 0xcee   : > { %v8921_v42 = vcombine.low %v6628_v38, %v6635_v41  ;;  %v8923_v2 = vcombine.high %v6628_v38, %v6635_v41  ;;  %v8925_v44 = vcombine.low %v6644_v43, %v6651_v46  ;;  %v8927_v23 = vcombine.high %v6644_v43, %v6651_v46 }
 0xcf0   : > { %v6700_v22 = vrot.slane %v8921_v42, %v11245_v19  ;;  %v6716_v61 = vrot.slane %v8923_v2, %v11245_v19  ;;  %v6732_v49 = vrot.slane %v8925_v44, %v11245_v19  ;;  %v6748_v29 = vrot.slane %v8927_v23, %v11245_v19  ;;  %v9918_v23 = vld [vmem:[#allocation7 + $0xe0] ss:$8 sps:$4 sm:$0xff]  }
 0xcf1   : > { %7093 = vmatpush1.bf16.msra.mxu0 %v9918_v23  ;;  %v9938_v23 = vld [vmem:[%s12857_s18 + $0x44] ss:$16 sps:$4 sm:$0xff]  }
 0xcf2   : > { %v6757_v51 = vcombine.high %v6700_v22, %v6716_v61  ;;  %v6789_v52 = vcombine.high %v6732_v49, %v6748_v29  ;;  %v6756_v20 = vcombine.low %v6700_v22, %v6716_v61  ;;  %v6788_v35 = vcombine.low %v6732_v49, %v6748_v29 }
 0xcf4   : > { %v12209_v6 = vrot.slane %v6757_v51, %v11252_v17  ;;  %v12212_v10 = vrot.slane %v6789_v52, %v11252_v17  ;;  %v12215_v55 = vrot.slane %v6756_v20, %v11252_v17  ;;  %v12218_v34 = vrot.slane %v6788_v35, %v11252_v17 }
 0xcf6   : > { %v6822_v40 = vcombine.low %v12209_v6, %v12212_v10  ;;  %v6820_v56 = vcombine.low %v12215_v55, %v12218_v34  ;;  %v6821_v7 = vcombine.high %v12215_v55, %v12218_v34  ;;  %v6823_v31 = vcombine.high %v12209_v6, %v12212_v10  ;;  %v6892_v55 = vld [vmem:[%s12854_s15] sm:$0x3] }
 0xcf7   : > { %v6897_v34 = vrot.slane %v6892_v55, %v11092_v13 }
 0xcfd   : > { %v6412_v21 = vpop.f32.mrb[48].mxu0  ;;  %v6458_v4 = vpop.f32.mrb[92].mxu1 }
 0xcfe   : > { %v9374_v0 = vpop.f32.mrb[49].mxu0  ;;  %v9380_v30 = vpop.f32.mrb[93].mxu1 }
 0xcff   : > { %v6415_v1 = vpop.f32.mrb[50].mxu0  ;;  %v6461_v24 = vpop.f32.mrb[94].mxu1  ;;  %v9921_v0 = vld [vmem:[#allocation7 + $0xf0] ss:$8 sps:$4 sm:$0xff]   ;;  %v9923_v30 = vld [vmem:[#allocation7 + $0xf4] ss:$8 sps:$4 sm:$0xff]  }
 0xd00   : > { %v9375_v28 = vpop.f32.mrb[51].mxu0  ;;  %v9381_v3 = vpop.f32.mrb[95].mxu1  ;;  %7094 = vmatprep.subr.bf16.mxu0 %v9923_v30  ;;  %v9957_v30 = vld [vmem:[%s12857_s18 + $0xa8] ss:$16 sps:$4 sm:$0xff]  }
 0xd01   : > { %7095 = vmatpush1.bf16.msra.mxu0 %v9921_v0  ;;  %v9954_v0 = vld [vmem:[%s12857_s18 + $0xa0] ss:$16 sps:$4 sm:$0xff]  }
 0xd1a   : > { %v6504_v16 = vpop.f32.mrb[52].mxu0 }
 0xd1b   : > { %v6588_v5 = vcombine.low %v6412_v21, %v6504_v16  ;;  %v6589_v58 = vcombine.high %v6412_v21, %v6504_v16  ;;  %v9386_v37 = vpop.f32.mrb[53].mxu0 }
 0xd1c   : > { %v6507_v8 = vpop.f32.mrb[54].mxu0 }
 0xd1d   : > { %v9387_v47 = vpop.f32.mrb[55].mxu0  ;;  %v6596_v59 = vrot.slane %v6588_v5, %v11245_v19  ;;  %v6603_v39 = vrot.slane %v6589_v58, %v11245_v19 }
 0xd26   : > { %v6550_v32 = vpop.f32.mrb[96].mxu1 }
 0xd27   : > { %v6604_v12 = vcombine.low %v6458_v4, %v6550_v32  ;;  %v6605_v14 = vcombine.high %v6458_v4, %v6550_v32  ;;  %v9392_v15 = vpop.f32.mrb[97].mxu1 }
 0xd28   : > { %v6553_v18 = vpop.f32.mrb[98].mxu1 }
 0xd29   : > { %v6612_v62 = vrot.slane %v6604_v12, %v11245_v19  ;;  %v6619_v33 = vrot.slane %v6605_v14, %v11245_v19  ;;  %v9393_v54 = vpop.f32.mrb[99].mxu1 }
 0xd2b   : > { %v6652_v36 = vcombine.low %v6596_v59, %v6612_v62  ;;  %v6653_v57 = vcombine.high %v6596_v59, %v6612_v62  ;;  %v6668_v9 = vcombine.low %v6603_v39, %v6619_v33  ;;  %v6669_v50 = vcombine.high %v6603_v39, %v6619_v33 }
 0xd2d   : > { %v6660_v26 = vrot.slane %v6652_v36, %v11252_v17  ;;  %v6667_v38 = vrot.slane %v6653_v57, %v11252_v17  ;;  %v6676_v41 = vrot.slane %v6668_v9, %v11252_v17  ;;  %v6683_v43 = vrot.slane %v6669_v50, %v11252_v17 }
 0xd2f   : > { %v8922_v46 = vcombine.low %v6660_v26, %v6667_v38  ;;  %v8924_v42 = vcombine.high %v6660_v26, %v6667_v38  ;;  %v8926_v2 = vcombine.low %v6676_v41, %v6683_v43  ;;  %v8928_v44 = vcombine.high %v6676_v41, %v6683_v43  ;;  %v9924_v41 = vld [vmem:[%s12857_s18] ss:$16 sps:$4 sm:$0xff]   ;;  %v9926_v43 = vld [vmem:[%s12857_s18 + $0x4] ss:$16 sps:$4 sm:$0xff]  }
 0xd30   : > { %7575 = vmatprep.subr.bf16.mxu1 %v9926_v43  ;;  %v10005_v43 = vld [vmem:[%s12857_s18 + $0x1a8] ss:$16 sps:$4 sm:$0xff]  }
 0xd31   : > { %v6707_v60 = vrot.slane %v8922_v46, %v11245_v19  ;;  %v6723_v22 = vrot.slane %v8924_v42, %v11245_v19  ;;  %v6739_v61 = vrot.slane %v8926_v2, %v11245_v19  ;;  %v6755_v49 = vrot.slane %v8928_v44, %v11245_v19  ;;  %v9932_v46 = vld [vmem:[%s12857_s18 + $0x24] ss:$16 sps:$4 sm:$0xff]   ;;  %v9935_v42 = vld [vmem:[%s12857_s18 + $0x2c] ss:$16 sps:$4 sm:$0xff]   ;;  %7576 = vmatpush1.bf16.msra.mxu1 %v9924_v41  ;;  %v9930_v2 = vld [vmem:[%s12857_s18 + $0x20] ss:$16 sps:$4 sm:$0xff]  }
 0xd32   : > { %7577 = vmatprep.subr.bf16.mxu1 %v9932_v46  ;;  %v9933_v44 = vld [vmem:[%s12857_s18 + $0x28] ss:$16 sps:$4 sm:$0xff]   ;;  %v10002_v41 = vld [vmem:[%s12857_s18 + $0x1a0] ss:$16 sps:$4 sm:$0xff]   ;;  %v10013_v46 = vld [vmem:[%s12857_s18 + $0x1cc] ss:$16 sps:$4 sm:$0xff]  }
 0xd33   : > { %v6773_v29 = vcombine.high %v6707_v60, %v6723_v22  ;;  %v6805_v51 = vcombine.high %v6739_v61, %v6755_v49  ;;  %v6772_v52 = vcombine.low %v6707_v60, %v6723_v22  ;;  %v6804_v20 = vcombine.low %v6739_v61, %v6755_v49  ;;  %v9936_v60 = vld [vmem:[%s12857_s18 + $0x40] ss:$16 sps:$4 sm:$0xff]   ;;  %v9939_v22 = vld [vmem:[%s12857_s18 + $0x48] ss:$16 sps:$4 sm:$0xff]   ;;  %v9944_v61 = vld [vmem:[%s12857_s18 + $0x64] ss:$16 sps:$4 sm:$0xff]  }
 0xd34   : > { %v9947_v49 = vld [vmem:[%s12857_s18 + $0x6c] ss:$16 sps:$4 sm:$0xff]  }
 0xd35   : > { %v6787_v35 = vrot.slane %v6773_v29, %v11252_v17  ;;  %v6819_v53 = vrot.slane %v6805_v51, %v11252_v17  ;;  %v6780_v21 = vrot.slane %v6772_v52, %v11252_v17  ;;  %v6812_v4 = vrot.slane %v6804_v20, %v11252_v17  ;;  %7578 = vmatpush1.bf16.msra.mxu1 %v9930_v2  ;;  %v9942_v29 = vld [vmem:[%s12857_s18 + $0x60] ss:$16 sps:$4 sm:$0xff]   ;;  %v9945_v51 = vld [vmem:[%s12857_s18 + $0x68] ss:$16 sps:$4 sm:$0xff]   ;;  %v9950_v52 = vld [vmem:[%s12857_s18 + $0x84] ss:$16 sps:$4 sm:$0xff]  }
 0xd36   : > { %7579 = vmatprep.subr.bf16.mxu1 %v9938_v23  ;;  %v9953_v20 = vld [vmem:[%s12857_s18 + $0x8c] ss:$16 sps:$4 sm:$0xff]   ;;  %v10011_v2 = vld [vmem:[%s12857_s18 + $0x1c8] ss:$16 sps:$4 sm:$0xff]  }
 0xd37   : > { %v6826_v1 = vcombine.low %v6787_v35, %v6819_v53  ;;  %v6825_v24 = vcombine.high %v6780_v21, %v6812_v4  ;;  %v6824_v28 = vcombine.low %v6780_v21, %v6812_v4  ;;  %v6827_v19 = vcombine.high %v6787_v35, %v6819_v53  ;;  %v9948_v35 = vld [vmem:[%s12857_s18 + $0x80] ss:$16 sps:$4 sm:$0xff]   ;;  %v9951_v53 = vld [vmem:[%s12857_s18 + $0x88] ss:$16 sps:$4 sm:$0xff]   ;;  %v9956_v21 = vld [vmem:[%s12857_s18 + $0xa4] ss:$16 sps:$4 sm:$0xff]  }
 0xd38   : > { %v9959_v4 = vld [vmem:[%s12857_s18 + $0xac] ss:$16 sps:$4 sm:$0xff]  }
 0xd39   : > { %v9530_v3 = vpack.i.bf16 %v6822_v40, %v6826_v1  ;;  %v9525_v16 = vpack.i.bf16 %v6821_v7, %v6825_v24  ;;  %v9535_v17 = vpack.i.bf16 %v6823_v31, %v6827_v19  ;;  %7580 = vmatpush1.bf16.msra.mxu1 %v9936_v60  ;;  %v9962_v1 = vld [vmem:[%s12857_s18 + $0xc4] ss:$16 sps:$4 sm:$0xff]   ;;  %v9965_v24 = vld [vmem:[%s12857_s18 + $0xcc] ss:$16 sps:$4 sm:$0xff]   ;;  %v9963_v19 = vld [vmem:[%s12857_s18 + $0xc8] ss:$16 sps:$4 sm:$0xff]  }
 0xd3a   : > { %7581 = vmatprep.subr.bf16.mxu1 %v9944_v61  ;;  %v10019_v23 = vld [vmem:[%s12857_s18 + $0x1ec] ss:$16 sps:$4 sm:$0xff]   ;;  %v10017_v60 = vld [vmem:[%s12857_s18 + $0x1e8] ss:$16 sps:$4 sm:$0xff]  }
 0xd3b   : > { %9531 = vrot.lane.b32.xlu1 %v9530_v3, %s10495_s11  ;;  %9526 = vrot.lane.b32.xlu0 %v9525_v16, %s10493_s19  ;;  %v9968_v3 = vld [vmem:[%s12857_s18 + $0xe4] ss:$16 sps:$4 sm:$0xff]   ;;  %v9971_v16 = vld [vmem:[%s12857_s18 + $0xec] ss:$16 sps:$4 sm:$0xff]   ;;  %s12944_s19 = sld [smem:[#allocation27_spill]]  ;;  %s9115_s11 = sshll.u32 %s10664_s9, 10 }
 0xd3c   : > { %v10025_v61 = vld [vmem:[%s12859_s20 + $0x104] ss:$8 sps:$4 sm:$0xff]   ;;  %s12762_s28 = scalar_lea.hbm %s12945_s8, %s9115_s11 }
 0xd3d   : > { %7582 = vmatpush1.bf16.msra.mxu1 %v9942_v29 }
 0xd3e   : > { %7583 = vmatprep.subr.bf16.mxu1 %v9950_v52  ;;  %v7107_v52 = vld [vmem:[%s12855_s16] sm:$0x3] }
 0xd3f   : > { %9536 = vrot.lane.b32.xlu1 %v9535_v17, %s10494_s27  ;;  %v9966_v17 = vld [vmem:[%s12857_s18 + $0xe0] ss:$16 sps:$4 sm:$0xff]   ;;  %s8399_s27 = sshll.u32 %s12126_s3, 4  ;;  %s10378_s3 = scalar_lea.vmem %s10377_s2, 2048  ;;  %s12757_s27 = int_to_ptr.vmem [resolvable:$true] %s8399_s27 }
 0xd40   : > { %p10379_p5 = scmp.lt.s32.totalorder %s12757_s27, %s10377_s2 }
 0xd41   : > { %7584 = vmatpush1.bf16.msra.mxu1 %v9948_v35  ;;  %v7129_v35 = vrot.slane %v7107_v52, %v11092_v13  ;;  %p12947_p1 = scmp.ne.s32.totalorder %s12944_s19, 0 }
 0xd42   : > { %7585 = vmatprep.subr.bf16.mxu1 %v9956_v21 }
 0xd45   : > { %7586 = vmatpush1.bf16.msra.mxu1 %v9954_v0 }
 0xd46   : > { %7587 = vmatprep.subr.bf16.mxu1 %v9962_v1 }
 0xdad   : > { %v9532_v5 = vpop.permute.xlu1 %9531  ;;  %v9527_v58 = vpop.permute.xlu0 %9526 }
 0xdae   : > { %v9529_v37 = vunpack.i.h.bf16 %v9527_v58  ;;  %v9528_v8 = vunpack.i.l.bf16 %v9527_v58  ;;  %v9534_v47 = vunpack.i.h.bf16 %v9532_v5  ;;  %v9533_v40 = vunpack.i.l.bf16 %v9532_v5  ;;  %v9969_v5 = vld [vmem:[%s12857_s18 + $0xe8] ss:$16 sps:$4 sm:$0xff]   ;;  %v9974_v58 = vld [vmem:[%s12857_s18 + $0x104] ss:$16 sps:$4 sm:$0xff]  }
 0xdb0   : > { %v6852_v7 = vsel %vm2603_vm2, %v6820_v56, %v9529_v37  ;;  %v6855_v6 = vsel %vm2603_vm2, %v6824_v28, %v9528_v8  ;;  %v6901_v56 = vrot.slane %v6892_v55, %v11114_v27  ;;  %v9960_v28 = vld [vmem:[%s12857_s18 + $0xc0] ss:$16 sps:$4 sm:$0xff]   ;;  %v9977_v37 = vld [vmem:[%s12857_s18 + $0x10c] ss:$16 sps:$4 sm:$0xff]  }
 0xdb1   : > { %v9537_v10 = vpop.permute.xlu1 %9536  ;;  %v6853_v12 = vsel %vm3759_vm5, %v6852_v7, %v9534_v47  ;;  %v6856_v14 = vsel %vm3759_vm5, %v6855_v6, %v9533_v40  ;;  %7588 = vmatpush1.bf16.msra.mxu1 %v9960_v28  ;;  %v9972_v8 = vld [vmem:[%s12857_s18 + $0x100] ss:$16 sps:$4 sm:$0xff]   ;;  %v9975_v47 = vld [vmem:[%s12857_s18 + $0x108] ss:$16 sps:$4 sm:$0xff]   ;;  %v9980_v40 = vld [vmem:[%s12857_s18 + $0x124] ss:$16 sps:$4 sm:$0xff]  }
 0xdb2   : > { %v9539_v31 = vunpack.i.h.bf16 %v9537_v10  ;;  %v9538_v32 = vunpack.i.l.bf16 %v9537_v10  ;;  %7589 = vmatprep.subr.bf16.mxu1 %v9968_v3  ;;  %v9983_v7 = vld [vmem:[%s12857_s18 + $0x12c] ss:$16 sps:$4 sm:$0xff]   ;;  %v9978_v6 = vld [vmem:[%s12857_s18 + $0x120] ss:$16 sps:$4 sm:$0xff]   ;;  %v9981_v10 = vld [vmem:[%s12857_s18 + $0x128] ss:$16 sps:$4 sm:$0xff]  }
 0xdb3   : > { %v9989_v55 = vld [vmem:[%s12857_s18 + $0x14c] ss:$16 sps:$4 sm:$0xff]  }
 0xdb4   : > { %v6854_v15 = vsel %vm3761_vm6, %v6853_v12, %v9539_v31  ;;  %v6857_v18 = vsel %vm3761_vm6, %v6856_v14, %v9538_v32 }
 0xdb5   : > { %v6858_v59 = vpack.c.bf16 %v6854_v15, %v6854_v15  ;;  %v6859_v39 = vpack.c.bf16 %v6857_v18, %v6857_v18  ;;  %7590 = vmatpush1.bf16.msra.mxu1 %v9966_v17 }
 0xdb6   : > { %7591 = vmatprep.subr.bf16.mxu1 %v9974_v58  ;;  %v10023_v58 = vld [vmem:[%s12859_s20 + $0x100] ss:$8 sps:$4 sm:$0xff]  }
 0xdb7   : > { %7096 = vmatprep.mubr.bf16.mxu0 %v6859_v39  ;;  %v9986_v39 = vld [vmem:[%s12857_s18 + $0x144] ss:$16 sps:$4 sm:$0xff]  }
 0xdb8   : > { %7097 = vmatmul.mubr.bf16.vlgmr.msra.gmra.mrb[56].mxu0 %v6858_v59 }
 0xdb9   : > { %7592 = vmatpush1.bf16.msra.mxu1 %v9972_v8  ;;  %v10031_v8 = vld [vmem:[%s12859_s20 + $0x114] ss:$8 sps:$4 sm:$0xff]  }
 0xdba   : > { %7593 = vmatprep.subr.bf16.mxu1 %v9980_v40  ;;  %v10029_v40 = vld [vmem:[%s12859_s20 + $0x110] ss:$8 sps:$4 sm:$0xff]  }
 0xdbd   : > { %7594 = vmatpush1.bf16.msra.mxu1 %v9978_v6  ;;  %v10037_v6 = vld [vmem:[%s12859_s20 + $0x124] ss:$8 sps:$4 sm:$0xff]  }
 0xdbe   : > { %7595 = vmatprep.subr.bf16.mxu1 %v9986_v39  ;;  %v10044_v39 = vld [vmem:[%s12859_s20 + $0x40] ss:$8 sps:$4 sm:$0xff]  }
 0xe8b   : > { %v7098_v62 = vpop.f32.mrb[56].mxu0 }
 0xe8c   : > { %v7099_v33 = vadd.f32 %v7098_v62, %v6897_v34  ;;  %v7100_v54 = vpop.f32.mrb[57].mxu0  ;;  %v9984_v34 = vld [vmem:[%s12857_s18 + $0x140] ss:$16 sps:$4 sm:$0xff]   ;;  %v9992_v62 = vld [vmem:[%s12857_s18 + $0x164] ss:$16 sps:$4 sm:$0xff]  }
 0xe8d   : > { %v7101_v36 = vadd.f32 %v7100_v54, %v6901_v56  ;;  %v7102_v57 = vpop.f32.mrb[58].mxu0  ;;  %v9987_v56 = vld [vmem:[%s12857_s18 + $0x148] ss:$16 sps:$4 sm:$0xff]   ;;  %7596 = vmatpush1.bf16.msra.mxu1 %v9984_v34  ;;  %v9990_v54 = vld [vmem:[%s12857_s18 + $0x160] ss:$16 sps:$4 sm:$0xff]  }
 0xe8e   : > { %v12271_v9 = vadd.f32 %v7099_v33, %v11774_v48  ;;  %v7103_v50 = vpop.f32.mrb[59].mxu0  ;;  %v9927_v48 = vld [vmem:[%s12857_s18 + $0x8] ss:$16 sps:$4 sm:$0xff]   ;;  %v9995_v33 = vld [vmem:[%s12857_s18 + $0x16c] ss:$16 sps:$4 sm:$0xff]   ;;  %7597 = vmatprep.subr.bf16.mxu1 %v9992_v62 }
 0xe8f   : > { %v12274_v26 = vadd.f32 %v7101_v36, %v11772_v63  ;;  %v9929_v63 = vld [vmem:[%s12857_s18 + $0xc] ss:$16 sps:$4 sm:$0xff]   ;;  %v9993_v36 = vld [vmem:[%s12857_s18 + $0x168] ss:$16 sps:$4 sm:$0xff]   ;;  %v9998_v57 = vld [vmem:[%s12857_s18 + $0x184] ss:$16 sps:$4 sm:$0xff]  }
 0xe90   : > { %7616 = vmatprep.subr.bf16.mxu0 %v9929_v63  ;;  %v9996_v50 = vld [vmem:[%s12857_s18 + $0x180] ss:$16 sps:$4 sm:$0xff]   ;;  %v10010_v63 = vld [vmem:[%s12857_s18 + $0x1c4] ss:$16 sps:$4 sm:$0xff]  }
 0xe91   : > { %v7109_v38 = vadd.f32 %v12274_v26, %v12271_v9  ;;  %7617 = vmatpush1.bf16.msra.mxu0 %v9927_v48  ;;  %7598 = vmatpush1.bf16.msra.mxu1 %v9990_v54  ;;  %v10007_v48 = vld [vmem:[%s12857_s18 + $0x1ac] ss:$16 sps:$4 sm:$0xff]   ;;  %v10050_v62 = vld [vmem:[%s12859_s20 + $0x50] ss:$8 sps:$4 sm:$0xff]  }
 0xe92   : > { %7618 = vmatprep.subr.bf16.mxu0 %v9935_v42  ;;  %7599 = vmatprep.subr.bf16.mxu1 %v9998_v57  ;;  %v10008_v42 = vld [vmem:[%s12857_s18 + $0x1c0] ss:$16 sps:$4 sm:$0xff]   ;;  %v10052_v34 = vld [vmem:[%s12859_s20 + $0x54] ss:$8 sps:$4 sm:$0xff]   ;;  %v10058_v54 = vld [vmem:[%s12859_s20 + $0x64] ss:$8 sps:$4 sm:$0xff]  }
 0xe93   : > { %7110 = vadd.xlane.f32.xlu0 %v7109_v38  ;;  %v10004_v38 = vld [vmem:[%s12857_s18 + $0x1a4] ss:$16 sps:$4 sm:$0xff]   ;;  %v10056_v57 = vld [vmem:[%s12859_s20 + $0x60] ss:$8 sps:$4 sm:$0xff]  }
 0xe95   : > { %7619 = vmatpush1.bf16.msra.mxu0 %v9933_v44  ;;  %7600 = vmatpush1.bf16.msra.mxu1 %v9996_v50  ;;  %v10016_v44 = vld [vmem:[%s12857_s18 + $0x1e4] ss:$16 sps:$4 sm:$0xff]  }
 0xe96   : > { %7620 = vmatprep.subr.bf16.mxu0 %v9941_v45  ;;  %7601 = vmatprep.subr.bf16.mxu1 %v10004_v38  ;;  %v10014_v45 = vld [vmem:[%s12857_s18 + $0x1e0] ss:$16 sps:$4 sm:$0xff]   ;;  %v10064_v50 = vld [vmem:[%s12859_s20 + $0x74] ss:$8 sps:$4 sm:$0xff]  }
 0xe97   : > { %v10062_v38 = vld [vmem:[%s12859_s20 + $0x70] ss:$8 sps:$4 sm:$0xff]  }
 0xe99   : > { %7621 = vmatpush1.bf16.msra.mxu0 %v9939_v22  ;;  %7602 = vmatpush1.bf16.msra.mxu1 %v10002_v41  ;;  %v10022_v22 = vld [vmem:[%s12859_s20 + $0x4] ss:$8 sps:$4 sm:$0xff]   ;;  %v10065_v41 = vld [vmem:[%s12859_s20 + $0x170] ss:$8 sps:$4 sm:$0xff]  }
 0xe9a   : > { %7622 = vmatprep.subr.bf16.mxu0 %v9947_v49  ;;  %7603 = vmatprep.subr.bf16.mxu1 %v10010_v63  ;;  %v10068_v63 = vld [vmem:[%s12859_s20 + $0x80] ss:$8 sps:$4 sm:$0xff]  }
 0xe9d   : > { %7623 = vmatpush1.bf16.msra.mxu0 %v9945_v51  ;;  %7604 = vmatpush1.bf16.msra.mxu1 %v10008_v42  ;;  %v10076_v42 = vld [vmem:[%s12859_s20 + $0x94] ss:$8 sps:$4 sm:$0xff]  }
 0xe9e   : > { %7624 = vmatprep.subr.bf16.mxu0 %v9953_v20  ;;  %7605 = vmatprep.subr.bf16.mxu1 %v10016_v44  ;;  %v7108_v20 = vld [vmem:[%s12856_s17] sm:$0x3]  ;;  %v10074_v44 = vld [vmem:[%s12859_s20 + $0x90] ss:$8 sps:$4 sm:$0xff]  }
 0xe9f   : > { %v7146_v1 = vrot.slane %v7108_v20, %v11114_v27 }
 0xea1   : > { %7625 = vmatpush1.bf16.msra.mxu0 %v9951_v53  ;;  %7606 = vmatpush1.bf16.msra.mxu1 %v10014_v45  ;;  %v7133_v53 = vrot.slane %v7107_v52, %v11114_v27  ;;  %v10082_v45 = vld [vmem:[%s12859_s20 + $0xa4] ss:$8 sps:$4 sm:$0xff]   ;;  %v10089_v52 = vld [vmem:[%s12859_s20 + $0x1b0] ss:$8 sps:$4 sm:$0xff]  }
 0xea2   : > { %7626 = vmatprep.subr.bf16.mxu0 %v9959_v4  ;;  %8061 = vmatprep.subr.bf16.mxu1 %v10022_v22  ;;  %v10080_v22 = vld [vmem:[%s12859_s20 + $0xa0] ss:$8 sps:$4 sm:$0xff]  }
 0xea5   : > { %7627 = vmatpush1.bf16.msra.mxu0 %v9957_v30  ;;  %v7142_v30 = vrot.slane %v7108_v20, %v11092_v13  ;;  %v10094_v20 = vld [vmem:[%s12859_s20 + $0xc4] ss:$8 sps:$4 sm:$0xff]  }
 0xea6   : > { %7628 = vmatprep.subr.bf16.mxu0 %v9965_v24 }
 0xea9   : > { %7629 = vmatpush1.bf16.msra.mxu0 %v9963_v19 }
 0xeaa   : > { %7630 = vmatprep.subr.bf16.mxu0 %v9971_v16 }
 0xead   : > { %7631 = vmatpush1.bf16.msra.mxu0 %v9969_v5  ;;  %v10020_v5 = vld [vmem:[%s12859_s20] ss:$8 sps:$4 sm:$0xff]  }
 0xeae   : > { %7632 = vmatprep.subr.bf16.mxu0 %v9977_v37  ;;  %v10028_v37 = vld [vmem:[%s12859_s20 + $0x14] ss:$8 sps:$4 sm:$0xff]  }
 0xeb1   : > { %7633 = vmatpush1.bf16.msra.mxu0 %v9975_v47  ;;  %v10026_v47 = vld [vmem:[%s12859_s20 + $0x10] ss:$8 sps:$4 sm:$0xff]  }
 0xeb2   : > { %7634 = vmatprep.subr.bf16.mxu0 %v9983_v7  ;;  %v10034_v7 = vld [vmem:[%s12859_s20 + $0x24] ss:$8 sps:$4 sm:$0xff]  }
 0xeb5   : > { %7635 = vmatpush1.bf16.msra.mxu0 %v9981_v10  ;;  %v10032_v10 = vld [vmem:[%s12859_s20 + $0x20] ss:$8 sps:$4 sm:$0xff]  }
 0xeb6   : > { %7636 = vmatprep.subr.bf16.mxu0 %v9989_v55  ;;  %v10047_v55 = vld [vmem:[%s12859_s20 + $0x140] ss:$8 sps:$4 sm:$0xff]  }
 0xeb9   : > { %7637 = vmatpush1.bf16.msra.mxu0 %v9987_v56  ;;  %v10055_v56 = vld [vmem:[%s12859_s20 + $0x154] ss:$8 sps:$4 sm:$0xff]  }
 0xeba   : > { %7638 = vmatprep.subr.bf16.mxu0 %v9995_v33  ;;  %v10053_v33 = vld [vmem:[%s12859_s20 + $0x150] ss:$8 sps:$4 sm:$0xff]  }
 0xebd   : > { %7639 = vmatpush1.bf16.msra.mxu0 %v9993_v36  ;;  %v10061_v36 = vld [vmem:[%s12859_s20 + $0x164] ss:$8 sps:$4 sm:$0xff]  }
 0xf20   : > { %v7111_v31 = vpop.xlane.xlu0 %7110 }
 0xf21   : > { %v7112_v32 = vmul.f32 0.00390625, %v7111_v31  ;;  %v10035_v31 = vld [vmem:[%s12859_s20 + $0x120] ss:$8 sps:$4 sm:$0xff]  }
 0xf23   : > { %v12399_v12 = vsub.f32 %v12271_v9, %v7112_v32  ;;  %v12402_v14 = vsub.f32 %v12274_v26, %v7112_v32  ;;  %v10001_v9 = vld [vmem:[%s12857_s18 + $0x18c] ss:$16 sps:$4 sm:$0xff]   ;;  %v9999_v26 = vld [vmem:[%s12857_s18 + $0x188] ss:$16 sps:$4 sm:$0xff]  }
 0xf24   : > { %7640 = vmatprep.subr.bf16.mxu0 %v10001_v9  ;;  %v10040_v32 = vld [vmem:[%s12859_s20 + $0x34] ss:$8 sps:$4 sm:$0xff]   ;;  %v10059_v9 = vld [vmem:[%s12859_s20 + $0x160] ss:$8 sps:$4 sm:$0xff]  }
 0xf25   : > { %v7115_v15 = vmul.f32 %v12399_v12, %v12399_v12  ;;  %v7116_v18 = vmul.f32 %v12402_v14, %v12402_v14  ;;  %7641 = vmatpush1.bf16.msra.mxu0 %v9999_v26  ;;  %v10067_v26 = vld [vmem:[%s12859_s20 + $0x174] ss:$8 sps:$4 sm:$0xff]  }
 0xf26   : > { %7642 = vmatprep.subr.bf16.mxu0 %v10007_v48  ;;  %v10073_v48 = vld [vmem:[%s12859_s20 + $0x184] ss:$8 sps:$4 sm:$0xff]  }
 0xf27   : > { %v7117_v59 = vadd.f32 %v7116_v18, %v7115_v15  ;;  %v10041_v15 = vld [vmem:[%s12859_s20 + $0x130] ss:$8 sps:$4 sm:$0xff]   ;;  %v10046_v18 = vld [vmem:[%s12859_s20 + $0x44] ss:$8 sps:$4 sm:$0xff]  }
 0xf29   : > { %7118 = vadd.xlane.f32.xlu1 %v7117_v59  ;;  %7643 = vmatpush1.bf16.msra.mxu0 %v10005_v43  ;;  %v10049_v59 = vld [vmem:[%s12859_s20 + $0x144] ss:$8 sps:$4 sm:$0xff]  }
 0xf2a   : > { %7644 = vmatprep.subr.bf16.mxu0 %v10013_v46  ;;  %v10070_v43 = vld [vmem:[%s12859_s20 + $0x84] ss:$8 sps:$4 sm:$0xff]   ;;  %v10071_v46 = vld [vmem:[%s12859_s20 + $0x180] ss:$8 sps:$4 sm:$0xff]  }
 0xf2d   : > { %7645 = vmatpush1.bf16.msra.mxu0 %v10011_v2  ;;  %v10079_v2 = vld [vmem:[%s12859_s20 + $0x194] ss:$8 sps:$4 sm:$0xff]  }
 0xf2e   : > { %7646 = vmatprep.subr.bf16.mxu0 %v10019_v23  ;;  %v10077_v23 = vld [vmem:[%s12859_s20 + $0x190] ss:$8 sps:$4 sm:$0xff]  }
 0xf31   : > { %7647 = vmatpush1.bf16.msra.mxu0 %v10017_v60  ;;  %v10085_v60 = vld [vmem:[%s12859_s20 + $0x1a4] ss:$8 sps:$4 sm:$0xff]  }
 0xf32   : > { %8102 = vmatprep.subr.bf16.mxu0 %v10025_v61  ;;  %v10083_v61 = vld [vmem:[%s12859_s20 + $0x1a0] ss:$8 sps:$4 sm:$0xff]  }
 0xfb6   : > { %v7119_v49 = vpop.xlane.xlu1 %7118 }
 0xfb7   : > { %v7120_v29 = vmul.f32 0.00390625, %v7119_v49  ;;  %v10088_v49 = vld [vmem:[%s12859_s20 + $0xb4] ss:$8 sps:$4 sm:$0xff]  }
 0xfb9   : > { %v7121_v51 = vadd.f32 1e-05, %v7120_v29  ;;  %v10091_v29 = vld [vmem:[%s12859_s20 + $0x1b4] ss:$8 sps:$4 sm:$0xff]  }
 0xfbb   : > { %10198 = vrsqrt.f32 %v7121_v51  ;;  %v10086_v51 = vld [vmem:[%s12859_s20 + $0xb0] ss:$8 sps:$4 sm:$0xff]  }
 0xfc5   : > { %v10199_v21 = vpop.eup %10198 }
 0xfc6   : > { %v7123_v4 = vmul.f32 %v10199_v21, %v12399_v12  ;;  %v7124_v0 = vmul.f32 %v10199_v21, %v12402_v14  ;;  %v10043_v12 = vld [vmem:[%s12859_s20 + $0x134] ss:$8 sps:$4 sm:$0xff]   ;;  %v10038_v14 = vld [vmem:[%s12859_s20 + $0x30] ss:$8 sps:$4 sm:$0xff]   ;;  %v10095_v21 = vld [vmem:[%s12859_s20 + $0x1c0] ss:$8 sps:$4 sm:$0xff]  }
 0xfc8   : > { %v7137_v24 = vmul.f32 %v7133_v53, %v7124_v0  ;;  %v7136_v28 = vmul.f32 %v7129_v35, %v7123_v4  ;;  %v10097_v35 = vld [vmem:[%s12859_s20 + $0x1c4] ss:$8 sps:$4 sm:$0xff]   ;;  %v10092_v53 = vld [vmem:[%s12859_s20 + $0xc0] ss:$8 sps:$4 sm:$0xff]   ;;  %v10100_v4 = vld [vmem:[%s12859_s20 + $0xd4] ss:$8 sps:$4 sm:$0xff]  }
 0xfc9   : > { %v10103_v0 = vld [vmem:[%s12859_s20 + $0x1d4] ss:$8 sps:$4 sm:$0xff]  }
 0xfca   : > { %v12498_v19 = vadd.f32 %v7146_v1, %v7137_v24  ;;  %v12500_v3 = vadd.f32 %v7142_v30, %v7136_v28  ;;  %v10098_v30 = vld [vmem:[%s12859_s20 + $0xd0] ss:$8 sps:$4 sm:$0xff]   ;;  %v10104_v24 = vld [vmem:[%s12859_s20 + $0xe0] ss:$8 sps:$4 sm:$0xff]   ;;  %v10106_v28 = vld [vmem:[%s12859_s20 + $0xe4] ss:$8 sps:$4 sm:$0xff]  }
 0xfcb   : > { %v10101_v1 = vld [vmem:[%s12859_s20 + $0x1d0] ss:$8 sps:$4 sm:$0xff]  }
 0xfcc   : > { %v7168_v16 = vpack.c.bf16 %v12498_v19, %v12498_v19  ;;  %v7167_v17 = vpack.c.bf16 %v12500_v3, %v12500_v3 }
 0xfce   : > { %7607 = vmatprep.mubr.bf16.mxu1 %v7168_v16  ;;  %7648 = vmatprep.mubr.bf16.mxu0 %v7168_v16  ;;  %v10107_v16 = vld [vmem:[%s12859_s20 + $0x1e0] ss:$8 sps:$4 sm:$0xff]  }
 0xfcf   : > { %7608 = vmatmul.mubr.bf16.vlgmr.msra.gmra.mrb[100].mxu1 %v7167_v17  ;;  %7649 = vmatmul.mubr.bf16.vlgmr.msra.gmra.mrb[60].mxu0 %v7167_v17  ;;  %v10109_v17 = vld [vmem:[%s12859_s20 + $0x1e4] ss:$8 sps:$4 sm:$0xff]  }
 0xfd0   : > { %8062 = vmatpush1.bf16.msra.mxu1 %v10020_v5  ;;  %8103 = vmatpush1.bf16.msra.mxu0 %v10023_v58  ;;  %v10112_v5 = vld [vmem:[%s12859_s20 + $0xf4] ss:$8 sps:$4 sm:$0xff]  }
 0xfd1   : > { %8063 = vmatprep.subr.bf16.mxu1 %v10028_v37  ;;  %8104 = vmatprep.subr.bf16.mxu0 %v10031_v8  ;;  %v10115_v58 = vld [vmem:[%s12859_s20 + $0x1f4] ss:$8 sps:$4 sm:$0xff]   ;;  %v10110_v37 = vld [vmem:[%s12859_s20 + $0xf0] ss:$8 sps:$4 sm:$0xff]  }
 0xfd2   : > { %v10113_v8 = vld [vmem:[%s12859_s20 + $0x1f0] ss:$8 sps:$4 sm:$0xff]  }
 0xfd4   : > { %8064 = vmatpush1.bf16.msra.mxu1 %v10026_v47  ;;  %8105 = vmatpush1.bf16.msra.mxu0 %v10029_v40  ;;  %v7233_v47 = vld [vmem:[%s12942_s24] sm:$0xf]  ;;  %s10372_s24 = scalar_lea.vmem %s12757_s27, 1024 }
 0xfd5   : > { %8065 = vmatprep.subr.bf16.mxu1 %v10034_v7  ;;  %8106 = vmatprep.subr.bf16.mxu0 %v10037_v6  ;;  %v7238_v40 = vrot.slane %v7233_v47, %v11092_v13  ;;  %v7246_v7 = vrot.slane %v7233_v47, %v11084_v11  ;;  %v7242_v6 = vrot.slane %v7233_v47, %v11114_v27  ;;  %p10373_p13 = scmp.ne.s32.totalorder %s12757_s27, %s10372_s24  ;;  %p10380_p10 = scmp.lt.s32.totalorder %s10378_s3, %s10372_s24 }
 0xfd7   : > { %p10374_p6 = pnand %p10373_p13, %p12947_p1  ;;  %p10381_p0 = por %p10380_p10, %p10379_p5 }
 0xfd8   : > { %8066 = vmatpush1.bf16.msra.mxu1 %v10032_v10  ;;  %8107 = vmatpush1.bf16.msra.mxu0 %v10035_v31  ;;  %v7250_v10 = vrot.slane %v7233_v47, %v11107_v25  ;;  %v10128_v47 = vld [vmem:[%s12943_s25 + $0x70] sm:$0xff]  }
 0xfd9   : > { %8067 = vmatprep.subr.bf16.mxu1 %v10040_v32  ;;  %8108 = vmatprep.subr.bf16.mxu0 %v10043_v12  ;;  %p10375_p9 = pneg %p10374_p6 }
 0xfdb   : > { %p10382_p2 = pnand %p10381_p0, %p10375_p9 }
 0xfdc   : > { %8068 = vmatpush1.bf16.msra.mxu1 %v10038_v14  ;;  %8109 = vmatpush1.bf16.msra.mxu0 %v10041_v15 }
 0xfdd   : > { %8069 = vmatprep.subr.bf16.mxu1 %v10046_v18  ;;  %8110 = vmatprep.subr.bf16.mxu0 %v10049_v59 }
 0xfe0   : > { %8070 = vmatpush1.bf16.msra.mxu1 %v10044_v39  ;;  %8111 = vmatpush1.bf16.msra.mxu0 %v10047_v55 }
 0xfe1   : > { %8071 = vmatprep.subr.bf16.mxu1 %v10052_v34  ;;  %8112 = vmatprep.subr.bf16.mxu0 %v10055_v56 }
 0xfe4   : > { %8072 = vmatpush1.bf16.msra.mxu1 %v10050_v62  ;;  %8113 = vmatpush1.bf16.msra.mxu0 %v10053_v33 }
 0xfe5   : > { %8073 = vmatprep.subr.bf16.mxu1 %v10058_v54  ;;  %8114 = vmatprep.subr.bf16.mxu0 %v10061_v36 }
 0xfe8   : > { %8074 = vmatpush1.bf16.msra.mxu1 %v10056_v57  ;;  %8115 = vmatpush1.bf16.msra.mxu0 %v10059_v9 }
 0xfe9   : > { %8075 = vmatprep.subr.bf16.mxu1 %v10064_v50  ;;  %8116 = vmatprep.subr.bf16.mxu0 %v10067_v26  ;;  %v7729_v26 = vld [vmem:[#allocation8] sm:$0x3] }
 0xfec   : > { %8076 = vmatpush1.bf16.msra.mxu1 %v10062_v38  ;;  %8117 = vmatpush1.bf16.msra.mxu0 %v10065_v41  ;;  %v7734_v38 = vrot.slane %v7729_v26, %v11092_v13  ;;  %v7738_v41 = vrot.slane %v7729_v26, %v11114_v27 }
 0xfed   : > { %8077 = vmatprep.subr.bf16.mxu1 %v10070_v43  ;;  %8118 = vmatprep.subr.bf16.mxu0 %v10073_v48 }
 0xff0   : > { %8078 = vmatpush1.bf16.msra.mxu1 %v10068_v63  ;;  %8119 = vmatpush1.bf16.msra.mxu0 %v10071_v46 }
 0xff1   : > { %8079 = vmatprep.subr.bf16.mxu1 %v10076_v42  ;;  %8120 = vmatprep.subr.bf16.mxu0 %v10079_v2 }
 0xff4   : > { %8080 = vmatpush1.bf16.msra.mxu1 %v10074_v44  ;;  %8121 = vmatpush1.bf16.msra.mxu0 %v10077_v23 }
 0xff5   : > { %8081 = vmatprep.subr.bf16.mxu1 %v10082_v45  ;;  %8122 = vmatprep.subr.bf16.mxu0 %v10085_v60 }
 0xff8   : > { %8082 = vmatpush1.bf16.msra.mxu1 %v10080_v22  ;;  %8123 = vmatpush1.bf16.msra.mxu0 %v10083_v61 }
 0xff9   : > { %8083 = vmatprep.subr.bf16.mxu1 %v10088_v49  ;;  %8124 = vmatprep.subr.bf16.mxu0 %v10091_v29 }
 0xffc   : > { %8084 = vmatpush1.bf16.msra.mxu1 %v10086_v51  ;;  %8125 = vmatpush1.bf16.msra.mxu0 %v10089_v52  ;;  %v10116_v52 = vld [vmem:[%s12943_s25 + $0x40] sm:$0xff]  }
 0xffd   : > { %8085 = vmatprep.subr.bf16.mxu1 %v10094_v20  ;;  %8126 = vmatprep.subr.bf16.mxu0 %v10097_v35  ;;  %v10117_v20 = vld [vmem:[%s12943_s25] sm:$0xff]   ;;  %v10118_v35 = vld [vmem:[%s12943_s25 + $0x48] sm:$0xff]  }
0x1000   : > { %8086 = vmatpush1.bf16.msra.mxu1 %v10092_v53  ;;  %8127 = vmatpush1.bf16.msra.mxu0 %v10095_v21 }
0x1001   : > { %8087 = vmatprep.subr.bf16.mxu1 %v10100_v4  ;;  %8128 = vmatprep.subr.bf16.mxu0 %v10103_v0 }
0x1004   : > { %8088 = vmatpush1.bf16.msra.mxu1 %v10098_v30  ;;  %8129 = vmatpush1.bf16.msra.mxu0 %v10101_v1 }
0x1005   : > { %8089 = vmatprep.subr.bf16.mxu1 %v10106_v28  ;;  %8130 = vmatprep.subr.bf16.mxu0 %v10109_v17  ;;  %v10121_v28 = vld [vmem:[%s12943_s25 + $0x10] sm:$0xff]   ;;  %v10123_v17 = vld [vmem:[%s12943_s25 + $0x18] sm:$0xff]  }
0x1008   : > { %8090 = vmatpush1.bf16.msra.mxu1 %v10104_v24  ;;  %8131 = vmatpush1.bf16.msra.mxu0 %v10107_v16  ;;  %v10120_v24 = vld [vmem:[%s12943_s25 + $0x50] sm:$0xff]   ;;  %v10122_v16 = vld [vmem:[%s12943_s25 + $0x58] sm:$0xff]  }
0x1009   : > { %8091 = vmatprep.subr.bf16.mxu1 %v10112_v5  ;;  %8132 = vmatprep.subr.bf16.mxu0 %v10115_v58  ;;  %v10124_v5 = vld [vmem:[%s12943_s25 + $0x60] sm:$0xff]  }
0x100a   : > { %v10125_v58 = vld [vmem:[%s12943_s25 + $0x20] sm:$0xff]  }
0x100c   : > { %8092 = vmatpush1.bf16.msra.mxu1 %v10110_v37  ;;  %8133 = vmatpush1.bf16.msra.mxu0 %v10113_v8  ;;  %v10126_v37 = vld [vmem:[%s12943_s25 + $0x68] sm:$0xff]  }
0x100d   : > { %9180 = vmatprep.subr.bf16.mxu1 %v10116_v52  ;;  %v10127_v8 = vld [vmem:[%s12943_s25 + $0x28] sm:$0xff]  }
0x10a2   : > { %v7609_v31 = vpop.f32.mrb[100].mxu1  ;;  %v7650_v32 = vpop.f32.mrb[60].mxu0 }
0x10a3   : > { %v7610_v12 = vadd.f32 %v7609_v31, %v7238_v40  ;;  %v7651_v14 = vadd.f32 %v7650_v32, %v7246_v7  ;;  %v7611_v15 = vpop.f32.mrb[101].mxu1  ;;  %v7652_v18 = vpop.f32.mrb[61].mxu0  ;;  %v10129_v40 = vld [vmem:[%s12943_s25 + $0x30] sm:$0xff]   ;;  %v10130_v7 = vld [vmem:[%s12943_s25 + $0x78] sm:$0xff]  }
0x10a4   : > { %v7612_v59 = vadd.f32 %v7611_v15, %v7242_v6  ;;  %v7653_v39 = vadd.f32 %v7652_v18, %v7250_v10  ;;  %v7613_v55 = vpop.f32.mrb[102].mxu1  ;;  %v7654_v34 = vpop.f32.mrb[62].mxu0  ;;  %v10131_v6 = vld [vmem:[%s12943_s25 + $0x38] sm:$0xff]  }
0x10a5   : > { %v7657_v56 = vmax.f32 %v7610_v12, 0.0  ;;  %v7659_v62 = vmax.f32 %v7651_v14, 0.0  ;;  %v7614_v33 = vpop.f32.mrb[103].mxu1  ;;  %v7655_v54 = vpop.f32.mrb[63].mxu0  ;;  %v8145_v12 = vld [vmem:[#allocation10] sm:$0x3] }
0x10a6   : > { %v7658_v36 = vmax.f32 %v7612_v59, 0.0  ;;  %v7660_v11 = vmax.f32 %v7653_v39, 0.0  ;;  %v8146_v14 = vld [vmem:[#allocation11] sm:$0x3]  ;;  %v8167_v15 = vrot.slane %v8145_v12, %v11092_v13  ;;  %v8171_v18 = vrot.slane %v8145_v12, %v11114_v27 }
0x10a7   : > { %v7661_v50 = vpack.c.bf16 %v7657_v56, %v7657_v56  ;;  %v7663_v25 = vpack.c.bf16 %v7659_v62, %v7659_v62  ;;  %v8180_v34 = vrot.slane %v8146_v14, %v11092_v13  ;;  %v8184_v56 = vrot.slane %v8146_v14, %v11114_v27 }
0x10a8   : > { %v7662_v57 = vpack.c.bf16 %v7658_v36, %v7658_v36  ;;  %v7664_v9 = vpack.c.bf16 %v7660_v11, %v7660_v11 }
0x10aa   : > { %8093 = vmatprep.mubr.bf16.mxu1 %v7662_v57  ;;  %8134 = vmatprep.mubr.bf16.mxu0 %v7664_v9 }
0x10ab   : > { %8094 = vmatmul.mubr.bf16.vlgmr.msra.gmra.mrb[104].mxu1 %v7661_v50  ;;  %8135 = vmatmul.mubr.bf16.vlgmr.msra.gmra.mrb[64].mxu0 %v7663_v25 }
0x10ac   : > { %9181 = vmatpush3.bf16.msra.mxu1 %v10117_v20 }
0x10ad   : > { %9182 = vmatprep.subr.bf16.mxu1 %v10118_v35 }
0x117e   : > { %v8095_v43 = vpop.f32.mrb[104].mxu1  ;;  %v8136_v48 = vpop.f32.mrb[64].mxu0 }
0x117f   : > { %v8096_v63 = vadd.f32 %v8095_v43, %v7734_v38  ;;  %v8097_v46 = vpop.f32.mrb[105].mxu1  ;;  %v8138_v42 = vpop.f32.mrb[65].mxu0 }
0x1180   : > { %v8098_v2 = vadd.f32 %v8097_v46, %v7738_v41  ;;  %v8099_v44 = vpop.f32.mrb[106].mxu1  ;;  %v8140_v23 = vpop.f32.mrb[66].mxu0 }
0x1181   : > { %v8137_v45 = vadd.f32 %v8136_v48, %v8096_v63  ;;  %v8100_v60 = vpop.f32.mrb[107].mxu1  ;;  %v8141_v22 = vpop.f32.mrb[67].mxu0 }
0x1182   : > { %v8139_v61 = vadd.f32 %v8138_v42, %v8098_v2 }
0x1183   : > { %v8143_v49 = vadd.f32 %v8137_v45, %v12500_v3 }
0x1184   : > { %v8144_v29 = vadd.f32 %v8139_v61, %v12498_v19  ;;  %v10119_v19 = vld [vmem:[%s12943_s25 + $0x8] sm:$0xff]  }
0x1185   : > { %9183 = vmatpush3.bf16.msra.mxu1 %v10119_v19 }
0x1186   : > { %v8147_v51 = vadd.f32 %v8144_v29, %v8143_v49  ;;  %9184 = vmatprep.subr.bf16.mxu1 %v10120_v24 }
0x1188   : > { %8148 = vadd.xlane.f32.xlu0 %v8147_v51 }
0x1189   : > { %9185 = vmatpush3.bf16.msra.mxu1 %v10121_v28 }
0x118a   : > { %9186 = vmatprep.subr.bf16.mxu1 %v10122_v16 }
0x118d   : > { %9187 = vmatpush3.bf16.msra.mxu1 %v10123_v17 }
0x118e   : > { %9188 = vmatprep.subr.bf16.mxu1 %v10124_v5 }
0x1191   : > { %9189 = vmatpush3.bf16.msra.mxu1 %v10125_v58 }
0x1192   : > { %9190 = vmatprep.subr.bf16.mxu1 %v10126_v37 }
0x1195   : > { %9191 = vmatpush3.bf16.msra.mxu1 %v10127_v8 }
0x1196   : > { %9192 = vmatprep.subr.bf16.mxu1 %v10128_v47 }
0x1199   : > { %9193 = vmatpush3.bf16.msra.mxu1 %v10129_v40 }
0x119a   : > { %9194 = vmatprep.subr.bf16.mxu1 %v10130_v7 }
0x119d   : > { %9195 = vmatpush3.bf16.msra.mxu1 %v10131_v6 }
0x1215   : > { %v8149_v3 = vpop.xlane.xlu0 %8148 }
0x1216   : > { %v8150_v53 = vmul.f32 0.00390625, %v8149_v3 }
0x1218   : > { %v8151_v21 = vsub.f32 %v8143_v49, %v8150_v53  ;;  %v8152_v4 = vsub.f32 %v8144_v29, %v8150_v53 }
0x121a   : > { %v8153_v0 = vmul.f32 %v8151_v21, %v8151_v21  ;;  %v8154_v30 = vmul.f32 %v8152_v4, %v8152_v4 }
0x121c   : > { %v8155_v1 = vadd.f32 %v8154_v30, %v8153_v0 }
0x121e   : > { %8156 = vadd.xlane.f32.xlu0 %v8155_v1 }
0x12ab   : > { %v8157_v10 = vpop.xlane.xlu0 %8156 }
0x12ac   : > { %v8158_v31 = vmul.f32 0.00390625, %v8157_v10 }
0x12ae   : > { %v8159_v32 = vadd.f32 1e-05, %v8158_v31 }
0x12b0   : > { %10200 = vrsqrt.f32 %v8159_v32 }
0x12ba   : > { %v10201_v59 = vpop.eup %10200 }
0x12bb   : > { %v8161_v39 = vmul.f32 %v10201_v59, %v8151_v21  ;;  %v8162_v55 = vmul.f32 %v10201_v59, %v8152_v4 }
0x12bd   : > { %v8175_v62 = vmul.f32 %v8171_v18, %v8162_v55  ;;  %v8174_v33 = vmul.f32 %v8167_v15, %v8161_v39 }
0x12bf   : > { %v8188_v54 = vadd.f32 %v8184_v56, %v8175_v62  ;;  %v8187_v36 = vadd.f32 %v8180_v34, %v8174_v33 }
0x12c1   : > { %v8190_v11 = vpack.c.bf16 %v8188_v54, %v8188_v54  ;;  %v8189_v57 = vpack.c.bf16 %v8187_v36, %v8187_v36 }
0x12c3   : > { %8358 = vmatprep.mubr.bf16.mxu1 %v8190_v11 }
0x12c4   : > { %8359 = vmatmul.mubr.bf16.vlgmr.msra.gmra.mrb[108].mxu1 %v8189_v57 }
0x12c5   : > { %10385 = shalt.err (!%p10382_p2)
}
0x12c6   : > { %s10386_s26 = scalar_lea.hbm %s12762_s28, 1024  ;;  %s10390_s7 = scalar_lea.hbm %s12946_s21, 2048 }
0x12c7   : > { %p10387_p3 = scmp.ne.s32.totalorder %s12762_s28, %s10386_s26  ;;  %p10391_p7 = scmp.lt.u32.totalorder %s12762_s28, %s12946_s21 }
0x12c8   : > { %p10392_p8 = scmp.lt.u32.totalorder %s10390_s7, %s10386_s26  ;;  %p10394_p13 = scmp.lt.u32.totalorder %s10386_s26, %s12762_s28 }
0x12c9   : > { %p10388_p4 = pnand %p10387_p3, %p12947_p1 }
0x12ca   : > { %p10393_p11 = por %p10392_p8, %p10391_p7 }
0x12cb   : > { %p10389_p12 = pneg %p10388_p4 }
0x12cc   : > { %p10395_p6 = por %p10394_p13, %p10393_p11 }
0x12ce   : > { %p10396_p9 = pnand %p10395_p6, %p10389_p12 }
0x12d0   : > { %10399 = shalt.err (!%p10396_p9)
}
0x12d1   : > { %s10500_s24 = smov 128   ;;  %s10501_s29 = smov 8  }
0x12d2   : > { %9419 = dma.vmem_to_hbm [thread:$0]  (%p12947_p1), %s12757_s27, 1024, %s12762_s28, %s8373_s1, %s10500_s24, %s10500_s24, %s10501_s29  }
0x12d3   : > { %s8599_s2 = sshll.u32 %s12119_s10, 3  ;;  %s12948_s26 = sld [smem:[#allocation45_spill]] }
0x12d4   : > { %s9108_s11 = sshll.u32 %s10664_s9, 7  ;;  %s934_s7 = scalar_lea.vmem [#allocation13], %s8599_s2 }
0x12d5   : > { %s8386_s30 = sshll.u32 %s934_s7, 4  ;;  %s12949_s6 = sld [smem:[#allocation46_spill]]  ;;  %s12798_s30 = int_to_ptr.vmem [resolvable:$true] %s8386_s30 }
0x12d6   : > { %s8368_s27 = scalar_lea.sflag [#allocation4], %s12119_s10  ;;  %s10400_s28 = scalar_lea.vmem %s12798_s30, 128 }
0x12d7   : > { %p10401_p5 = scmp.ne.s32.totalorder %s12798_s30, %s10400_s28  ;;  %s10502_s9 = smov [#allocation13]  }
0x12d8   : > { %s10404_s1 = sshll.u32 %s10502_s9, 4  ;;  %s10405_s1 = int_to_ptr.vmem [resolvable:$false] %s10404_s1 }
0x12d9   : > { %v9089_v27 = vld [vmem:[%s12948_s26] ss:$0 sm:$0xff]  ;;  %p10402_p10 = pnand %p10401_p5, %p12947_p1  ;;  %s10406_s24 = scalar_lea.vmem %s10405_s1, 256 }
0x12da   : > { %p10407_p2 = scmp.lt.s32.totalorder %s12798_s30, %s10405_s1  ;;  %p10408_p3 = scmp.lt.s32.totalorder %s10406_s24, %s10400_s28 }
0x12db   : > { %s12796_s12 = scalar_lea.hbm %s12949_s6, %s9108_s11  ;;  %p10403_p0 = pneg %p10402_p10 }
0x12dc   : > { %p10409_p4 = por %p10408_p3, %p10407_p2 }
0x12de   : > { %p10410_p12 = pnand %p10409_p4, %p10403_p0 }
0x1397   : > { %v9196_v13 = vpop.f32.mrb[108].mxu1 }
0x1398   : > { %v9197_v9 = vpop.f32.mrb[109].mxu1 }
0x1399   : > { %v9198_v50 = vadd.f32 %v9197_v9, %v9196_v13  ;;  %v9199_v25 = vpop.f32.mrb[110].mxu1 }
0x139a   : > { %v9200_v26 = vpop.f32.mrb[111].mxu1 }
0x139b   : > { %v8361_v38 = vadd.f32 %v9198_v50, %v9089_v27 }
0x139d   : > { %8366 = vst [vmem:[%s934_s7] sm:$0xff] %v8361_v38 }
0x139e   : > { %10413 = shalt.err (!%p10410_p12)
}
0x139f   : > { %s10414_s5 = scalar_lea.hbm %s12796_s12, 128  ;;  %s10418_s2 = scalar_lea.hbm %s12949_s6, 256 }
0x13a0   : > { %p10415_p7 = scmp.ne.s32.totalorder %s12796_s12, %s10414_s5  ;;  %p10419_p13 = scmp.lt.u32.totalorder %s12796_s12, %s12949_s6 }
0x13a1   : > { %p10420_p6 = scmp.lt.u32.totalorder %s10418_s2, %s10414_s5  ;;  %p10422_p5 = scmp.lt.u32.totalorder %s10414_s5, %s12796_s12 }
0x13a2   : > { %p10416_p8 = pnand %p10415_p7, %p12947_p1 }
0x13a3   : > { %p10421_p9 = por %p10420_p6, %p10419_p13 }
0x13a4   : > { %p10417_p11 = pneg %p10416_p8 }
0x13a5   : > { %p10423_p10 = por %p10422_p5, %p10421_p9 }
0x13a7   : > { %p10424_p0 = pnand %p10423_p10, %p10417_p11 }
0x13a9   : > { %10427 = shalt.err (!%p10424_p0)
}
0x13aa   : > { %9418 = dma.vmem_to_hbm [thread:$0]  (%p12947_p1), %s12798_s30, 128, %s12796_s12, %s8368_s27  }
0x13ab PF: > { %s12950_s26 = sld [smem:[#allocation24_spill]]  ;;  %s12951_s11 = sld [smem:[#allocation22_spill]] }
0x13ac   : > { %s12952_s7 = sld [smem:[#allocation28_spill]] }
0x13b1   : > { %p9460_p2 = scmp.ge.s32.totalorder %s12950_s26, 2  ;;  %s8414_s8 = sand.u32 1, %s12951_s11  }
0x13b2   : > { %p12953_p3 = scmp.ne.s32.totalorder %s12952_s7, 0  ;;  %s8415_s28 = scalar_lea.sflag [#allocation4], %s8414_s8 }
0x13b4   : > { %p9442_p4 = pnand %p9460_p2, %p12953_p3 }
0x13b6   : > { %10461 = dma.done.wait (!%p9442_p4), %s8415_s28, 128  }
0x13b7   : > { %10463 = vsyncadd (!%p9442_p4), %s8415_s28, 4294967168  ;;  %s8424_s9 = scalar_lea.sflag [#allocation15], %s8414_s8 }
0x13b8   : > { %10465 = dma.done.wait (!%p9442_p4), %s8424_s9, 1024  }
0x13b9   : > { %10467 = vsyncadd (!%p9442_p4), %s8424_s9, 4294966272  ;;  %s12954_s30 = sld [smem:[#allocation25_spill]]  ;;  %s12955_s19 = sld [smem:[#allocation23_spill]] }
0x13ba   : > { %s12956_s8 = sld [smem:[#allocation26_spill]]  ;;  %s12957_s7 = smov %s10474_s4 }
0x13bf   : > { %p45_p1 = scmp.ge.s32.totalorder %s12954_s30, 4   ;;  %s12958_s4 = smov %s12955_s19 }
0x13c1   :  { %47 = sbr.rel (!%p45_p1) target bundleno = 29 (0x1d), region = 210 }
0x13c8   :  { %8429 = vsyncpa [#allocation3], 1 }
0x13c9   :  { %8431 = vsyncpa [#allocation3 + $0x1], 1 }
0x13ca   :  { %8432 = vsyncpa [#allocation6], 1 }
0x13cb   :  { %8433 = vsyncpa [#allocation9], 1 }
0x13cc   :  { %8434 = vsyncpa [#allocation12], 1 }
0x13cd   :  { %8435 = vsyncpa [#allocation4], 1 }
0x13ce   :  { %8437 = vsyncpa [#allocation4 + $0x1], 1 }
0x13cf   :  { %8438 = vsyncpa [#allocation15], 1 }
0x13d0   :  { %8440 = vsyncpa [#allocation15 + $0x1], 1 }

</bundles_post_ra>
